<compile_context>
chip_gen: v5e
topology: v5e:2x2
jax: 0.10.0
libtpu: 0.0.40
codegen_flags: <defaults>
</compile_context>

<pallas_src>
import numpy as np
import jax
import jax.numpy as jnp
from jax import lax
from jax.experimental import pallas as pl
from jax.experimental.pallas import tpu as pltpu

# ----------------------------- configuration --------------------------------
B_SZ   = 2
C_IN   = 64           # in_channels
C_OUT  = 32           # out_channels
H_IMG  = 16
W_IMG  = 16
HW     = H_IMG * W_IMG            # 256 -> lane-dense last dim
SPLIT  = 8            # GroupNorm groups (split_nums)
RATIO  = 8            # channel-attention reduction ratio
C_MID  = C_IN // RATIO            # 8
GN_EPS = 1e-5

# 5x5 depthwise offsets; the 3x3 taps are the |dy|<=1, |dx|<=1 subset.
_OFFSETS5 = [(dy, dx) for dy in range(-2, 3) for dx in range(-2, 3)]

# Packed small-parameter layout: one (C_IN, N_SP_COLS) f32 array -> one DMA.
COL_B1, COL_DW1W, COL_BP, COL_GNW, COL_GNB, COL_BS = 0, 1, 2, 3, 4, 5
COL_DW2, COL_DW3 = 6, 15
N_SP_COLS = COL_DW3 + 25          # 40


# ------------------------ static (numpy) index helpers -----------------------
def _build_dw_masks():
    """Validity mask per 5x5 tap over flattened output positions (25, HW)."""
    hh, ww = np.meshgrid(np.arange(H_IMG), np.arange(W_IMG), indexing="ij")
    m = np.zeros((25, HW), np.float32)
    for k, (dy, dx) in enumerate(_OFFSETS5):
        valid = ((hh + dy >= 0) & (hh + dy < H_IMG) &
                 (ww + dx >= 0) & (ww + dx < W_IMG))
        m[k] = valid.reshape(-1)
    return m


_DW_MASKS = _build_dw_masks()


def _build_sa_indices():
    """Scatter indices to build the 7x7 spatial-attention conv matrix."""
    hh, ww = np.meshgrid(np.arange(H_IMG), np.arange(W_IMG), indexing="ij")
    taps, srcs, dsts = [], [], []
    for i in range(7):
        for j in range(7):
            dy, dx = i - 3, j - 3
            sh, sw = hh + dy, ww + dx
            valid = (sh >= 0) & (sh < H_IMG) & (sw >= 0) & (sw < W_IMG)
            dsts.append((hh * W_IMG + ww)[valid].astype(np.int32))
            srcs.append((sh * W_IMG + sw)[valid].astype(np.int32))
            taps.append(np.full(dsts[-1].shape, i * 7 + j, np.int32))
    return (np.concatenate(taps), np.concatenate(srcs), np.concatenate(dsts))


_SA_TAP, _SA_SRC, _SA_DST = _build_sa_indices()


# ------------------------------ kernel helpers -------------------------------
def _silu(x):
    return x * jax.nn.sigmoid(x)


def _shift_lanes(x, s):
    """out[:, p] = x[:, (p + s) % HW]; wrapped lanes are zeroed by the masks.

    Static slice+concat (portable); on hardware this lowers to a lane rotate.
    """
    k = s % HW
    if k == 0:
        return x
    return jnp.concatenate([x[:, k:], x[:, :k]], axis=1)


# ------------------------------ fused kernel ---------------------------------
def _mscb_kernel(x_ref, w1_ref, wp_ref, wm1_ref, wm2_ref, sam_ref,
                 dwm_ref, sp_ref, out_ref):
    x0 = x_ref[0]                                       # (C_IN, HW) f32

    # ---- conv1: 1x1 conv C_IN -> C_OUT + SiLU (bf16 MXU, f32 accumulate) ----
    b1 = sp_ref[0:C_OUT, COL_B1:COL_B1 + 1]
    y = jnp.dot(w1_ref[...], x0.astype(jnp.bfloat16),
                preferred_element_type=jnp.float32)
    y = _silu(y + b1)                                   # (C_OUT, HW) f32

    # ---- depthwise 3x3 / 5x5 sharing one shifted tensor per tap -------------
    x2 = jnp.zeros((C_OUT, HW), jnp.float32)
    x3 = jnp.zeros((C_OUT, HW), jnp.float32)
    for k5, (dy, dx) in enumerate(_OFFSETS5):
        s = dy * W_IMG + dx
        if s == 0:
            mr = y                                      # mask is all ones here
        else:
            mr = _shift_lanes(y, s) * dwm_ref[k5:k5 + 1, :]
        w3k = sp_ref[0:C_OUT, COL_DW3 + k5:COL_DW3 + k5 + 1]
        x3 = x3 + w3k * mr
        if abs(dy) <= 1 and abs(dx) <= 1:
            k3 = (dy + 1) * 3 + (dx + 1)
            w2k = sp_ref[0:C_OUT, COL_DW2 + k3:COL_DW2 + k3 + 1]
            x2 = x2 + w2k * mr
    # depthwise biases are already folded into the pointwise bias (wrapper).

    # ---- pointwise 1x1 (3*C_OUT -> C_IN) + SiLU, residual, SiLU -------------
    # Interleave the dots so x2 / x3 / the dwconv1 branch are never all live.
    bp = sp_ref[:, COL_BP:COL_BP + 1]
    p = jnp.dot(wp_ref[C_IN:2 * C_IN, :], x2.astype(jnp.bfloat16),
                preferred_element_type=jnp.float32) + bp
    p = p + jnp.dot(wp_ref[2 * C_IN:3 * C_IN, :], x3.astype(jnp.bfloat16),
                    preferred_element_type=jnp.float32)
    dw1w = sp_ref[0:C_OUT, COL_DW1W:COL_DW1W + 1]
    p = p + jnp.dot(wp_ref[0:C_IN, :], (dw1w * y).astype(jnp.bfloat16),
                    preferred_element_type=jnp.float32)
    xa = _silu(_silu(p) + x0)                           # (C_IN, HW)

    # ---- CBAM channel attention (shared MLP on stacked [avg|max]) -----------
    avg_c = jnp.mean(xa, axis=1, keepdims=True)         # (C_IN, 1)
    max_c = jnp.max(xa, axis=1, keepdims=True)          # (C_IN, 1)
    cols = jnp.concatenate([avg_c, max_c], axis=1)      # (C_IN, 2)
    h = jnp.maximum(jnp.dot(wm1_ref[...], cols,
                            preferred_element_type=jnp.float32), 0.0)
    o = jnp.dot(wm2_ref[...], h, preferred_element_type=jnp.float32)
    ca = _silu(jnp.sum(o, axis=1, keepdims=True))       # (C_IN, 1)
    xc = xa * ca

    # ---- CBAM spatial attention: 7x7 conv as one banded MXU matmul ----------
    ch_avg = jnp.mean(xc, axis=0, keepdims=True)        # (1, HW)
    ch_max = jnp.max(xc, axis=0, keepdims=True)         # (1, HW)
    ch_cat = jnp.concatenate([ch_avg, ch_max], axis=1).astype(jnp.bfloat16)
    bs = sp_ref[0:1, COL_BS:COL_BS + 1]
    sa = _silu(jnp.dot(ch_cat, sam_ref[...],
                       preferred_element_type=jnp.float32) + bs)  # (1, HW)
    xs = xc * sa

    # ---- GroupNorm(SPLIT) + SiLU, one-pass stats, tile-aligned stores -------
    gc = C_IN // SPLIT
    inv_n = 1.0 / float(gc * HW)
    for g in range(SPLIT):
        lo, hi = g * gc, (g + 1) * gc
        blk = xs[lo:hi, :]                              # (8, 256) aligned
        s1 = jnp.sum(blk)
        s2 = jnp.sum(blk * blk)
        mu = s1 * inv_n
        var = s2 * inv_n - mu * mu
        inv = lax.rsqrt(var + GN_EPS)
        gw = sp_ref[lo:hi, COL_GNW:COL_GNW + 1]
        gb = sp_ref[lo:hi, COL_GNB:COL_GNB + 1]
        scale = inv * gw
        bias = gb - mu * scale
        out_ref[0, lo:hi, :] = _silu(blk * scale + bias)


# ------------------------------ wrapper ---------------------------------------
def _pack_operands(params):
    f32, bf16 = jnp.float32, jnp.bfloat16
    w1 = params["w1"].astype(bf16)                                # (C_OUT, C_IN)
    # pointwise weight split in the torch.cat((x1, x2, x3)) order, stacked on
    # the sublane axis so the kernel can take aligned row slices.
    wp_all = jnp.concatenate([params["wp1"], params["wp2"], params["wp3"]],
                             axis=0).astype(bf16)                 # (3*C_IN, C_OUT)
    wm1 = params["wm1"].astype(f32)                               # (C_MID, C_IN)
    wm2 = params["wm2"].astype(f32)                               # (C_IN, C_MID)

    # 7x7 spatial-attention conv (2 input maps, zero padding) as one banded
    # (2*HW, HW) matrix; boundary masking is baked in by construction.
    sam = jnp.zeros((2 * HW, HW), f32)
    sam = sam.at[_SA_SRC, _SA_DST].add(params["ws_a"][_SA_TAP])
    sam = sam.at[_SA_SRC + HW, _SA_DST].add(params["ws_m"][_SA_TAP])
    sam = sam.astype(bf16)

    dwm = jnp.asarray(_DW_MASKS, f32)                             # (25, HW)

    # Fold the depthwise biases through the (linear) pointwise conv.
    bp_total = (params["bp"]
                + params["wp1"] @ params["dw1_b"]
                + params["wp2"] @ params["dw2_b"]
                + params["wp3"] @ params["dw3_b"])                # (C_IN,)

    # Pack all small per-channel / scalar parameters into a single array.
    sp = jnp.zeros((C_IN, N_SP_COLS), f32)
    sp = sp.at[:C_OUT, COL_B1].set(params["b1"])
    sp = sp.at[:C_OUT, COL_DW1W].set(params["dw1_w"])
    sp = sp.at[:, COL_BP].set(bp_total)
    sp = sp.at[:, COL_GNW].set(params["gn_w"])
    sp = sp.at[:, COL_GNB].set(params["gn_b"])
    sp = sp.at[0, COL_BS].set(params["bs"])
    sp = sp.at[:C_OUT, COL_DW2:COL_DW2 + 9].set(params["dw2_w"])
    sp = sp.at[:C_OUT, COL_DW3:COL_DW3 + 25].set(params["dw3_w"])
    return w1, wp_all, wm1, wm2, sam, dwm, sp


@jax.jit
def mscb_forward(x, params):
    Bn, C, Hh, Ww = x.shape
    assert C == C_IN and Hh == H_IMG and Ww == W_IMG
    xf = x.astype(jnp.float32).reshape(Bn, C, HW)
    ops = _pack_operands(params)

    def full_spec(a):
        return pl.BlockSpec(a.shape, lambda b, nd=a.ndim: (0,) * nd)

    out = pl.pallas_call(
        _mscb_kernel,
        out_shape=jax.ShapeDtypeStruct((Bn, C, HW), jnp.float32),
        grid=(Bn,),
        in_specs=[pl.BlockSpec((1, C, HW), lambda b: (b, 0, 0))]
                 + [full_spec(a) for a in ops],
        out_specs=pl.BlockSpec((1, C, HW), lambda b: (b, 0, 0)),
        compiler_params=pltpu.CompilerParams(
            dimension_semantics=("parallel",)),
    )(xf, *ops)
    return out.reshape(Bn, C, Hh, Ww)


# ------------------------------ params ----------------------------------------
def init_params(key):
    ks = jax.random.split(key, 11)
    r = lambda k, s, sc: jax.random.normal(k, s, jnp.float32) * sc
    return dict(
        # conv1: Conv2d(C_IN, C_OUT, 1) + SiLU
        w1=r(ks[0], (C_OUT, C_IN), 0.15),
        b1=jnp.zeros((C_OUT,), jnp.float32),
        # dwconv1: depthwise 1x1
        dw1_w=r(ks[1], (C_OUT,), 0.3),
        dw1_b=jnp.zeros((C_OUT,), jnp.float32),
        # dwconv2: depthwise 3x3 -> [channel, i*3+j]   (torch weight.reshape(C,9))
        dw2_w=r(ks[2], (C_OUT, 9), 0.2),
        dw2_b=jnp.zeros((C_OUT,), jnp.float32),
        # dwconv3: depthwise 5x5 -> [channel, i*5+j]
        dw3_w=r(ks[3], (C_OUT, 25), 0.12),
        dw3_b=jnp.zeros((C_OUT,), jnp.float32),
        # pointwise Conv2d(3*C_OUT, C_IN, 1): W[:, :C_OUT], W[:, C_OUT:2C], W[:, 2C:]
        wp1=r(ks[4], (C_IN, C_OUT), 0.12),
        wp2=r(ks[5], (C_IN, C_OUT), 0.12),
        wp3=r(ks[6], (C_IN, C_OUT), 0.12),
        bp=jnp.zeros((C_IN,), jnp.float32),
        # channel-attention shared MLP (bias-free): W1 (C_MID,C_IN), W2 (C_IN,C_MID)
        wm1=r(ks[7], (C_MID, C_IN), 0.15),
        wm2=r(ks[8], (C_IN, C_MID), 0.15),
        # spatial-attention Conv2d(2, 1, 7, pad=3): avg-map taps, max-map taps, bias
        ws_a=r(ks[9], (49,), 0.1),
        ws_m=r(ks[10], (49,), 0.1),
        bs=jnp.zeros((), jnp.float32),
        # GroupNorm affine
        gn_w=jnp.ones((C_IN,), jnp.float32),
        gn_b=jnp.zeros((C_IN,), jnp.float32),
    )


if __name__ == "__main__":
    key = jax.random.PRNGKey(0)
    kx, kp = jax.random.split(key)
    x = jax.random.normal(kx, (B_SZ, C_IN, H_IMG, W_IMG), jnp.float32)
    params = init_params(kp)
    out = mscb_forward(x, params)
    out = jax.block_until_ready(out)
    assert out.shape == (B_SZ, C_IN, H_IMG, W_IMG)
    assert bool(jnp.all(jnp.isfinite(out)))
    print("KERNEL_OK")
</pallas_src>

<mosaic_0001>
module attributes {stable_mosaic.version = 11 : i64} {
  func.func @_mscb_kernel(%arg0: i32, %arg1: memref<1x64x256xf32, #tpu.memory_space<vmem>>, %arg2: memref<32x64xbf16, #tpu.memory_space<vmem>>, %arg3: memref<192x32xbf16, #tpu.memory_space<vmem>>, %arg4: memref<8x64xf32, #tpu.memory_space<vmem>>, %arg5: memref<64x8xf32, #tpu.memory_space<vmem>>, %arg6: memref<512x256xbf16, #tpu.memory_space<vmem>>, %arg7: memref<25x256xf32, #tpu.memory_space<vmem>>, %arg8: memref<64x40xf32, #tpu.memory_space<vmem>>, %arg9: memref<1x64x256xf32, #tpu.memory_space<vmem>>) attributes {dimension_semantics = [#tpu.dimension_semantics<parallel>], iteration_bounds = array<i64: 2>, scalar_prefetch = 0 : i64, scratch_operands = 0 : i64, tpu.core_type = #tpu.core_type<tc>, window_params = [{transform_indices = @transform_0, window_bounds = array<i64: 1, 64, 256>}, {pipeline_mode = #tpu.pipeline_mode<synchronous>, transform_indices = @transform_1, window_bounds = array<i64: 32, 64>}, {pipeline_mode = #tpu.pipeline_mode<synchronous>, transform_indices = @transform_2, window_bounds = array<i64: 192, 32>}, {pipeline_mode = #tpu.pipeline_mode<synchronous>, transform_indices = @transform_3, window_bounds = array<i64: 8, 64>}, {pipeline_mode = #tpu.pipeline_mode<synchronous>, transform_indices = @transform_4, window_bounds = array<i64: 64, 8>}, {pipeline_mode = #tpu.pipeline_mode<synchronous>, transform_indices = @transform_5, window_bounds = array<i64: 512, 256>}, {pipeline_mode = #tpu.pipeline_mode<synchronous>, transform_indices = @transform_6, window_bounds = array<i64: 25, 256>}, {pipeline_mode = #tpu.pipeline_mode<synchronous>, transform_indices = @transform_7, window_bounds = array<i64: 64, 40>}, {transform_indices = @transform_8, window_bounds = array<i64: 1, 64, 256>}]} {
    %c0 = arith.constant 0 : index
    %c0_0 = arith.constant 0 : index
    %c0_1 = arith.constant 0 : index
    %0 = vector.load %arg1[%c0, %c0_0, %c0_1] : memref<1x64x256xf32, #tpu.memory_space<vmem>>, vector<1x64x256xf32>
    %1 = vector.shape_cast %0 : vector<1x64x256xf32> to vector<64x256xf32>
    %c0_2 = arith.constant 0 : index
    %c0_3 = arith.constant 0 : index
    %2 = vector.load %arg8[%c0_2, %c0_3] : memref<64x40xf32, #tpu.memory_space<vmem>>, vector<32x1xf32>
    %c0_4 = arith.constant 0 : index
    %c0_5 = arith.constant 0 : index
    %3 = vector.load %arg2[%c0_4, %c0_5] : memref<32x64xbf16, #tpu.memory_space<vmem>>, vector<32x64xbf16>
    %4 = arith.truncf %1 : vector<64x256xf32> to vector<64x256xbf16>
    %cst = arith.constant dense<0.000000e+00> : vector<32x256xf32>
    %5 = tpu.matmul %3, %4, %cst {dimension_numbers = #tpu.dot_dimension_numbers<[1], [0], [0], [1], [0, 0, 1, 1], [], []>} : vector<32x64xbf16>, vector<64x256xbf16>, vector<32x256xf32> -> vector<32x256xf32>
    %6 = vector.broadcast %2 : vector<32x1xf32> to vector<32x256xf32>
    %7 = arith.addf %5, %6 : vector<32x256xf32>
    %8 = arith.negf %7 : vector<32x256xf32>
    %9 = math.exp %8 : vector<32x256xf32>
    %cst_6 = arith.constant 1.000000e+00 : f32
    %10 = vector.broadcast %cst_6 : f32 to vector<32x256xf32>
    %11 = arith.addf %10, %9 : vector<32x256xf32>
    %12 = arith.divf %10, %11 : vector<32x256xf32>
    %13 = arith.mulf %7, %12 : vector<32x256xf32>
    %cst_7 = arith.constant 0.000000e+00 : f32
    %14 = vector.broadcast %cst_7 : f32 to vector<32x256xf32>
    %cst_8 = arith.constant 0.000000e+00 : f32
    %15 = vector.broadcast %cst_8 : f32 to vector<32x256xf32>
    %16 = vector.extract_strided_slice %13 {offsets = [0, 222], sizes = [32, 34], strides = [1, 1]} : vector<32x256xf32> to vector<32x34xf32>
    %17 = vector.extract_strided_slice %13 {offsets = [0, 0], sizes = [32, 222], strides = [1, 1]} : vector<32x256xf32> to vector<32x222xf32>
    %18 = tpu.concatenate %16, %17 in 1 : vector<32x34xf32>, vector<32x222xf32> -> vector<32x256xf32>
    %c0_9 = arith.constant 0 : index
    %c0_10 = arith.constant 0 : index
    %19 = vector.load %arg7[%c0_9, %c0_10] : memref<25x256xf32, #tpu.memory_space<vmem>>, vector<1x256xf32>
    %20 = vector.broadcast %19 : vector<1x256xf32> to vector<32x256xf32>
    %21 = arith.mulf %18, %20 : vector<32x256xf32>
    %c0_11 = arith.constant 0 : index
    %c15 = arith.constant 15 : index
    %22 = vector.load %arg8[%c0_11, %c15] : memref<64x40xf32, #tpu.memory_space<vmem>>, vector<32x1xf32>
    %23 = vector.broadcast %22 : vector<32x1xf32> to vector<32x256xf32>
    %24 = arith.mulf %23, %21 : vector<32x256xf32>
    %25 = arith.addf %15, %24 : vector<32x256xf32>
    %26 = vector.extract_strided_slice %13 {offsets = [0, 223], sizes = [32, 33], strides = [1, 1]} : vector<32x256xf32> to vector<32x33xf32>
    %27 = vector.extract_strided_slice %13 {offsets = [0, 0], sizes = [32, 223], strides = [1, 1]} : vector<32x256xf32> to vector<32x223xf32>
    %28 = tpu.concatenate %26, %27 in 1 : vector<32x33xf32>, vector<32x223xf32> -> vector<32x256xf32>
    %c1 = arith.constant 1 : index
    %c0_12 = arith.constant 0 : index
    %29 = vector.load %arg7[%c1, %c0_12] : memref<25x256xf32, #tpu.memory_space<vmem>>, vector<1x256xf32>
    %30 = vector.broadcast %29 : vector<1x256xf32> to vector<32x256xf32>
    %31 = arith.mulf %28, %30 : vector<32x256xf32>
    %c0_13 = arith.constant 0 : index
    %c16 = arith.constant 16 : index
    %32 = vector.load %arg8[%c0_13, %c16] : memref<64x40xf32, #tpu.memory_space<vmem>>, vector<32x1xf32>
    %33 = vector.broadcast %32 : vector<32x1xf32> to vector<32x256xf32>
    %34 = arith.mulf %33, %31 : vector<32x256xf32>
    %35 = arith.addf %25, %34 : vector<32x256xf32>
    %36 = vector.extract_strided_slice %13 {offsets = [0, 224], sizes = [32, 32], strides = [1, 1]} : vector<32x256xf32> to vector<32x32xf32>
    %37 = vector.extract_strided_slice %13 {offsets = [0, 0], sizes = [32, 224], strides = [1, 1]} : vector<32x256xf32> to vector<32x224xf32>
    %38 = tpu.concatenate %36, %37 in 1 : vector<32x32xf32>, vector<32x224xf32> -> vector<32x256xf32>
    %c2 = arith.constant 2 : index
    %c0_14 = arith.constant 0 : index
    %39 = vector.load %arg7[%c2, %c0_14] : memref<25x256xf32, #tpu.memory_space<vmem>>, vector<1x256xf32>
    %40 = vector.broadcast %39 : vector<1x256xf32> to vector<32x256xf32>
    %41 = arith.mulf %38, %40 : vector<32x256xf32>
    %c0_15 = arith.constant 0 : index
    %c17 = arith.constant 17 : index
    %42 = vector.load %arg8[%c0_15, %c17] : memref<64x40xf32, #tpu.memory_space<vmem>>, vector<32x1xf32>
    %43 = vector.broadcast %42 : vector<32x1xf32> to vector<32x256xf32>
    %44 = arith.mulf %43, %41 : vector<32x256xf32>
    %45 = arith.addf %35, %44 : vector<32x256xf32>
    %46 = vector.extract_strided_slice %13 {offsets = [0, 225], sizes = [32, 31], strides = [1, 1]} : vector<32x256xf32> to vector<32x31xf32>
    %47 = vector.extract_strided_slice %13 {offsets = [0, 0], sizes = [32, 225], strides = [1, 1]} : vector<32x256xf32> to vector<32x225xf32>
    %48 = tpu.concatenate %46, %47 in 1 : vector<32x31xf32>, vector<32x225xf32> -> vector<32x256xf32>
    %c3 = arith.constant 3 : index
    %c0_16 = arith.constant 0 : index
    %49 = vector.load %arg7[%c3, %c0_16] : memref<25x256xf32, #tpu.memory_space<vmem>>, vector<1x256xf32>
    %50 = vector.broadcast %49 : vector<1x256xf32> to vector<32x256xf32>
    %51 = arith.mulf %48, %50 : vector<32x256xf32>
    %c0_17 = arith.constant 0 : index
    %c18 = arith.constant 18 : index
    %52 = vector.load %arg8[%c0_17, %c18] : memref<64x40xf32, #tpu.memory_space<vmem>>, vector<32x1xf32>
    %53 = vector.broadcast %52 : vector<32x1xf32> to vector<32x256xf32>
    %54 = arith.mulf %53, %51 : vector<32x256xf32>
    %55 = arith.addf %45, %54 : vector<32x256xf32>
    %56 = vector.extract_strided_slice %13 {offsets = [0, 226], sizes = [32, 30], strides = [1, 1]} : vector<32x256xf32> to vector<32x30xf32>
    %57 = vector.extract_strided_slice %13 {offsets = [0, 0], sizes = [32, 226], strides = [1, 1]} : vector<32x256xf32> to vector<32x226xf32>
    %58 = tpu.concatenate %56, %57 in 1 : vector<32x30xf32>, vector<32x226xf32> -> vector<32x256xf32>
    %c4 = arith.constant 4 : index
    %c0_18 = arith.constant 0 : index
    %59 = vector.load %arg7[%c4, %c0_18] : memref<25x256xf32, #tpu.memory_space<vmem>>, vector<1x256xf32>
    %60 = vector.broadcast %59 : vector<1x256xf32> to vector<32x256xf32>
    %61 = arith.mulf %58, %60 : vector<32x256xf32>
    %c0_19 = arith.constant 0 : index
    %c19 = arith.constant 19 : index
    %62 = vector.load %arg8[%c0_19, %c19] : memref<64x40xf32, #tpu.memory_space<vmem>>, vector<32x1xf32>
    %63 = vector.broadcast %62 : vector<32x1xf32> to vector<32x256xf32>
    %64 = arith.mulf %63, %61 : vector<32x256xf32>
    %65 = arith.addf %55, %64 : vector<32x256xf32>
    %66 = vector.extract_strided_slice %13 {offsets = [0, 238], sizes = [32, 18], strides = [1, 1]} : vector<32x256xf32> to vector<32x18xf32>
    %67 = vector.extract_strided_slice %13 {offsets = [0, 0], sizes = [32, 238], strides = [1, 1]} : vector<32x256xf32> to vector<32x238xf32>
    %68 = tpu.concatenate %66, %67 in 1 : vector<32x18xf32>, vector<32x238xf32> -> vector<32x256xf32>
    %c5 = arith.constant 5 : index
    %c0_20 = arith.constant 0 : index
    %69 = vector.load %arg7[%c5, %c0_20] : memref<25x256xf32, #tpu.memory_space<vmem>>, vector<1x256xf32>
    %70 = vector.broadcast %69 : vector<1x256xf32> to vector<32x256xf32>
    %71 = arith.mulf %68, %70 : vector<32x256xf32>
    %c0_21 = arith.constant 0 : index
    %c20 = arith.constant 20 : index
    %72 = vector.load %arg8[%c0_21, %c20] : memref<64x40xf32, #tpu.memory_space<vmem>>, vector<32x1xf32>
    %73 = vector.broadcast %72 : vector<32x1xf32> to vector<32x256xf32>
    %74 = arith.mulf %73, %71 : vector<32x256xf32>
    %75 = arith.addf %65, %74 : vector<32x256xf32>
    %76 = vector.extract_strided_slice %13 {offsets = [0, 239], sizes = [32, 17], strides = [1, 1]} : vector<32x256xf32> to vector<32x17xf32>
    %77 = vector.extract_strided_slice %13 {offsets = [0, 0], sizes = [32, 239], strides = [1, 1]} : vector<32x256xf32> to vector<32x239xf32>
    %78 = tpu.concatenate %76, %77 in 1 : vector<32x17xf32>, vector<32x239xf32> -> vector<32x256xf32>
    %c6 = arith.constant 6 : index
    %c0_22 = arith.constant 0 : index
    %79 = vector.load %arg7[%c6, %c0_22] : memref<25x256xf32, #tpu.memory_space<vmem>>, vector<1x256xf32>
    %80 = vector.broadcast %79 : vector<1x256xf32> to vector<32x256xf32>
    %81 = arith.mulf %78, %80 : vector<32x256xf32>
    %c0_23 = arith.constant 0 : index
    %c21 = arith.constant 21 : index
    %82 = vector.load %arg8[%c0_23, %c21] : memref<64x40xf32, #tpu.memory_space<vmem>>, vector<32x1xf32>
    %83 = vector.broadcast %82 : vector<32x1xf32> to vector<32x256xf32>
    %84 = arith.mulf %83, %81 : vector<32x256xf32>
    %85 = arith.addf %75, %84 : vector<32x256xf32>
    %c0_24 = arith.constant 0 : index
    %c6_25 = arith.constant 6 : index
    %86 = vector.load %arg8[%c0_24, %c6_25] : memref<64x40xf32, #tpu.memory_space<vmem>>, vector<32x1xf32>
    %87 = vector.broadcast %86 : vector<32x1xf32> to vector<32x256xf32>
    %88 = arith.mulf %87, %81 : vector<32x256xf32>
    %89 = arith.addf %14, %88 : vector<32x256xf32>
    %90 = vector.extract_strided_slice %13 {offsets = [0, 240], sizes = [32, 16], strides = [1, 1]} : vector<32x256xf32> to vector<32x16xf32>
    %91 = vector.extract_strided_slice %13 {offsets = [0, 0], sizes = [32, 240], strides = [1, 1]} : vector<32x256xf32> to vector<32x240xf32>
    %92 = tpu.concatenate %90, %91 in 1 : vector<32x16xf32>, vector<32x240xf32> -> vector<32x256xf32>
    %c7 = arith.constant 7 : index
    %c0_26 = arith.constant 0 : index
    %93 = vector.load %arg7[%c7, %c0_26] : memref<25x256xf32, #tpu.memory_space<vmem>>, vector<1x256xf32>
    %94 = vector.broadcast %93 : vector<1x256xf32> to vector<32x256xf32>
    %95 = arith.mulf %92, %94 : vector<32x256xf32>
    %c0_27 = arith.constant 0 : index
    %c22 = arith.constant 22 : index
    %96 = vector.load %arg8[%c0_27, %c22] : memref<64x40xf32, #tpu.memory_space<vmem>>, vector<32x1xf32>
    %97 = vector.broadcast %96 : vector<32x1xf32> to vector<32x256xf32>
    %98 = arith.mulf %97, %95 : vector<32x256xf32>
    %99 = arith.addf %85, %98 : vector<32x256xf32>
    %c0_28 = arith.constant 0 : index
    %c7_29 = arith.constant 7 : index
    %100 = vector.load %arg8[%c0_28, %c7_29] : memref<64x40xf32, #tpu.memory_space<vmem>>, vector<32x1xf32>
    %101 = vector.broadcast %100 : vector<32x1xf32> to vector<32x256xf32>
    %102 = arith.mulf %101, %95 : vector<32x256xf32>
    %103 = arith.addf %89, %102 : vector<32x256xf32>
    %104 = vector.extract_strided_slice %13 {offsets = [0, 241], sizes = [32, 15], strides = [1, 1]} : vector<32x256xf32> to vector<32x15xf32>
    %105 = vector.extract_strided_slice %13 {offsets = [0, 0], sizes = [32, 241], strides = [1, 1]} : vector<32x256xf32> to vector<32x241xf32>
    %106 = tpu.concatenate %104, %105 in 1 : vector<32x15xf32>, vector<32x241xf32> -> vector<32x256xf32>
    %c8 = arith.constant 8 : index
    %c0_30 = arith.constant 0 : index
    %107 = vector.load %arg7[%c8, %c0_30] : memref<25x256xf32, #tpu.memory_space<vmem>>, vector<1x256xf32>
    %108 = vector.broadcast %107 : vector<1x256xf32> to vector<32x256xf32>
    %109 = arith.mulf %106, %108 : vector<32x256xf32>
    %c0_31 = arith.constant 0 : index
    %c23 = arith.constant 23 : index
    %110 = vector.load %arg8[%c0_31, %c23] : memref<64x40xf32, #tpu.memory_space<vmem>>, vector<32x1xf32>
    %111 = vector.broadcast %110 : vector<32x1xf32> to vector<32x256xf32>
    %112 = arith.mulf %111, %109 : vector<32x256xf32>
    %113 = arith.addf %99, %112 : vector<32x256xf32>
    %c0_32 = arith.constant 0 : index
    %c8_33 = arith.constant 8 : index
    %114 = vector.load %arg8[%c0_32, %c8_33] : memref<64x40xf32, #tpu.memory_space<vmem>>, vector<32x1xf32>
    %115 = vector.broadcast %114 : vector<32x1xf32> to vector<32x256xf32>
    %116 = arith.mulf %115, %109 : vector<32x256xf32>
    %117 = arith.addf %103, %116 : vector<32x256xf32>
    %118 = vector.extract_strided_slice %13 {offsets = [0, 242], sizes = [32, 14], strides = [1, 1]} : vector<32x256xf32> to vector<32x14xf32>
    %119 = vector.extract_strided_slice %13 {offsets = [0, 0], sizes = [32, 242], strides = [1, 1]} : vector<32x256xf32> to vector<32x242xf32>
    %120 = tpu.concatenate %118, %119 in 1 : vector<32x14xf32>, vector<32x242xf32> -> vector<32x256xf32>
    %c9 = arith.constant 9 : index
    %c0_34 = arith.constant 0 : index
    %121 = vector.load %arg7[%c9, %c0_34] : memref<25x256xf32, #tpu.memory_space<vmem>>, vector<1x256xf32>
    %122 = vector.broadcast %121 : vector<1x256xf32> to vector<32x256xf32>
    %123 = arith.mulf %120, %122 : vector<32x256xf32>
    %c0_35 = arith.constant 0 : index
    %c24 = arith.constant 24 : index
    %124 = vector.load %arg8[%c0_35, %c24] : memref<64x40xf32, #tpu.memory_space<vmem>>, vector<32x1xf32>
    %125 = vector.broadcast %124 : vector<32x1xf32> to vector<32x256xf32>
    %126 = arith.mulf %125, %123 : vector<32x256xf32>
    %127 = arith.addf %113, %126 : vector<32x256xf32>
    %128 = vector.extract_strided_slice %13 {offsets = [0, 254], sizes = [32, 2], strides = [1, 1]} : vector<32x256xf32> to vector<32x2xf32>
    %129 = vector.extract_strided_slice %13 {offsets = [0, 0], sizes = [32, 254], strides = [1, 1]} : vector<32x256xf32> to vector<32x254xf32>
    %130 = tpu.concatenate %128, %129 in 1 : vector<32x2xf32>, vector<32x254xf32> -> vector<32x256xf32>
    %c10 = arith.constant 10 : index
    %c0_36 = arith.constant 0 : index
    %131 = vector.load %arg7[%c10, %c0_36] : memref<25x256xf32, #tpu.memory_space<vmem>>, vector<1x256xf32>
    %132 = vector.broadcast %131 : vector<1x256xf32> to vector<32x256xf32>
    %133 = arith.mulf %130, %132 : vector<32x256xf32>
    %c0_37 = arith.constant 0 : index
    %c25 = arith.constant 25 : index
    %134 = vector.load %arg8[%c0_37, %c25] : memref<64x40xf32, #tpu.memory_space<vmem>>, vector<32x1xf32>
    %135 = vector.broadcast %134 : vector<32x1xf32> to vector<32x256xf32>
    %136 = arith.mulf %135, %133 : vector<32x256xf32>
    %137 = arith.addf %127, %136 : vector<32x256xf32>
    %138 = vector.extract_strided_slice %13 {offsets = [0, 255], sizes = [32, 1], strides = [1, 1]} : vector<32x256xf32> to vector<32x1xf32>
    %139 = vector.extract_strided_slice %13 {offsets = [0, 0], sizes = [32, 255], strides = [1, 1]} : vector<32x256xf32> to vector<32x255xf32>
    %140 = tpu.concatenate %138, %139 in 1 : vector<32x1xf32>, vector<32x255xf32> -> vector<32x256xf32>
    %c11 = arith.constant 11 : index
    %c0_38 = arith.constant 0 : index
    %141 = vector.load %arg7[%c11, %c0_38] : memref<25x256xf32, #tpu.memory_space<vmem>>, vector<1x256xf32>
    %142 = vector.broadcast %141 : vector<1x256xf32> to vector<32x256xf32>
    %143 = arith.mulf %140, %142 : vector<32x256xf32>
    %c0_39 = arith.constant 0 : index
    %c26 = arith.constant 26 : index
    %144 = vector.load %arg8[%c0_39, %c26] : memref<64x40xf32, #tpu.memory_space<vmem>>, vector<32x1xf32>
    %145 = vector.broadcast %144 : vector<32x1xf32> to vector<32x256xf32>
    %146 = arith.mulf %145, %143 : vector<32x256xf32>
    %147 = arith.addf %137, %146 : vector<32x256xf32>
    %c0_40 = arith.constant 0 : index
    %c9_41 = arith.constant 9 : index
    %148 = vector.load %arg8[%c0_40, %c9_41] : memref<64x40xf32, #tpu.memory_space<vmem>>, vector<32x1xf32>
    %149 = vector.broadcast %148 : vector<32x1xf32> to vector<32x256xf32>
    %150 = arith.mulf %149, %143 : vector<32x256xf32>
    %151 = arith.addf %117, %150 : vector<32x256xf32>
    %c0_42 = arith.constant 0 : index
    %c27 = arith.constant 27 : index
    %152 = vector.load %arg8[%c0_42, %c27] : memref<64x40xf32, #tpu.memory_space<vmem>>, vector<32x1xf32>
    %153 = vector.broadcast %152 : vector<32x1xf32> to vector<32x256xf32>
    %154 = arith.mulf %153, %13 : vector<32x256xf32>
    %155 = arith.addf %147, %154 : vector<32x256xf32>
    %c0_43 = arith.constant 0 : index
    %c10_44 = arith.constant 10 : index
    %156 = vector.load %arg8[%c0_43, %c10_44] : memref<64x40xf32, #tpu.memory_space<vmem>>, vector<32x1xf32>
    %157 = vector.broadcast %156 : vector<32x1xf32> to vector<32x256xf32>
    %158 = arith.mulf %157, %13 : vector<32x256xf32>
    %159 = arith.addf %151, %158 : vector<32x256xf32>
    %160 = vector.extract_strided_slice %13 {offsets = [0, 1], sizes = [32, 255], strides = [1, 1]} : vector<32x256xf32> to vector<32x255xf32>
    %161 = vector.extract_strided_slice %13 {offsets = [0, 0], sizes = [32, 1], strides = [1, 1]} : vector<32x256xf32> to vector<32x1xf32>
    %162 = tpu.concatenate %160, %161 in 1 : vector<32x255xf32>, vector<32x1xf32> -> vector<32x256xf32>
    %c13 = arith.constant 13 : index
    %c0_45 = arith.constant 0 : index
    %163 = vector.load %arg7[%c13, %c0_45] : memref<25x256xf32, #tpu.memory_space<vmem>>, vector<1x256xf32>
    %164 = vector.broadcast %163 : vector<1x256xf32> to vector<32x256xf32>
    %165 = arith.mulf %162, %164 : vector<32x256xf32>
    %c0_46 = arith.constant 0 : index
    %c28 = arith.constant 28 : index
    %166 = vector.load %arg8[%c0_46, %c28] : memref<64x40xf32, #tpu.memory_space<vmem>>, vector<32x1xf32>
    %167 = vector.broadcast %166 : vector<32x1xf32> to vector<32x256xf32>
    %168 = arith.mulf %167, %165 : vector<32x256xf32>
    %169 = arith.addf %155, %168 : vector<32x256xf32>
    %c0_47 = arith.constant 0 : index
    %c11_48 = arith.constant 11 : index
    %170 = vector.load %arg8[%c0_47, %c11_48] : memref<64x40xf32, #tpu.memory_space<vmem>>, vector<32x1xf32>
    %171 = vector.broadcast %170 : vector<32x1xf32> to vector<32x256xf32>
    %172 = arith.mulf %171, %165 : vector<32x256xf32>
    %173 = arith.addf %159, %172 : vector<32x256xf32>
    %174 = vector.extract_strided_slice %13 {offsets = [0, 2], sizes = [32, 254], strides = [1, 1]} : vector<32x256xf32> to vector<32x254xf32>
    %175 = vector.extract_strided_slice %13 {offsets = [0, 0], sizes = [32, 2], strides = [1, 1]} : vector<32x256xf32> to vector<32x2xf32>
    %176 = tpu.concatenate %174, %175 in 1 : vector<32x254xf32>, vector<32x2xf32> -> vector<32x256xf32>
    %c14 = arith.constant 14 : index
    %c0_49 = arith.constant 0 : index
    %177 = vector.load %arg7[%c14, %c0_49] : memref<25x256xf32, #tpu.memory_space<vmem>>, vector<1x256xf32>
    %178 = vector.broadcast %177 : vector<1x256xf32> to vector<32x256xf32>
    %179 = arith.mulf %176, %178 : vector<32x256xf32>
    %c0_50 = arith.constant 0 : index
    %c29 = arith.constant 29 : index
    %180 = vector.load %arg8[%c0_50, %c29] : memref<64x40xf32, #tpu.memory_space<vmem>>, vector<32x1xf32>
    %181 = vector.broadcast %180 : vector<32x1xf32> to vector<32x256xf32>
    %182 = arith.mulf %181, %179 : vector<32x256xf32>
    %183 = arith.addf %169, %182 : vector<32x256xf32>
    %184 = vector.extract_strided_slice %13 {offsets = [0, 14], sizes = [32, 242], strides = [1, 1]} : vector<32x256xf32> to vector<32x242xf32>
    %185 = vector.extract_strided_slice %13 {offsets = [0, 0], sizes = [32, 14], strides = [1, 1]} : vector<32x256xf32> to vector<32x14xf32>
    %186 = tpu.concatenate %184, %185 in 1 : vector<32x242xf32>, vector<32x14xf32> -> vector<32x256xf32>
    %c15_51 = arith.constant 15 : index
    %c0_52 = arith.constant 0 : index
    %187 = vector.load %arg7[%c15_51, %c0_52] : memref<25x256xf32, #tpu.memory_space<vmem>>, vector<1x256xf32>
    %188 = vector.broadcast %187 : vector<1x256xf32> to vector<32x256xf32>
    %189 = arith.mulf %186, %188 : vector<32x256xf32>
    %c0_53 = arith.constant 0 : index
    %c30 = arith.constant 30 : index
    %190 = vector.load %arg8[%c0_53, %c30] : memref<64x40xf32, #tpu.memory_space<vmem>>, vector<32x1xf32>
    %191 = vector.broadcast %190 : vector<32x1xf32> to vector<32x256xf32>
    %192 = arith.mulf %191, %189 : vector<32x256xf32>
    %193 = arith.addf %183, %192 : vector<32x256xf32>
    %194 = vector.extract_strided_slice %13 {offsets = [0, 15], sizes = [32, 241], strides = [1, 1]} : vector<32x256xf32> to vector<32x241xf32>
    %195 = vector.extract_strided_slice %13 {offsets = [0, 0], sizes = [32, 15], strides = [1, 1]} : vector<32x256xf32> to vector<32x15xf32>
    %196 = tpu.concatenate %194, %195 in 1 : vector<32x241xf32>, vector<32x15xf32> -> vector<32x256xf32>
    %c16_54 = arith.constant 16 : index
    %c0_55 = arith.constant 0 : index
    %197 = vector.load %arg7[%c16_54, %c0_55] : memref<25x256xf32, #tpu.memory_space<vmem>>, vector<1x256xf32>
    %198 = vector.broadcast %197 : vector<1x256xf32> to vector<32x256xf32>
    %199 = arith.mulf %196, %198 : vector<32x256xf32>
    %c0_56 = arith.constant 0 : index
    %c31 = arith.constant 31 : index
    %200 = vector.load %arg8[%c0_56, %c31] : memref<64x40xf32, #tpu.memory_space<vmem>>, vector<32x1xf32>
    %201 = vector.broadcast %200 : vector<32x1xf32> to vector<32x256xf32>
    %202 = arith.mulf %201, %199 : vector<32x256xf32>
    %203 = arith.addf %193, %202 : vector<32x256xf32>
    %c0_57 = arith.constant 0 : index
    %c12 = arith.constant 12 : index
    %204 = vector.load %arg8[%c0_57, %c12] : memref<64x40xf32, #tpu.memory_space<vmem>>, vector<32x1xf32>
    %205 = vector.broadcast %204 : vector<32x1xf32> to vector<32x256xf32>
    %206 = arith.mulf %205, %199 : vector<32x256xf32>
    %207 = arith.addf %173, %206 : vector<32x256xf32>
    %208 = vector.extract_strided_slice %13 {offsets = [0, 16], sizes = [32, 240], strides = [1, 1]} : vector<32x256xf32> to vector<32x240xf32>
    %209 = vector.extract_strided_slice %13 {offsets = [0, 0], sizes = [32, 16], strides = [1, 1]} : vector<32x256xf32> to vector<32x16xf32>
    %210 = tpu.concatenate %208, %209 in 1 : vector<32x240xf32>, vector<32x16xf32> -> vector<32x256xf32>
    %c17_58 = arith.constant 17 : index
    %c0_59 = arith.constant 0 : index
    %211 = vector.load %arg7[%c17_58, %c0_59] : memref<25x256xf32, #tpu.memory_space<vmem>>, vector<1x256xf32>
    %212 = vector.broadcast %211 : vector<1x256xf32> to vector<32x256xf32>
    %213 = arith.mulf %210, %212 : vector<32x256xf32>
    %c0_60 = arith.constant 0 : index
    %c32 = arith.constant 32 : index
    %214 = vector.load %arg8[%c0_60, %c32] : memref<64x40xf32, #tpu.memory_space<vmem>>, vector<32x1xf32>
    %215 = vector.broadcast %214 : vector<32x1xf32> to vector<32x256xf32>
    %216 = arith.mulf %215, %213 : vector<32x256xf32>
    %217 = arith.addf %203, %216 : vector<32x256xf32>
    %c0_61 = arith.constant 0 : index
    %c13_62 = arith.constant 13 : index
    %218 = vector.load %arg8[%c0_61, %c13_62] : memref<64x40xf32, #tpu.memory_space<vmem>>, vector<32x1xf32>
    %219 = vector.broadcast %218 : vector<32x1xf32> to vector<32x256xf32>
    %220 = arith.mulf %219, %213 : vector<32x256xf32>
    %221 = arith.addf %207, %220 : vector<32x256xf32>
    %222 = vector.extract_strided_slice %13 {offsets = [0, 17], sizes = [32, 239], strides = [1, 1]} : vector<32x256xf32> to vector<32x239xf32>
    %223 = vector.extract_strided_slice %13 {offsets = [0, 0], sizes = [32, 17], strides = [1, 1]} : vector<32x256xf32> to vector<32x17xf32>
    %224 = tpu.concatenate %222, %223 in 1 : vector<32x239xf32>, vector<32x17xf32> -> vector<32x256xf32>
    %c18_63 = arith.constant 18 : index
    %c0_64 = arith.constant 0 : index
    %225 = vector.load %arg7[%c18_63, %c0_64] : memref<25x256xf32, #tpu.memory_space<vmem>>, vector<1x256xf32>
    %226 = vector.broadcast %225 : vector<1x256xf32> to vector<32x256xf32>
    %227 = arith.mulf %224, %226 : vector<32x256xf32>
    %c0_65 = arith.constant 0 : index
    %c33 = arith.constant 33 : index
    %228 = vector.load %arg8[%c0_65, %c33] : memref<64x40xf32, #tpu.memory_space<vmem>>, vector<32x1xf32>
    %229 = vector.broadcast %228 : vector<32x1xf32> to vector<32x256xf32>
    %230 = arith.mulf %229, %227 : vector<32x256xf32>
    %231 = arith.addf %217, %230 : vector<32x256xf32>
    %c0_66 = arith.constant 0 : index
    %c14_67 = arith.constant 14 : index
    %232 = vector.load %arg8[%c0_66, %c14_67] : memref<64x40xf32, #tpu.memory_space<vmem>>, vector<32x1xf32>
    %233 = vector.broadcast %232 : vector<32x1xf32> to vector<32x256xf32>
    %234 = arith.mulf %233, %227 : vector<32x256xf32>
    %235 = arith.addf %221, %234 : vector<32x256xf32>
    %236 = vector.extract_strided_slice %13 {offsets = [0, 18], sizes = [32, 238], strides = [1, 1]} : vector<32x256xf32> to vector<32x238xf32>
    %237 = vector.extract_strided_slice %13 {offsets = [0, 0], sizes = [32, 18], strides = [1, 1]} : vector<32x256xf32> to vector<32x18xf32>
    %238 = tpu.concatenate %236, %237 in 1 : vector<32x238xf32>, vector<32x18xf32> -> vector<32x256xf32>
    %c19_68 = arith.constant 19 : index
    %c0_69 = arith.constant 0 : index
    %239 = vector.load %arg7[%c19_68, %c0_69] : memref<25x256xf32, #tpu.memory_space<vmem>>, vector<1x256xf32>
    %240 = vector.broadcast %239 : vector<1x256xf32> to vector<32x256xf32>
    %241 = arith.mulf %238, %240 : vector<32x256xf32>
    %c0_70 = arith.constant 0 : index
    %c34 = arith.constant 34 : index
    %242 = vector.load %arg8[%c0_70, %c34] : memref<64x40xf32, #tpu.memory_space<vmem>>, vector<32x1xf32>
    %243 = vector.broadcast %242 : vector<32x1xf32> to vector<32x256xf32>
    %244 = arith.mulf %243, %241 : vector<32x256xf32>
    %245 = arith.addf %231, %244 : vector<32x256xf32>
    %246 = vector.extract_strided_slice %13 {offsets = [0, 30], sizes = [32, 226], strides = [1, 1]} : vector<32x256xf32> to vector<32x226xf32>
    %247 = vector.extract_strided_slice %13 {offsets = [0, 0], sizes = [32, 30], strides = [1, 1]} : vector<32x256xf32> to vector<32x30xf32>
    %248 = tpu.concatenate %246, %247 in 1 : vector<32x226xf32>, vector<32x30xf32> -> vector<32x256xf32>
    %c20_71 = arith.constant 20 : index
    %c0_72 = arith.constant 0 : index
    %249 = vector.load %arg7[%c20_71, %c0_72] : memref<25x256xf32, #tpu.memory_space<vmem>>, vector<1x256xf32>
    %250 = vector.broadcast %249 : vector<1x256xf32> to vector<32x256xf32>
    %251 = arith.mulf %248, %250 : vector<32x256xf32>
    %c0_73 = arith.constant 0 : index
    %c35 = arith.constant 35 : index
    %252 = vector.load %arg8[%c0_73, %c35] : memref<64x40xf32, #tpu.memory_space<vmem>>, vector<32x1xf32>
    %253 = vector.broadcast %252 : vector<32x1xf32> to vector<32x256xf32>
    %254 = arith.mulf %253, %251 : vector<32x256xf32>
    %255 = arith.addf %245, %254 : vector<32x256xf32>
    %256 = vector.extract_strided_slice %13 {offsets = [0, 31], sizes = [32, 225], strides = [1, 1]} : vector<32x256xf32> to vector<32x225xf32>
    %257 = vector.extract_strided_slice %13 {offsets = [0, 0], sizes = [32, 31], strides = [1, 1]} : vector<32x256xf32> to vector<32x31xf32>
    %258 = tpu.concatenate %256, %257 in 1 : vector<32x225xf32>, vector<32x31xf32> -> vector<32x256xf32>
    %c21_74 = arith.constant 21 : index
    %c0_75 = arith.constant 0 : index
    %259 = vector.load %arg7[%c21_74, %c0_75] : memref<25x256xf32, #tpu.memory_space<vmem>>, vector<1x256xf32>
    %260 = vector.broadcast %259 : vector<1x256xf32> to vector<32x256xf32>
    %261 = arith.mulf %258, %260 : vector<32x256xf32>
    %c0_76 = arith.constant 0 : index
    %c36 = arith.constant 36 : index
    %262 = vector.load %arg8[%c0_76, %c36] : memref<64x40xf32, #tpu.memory_space<vmem>>, vector<32x1xf32>
    %263 = vector.broadcast %262 : vector<32x1xf32> to vector<32x256xf32>
    %264 = arith.mulf %263, %261 : vector<32x256xf32>
    %265 = arith.addf %255, %264 : vector<32x256xf32>
    %266 = vector.extract_strided_slice %13 {offsets = [0, 32], sizes = [32, 224], strides = [1, 1]} : vector<32x256xf32> to vector<32x224xf32>
    %267 = vector.extract_strided_slice %13 {offsets = [0, 0], sizes = [32, 32], strides = [1, 1]} : vector<32x256xf32> to vector<32x32xf32>
    %268 = tpu.concatenate %266, %267 in 1 : vector<32x224xf32>, vector<32x32xf32> -> vector<32x256xf32>
    %c22_77 = arith.constant 22 : index
    %c0_78 = arith.constant 0 : index
    %269 = vector.load %arg7[%c22_77, %c0_78] : memref<25x256xf32, #tpu.memory_space<vmem>>, vector<1x256xf32>
    %270 = vector.broadcast %269 : vector<1x256xf32> to vector<32x256xf32>
    %271 = arith.mulf %268, %270 : vector<32x256xf32>
    %c0_79 = arith.constant 0 : index
    %c37 = arith.constant 37 : index
    %272 = vector.load %arg8[%c0_79, %c37] : memref<64x40xf32, #tpu.memory_space<vmem>>, vector<32x1xf32>
    %273 = vector.broadcast %272 : vector<32x1xf32> to vector<32x256xf32>
    %274 = arith.mulf %273, %271 : vector<32x256xf32>
    %275 = arith.addf %265, %274 : vector<32x256xf32>
    %276 = vector.extract_strided_slice %13 {offsets = [0, 33], sizes = [32, 223], strides = [1, 1]} : vector<32x256xf32> to vector<32x223xf32>
    %277 = vector.extract_strided_slice %13 {offsets = [0, 0], sizes = [32, 33], strides = [1, 1]} : vector<32x256xf32> to vector<32x33xf32>
    %278 = tpu.concatenate %276, %277 in 1 : vector<32x223xf32>, vector<32x33xf32> -> vector<32x256xf32>
    %c23_80 = arith.constant 23 : index
    %c0_81 = arith.constant 0 : index
    %279 = vector.load %arg7[%c23_80, %c0_81] : memref<25x256xf32, #tpu.memory_space<vmem>>, vector<1x256xf32>
    %280 = vector.broadcast %279 : vector<1x256xf32> to vector<32x256xf32>
    %281 = arith.mulf %278, %280 : vector<32x256xf32>
    %c0_82 = arith.constant 0 : index
    %c38 = arith.constant 38 : index
    %282 = vector.load %arg8[%c0_82, %c38] : memref<64x40xf32, #tpu.memory_space<vmem>>, vector<32x1xf32>
    %283 = vector.broadcast %282 : vector<32x1xf32> to vector<32x256xf32>
    %284 = arith.mulf %283, %281 : vector<32x256xf32>
    %285 = arith.addf %275, %284 : vector<32x256xf32>
    %286 = vector.extract_strided_slice %13 {offsets = [0, 34], sizes = [32, 222], strides = [1, 1]} : vector<32x256xf32> to vector<32x222xf32>
    %287 = vector.extract_strided_slice %13 {offsets = [0, 0], sizes = [32, 34], strides = [1, 1]} : vector<32x256xf32> to vector<32x34xf32>
    %288 = tpu.concatenate %286, %287 in 1 : vector<32x222xf32>, vector<32x34xf32> -> vector<32x256xf32>
    %c24_83 = arith.constant 24 : index
    %c0_84 = arith.constant 0 : index
    %289 = vector.load %arg7[%c24_83, %c0_84] : memref<25x256xf32, #tpu.memory_space<vmem>>, vector<1x256xf32>
    %290 = vector.broadcast %289 : vector<1x256xf32> to vector<32x256xf32>
    %291 = arith.mulf %288, %290 : vector<32x256xf32>
    %c0_85 = arith.constant 0 : index
    %c39 = arith.constant 39 : index
    %292 = vector.load %arg8[%c0_85, %c39] : memref<64x40xf32, #tpu.memory_space<vmem>>, vector<32x1xf32>
    %293 = vector.broadcast %292 : vector<32x1xf32> to vector<32x256xf32>
    %294 = arith.mulf %293, %291 : vector<32x256xf32>
    %295 = arith.addf %285, %294 : vector<32x256xf32>
    %c0_86 = arith.constant 0 : index
    %c2_87 = arith.constant 2 : index
    %296 = vector.load %arg8[%c0_86, %c2_87] : memref<64x40xf32, #tpu.memory_space<vmem>>, vector<64x1xf32>
    %c64 = arith.constant 64 : index
    %c0_88 = arith.constant 0 : index
    %297 = vector.load %arg3[%c64, %c0_88] : memref<192x32xbf16, #tpu.memory_space<vmem>>, vector<64x32xbf16>
    %298 = arith.truncf %235 : vector<32x256xf32> to vector<32x256xbf16>
    %cst_89 = arith.constant dense<0.000000e+00> : vector<64x256xf32>
    %299 = tpu.matmul %297, %298, %cst_89 {dimension_numbers = #tpu.dot_dimension_numbers<[1], [0], [0], [1], [0, 0, 1, 1], [], []>} : vector<64x32xbf16>, vector<32x256xbf16>, vector<64x256xf32> -> vector<64x256xf32>
    %300 = vector.broadcast %296 : vector<64x1xf32> to vector<64x256xf32>
    %301 = arith.addf %299, %300 : vector<64x256xf32>
    %c128 = arith.constant 128 : index
    %c0_90 = arith.constant 0 : index
    %302 = vector.load %arg3[%c128, %c0_90] : memref<192x32xbf16, #tpu.memory_space<vmem>>, vector<64x32xbf16>
    %303 = arith.truncf %295 : vector<32x256xf32> to vector<32x256xbf16>
    %cst_91 = arith.constant dense<0.000000e+00> : vector<64x256xf32>
    %304 = tpu.matmul %302, %303, %cst_91 {dimension_numbers = #tpu.dot_dimension_numbers<[1], [0], [0], [1], [0, 0, 1, 1], [], []>} : vector<64x32xbf16>, vector<32x256xbf16>, vector<64x256xf32> -> vector<64x256xf32>
    %305 = arith.addf %301, %304 : vector<64x256xf32>
    %c0_92 = arith.constant 0 : index
    %c1_93 = arith.constant 1 : index
    %306 = vector.load %arg8[%c0_92, %c1_93] : memref<64x40xf32, #tpu.memory_space<vmem>>, vector<32x1xf32>
    %c0_94 = arith.constant 0 : index
    %c0_95 = arith.constant 0 : index
    %307 = vector.load %arg3[%c0_94, %c0_95] : memref<192x32xbf16, #tpu.memory_space<vmem>>, vector<64x32xbf16>
    %308 = vector.broadcast %306 : vector<32x1xf32> to vector<32x256xf32>
    %309 = arith.mulf %308, %13 : vector<32x256xf32>
    %310 = arith.truncf %309 : vector<32x256xf32> to vector<32x256xbf16>
    %cst_96 = arith.constant dense<0.000000e+00> : vector<64x256xf32>
    %311 = tpu.matmul %307, %310, %cst_96 {dimension_numbers = #tpu.dot_dimension_numbers<[1], [0], [0], [1], [0, 0, 1, 1], [], []>} : vector<64x32xbf16>, vector<32x256xbf16>, vector<64x256xf32> -> vector<64x256xf32>
    %312 = arith.addf %305, %311 : vector<64x256xf32>
    %313 = arith.negf %312 : vector<64x256xf32>
    %314 = math.exp %313 : vector<64x256xf32>
    %cst_97 = arith.constant 1.000000e+00 : f32
    %315 = vector.broadcast %cst_97 : f32 to vector<64x256xf32>
    %316 = arith.addf %315, %314 : vector<64x256xf32>
    %317 = arith.divf %315, %316 : vector<64x256xf32>
    %318 = arith.mulf %312, %317 : vector<64x256xf32>
    %319 = arith.addf %318, %1 : vector<64x256xf32>
    %320 = arith.negf %319 : vector<64x256xf32>
    %321 = math.exp %320 : vector<64x256xf32>
    %cst_98 = arith.constant 1.000000e+00 : f32
    %322 = vector.broadcast %cst_98 : f32 to vector<64x256xf32>
    %323 = arith.addf %322, %321 : vector<64x256xf32>
    %324 = arith.divf %322, %323 : vector<64x256xf32>
    %325 = arith.mulf %319, %324 : vector<64x256xf32>
    %cst_99 = arith.constant dense<0.000000e+00> : vector<64xf32>
    %326 = vector.multi_reduction <add>, %325, %cst_99 [1] : vector<64x256xf32> to vector<64xf32>
    %327 = vector.shape_cast %326 : vector<64xf32> to vector<64x1xf32>
    %cst_100 = arith.constant 2.560000e+02 : f32
    %328 = vector.broadcast %cst_100 : f32 to vector<64x1xf32>
    %329 = arith.divf %327, %328 : vector<64x1xf32>
    %cst_101 = arith.constant dense<0xFF800000> : vector<64xf32>
    %330 = vector.multi_reduction <maximumf>, %325, %cst_101 [1] : vector<64x256xf32> to vector<64xf32>
    %331 = vector.shape_cast %330 : vector<64xf32> to vector<64x1xf32>
    %332 = tpu.concatenate %329, %331 in 1 : vector<64x1xf32>, vector<64x1xf32> -> vector<64x2xf32>
    %c0_102 = arith.constant 0 : index
    %c0_103 = arith.constant 0 : index
    %333 = vector.load %arg4[%c0_102, %c0_103] : memref<8x64xf32, #tpu.memory_space<vmem>>, vector<8x64xf32>
    %cst_104 = arith.constant dense<0.000000e+00> : vector<8x2xf32>
    %334 = tpu.matmul %333, %332, %cst_104 {dimension_numbers = #tpu.dot_dimension_numbers<[1], [0], [0], [1], [0, 0, 1, 1], [], []>} : vector<8x64xf32>, vector<64x2xf32>, vector<8x2xf32> -> vector<8x2xf32>
    %cst_105 = arith.constant 0.000000e+00 : f32
    %335 = vector.broadcast %cst_105 : f32 to vector<8x2xf32>
    %336 = arith.maximumf %334, %335 : vector<8x2xf32>
    %c0_106 = arith.constant 0 : index
    %c0_107 = arith.constant 0 : index
    %337 = vector.load %arg5[%c0_106, %c0_107] : memref<64x8xf32, #tpu.memory_space<vmem>>, vector<64x8xf32>
    %cst_108 = arith.constant dense<0.000000e+00> : vector<64x2xf32>
    %338 = tpu.matmul %337, %336, %cst_108 {dimension_numbers = #tpu.dot_dimension_numbers<[1], [0], [0], [1], [0, 0, 1, 1], [], []>} : vector<64x8xf32>, vector<8x2xf32>, vector<64x2xf32> -> vector<64x2xf32>
    %cst_109 = arith.constant dense<0.000000e+00> : vector<64xf32>
    %339 = vector.multi_reduction <add>, %338, %cst_109 [1] : vector<64x2xf32> to vector<64xf32>
    %340 = vector.shape_cast %339 : vector<64xf32> to vector<64x1xf32>
    %341 = arith.negf %340 : vector<64x1xf32>
    %342 = math.exp %341 : vector<64x1xf32>
    %cst_110 = arith.constant 1.000000e+00 : f32
    %343 = vector.broadcast %cst_110 : f32 to vector<64x1xf32>
    %344 = arith.addf %343, %342 : vector<64x1xf32>
    %345 = arith.divf %343, %344 : vector<64x1xf32>
    %346 = arith.mulf %340, %345 : vector<64x1xf32>
    %347 = vector.broadcast %346 : vector<64x1xf32> to vector<64x256xf32>
    %348 = arith.mulf %325, %347 : vector<64x256xf32>
    %cst_111 = arith.constant dense<0.000000e+00> : vector<256xf32>
    %349 = vector.multi_reduction <add>, %348, %cst_111 [0] : vector<64x256xf32> to vector<256xf32>
    %350 = vector.shape_cast %349 : vector<256xf32> to vector<1x256xf32>
    %cst_112 = arith.constant 6.400000e+01 : f32
    %351 = vector.broadcast %cst_112 : f32 to vector<1x256xf32>
    %352 = arith.divf %350, %351 : vector<1x256xf32>
    %cst_113 = arith.constant dense<0xFF800000> : vector<256xf32>
    %353 = vector.multi_reduction <maximumf>, %348, %cst_113 [0] : vector<64x256xf32> to vector<256xf32>
    %354 = vector.shape_cast %353 : vector<256xf32> to vector<1x256xf32>
    %355 = tpu.concatenate %352, %354 in 1 : vector<1x256xf32>, vector<1x256xf32> -> vector<1x512xf32>
    %356 = arith.truncf %355 : vector<1x512xf32> to vector<1x512xbf16>
    %c0_114 = arith.constant 0 : index
    %c5_115 = arith.constant 5 : index
    %357 = vector.load %arg8[%c0_114, %c5_115] : memref<64x40xf32, #tpu.memory_space<vmem>>, vector<1x1xf32>
    %c0_116 = arith.constant 0 : index
    %c0_117 = arith.constant 0 : index
    %358 = vector.load %arg6[%c0_116, %c0_117] : memref<512x256xbf16, #tpu.memory_space<vmem>>, vector<512x256xbf16>
    %cst_118 = arith.constant dense<0.000000e+00> : vector<1x256xf32>
    %359 = tpu.matmul %356, %358, %cst_118 {dimension_numbers = #tpu.dot_dimension_numbers<[1], [0], [0], [1], [0, 0, 1, 1], [], []>} : vector<1x512xbf16>, vector<512x256xbf16>, vector<1x256xf32> -> vector<1x256xf32>
    %360 = vector.broadcast %357 : vector<1x1xf32> to vector<1x256xf32>
    %361 = arith.addf %359, %360 : vector<1x256xf32>
    %362 = arith.negf %361 : vector<1x256xf32>
    %363 = math.exp %362 : vector<1x256xf32>
    %cst_119 = arith.constant 1.000000e+00 : f32
    %364 = vector.broadcast %cst_119 : f32 to vector<1x256xf32>
    %365 = arith.addf %364, %363 : vector<1x256xf32>
    %366 = arith.divf %364, %365 : vector<1x256xf32>
    %367 = arith.mulf %361, %366 : vector<1x256xf32>
    %368 = vector.broadcast %367 : vector<1x256xf32> to vector<64x256xf32>
    %369 = arith.mulf %348, %368 : vector<64x256xf32>
    %370 = vector.extract_strided_slice %369 {offsets = [0, 0], sizes = [8, 256], strides = [1, 1]} : vector<64x256xf32> to vector<8x256xf32>
    %371 = vector.shape_cast %370 : vector<8x256xf32> to vector<1x8x256xf32>
    %cst_120 = arith.constant dense<0.000000e+00> : vector<1xf32>
    %372 = vector.multi_reduction <add>, %371, %cst_120 [1, 2] : vector<1x8x256xf32> to vector<1xf32>
    %373 = vector.shape_cast %372 : vector<1xf32> to vector<1x1x1xf32>
    %374 = vector.extract %373[0, 0, 0] : f32 from vector<1x1x1xf32>
    %375 = arith.mulf %370, %370 : vector<8x256xf32>
    %376 = vector.shape_cast %375 : vector<8x256xf32> to vector<1x8x256xf32>
    %cst_121 = arith.constant dense<0.000000e+00> : vector<1xf32>
    %377 = vector.multi_reduction <add>, %376, %cst_121 [1, 2] : vector<1x8x256xf32> to vector<1xf32>
    %378 = vector.shape_cast %377 : vector<1xf32> to vector<1x1x1xf32>
    %379 = vector.extract %378[0, 0, 0] : f32 from vector<1x1x1xf32>
    %cst_122 = arith.constant 4.8828125E-4 : f32
    %380 = arith.mulf %374, %cst_122 : f32
    %cst_123 = arith.constant 4.8828125E-4 : f32
    %381 = arith.mulf %379, %cst_123 : f32
    %382 = arith.mulf %380, %380 : f32
    %383 = arith.subf %381, %382 : f32
    %cst_124 = arith.constant 9.99999974E-6 : f32
    %384 = arith.addf %383, %cst_124 : f32
    %385 = math.rsqrt %384 : f32
    %c0_125 = arith.constant 0 : index
    %c3_126 = arith.constant 3 : index
    %386 = vector.load %arg8[%c0_125, %c3_126] : memref<64x40xf32, #tpu.memory_space<vmem>>, vector<8x1xf32>
    %c0_127 = arith.constant 0 : index
    %c4_128 = arith.constant 4 : index
    %387 = vector.load %arg8[%c0_127, %c4_128] : memref<64x40xf32, #tpu.memory_space<vmem>>, vector<8x1xf32>
    %388 = vector.broadcast %385 : f32 to vector<8x1xf32>
    %389 = arith.mulf %388, %386 : vector<8x1xf32>
    %390 = vector.broadcast %380 : f32 to vector<8x1xf32>
    %391 = arith.mulf %390, %389 : vector<8x1xf32>
    %392 = arith.subf %387, %391 : vector<8x1xf32>
    %393 = vector.broadcast %389 : vector<8x1xf32> to vector<8x256xf32>
    %394 = arith.mulf %370, %393 : vector<8x256xf32>
    %395 = vector.broadcast %392 : vector<8x1xf32> to vector<8x256xf32>
    %396 = arith.addf %394, %395 : vector<8x256xf32>
    %397 = arith.negf %396 : vector<8x256xf32>
    %398 = math.exp %397 : vector<8x256xf32>
    %cst_129 = arith.constant 1.000000e+00 : f32
    %399 = vector.broadcast %cst_129 : f32 to vector<8x256xf32>
    %400 = arith.addf %399, %398 : vector<8x256xf32>
    %401 = arith.divf %399, %400 : vector<8x256xf32>
    %402 = arith.mulf %396, %401 : vector<8x256xf32>
    %c0_130 = arith.constant 0 : index
    %c0_131 = arith.constant 0 : index
    %c0_132 = arith.constant 0 : index
    %403 = vector.load %arg9[%c0_130, %c0_131, %c0_132] : memref<1x64x256xf32, #tpu.memory_space<vmem>>, vector<1x8x256xf32>
    %404 = vector.shape_cast %403 : vector<1x8x256xf32> to vector<8x256xf32>
    %405 = vector.shape_cast %402 : vector<8x256xf32> to vector<1x8x256xf32>
    tpu.vector_store %arg9[%c0_130, %c0_131, %c0_132], %405 {strides = array<i32>} : memref<1x64x256xf32, #tpu.memory_space<vmem>>, vector<1x8x256xf32>,
    %406 = vector.extract_strided_slice %369 {offsets = [8, 0], sizes = [8, 256], strides = [1, 1]} : vector<64x256xf32> to vector<8x256xf32>
    %407 = vector.shape_cast %406 : vector<8x256xf32> to vector<1x8x256xf32>
    %cst_133 = arith.constant dense<0.000000e+00> : vector<1xf32>
    %408 = vector.multi_reduction <add>, %407, %cst_133 [1, 2] : vector<1x8x256xf32> to vector<1xf32>
    %409 = vector.shape_cast %408 : vector<1xf32> to vector<1x1x1xf32>
    %410 = vector.extract %409[0, 0, 0] : f32 from vector<1x1x1xf32>
    %411 = arith.mulf %406, %406 : vector<8x256xf32>
    %412 = vector.shape_cast %411 : vector<8x256xf32> to vector<1x8x256xf32>
    %cst_134 = arith.constant dense<0.000000e+00> : vector<1xf32>
    %413 = vector.multi_reduction <add>, %412, %cst_134 [1, 2] : vector<1x8x256xf32> to vector<1xf32>
    %414 = vector.shape_cast %413 : vector<1xf32> to vector<1x1x1xf32>
    %415 = vector.extract %414[0, 0, 0] : f32 from vector<1x1x1xf32>
    %cst_135 = arith.constant 4.8828125E-4 : f32
    %416 = arith.mulf %410, %cst_135 : f32
    %cst_136 = arith.constant 4.8828125E-4 : f32
    %417 = arith.mulf %415, %cst_136 : f32
    %418 = arith.mulf %416, %416 : f32
    %419 = arith.subf %417, %418 : f32
    %cst_137 = arith.constant 9.99999974E-6 : f32
    %420 = arith.addf %419, %cst_137 : f32
    %421 = math.rsqrt %420 : f32
    %c8_138 = arith.constant 8 : index
    %c3_139 = arith.constant 3 : index
    %422 = vector.load %arg8[%c8_138, %c3_139] : memref<64x40xf32, #tpu.memory_space<vmem>>, vector<8x1xf32>
    %c8_140 = arith.constant 8 : index
    %c4_141 = arith.constant 4 : index
    %423 = vector.load %arg8[%c8_140, %c4_141] : memref<64x40xf32, #tpu.memory_space<vmem>>, vector<8x1xf32>
    %424 = vector.broadcast %421 : f32 to vector<8x1xf32>
    %425 = arith.mulf %424, %422 : vector<8x1xf32>
    %426 = vector.broadcast %416 : f32 to vector<8x1xf32>
    %427 = arith.mulf %426, %425 : vector<8x1xf32>
    %428 = arith.subf %423, %427 : vector<8x1xf32>
    %429 = vector.broadcast %425 : vector<8x1xf32> to vector<8x256xf32>
    %430 = arith.mulf %406, %429 : vector<8x256xf32>
    %431 = vector.broadcast %428 : vector<8x1xf32> to vector<8x256xf32>
    %432 = arith.addf %430, %431 : vector<8x256xf32>
    %433 = arith.negf %432 : vector<8x256xf32>
    %434 = math.exp %433 : vector<8x256xf32>
    %cst_142 = arith.constant 1.000000e+00 : f32
    %435 = vector.broadcast %cst_142 : f32 to vector<8x256xf32>
    %436 = arith.addf %435, %434 : vector<8x256xf32>
    %437 = arith.divf %435, %436 : vector<8x256xf32>
    %438 = arith.mulf %432, %437 : vector<8x256xf32>
    %c0_143 = arith.constant 0 : index
    %c8_144 = arith.constant 8 : index
    %c0_145 = arith.constant 0 : index
    %439 = vector.load %arg9[%c0_143, %c8_144, %c0_145] : memref<1x64x256xf32, #tpu.memory_space<vmem>>, vector<1x8x256xf32>
    %440 = vector.shape_cast %439 : vector<1x8x256xf32> to vector<8x256xf32>
    %441 = vector.shape_cast %438 : vector<8x256xf32> to vector<1x8x256xf32>
    tpu.vector_store %arg9[%c0_143, %c8_144, %c0_145], %441 {strides = array<i32>} : memref<1x64x256xf32, #tpu.memory_space<vmem>>, vector<1x8x256xf32>,
    %442 = vector.extract_strided_slice %369 {offsets = [16, 0], sizes = [8, 256], strides = [1, 1]} : vector<64x256xf32> to vector<8x256xf32>
    %443 = vector.shape_cast %442 : vector<8x256xf32> to vector<1x8x256xf32>
    %cst_146 = arith.constant dense<0.000000e+00> : vector<1xf32>
    %444 = vector.multi_reduction <add>, %443, %cst_146 [1, 2] : vector<1x8x256xf32> to vector<1xf32>
    %445 = vector.shape_cast %444 : vector<1xf32> to vector<1x1x1xf32>
    %446 = vector.extract %445[0, 0, 0] : f32 from vector<1x1x1xf32>
    %447 = arith.mulf %442, %442 : vector<8x256xf32>
    %448 = vector.shape_cast %447 : vector<8x256xf32> to vector<1x8x256xf32>
    %cst_147 = arith.constant dense<0.000000e+00> : vector<1xf32>
    %449 = vector.multi_reduction <add>, %448, %cst_147 [1, 2] : vector<1x8x256xf32> to vector<1xf32>
    %450 = vector.shape_cast %449 : vector<1xf32> to vector<1x1x1xf32>
    %451 = vector.extract %450[0, 0, 0] : f32 from vector<1x1x1xf32>
    %cst_148 = arith.constant 4.8828125E-4 : f32
    %452 = arith.mulf %446, %cst_148 : f32
    %cst_149 = arith.constant 4.8828125E-4 : f32
    %453 = arith.mulf %451, %cst_149 : f32
    %454 = arith.mulf %452, %452 : f32
    %455 = arith.subf %453, %454 : f32
    %cst_150 = arith.constant 9.99999974E-6 : f32
    %456 = arith.addf %455, %cst_150 : f32
    %457 = math.rsqrt %456 : f32
    %c16_151 = arith.constant 16 : index
    %c3_152 = arith.constant 3 : index
    %458 = vector.load %arg8[%c16_151, %c3_152] : memref<64x40xf32, #tpu.memory_space<vmem>>, vector<8x1xf32>
    %c16_153 = arith.constant 16 : index
    %c4_154 = arith.constant 4 : index
    %459 = vector.load %arg8[%c16_153, %c4_154] : memref<64x40xf32, #tpu.memory_space<vmem>>, vector<8x1xf32>
    %460 = vector.broadcast %457 : f32 to vector<8x1xf32>
    %461 = arith.mulf %460, %458 : vector<8x1xf32>
    %462 = vector.broadcast %452 : f32 to vector<8x1xf32>
    %463 = arith.mulf %462, %461 : vector<8x1xf32>
    %464 = arith.subf %459, %463 : vector<8x1xf32>
    %465 = vector.broadcast %461 : vector<8x1xf32> to vector<8x256xf32>
    %466 = arith.mulf %442, %465 : vector<8x256xf32>
    %467 = vector.broadcast %464 : vector<8x1xf32> to vector<8x256xf32>
    %468 = arith.addf %466, %467 : vector<8x256xf32>
    %469 = arith.negf %468 : vector<8x256xf32>
    %470 = math.exp %469 : vector<8x256xf32>
    %cst_155 = arith.constant 1.000000e+00 : f32
    %471 = vector.broadcast %cst_155 : f32 to vector<8x256xf32>
    %472 = arith.addf %471, %470 : vector<8x256xf32>
    %473 = arith.divf %471, %472 : vector<8x256xf32>
    %474 = arith.mulf %468, %473 : vector<8x256xf32>
    %c0_156 = arith.constant 0 : index
    %c16_157 = arith.constant 16 : index
    %c0_158 = arith.constant 0 : index
    %475 = vector.load %arg9[%c0_156, %c16_157, %c0_158] : memref<1x64x256xf32, #tpu.memory_space<vmem>>, vector<1x8x256xf32>
    %476 = vector.shape_cast %475 : vector<1x8x256xf32> to vector<8x256xf32>
    %477 = vector.shape_cast %474 : vector<8x256xf32> to vector<1x8x256xf32>
    tpu.vector_store %arg9[%c0_156, %c16_157, %c0_158], %477 {strides = array<i32>} : memref<1x64x256xf32, #tpu.memory_space<vmem>>, vector<1x8x256xf32>,
    %478 = vector.extract_strided_slice %369 {offsets = [24, 0], sizes = [8, 256], strides = [1, 1]} : vector<64x256xf32> to vector<8x256xf32>
    %479 = vector.shape_cast %478 : vector<8x256xf32> to vector<1x8x256xf32>
    %cst_159 = arith.constant dense<0.000000e+00> : vector<1xf32>
    %480 = vector.multi_reduction <add>, %479, %cst_159 [1, 2] : vector<1x8x256xf32> to vector<1xf32>
    %481 = vector.shape_cast %480 : vector<1xf32> to vector<1x1x1xf32>
    %482 = vector.extract %481[0, 0, 0] : f32 from vector<1x1x1xf32>
    %483 = arith.mulf %478, %478 : vector<8x256xf32>
    %484 = vector.shape_cast %483 : vector<8x256xf32> to vector<1x8x256xf32>
    %cst_160 = arith.constant dense<0.000000e+00> : vector<1xf32>
    %485 = vector.multi_reduction <add>, %484, %cst_160 [1, 2] : vector<1x8x256xf32> to vector<1xf32>
    %486 = vector.shape_cast %485 : vector<1xf32> to vector<1x1x1xf32>
    %487 = vector.extract %486[0, 0, 0] : f32 from vector<1x1x1xf32>
    %cst_161 = arith.constant 4.8828125E-4 : f32
    %488 = arith.mulf %482, %cst_161 : f32
    %cst_162 = arith.constant 4.8828125E-4 : f32
    %489 = arith.mulf %487, %cst_162 : f32
    %490 = arith.mulf %488, %488 : f32
    %491 = arith.subf %489, %490 : f32
    %cst_163 = arith.constant 9.99999974E-6 : f32
    %492 = arith.addf %491, %cst_163 : f32
    %493 = math.rsqrt %492 : f32
    %c24_164 = arith.constant 24 : index
    %c3_165 = arith.constant 3 : index
    %494 = vector.load %arg8[%c24_164, %c3_165] : memref<64x40xf32, #tpu.memory_space<vmem>>, vector<8x1xf32>
    %c24_166 = arith.constant 24 : index
    %c4_167 = arith.constant 4 : index
    %495 = vector.load %arg8[%c24_166, %c4_167] : memref<64x40xf32, #tpu.memory_space<vmem>>, vector<8x1xf32>
    %496 = vector.broadcast %493 : f32 to vector<8x1xf32>
    %497 = arith.mulf %496, %494 : vector<8x1xf32>
    %498 = vector.broadcast %488 : f32 to vector<8x1xf32>
    %499 = arith.mulf %498, %497 : vector<8x1xf32>
    %500 = arith.subf %495, %499 : vector<8x1xf32>
    %501 = vector.broadcast %497 : vector<8x1xf32> to vector<8x256xf32>
    %502 = arith.mulf %478, %501 : vector<8x256xf32>
    %503 = vector.broadcast %500 : vector<8x1xf32> to vector<8x256xf32>
    %504 = arith.addf %502, %503 : vector<8x256xf32>
    %505 = arith.negf %504 : vector<8x256xf32>
    %506 = math.exp %505 : vector<8x256xf32>
    %cst_168 = arith.constant 1.000000e+00 : f32
    %507 = vector.broadcast %cst_168 : f32 to vector<8x256xf32>
    %508 = arith.addf %507, %506 : vector<8x256xf32>
    %509 = arith.divf %507, %508 : vector<8x256xf32>
    %510 = arith.mulf %504, %509 : vector<8x256xf32>
    %c0_169 = arith.constant 0 : index
    %c24_170 = arith.constant 24 : index
    %c0_171 = arith.constant 0 : index
    %511 = vector.load %arg9[%c0_169, %c24_170, %c0_171] : memref<1x64x256xf32, #tpu.memory_space<vmem>>, vector<1x8x256xf32>
    %512 = vector.shape_cast %511 : vector<1x8x256xf32> to vector<8x256xf32>
    %513 = vector.shape_cast %510 : vector<8x256xf32> to vector<1x8x256xf32>
    tpu.vector_store %arg9[%c0_169, %c24_170, %c0_171], %513 {strides = array<i32>} : memref<1x64x256xf32, #tpu.memory_space<vmem>>, vector<1x8x256xf32>,
    %514 = vector.extract_strided_slice %369 {offsets = [32, 0], sizes = [8, 256], strides = [1, 1]} : vector<64x256xf32> to vector<8x256xf32>
    %515 = vector.shape_cast %514 : vector<8x256xf32> to vector<1x8x256xf32>
    %cst_172 = arith.constant dense<0.000000e+00> : vector<1xf32>
    %516 = vector.multi_reduction <add>, %515, %cst_172 [1, 2] : vector<1x8x256xf32> to vector<1xf32>
    %517 = vector.shape_cast %516 : vector<1xf32> to vector<1x1x1xf32>
    %518 = vector.extract %517[0, 0, 0] : f32 from vector<1x1x1xf32>
    %519 = arith.mulf %514, %514 : vector<8x256xf32>
    %520 = vector.shape_cast %519 : vector<8x256xf32> to vector<1x8x256xf32>
    %cst_173 = arith.constant dense<0.000000e+00> : vector<1xf32>
    %521 = vector.multi_reduction <add>, %520, %cst_173 [1, 2] : vector<1x8x256xf32> to vector<1xf32>
    %522 = vector.shape_cast %521 : vector<1xf32> to vector<1x1x1xf32>
    %523 = vector.extract %522[0, 0, 0] : f32 from vector<1x1x1xf32>
    %cst_174 = arith.constant 4.8828125E-4 : f32
    %524 = arith.mulf %518, %cst_174 : f32
    %cst_175 = arith.constant 4.8828125E-4 : f32
    %525 = arith.mulf %523, %cst_175 : f32
    %526 = arith.mulf %524, %524 : f32
    %527 = arith.subf %525, %526 : f32
    %cst_176 = arith.constant 9.99999974E-6 : f32
    %528 = arith.addf %527, %cst_176 : f32
    %529 = math.rsqrt %528 : f32
    %c32_177 = arith.constant 32 : index
    %c3_178 = arith.constant 3 : index
    %530 = vector.load %arg8[%c32_177, %c3_178] : memref<64x40xf32, #tpu.memory_space<vmem>>, vector<8x1xf32>
    %c32_179 = arith.constant 32 : index
    %c4_180 = arith.constant 4 : index
    %531 = vector.load %arg8[%c32_179, %c4_180] : memref<64x40xf32, #tpu.memory_space<vmem>>, vector<8x1xf32>
    %532 = vector.broadcast %529 : f32 to vector<8x1xf32>
    %533 = arith.mulf %532, %530 : vector<8x1xf32>
    %534 = vector.broadcast %524 : f32 to vector<8x1xf32>
    %535 = arith.mulf %534, %533 : vector<8x1xf32>
    %536 = arith.subf %531, %535 : vector<8x1xf32>
    %537 = vector.broadcast %533 : vector<8x1xf32> to vector<8x256xf32>
    %538 = arith.mulf %514, %537 : vector<8x256xf32>
    %539 = vector.broadcast %536 : vector<8x1xf32> to vector<8x256xf32>
    %540 = arith.addf %538, %539 : vector<8x256xf32>
    %541 = arith.negf %540 : vector<8x256xf32>
    %542 = math.exp %541 : vector<8x256xf32>
    %cst_181 = arith.constant 1.000000e+00 : f32
    %543 = vector.broadcast %cst_181 : f32 to vector<8x256xf32>
    %544 = arith.addf %543, %542 : vector<8x256xf32>
    %545 = arith.divf %543, %544 : vector<8x256xf32>
    %546 = arith.mulf %540, %545 : vector<8x256xf32>
    %c0_182 = arith.constant 0 : index
    %c32_183 = arith.constant 32 : index
    %c0_184 = arith.constant 0 : index
    %547 = vector.load %arg9[%c0_182, %c32_183, %c0_184] : memref<1x64x256xf32, #tpu.memory_space<vmem>>, vector<1x8x256xf32>
    %548 = vector.shape_cast %547 : vector<1x8x256xf32> to vector<8x256xf32>
    %549 = vector.shape_cast %546 : vector<8x256xf32> to vector<1x8x256xf32>
    tpu.vector_store %arg9[%c0_182, %c32_183, %c0_184], %549 {strides = array<i32>} : memref<1x64x256xf32, #tpu.memory_space<vmem>>, vector<1x8x256xf32>,
    %550 = vector.extract_strided_slice %369 {offsets = [40, 0], sizes = [8, 256], strides = [1, 1]} : vector<64x256xf32> to vector<8x256xf32>
    %551 = vector.shape_cast %550 : vector<8x256xf32> to vector<1x8x256xf32>
    %cst_185 = arith.constant dense<0.000000e+00> : vector<1xf32>
    %552 = vector.multi_reduction <add>, %551, %cst_185 [1, 2] : vector<1x8x256xf32> to vector<1xf32>
    %553 = vector.shape_cast %552 : vector<1xf32> to vector<1x1x1xf32>
    %554 = vector.extract %553[0, 0, 0] : f32 from vector<1x1x1xf32>
    %555 = arith.mulf %550, %550 : vector<8x256xf32>
    %556 = vector.shape_cast %555 : vector<8x256xf32> to vector<1x8x256xf32>
    %cst_186 = arith.constant dense<0.000000e+00> : vector<1xf32>
    %557 = vector.multi_reduction <add>, %556, %cst_186 [1, 2] : vector<1x8x256xf32> to vector<1xf32>
    %558 = vector.shape_cast %557 : vector<1xf32> to vector<1x1x1xf32>
    %559 = vector.extract %558[0, 0, 0] : f32 from vector<1x1x1xf32>
    %cst_187 = arith.constant 4.8828125E-4 : f32
    %560 = arith.mulf %554, %cst_187 : f32
    %cst_188 = arith.constant 4.8828125E-4 : f32
    %561 = arith.mulf %559, %cst_188 : f32
    %562 = arith.mulf %560, %560 : f32
    %563 = arith.subf %561, %562 : f32
    %cst_189 = arith.constant 9.99999974E-6 : f32
    %564 = arith.addf %563, %cst_189 : f32
    %565 = math.rsqrt %564 : f32
    %c40 = arith.constant 40 : index
    %c3_190 = arith.constant 3 : index
    %566 = vector.load %arg8[%c40, %c3_190] : memref<64x40xf32, #tpu.memory_space<vmem>>, vector<8x1xf32>
    %c40_191 = arith.constant 40 : index
    %c4_192 = arith.constant 4 : index
    %567 = vector.load %arg8[%c40_191, %c4_192] : memref<64x40xf32, #tpu.memory_space<vmem>>, vector<8x1xf32>
    %568 = vector.broadcast %565 : f32 to vector<8x1xf32>
    %569 = arith.mulf %568, %566 : vector<8x1xf32>
    %570 = vector.broadcast %560 : f32 to vector<8x1xf32>
    %571 = arith.mulf %570, %569 : vector<8x1xf32>
    %572 = arith.subf %567, %571 : vector<8x1xf32>
    %573 = vector.broadcast %569 : vector<8x1xf32> to vector<8x256xf32>
    %574 = arith.mulf %550, %573 : vector<8x256xf32>
    %575 = vector.broadcast %572 : vector<8x1xf32> to vector<8x256xf32>
    %576 = arith.addf %574, %575 : vector<8x256xf32>
    %577 = arith.negf %576 : vector<8x256xf32>
    %578 = math.exp %577 : vector<8x256xf32>
    %cst_193 = arith.constant 1.000000e+00 : f32
    %579 = vector.broadcast %cst_193 : f32 to vector<8x256xf32>
    %580 = arith.addf %579, %578 : vector<8x256xf32>
    %581 = arith.divf %579, %580 : vector<8x256xf32>
    %582 = arith.mulf %576, %581 : vector<8x256xf32>
    %c0_194 = arith.constant 0 : index
    %c40_195 = arith.constant 40 : index
    %c0_196 = arith.constant 0 : index
    %583 = vector.load %arg9[%c0_194, %c40_195, %c0_196] : memref<1x64x256xf32, #tpu.memory_space<vmem>>, vector<1x8x256xf32>
    %584 = vector.shape_cast %583 : vector<1x8x256xf32> to vector<8x256xf32>
    %585 = vector.shape_cast %582 : vector<8x256xf32> to vector<1x8x256xf32>
    tpu.vector_store %arg9[%c0_194, %c40_195, %c0_196], %585 {strides = array<i32>} : memref<1x64x256xf32, #tpu.memory_space<vmem>>, vector<1x8x256xf32>,
    %586 = vector.extract_strided_slice %369 {offsets = [48, 0], sizes = [8, 256], strides = [1, 1]} : vector<64x256xf32> to vector<8x256xf32>
    %587 = vector.shape_cast %586 : vector<8x256xf32> to vector<1x8x256xf32>
    %cst_197 = arith.constant dense<0.000000e+00> : vector<1xf32>
    %588 = vector.multi_reduction <add>, %587, %cst_197 [1, 2] : vector<1x8x256xf32> to vector<1xf32>
    %589 = vector.shape_cast %588 : vector<1xf32> to vector<1x1x1xf32>
    %590 = vector.extract %589[0, 0, 0] : f32 from vector<1x1x1xf32>
    %591 = arith.mulf %586, %586 : vector<8x256xf32>
    %592 = vector.shape_cast %591 : vector<8x256xf32> to vector<1x8x256xf32>
    %cst_198 = arith.constant dense<0.000000e+00> : vector<1xf32>
    %593 = vector.multi_reduction <add>, %592, %cst_198 [1, 2] : vector<1x8x256xf32> to vector<1xf32>
    %594 = vector.shape_cast %593 : vector<1xf32> to vector<1x1x1xf32>
    %595 = vector.extract %594[0, 0, 0] : f32 from vector<1x1x1xf32>
    %cst_199 = arith.constant 4.8828125E-4 : f32
    %596 = arith.mulf %590, %cst_199 : f32
    %cst_200 = arith.constant 4.8828125E-4 : f32
    %597 = arith.mulf %595, %cst_200 : f32
    %598 = arith.mulf %596, %596 : f32
    %599 = arith.subf %597, %598 : f32
    %cst_201 = arith.constant 9.99999974E-6 : f32
    %600 = arith.addf %599, %cst_201 : f32
    %601 = math.rsqrt %600 : f32
    %c48 = arith.constant 48 : index
    %c3_202 = arith.constant 3 : index
    %602 = vector.load %arg8[%c48, %c3_202] : memref<64x40xf32, #tpu.memory_space<vmem>>, vector<8x1xf32>
    %c48_203 = arith.constant 48 : index
    %c4_204 = arith.constant 4 : index
    %603 = vector.load %arg8[%c48_203, %c4_204] : memref<64x40xf32, #tpu.memory_space<vmem>>, vector<8x1xf32>
    %604 = vector.broadcast %601 : f32 to vector<8x1xf32>
    %605 = arith.mulf %604, %602 : vector<8x1xf32>
    %606 = vector.broadcast %596 : f32 to vector<8x1xf32>
    %607 = arith.mulf %606, %605 : vector<8x1xf32>
    %608 = arith.subf %603, %607 : vector<8x1xf32>
    %609 = vector.broadcast %605 : vector<8x1xf32> to vector<8x256xf32>
    %610 = arith.mulf %586, %609 : vector<8x256xf32>
    %611 = vector.broadcast %608 : vector<8x1xf32> to vector<8x256xf32>
    %612 = arith.addf %610, %611 : vector<8x256xf32>
    %613 = arith.negf %612 : vector<8x256xf32>
    %614 = math.exp %613 : vector<8x256xf32>
    %cst_205 = arith.constant 1.000000e+00 : f32
    %615 = vector.broadcast %cst_205 : f32 to vector<8x256xf32>
    %616 = arith.addf %615, %614 : vector<8x256xf32>
    %617 = arith.divf %615, %616 : vector<8x256xf32>
    %618 = arith.mulf %612, %617 : vector<8x256xf32>
    %c0_206 = arith.constant 0 : index
    %c48_207 = arith.constant 48 : index
    %c0_208 = arith.constant 0 : index
    %619 = vector.load %arg9[%c0_206, %c48_207, %c0_208] : memref<1x64x256xf32, #tpu.memory_space<vmem>>, vector<1x8x256xf32>
    %620 = vector.shape_cast %619 : vector<1x8x256xf32> to vector<8x256xf32>
    %621 = vector.shape_cast %618 : vector<8x256xf32> to vector<1x8x256xf32>
    tpu.vector_store %arg9[%c0_206, %c48_207, %c0_208], %621 {strides = array<i32>} : memref<1x64x256xf32, #tpu.memory_space<vmem>>, vector<1x8x256xf32>,
    %622 = vector.extract_strided_slice %369 {offsets = [56, 0], sizes = [8, 256], strides = [1, 1]} : vector<64x256xf32> to vector<8x256xf32>
    %623 = vector.shape_cast %622 : vector<8x256xf32> to vector<1x8x256xf32>
    %cst_209 = arith.constant dense<0.000000e+00> : vector<1xf32>
    %624 = vector.multi_reduction <add>, %623, %cst_209 [1, 2] : vector<1x8x256xf32> to vector<1xf32>
    %625 = vector.shape_cast %624 : vector<1xf32> to vector<1x1x1xf32>
    %626 = vector.extract %625[0, 0, 0] : f32 from vector<1x1x1xf32>
    %627 = arith.mulf %622, %622 : vector<8x256xf32>
    %628 = vector.shape_cast %627 : vector<8x256xf32> to vector<1x8x256xf32>
    %cst_210 = arith.constant dense<0.000000e+00> : vector<1xf32>
    %629 = vector.multi_reduction <add>, %628, %cst_210 [1, 2] : vector<1x8x256xf32> to vector<1xf32>
    %630 = vector.shape_cast %629 : vector<1xf32> to vector<1x1x1xf32>
    %631 = vector.extract %630[0, 0, 0] : f32 from vector<1x1x1xf32>
    %cst_211 = arith.constant 4.8828125E-4 : f32
    %632 = arith.mulf %626, %cst_211 : f32
    %cst_212 = arith.constant 4.8828125E-4 : f32
    %633 = arith.mulf %631, %cst_212 : f32
    %634 = arith.mulf %632, %632 : f32
    %635 = arith.subf %633, %634 : f32
    %cst_213 = arith.constant 9.99999974E-6 : f32
    %636 = arith.addf %635, %cst_213 : f32
    %637 = math.rsqrt %636 : f32
    %c56 = arith.constant 56 : index
    %c3_214 = arith.constant 3 : index
    %638 = vector.load %arg8[%c56, %c3_214] : memref<64x40xf32, #tpu.memory_space<vmem>>, vector<8x1xf32>
    %c56_215 = arith.constant 56 : index
    %c4_216 = arith.constant 4 : index
    %639 = vector.load %arg8[%c56_215, %c4_216] : memref<64x40xf32, #tpu.memory_space<vmem>>, vector<8x1xf32>
    %640 = vector.broadcast %637 : f32 to vector<8x1xf32>
    %641 = arith.mulf %640, %638 : vector<8x1xf32>
    %642 = vector.broadcast %632 : f32 to vector<8x1xf32>
    %643 = arith.mulf %642, %641 : vector<8x1xf32>
    %644 = arith.subf %639, %643 : vector<8x1xf32>
    %645 = vector.broadcast %641 : vector<8x1xf32> to vector<8x256xf32>
    %646 = arith.mulf %622, %645 : vector<8x256xf32>
    %647 = vector.broadcast %644 : vector<8x1xf32> to vector<8x256xf32>
    %648 = arith.addf %646, %647 : vector<8x256xf32>
    %649 = arith.negf %648 : vector<8x256xf32>
    %650 = math.exp %649 : vector<8x256xf32>
    %cst_217 = arith.constant 1.000000e+00 : f32
    %651 = vector.broadcast %cst_217 : f32 to vector<8x256xf32>
    %652 = arith.addf %651, %650 : vector<8x256xf32>
    %653 = arith.divf %651, %652 : vector<8x256xf32>
    %654 = arith.mulf %648, %653 : vector<8x256xf32>
    %c0_218 = arith.constant 0 : index
    %c56_219 = arith.constant 56 : index
    %c0_220 = arith.constant 0 : index
    %655 = vector.load %arg9[%c0_218, %c56_219, %c0_220] : memref<1x64x256xf32, #tpu.memory_space<vmem>>, vector<1x8x256xf32>
    %656 = vector.shape_cast %655 : vector<1x8x256xf32> to vector<8x256xf32>
    %657 = vector.shape_cast %654 : vector<8x256xf32> to vector<1x8x256xf32>
    tpu.vector_store %arg9[%c0_218, %c56_219, %c0_220], %657 {strides = array<i32>} : memref<1x64x256xf32, #tpu.memory_space<vmem>>, vector<1x8x256xf32>,
    return
  }
  func.func @transform_0(%arg0: i32) -> (i32, i32, i32) {
    %c0_i32 = arith.constant 0 : i32
    %c0_i32_0 = arith.constant 0 : i32
    %c0_i32_1 = arith.constant 0 : i32
    return %arg0, %c0_i32, %c0_i32_0 : i32, i32, i32
  }
  func.func @transform_1(%arg0: i32) -> (i32, i32) {
    %c0_i32 = arith.constant 0 : i32
    %c0_i32_0 = arith.constant 0 : i32
    %c0_i32_1 = arith.constant 0 : i32
    return %c0_i32, %c0_i32_0 : i32, i32
  }
  func.func @transform_2(%arg0: i32) -> (i32, i32) {
    %c0_i32 = arith.constant 0 : i32
    %c0_i32_0 = arith.constant 0 : i32
    %c0_i32_1 = arith.constant 0 : i32
    return %c0_i32, %c0_i32_0 : i32, i32
  }
  func.func @transform_3(%arg0: i32) -> (i32, i32) {
    %c0_i32 = arith.constant 0 : i32
    %c0_i32_0 = arith.constant 0 : i32
    %c0_i32_1 = arith.constant 0 : i32
    return %c0_i32, %c0_i32_0 : i32, i32
  }
  func.func @transform_4(%arg0: i32) -> (i32, i32) {
    %c0_i32 = arith.constant 0 : i32
    %c0_i32_0 = arith.constant 0 : i32
    %c0_i32_1 = arith.constant 0 : i32
    return %c0_i32, %c0_i32_0 : i32, i32
  }
  func.func @transform_5(%arg0: i32) -> (i32, i32) {
    %c0_i32 = arith.constant 0 : i32
    %c0_i32_0 = arith.constant 0 : i32
    %c0_i32_1 = arith.constant 0 : i32
    return %c0_i32, %c0_i32_0 : i32, i32
  }
  func.func @transform_6(%arg0: i32) -> (i32, i32) {
    %c0_i32 = arith.constant 0 : i32
    %c0_i32_0 = arith.constant 0 : i32
    %c0_i32_1 = arith.constant 0 : i32
    return %c0_i32, %c0_i32_0 : i32, i32
  }
  func.func @transform_7(%arg0: i32) -> (i32, i32) {
    %c0_i32 = arith.constant 0 : i32
    %c0_i32_0 = arith.constant 0 : i32
    %c0_i32_1 = arith.constant 0 : i32
    return %c0_i32, %c0_i32_0 : i32, i32
  }
  func.func @transform_8(%arg0: i32) -> (i32, i32, i32) {
    %c0_i32 = arith.constant 0 : i32
    %c0_i32_0 = arith.constant 0 : i32
    %c0_i32_1 = arith.constant 0 : i32
    return %arg0, %c0_i32, %c0_i32_0 : i32, i32, i32
  }
}

</mosaic_0001>

<bundles_post_ra>
// kernel: mscb_forward.1
= control target key start
LH: loop header
LB: loop body
LE: loop exit
PB: predicated region body
PF: predicated region fallthrough
CT: control target
= control target key end

     0   :  { %s7091_s27 = smov 0   ;;  %s11948_s0 = inlined_call_operand.vmem [shape: f32[2,64,256], index: 0, kind: input, shape index: {}]   ;;  %s11949_s1 = inlined_call_operand.vmem [shape: bf16[32,64], index: 1, kind: input, shape index: {}]   ;;  %s11950_s2 = inlined_call_operand.vmem [shape: bf16[192,32], index: 2, kind: input, shape index: {}]   ;;  %s11951_s3 = inlined_call_operand.vmem [shape: f32[8,64], index: 3, kind: input, shape index: {}]   ;;  %s11952_s4 = inlined_call_operand.vmem [shape: f32[64,8], index: 4, kind: input, shape index: {}]   ;;  %s11953_s5 = inlined_call_operand.vmem [shape: bf16[512,256], index: 5, kind: input, shape index: {}]   ;;  %s11954_s6 = inlined_call_operand.vmem [shape: f32[25,256], index: 6, kind: input, shape index: {}]   ;;  %s11955_s7 = inlined_call_operand.vmem [shape: f32[64,40], index: 7, kind: input, shape index: {}]   ;;  %s11956_s8 = inlined_call_operand.vmem [shape: f32[2,64,256], index: 8, kind: output, shape index: {}]  }
   0x1 LB: > { %s5865_s28 = sadd.s32 4294967295, %s6978_s27   ;;  %p5869_p0 = scmp.ge.s32.totalorder %s6978_s27, 1  ;;  %s6978_s27 = sphi %s7091_s27, %s18_s27  }
   0x2   : > { %p262_p1 = scmp.lt.s32.totalorder %s6978_s27, 3 }
   0x4   : > { %p263_p2 = pnand %p5869_p0, %p262_p1 }
   0x6   : > { %266 = sbr.rel (%p263_p2) target bundleno = 3414 (0xd56), region = 52 }
   0xb   : > { %p296_p3 = scmp.lt.s32.totalorder %s5865_s28, 1  ;;  %v7102_v0 = vld [vmem:[%s11955_s7] sm:$0xff]  ;;  %v7107_v1 = vld [vmem:[%s11955_s7 + $0x10] sm:$0xff]  ;;  %v6980_v2 = vmov 0   ;;  %v7116_v3 = vld [vmem:[%s11955_s7 + $0x18] sm:$0xff]  ;;  %v6981_v4 = vmov 6  }
   0xc   : > { %6519 = vset.pattern.permute.xlu1 %v6980_v2  ;;  %6518 = vset.pattern.permute.xlu0 %v6980_v2  ;;  %v7131_v5 = vld [vmem:[%s11955_s7 + $0x8] sm:$0xff]  ;;  %v6982_v30 = vmov 8   ;;  %v6316_v31 = vld [vmem:[%s11949_s1] sm:$0xff]  ;;  %v6983_v32 = vmov 9   ;;  %vm369_vm0 = vcmask 523264   ;;  %v6984_v33 = vmov 7  }
   0xd   : > { %s12879_s28 = smov (!%p296_p3, %s5865_s28), 1  ;;  %341 = vperm.xlu1 %6519, %v7102_v0   ;;  %351 = vperm.xlu0 %6518, %v7107_v1   ;;  %v6317_v34 = vld [vmem:[%s11949_s1 + $0x8] sm:$0xff]  ;;  %v6985_v35 = vmov 10   ;;  %v6986_v36 = vmov 11   ;;  %s6987_s23 = smov 16  }
   0xe   : > { %6521 = vset.pattern.permute.xlu2 %v6981_v4  ;;  %s6314_s13 = sshll.u32 %s12879_s28, 7  ;;  %s6988_s24 = smov 17  }
   0xf   : > { %1182 = vperm.xlu2 %6521, %v7116_v3   ;;  %s7126_s16 = scalar_lea.vmem %s11948_s0, %s6314_s13  ;;  %s6989_s25 = smov 1  }
  0x10   : > { %v319_v6 = vld [vmem:[%s7126_s16 + $0x60] sm:$0xff]  ;;  %v321_v7 = vld [vmem:[%s7126_s16 + $0x70] sm:$0xff]  ;;  %v320_v8 = vld [vmem:[%s7126_s16 + $0x68] sm:$0xff]  ;;  %s6990_s26 = smov 15   ;;  %s6991_s29 = smov 127  }
  0x11   : > { %v337_v9 = vpack.c.bf16 %v321_v7, %v319_v6  ;;  %v322_v10 = vld [vmem:[%s7126_s16 + $0x78] sm:$0xff]  ;;  %v315_v11 = vld [vmem:[%s7126_s16 + $0x40] sm:$0xff]  ;;  %v317_v12 = vld [vmem:[%s7126_s16 + $0x50] sm:$0xff]  ;;  %s6992_s30 = smov 113   ;;  %s6994_s9 = smov 112  }
  0x12   : > { %v338_v13 = vpack.c.bf16 %v322_v10, %v320_v8  ;;  %v316_v14 = vld [vmem:[%s7126_s16 + $0x48] sm:$0xff]  ;;  %v318_v15 = vld [vmem:[%s7126_s16 + $0x58] sm:$0xff]  ;;  %v335_v16 = vpack.c.bf16 %v317_v12, %v315_v11  ;;  %v311_v18 = vld [vmem:[%s7126_s16 + $0x20] sm:$0xff]  ;;  %s6995_s10 = smov 111   ;;  %s6997_s11 = smov 34  }
  0x13   : > { %380 = vmatpush.bf16.msra.mxu0 %v337_v9  ;;  %v336_v17 = vpack.c.bf16 %v318_v15, %v316_v14  ;;  %v313_v19 = vld [vmem:[%s7126_s16 + $0x30] sm:$0xff]  ;;  %v312_v20 = vld [vmem:[%s7126_s16 + $0x28] sm:$0xff]  ;;  %v314_v21 = vld [vmem:[%s7126_s16 + $0x38] sm:$0xff]  ;;  %s7000_s12 = smov 33   ;;  %s7001_s14 = smov 32  }
  0x14   : > { %399 = vmatpush.bf16.msra.mxu1 %v338_v13  ;;  %v333_v22 = vpack.c.bf16 %v313_v19, %v311_v18  ;;  %v334_v23 = vpack.c.bf16 %v314_v21, %v312_v20  ;;  %v307_v24 = vld [vmem:[%s7126_s16] sm:$0xff]  ;;  %v309_v25 = vld [vmem:[%s7126_s16 + $0x10] sm:$0xff]  ;;  %v308_v26 = vld [vmem:[%s7126_s16 + $0x8] sm:$0xff]  ;;  %s7003_s15 = smov 31   ;;  %s7006_s19 = smov 18  }
  0x15   : > { %346 = vperm.xlu1 %6519, %v7131_v5   ;;  %356 = vperm.xlu0 %6518, %v7116_v3   ;;  %v310_v27 = vld [vmem:[%s7126_s16 + $0x18] sm:$0xff]  ;;  %v331_v28 = vpack.c.bf16 %v309_v25, %v307_v24  ;;  %s7024_s17 = smov 110   ;;  %s7026_s18 = smov 98  }
  0x16   : > { %v332_v29 = vpack.c.bf16 %v310_v27, %v308_v26  ;;  %s7029_s21 = smov 97   ;;  %s7030_s22 = smov 96  }
  0x17   : > { %1174 = vperm.xlu2 %6521, %v7131_v5   ;;  %381 = vmatpush.bf16.msra.mxu0 %v335_v16 }
  0x18   : > { %400 = vmatpush.bf16.msra.mxu1 %v336_v17 }
  0x1b   : > { %382 = vmatpush.bf16.msra.mxu0 %v333_v22 }
  0x1c   : > { %401 = vmatpush.bf16.msra.mxu1 %v334_v23 }
  0x1d   : > { %6520 = vset.pattern.permute.xlu1 %v6981_v4  ;;  %6523 = vset.pattern.permute.xlu0 %v6982_v30 }
  0x1e   : > { %1178 = vperm.xlu1 %6520, %v7107_v1   ;;  %1410 = vperm.xlu0 %6523, %v7107_v1  }
  0x1f   : > { %6528 = vset.pattern.permute.xlu2 %v6983_v32  ;;  %383 = vmatpush.bf16.msra.mxu0 %v331_v28 }
  0x20   : > { %1694 = vperm.xlu2 %6528, %v7107_v1   ;;  %402 = vmatpush.bf16.msra.mxu1 %v332_v29 }
  0x22   : > { %5882 = vmatmul.msk.bf16.vlgmr.msra.gmra.mxu0 %vm369_vm0, %v6316_v31 }
  0x23   : > { %5884 = vmatmul.msk.bf16.vlgmr.msra.gmra.mxu1 %vm369_vm0, %v6316_v31 }
  0x26   : > { %6522 = vset.pattern.permute.xlu1 %v6984_v33  ;;  %6524 = vset.pattern.permute.xlu0 %v6984_v33 }
  0x27   : > { %1298 = vperm.xlu1 %6522, %v7116_v3   ;;  %1294 = vperm.xlu0 %6524, %v7107_v1  }
  0x28   : > { %6531 = vset.pattern.permute.xlu2 %v6982_v30 }
  0x29   : > { %1406 = vperm.xlu2 %6531, %v7131_v5  }
  0x2f   : > { %6525 = vset.pattern.permute.xlu1 %v6982_v30  ;;  %1286 = vperm.xlu0 %6524, %v7102_v0  }
  0x30   : > { %1414 = vperm.xlu1 %6525, %v7116_v3  }
  0x31   : > { %6535 = vset.pattern.permute.xlu2 %v6983_v32 }
  0x32   : > { %1690 = vperm.xlu2 %6535, %v7131_v5   ;;  %5883 = vmatmul.msk.bf16.gmra.mxu0 %vm369_vm0, %v6317_v34 }
  0x33   : > { %5885 = vmatmul.msk.bf16.gmra.mxu1 %vm369_vm0, %v6317_v34 }
  0x37   : > { %6532 = vset.pattern.permute.xlu0 %v6985_v35 }
  0x38   : > { %6526 = vset.pattern.permute.xlu1 %v6981_v4  ;;  %1758 = vperm.xlu0 %6532, %v7107_v1  }
  0x39   : > { %1170 = vperm.xlu1 %6526, %v7102_v0  }
  0x3a   : > { %6537 = vset.pattern.permute.xlu2 %v6985_v35 }
  0x3b   : > { %1750 = vperm.xlu2 %6537, %v7102_v0  }
  0x40   : > { %1754 = vperm.xlu0 %6532, %v7131_v5  }
  0x41   : > { %6527 = vset.pattern.permute.xlu1 %v6984_v33 }
  0x42   : > { %1290 = vperm.xlu1 %6527, %v7131_v5  }
  0x48   : > { %6538 = vset.pattern.permute.xlu0 %v6986_v36 }
  0x4a   : > { %6529 = vset.pattern.permute.xlu1 %v6983_v32 }
  0x4b   : > { %1698 = vperm.xlu1 %6529, %v7116_v3  }
  0x53   : > { %6530 = vset.pattern.permute.xlu1 %v6982_v30 }
  0x54   : > { %1402 = vperm.xlu1 %6530, %v7102_v0  }
  0x5c   : > { %6533 = vset.pattern.permute.xlu1 %v6985_v35 }
  0x5d   : > { %1762 = vperm.xlu1 %6533, %v7116_v3  }
  0x65   : > { %6534 = vset.pattern.permute.xlu1 %v6983_v32 }
  0x66   : > { %1686 = vperm.xlu1 %6534, %v7102_v0  }
  0x6e   : > { %6536 = vset.pattern.permute.xlu1 %v6986_v36 }
  0x6f   : > { %1878 = vperm.xlu1 %6536, %v7116_v3  }
  0x7f   : > { %v342_v37 = vpop.permute.xlu1 %341  ;;  %v352_v55 = vpop.permute.xlu0 %351 }
  0x87   : > { %v347_v44 = vpop.permute.xlu1 %346 }
  0x9f   : > { %v385_v38 = vpop.f32.mrf.mxu0 }
  0xa0   : > { %v7185_v39 = vadd.f32 %v385_v38, %v342_v37  ;;  %v404_v40 = vpop.f32.mrf.mxu1 }
  0xa1   : > { %v7187_v41 = vadd.f32 %v404_v40, %v342_v37 }
  0xa2   : > { %v5886_v42 = vmul.f32 -1.442695, %v7185_v39 }
  0xa3   : > { %v5887_v43 = vmul.f32 -1.442695, %v7187_v41 }
  0xa4   : > { %6660 = vpow2.f32 %v5886_v42 }
  0xa5   : > { %6662 = vpow2.f32 %v5887_v43 }
  0xa7   : > { %v387_v45 = vpop.f32.mrf.mxu0 }
  0xa8   : > { %v7191_v46 = vadd.f32 %v387_v45, %v347_v44  ;;  %v406_v47 = vpop.f32.mrf.mxu1 }
  0xa9   : > { %v7193_v48 = vadd.f32 %v406_v47, %v347_v44 }
  0xaa   : > { %v6661_v49 = vpop.eup %6660  ;;  %v5888_v50 = vmul.f32 -1.442695, %v7191_v46 }
  0xab   : > { %v6663_v51 = vpop.eup %6662  ;;  %v438_v52 = vadd.f32 1.0, %v6661_v49  ;;  %v5889_v53 = vmul.f32 -1.442695, %v7193_v48 }
  0xac   : > { %v439_v54 = vadd.f32 1.0, %v6663_v51  ;;  %6664 = vpow2.f32 %v5888_v50  ;;  %v357_v50 = vpop.permute.xlu0 %356 }
  0xad   : > { %6666 = vrcp.f32 %v438_v52  ;;  %v455_v8 = vand.u32 2147483647, %v438_v52  ;;  %v457_v9 = vand.u32 2147483648, %v438_v52  ;;  %vm451_vm3 = vweird.f32 %v438_v52 }
  0xae   : > { %6668 = vrcp.f32 %v439_v54  ;;  %v472_v12 = vand.u32 2147483648, %v439_v54  ;;  %v470_v14 = vand.u32 2147483647, %v439_v54  ;;  %vm466_vm5 = vweird.f32 %v439_v54 }
  0xaf   : > { %6670 = vpow2.f32 %v5889_v53  ;;  %v390_v56 = vpop.f32.mrf.mxu0  ;;  %v458_v19 = vor.u32 1.1754944e-38, %v457_v9  ;;  %vm456_vm6 = vcmp.eq.f32.partialorder %v455_v8, 8.507059e+37 }
  0xb0   : > { %v7197_v58 = vadd.f32 %v390_v56, %v352_v55  ;;  %v409_v15 = vpop.f32.mrf.mxu1  ;;  %v473_v22 = vor.u32 1.1754944e-38, %v472_v12  ;;  %vm471_vm8 = vcmp.eq.f32.partialorder %v470_v14, 8.507059e+37 }
  0xb1   : > { %v7203_v17 = vadd.f32 %v409_v15, %v352_v55 }
  0xb2   : > { %v6665_v57 = vpop.eup %6664  ;;  %v5890_v7 = vmul.f32 -1.442695, %v7197_v58 }
  0xb3   : > { %v6667_v59 = vpop.eup %6666  ;;  %v440_v60 = vadd.f32 1.0, %v6665_v57  ;;  %v5891_v30 = vmul.f32 -1.442695, %v7203_v17 }
  0xb4   : > { %v6669_v61 = vpop.eup %6668  ;;  %v447_v62 = vmul.f32 %v6667_v59, %v438_v52  ;;  %vm452_vm1 = vweird.f32 %v6667_v59 }
  0xb5   : > { %v6671_v63 = vpop.eup %6670  ;;  %v462_v2 = vmul.f32 %v6669_v61, %v439_v54  ;;  %6672 = vrcp.f32 %v440_v60  ;;  %vm467_vm2 = vweird.f32 %v6669_v61  ;;  %vm453_vm4 = vmor %vm451_vm3, %vm452_vm1  ;;  %v487_v32 = vand.u32 2147483648, %v440_v60 }
  0xb6   : > { %v448_v4 = vsub.f32 1.0, %v447_v62  ;;  %v7199_v6 = vadd.f32 1.0, %v6671_v63  ;;  %vm468_vm7 = vmor %vm466_vm5, %vm467_vm2  ;;  %v485_v35 = vand.u32 2147483647, %v440_v60  ;;  %vm481_vm10 = vweird.f32 %v440_v60  ;;  %v7256_v63 = vpop.permute.xlu1 %1178 }
  0xb7   : > { %v463_v10 = vsub.f32 1.0, %v462_v2  ;;  %12274 = vst [vmem:[#allocation4_spill] sm:$0xff] %v7256_v63 }
  0xb8   : > { %v449_v11 = vmul.f32 %v6667_v59, %v448_v4  ;;  %6674 = vrcp.f32 %v7199_v6  ;;  %vm486_vm12 = vcmp.eq.f32.partialorder %v485_v35, 8.507059e+37  ;;  %v411_v45 = vpop.f32.mrf.mxu1  ;;  %v502_v54 = vand.u32 2147483648, %v7199_v6 }
  0xb9   : > { %v464_v13 = vmul.f32 %v6669_v61, %v463_v10  ;;  %6676 = vpow2.f32 %v5890_v7  ;;  %v7235_v51 = vadd.f32 %v411_v45, %v357_v50  ;;  %vm496_vm14 = vweird.f32 %v7199_v6 }
  0xba   : > { %v450_v16 = vadd.f32 %v6667_v59, %v449_v11  ;;  %6678 = vpow2.f32 %v5891_v30  ;;  %v500_v55 = vand.u32 2147483647, %v7199_v6  ;;  %v503_v62 = vor.u32 1.1754944e-38, %v502_v54 }
  0xbb   : > { %v6673_v18 = vpop.eup %6672  ;;  %v465_v20 = vadd.f32 %v6669_v61, %v464_v13  ;;  %v5893_v56 = vmul.f32 -1.442695, %v7235_v51 }
  0xbc   : > { %v454_v21 = vsel %vm453_vm4, %v6667_v59, %v450_v16  ;;  %v477_v23 = vmul.f32 %v6673_v18, %v440_v60  ;;  %vm482_vm9 = vweird.f32 %v6673_v18  ;;  %v392_v59 = vpop.f32.mrf.mxu0  ;;  %vm501_vm1 = vcmp.eq.f32.partialorder %v500_v55, 8.507059e+37 }
  0xbd   : > { %v459_v24 = vsel %vm456_vm6, %v458_v19, %v454_v21  ;;  %v469_v25 = vsel %vm468_vm7, %v6669_v61, %v465_v20  ;;  %vm483_vm11 = vmor %vm481_vm10, %vm482_vm9  ;;  %v7262_v2 = vadd.f32 %v392_v59, %v357_v50 }
  0xbe   : > { %v7205_v26 = vpop.eup %6674  ;;  %v7208_v27 = vmul.f32 %v459_v24, %v7185_v39  ;;  %v474_v28 = vsel %vm471_vm8, %v473_v22, %v469_v25  ;;  %v478_v29 = vsub.f32 1.0, %v477_v23  ;;  %v488_v39 = vor.u32 1.1754944e-38, %v487_v32  ;;  %v7282_v23 = vpop.permute.xlu2 %1182 }
  0xbf   : > { %v7212_v31 = vmul.f32 %v474_v28, %v7187_v41  ;;  %v6677_v33 = vpop.eup %6676  ;;  %v492_v37 = vmul.f32 %v7205_v26, %v7199_v6  ;;  %vm497_vm13 = vweird.f32 %v7205_v26  ;;  %v5892_v9 = vmul.f32 -1.442695, %v7262_v2  ;;  %12277 = vst [vmem:[#allocation7_spill] sm:$0xff] %v7282_v23 }
  0xc0   : > { %12270 = vst [vmem:[#allocation2_spill] sm:$0xff] %v7208_v27  ;;  %v479_v34 = vmul.f32 %v6673_v18, %v478_v29  ;;  %1213 = vrot.lane.b32.xlu0 %v7208_v27, %s6987_s23  ;;  %v7222_v40 = vadd.f32 1.0, %v6677_v33  ;;  %v6679_v47 = vpop.eup %6678  ;;  %vm7245_vm15 = vmor %vm496_vm14, %vm497_vm13 }
  0xc1   : > { %1201 = vrot.lane.b32.xlu1 %v7212_v31, %s6987_s23  ;;  %1085 = vrot.lane.b32.xlu2 %v7212_v31, %s6988_s24  ;;  %v493_v42 = vsub.f32 1.0, %v492_v37 }
  0xc2   : > { %v480_v38 = vadd.f32 %v6673_v18, %v479_v34  ;;  %6680 = vrcp.f32 %v7222_v40  ;;  %vm511_vm2 = vweird.f32 %v7222_v40  ;;  %v517_v13 = vand.u32 2147483648, %v7222_v40 }
  0xc3   : > { %v494_v49 = vmul.f32 %v7205_v26, %v493_v42  ;;  %v515_v16 = vand.u32 2147483647, %v7222_v40 }
  0xc4   : > { %v484_v41 = vsel %vm483_vm11, %v6673_v18, %v480_v38  ;;  %v518_v19 = vor.u32 1.1754944e-38, %v517_v13 }
  0xc5   : > { %v489_v43 = vsel %vm486_vm12, %v488_v39, %v484_v41  ;;  %v495_v52 = vadd.f32 %v7205_v26, %v494_v49  ;;  %vm516_vm5 = vcmp.eq.f32.partialorder %v515_v16, 8.507059e+37 }
  0xc6   : > { %v7225_v44 = vmul.f32 %v489_v43, %v7191_v46  ;;  %v7237_v46 = vadd.f32 1.0, %v6679_v47  ;;  %v7302_v38 = vpop.permute.xlu2 %1174 }
  0xc7   : > { %v499_v60 = vsel %vm7245_vm15, %v7205_v26, %v495_v52 }
  0xc8   : > { %12271 = vst [vmem:[#allocation3_spill] sm:$0xff] %v7225_v44  ;;  %1099 = vrot.lane.b32.xlu0 %v7225_v44, %s6988_s24  ;;  %v6681_v53 = vpop.eup %6680  ;;  %6682 = vrcp.f32 %v7237_v46  ;;  %v504_v4 = vsel %vm501_vm1, %v503_v62, %v499_v60  ;;  %vm526_vm6 = vweird.f32 %v7237_v46  ;;  %v532_v25 = vand.u32 2147483648, %v7237_v46 }
  0xc9   : > { %1613 = vrot.lane.b32.xlu1 %v7208_v27, %s6989_s25  ;;  %1097 = vrot.lane.b32.xlu2 %v7208_v27, %s6988_s24  ;;  %v507_v61 = vmul.f32 %v6681_v53, %v7222_v40  ;;  %6684 = vpow2.f32 %v5893_v56  ;;  %v7265_v8 = vmul.f32 %v504_v4, %v7193_v48  ;;  %vm512_vm3 = vweird.f32 %v6681_v53  ;;  %v7276_v48 = vpop.permute.xlu1 %1298 }
  0xca   : > { %6686 = vpow2.f32 %v5892_v9  ;;  %12276 = vst [vmem:[#allocation6_spill] sm:$0xff] %v7276_v48  ;;  %vm513_vm4 = vmor %vm511_vm2, %vm512_vm3  ;;  %v530_v29 = vand.u32 2147483647, %v7237_v46  ;;  %v533_v34 = vor.u32 1.1754944e-38, %v532_v25  ;;  %vm1221_vm3 = vcmask 130048  }
  0xcb   : > { %v508_v6 = vsub.f32 1.0, %v507_v61  ;;  %12275 = vst [vmem:[#allocation5_spill] sm:$0xff] %v7265_v8 }
  0xcc   : > { %vm531_vm9 = vcmp.eq.f32.partialorder %v530_v29, 8.507059e+37 }
  0xcd   : > { %v509_v11 = vmul.f32 %v6681_v53, %v508_v6 }
  0xce   : > { %v6683_v7 = vpop.eup %6682 }
  0xcf   : > { %v6685_v10 = vpop.eup %6684  ;;  %v522_v12 = vmul.f32 %v6683_v7, %v7237_v46  ;;  %v510_v15 = vadd.f32 %v6681_v53, %v509_v11  ;;  %vm527_vm7 = vweird.f32 %v6683_v7  ;;  %v7315_v46 = vpop.permute.xlu2 %1694 }
  0xd0   : > { %1331 = vrot.lane.b32.xlu0 %v7225_v44, %s6990_s26  ;;  %v445_v14 = vadd.f32 1.0, %v6685_v10  ;;  %v6687_v20 = vpop.eup %6686  ;;  %vm528_vm8 = vmor %vm526_vm6, %vm527_vm7  ;;  %12281 = vst [vmem:[#allocation11_spill] sm:$0xff] %v7315_v46  ;;  %v7338_v10 = vpop.permute.xlu0 %1410  ;;  %vm1621_vm6 = vcmask 7168   ;;  %vm1797_vm7 = vcmask 1039360  }
  0xd1   : > { %1783 = vrot.lane.b32.xlu1 %v7212_v31, %s6991_s29  ;;  %1317 = vrot.lane.b32.xlu2 %v7212_v31, %s6990_s26  ;;  %v523_v18 = vsub.f32 1.0, %v522_v12  ;;  %v514_v21 = vsel %vm513_vm4, %v6681_v53, %v510_v15  ;;  %v444_v26 = vadd.f32 1.0, %v6687_v20  ;;  %v7291_v32 = vpop.permute.xlu1 %1414  ;;  %12285 = vst [vmem:[#allocation15_spill] sm:$0xff] %v7338_v10  ;;  %v6993_v12 = vmov 12  }
  0xd2   : > { %6688 = vrcp.f32 %v445_v14  ;;  %v519_v24 = vsel %vm516_vm5, %v518_v19, %v514_v21  ;;  %12278 = vst [vmem:[#allocation8_spill] sm:$0xff] %v7291_v32  ;;  %vm556_vm10 = vweird.f32 %v445_v14  ;;  %v562_v47 = vand.u32 2147483648, %v445_v14  ;;  %6539 = vset.pattern.permute.xlu1 %v6993_v12  ;;  %6540 = vset.pattern.permute.xlu2 %v6993_v12 }
  0xd3   : > { %v524_v22 = vmul.f32 %v6683_v7, %v523_v18  ;;  %v7294_v33 = vmul.f32 %v519_v24, %v7197_v58  ;;  %6690 = vrcp.f32 %v444_v26  ;;  %vm541_vm14 = vweird.f32 %v444_v26 }
  0xd4   : > { %v563_v52 = vor.u32 1.1754944e-38, %v562_v47  ;;  %v547_v56 = vand.u32 2147483648, %v444_v26  ;;  %v545_v60 = vand.u32 2147483647, %v444_v26  ;;  %vm1105_vm4 = vcmask 138240  }
  0xd5   : > { %v525_v28 = vadd.f32 %v6683_v7, %v524_v22  ;;  %12279 = vst [vmem:[#allocation9_spill] sm:$0xff] %v7294_v33  ;;  %vm1337_vm5 = vcmask 121856  }
  0xd6   : > { %v548_v4 = vor.u32 1.1754944e-38, %v547_v56  ;;  %vm546_vm2 = vcmp.eq.f32.partialorder %v545_v60, 8.507059e+37 }
  0xd7   : > { %v529_v35 = vsel %vm528_vm8, %v6683_v7, %v525_v28  ;;  %v7328_v62 = vpop.permute.xlu2 %1406  ;;  %vm2081_vm8 = vcmask 924672  }
  0xd8   : > { %1603 = vrot.lane.b32.xlu0 %v7265_v8, %s6989_s25  ;;  %v6689_v30 = vpop.eup %6688  ;;  %v534_v39 = vsel %vm531_vm9, %v533_v34, %v529_v35  ;;  %12283 = vst [vmem:[#allocation13_spill] sm:$0xff] %v7328_v62  ;;  %vm2197_vm9 = vcmask 916480  }
  0xd9   : > { %1087 = vrot.lane.b32.xlu1 %v7265_v8, %s6988_s24  ;;  %1329 = vrot.lane.b32.xlu2 %v7208_v27, %s6990_s26  ;;  %v552_v37 = vmul.f32 %v6689_v30, %v445_v14  ;;  %v6691_v58 = vpop.eup %6690  ;;  %v7305_v41 = vmul.f32 %v534_v39, %v7203_v17  ;;  %v7307_v42 = vpop.permute.xlu1 %1170  ;;  %vm557_vm11 = vweird.f32 %v6689_v30  ;;  %v560_v17 = vand.u32 2147483647, %v445_v14 }
  0xda   : > { %v537_v43 = vmul.f32 %v6691_v58, %v444_v26  ;;  %vm558_vm12 = vmor %vm556_vm10, %vm557_vm11  ;;  %vm542_vm15 = vweird.f32 %v6691_v58  ;;  %vm2313_vm10 = vcmask 908288   ;;  %vm685_vm11 = vcmask 269312  }
  0xdb   : > { %v553_v40 = vsub.f32 1.0, %v552_v37  ;;  %12280 = vst [vmem:[#allocation10_spill] sm:$0xff] %v7305_v41  ;;  %vm561_vm13 = vcmp.eq.f32.partialorder %v560_v17, 8.507059e+37  ;;  %vm543_vm1 = vmor %vm541_vm14, %vm542_vm15  ;;  %vm853_vm14 = vcmask 252928   ;;  %vm937_vm15 = vcmask 244736  }
  0xdc   : > { %v538_v49 = vsub.f32 1.0, %v537_v43 }
  0xdd   : > { %v554_v45 = vmul.f32 %v6689_v30, %v553_v40 }
  0xde   : > { %v539_v53 = vmul.f32 %v6691_v58, %v538_v49  ;;  %v6996_v49 = vmov 13  }
  0xdf   : > { %v555_v50 = vadd.f32 %v6689_v30, %v554_v45  ;;  %v7345_v11 = vpop.permute.xlu2 %1690 }
  0xe0   : > { %1787 = vrot.lane.b32.xlu0 %v7265_v8, %s6991_s29  ;;  %v540_v59 = vadd.f32 %v6691_v58, %v539_v53  ;;  %12287 = vst [vmem:[#allocation17_spill] sm:$0xff] %v7345_v11  ;;  %v5901_v11 = vld [vmem:[%s11954_s6 + $0x10] ss:$8 sm:$0x3] }
  0xe1   : > { %1215 = vrot.lane.b32.xlu1 %v7225_v44, %s6987_s23  ;;  %1601 = vrot.lane.b32.xlu2 %v7212_v31, %s6989_s25  ;;  %v559_v54 = vsel %vm558_vm12, %v6689_v30, %v555_v50  ;;  %v7319_v55 = vpop.permute.xlu1 %1290  ;;  %vm602_vm12 = vcmask 277504  }
  0xe2   : > { %v564_v57 = vsel %vm561_vm13, %v563_v52, %v559_v54  ;;  %v544_v6 = vsel %vm543_vm1, %v6691_v58, %v540_v59  ;;  %vm769_vm13 = vcmask 261120   ;;  %vm1021_vm1 = vcmask 146432  }
  0xe3   : > { %v7326_v61 = vmul.f32 %v564_v57, %v7235_v51  ;;  %v549_v7 = vsel %vm546_vm2, %v548_v4, %v544_v6  ;;  %v11958_v4 = vmov 15   ;;  %v6999_v6 = vmov 14  }
  0xe4   : > { %v7341_v51 = vmul.f32 %v549_v7, %v7262_v2  ;;  %v7355_v2 = vpop.permute.xlu0 %1294  ;;  %vm1453_vm2 = vcmask 113664  }
  0xe5   : > { %12282 = vst [vmem:[#allocation12_spill] sm:$0xff] %v7326_v61 }
  0xe6   : > { %12286 = vst [vmem:[#allocation16_spill] sm:$0xff] %v7341_v51 }
  0xe7   : > { %v7363_v14 = vpop.permute.xlu2 %1750 }
  0xe8   : > { %1101 = vrot.lane.b32.xlu0 %v7294_v33, %s6988_s24 }
  0xe9   : > { %1319 = vrot.lane.b32.xlu1 %v7265_v8, %s6990_s26  ;;  %1781 = vrot.lane.b32.xlu2 %v7208_v27, %s6991_s29  ;;  %v7336_v9 = vpop.permute.xlu1 %1698 }
  0xea   : > { %12284 = vst [vmem:[#allocation14_spill] sm:$0xff] %v7336_v9 }
  0xec   : > { %v7367_v16 = vpop.permute.xlu0 %1286 }
  0xf0   : > { %1321 = vrot.lane.b32.xlu0 %v7305_v41, %s6990_s26 }
  0xf1   : > { %1217 = vrot.lane.b32.xlu1 %v7294_v33, %s6987_s23  ;;  %1203 = vrot.lane.b32.xlu2 %v7265_v8, %s6987_s23  ;;  %v7353_v13 = vpop.permute.xlu1 %1402 }
  0xf4   : > { %v7385_v20 = vpop.permute.xlu0 %1758 }
  0xf8   : > { %1789 = vrot.lane.b32.xlu0 %v7294_v33, %s6991_s29 }
  0xf9   : > { %1617 = vrot.lane.b32.xlu1 %v7294_v33, %s6989_s25  ;;  %1615 = vrot.lane.b32.xlu2 %v7225_v44, %s6989_s25  ;;  %v7365_v15 = vpop.permute.xlu1 %1762 }
  0xfc   : > { %v7399_v25 = vpop.permute.xlu0 %1754 }
 0x100   : > { %1207 = vrot.lane.b32.xlu0 %v7326_v61, %s6987_s23 }
 0x101   : > { %1791 = vrot.lane.b32.xlu1 %v7305_v41, %s6991_s29  ;;  %1785 = vrot.lane.b32.xlu2 %v7225_v44, %s6991_s29  ;;  %v7377_v19 = vpop.permute.xlu1 %1686 }
 0x108   : > { %1335 = vrot.lane.b32.xlu0 %v7341_v51, %s6990_s26 }
 0x109   : > { %2075 = vrot.lane.b32.xlu1 %v7305_v41, %s6992_s30  ;;  %1089 = vrot.lane.b32.xlu2 %v7305_v41, %s6988_s24  ;;  %v7395_v22 = vpop.permute.xlu1 %1878 }
 0x10a   : > { %12288 = vst [vmem:[#allocation18_spill] sm:$0xff] %v7395_v22 }
 0x110   : > { %1607 = vrot.lane.b32.xlu0 %v7326_v61, %s6989_s25 }
 0x111   : > { %2189 = vrot.lane.b32.xlu1 %v7294_v33, %s6994_s9  ;;  %1205 = vrot.lane.b32.xlu2 %v7305_v41, %s6987_s23 }
 0x118   : > { %1795 = vrot.lane.b32.xlu0 %v7326_v61, %s6991_s29 }
 0x119   : > { %1103 = vrot.lane.b32.xlu1 %v7341_v51, %s6988_s24  ;;  %1333 = vrot.lane.b32.xlu2 %v7294_v33, %s6990_s26 }
 0x11b   : > { %v7375_v18 = vpop.permute.xlu2 %1085 }
 0x120   : > { %2079 = vrot.lane.b32.xlu0 %v7326_v61, %s6992_s30 }
 0x121   : > { %1323 = vrot.lane.b32.xlu1 %v7326_v61, %s6990_s26  ;;  %1605 = vrot.lane.b32.xlu2 %v7305_v41, %s6989_s25  ;;  %s7005_s26 = smov 30  }
 0x123   : > { %v7387_v21 = vpop.permute.xlu2 %1097 }
 0x128   : > { %2193 = vrot.lane.b32.xlu0 %v7341_v51, %s6994_s9 }
 0x129   : > { %2195 = vrot.lane.b32.xlu1 %v7326_v61, %s6994_s9  ;;  %2073 = vrot.lane.b32.xlu2 %v7294_v33, %s6992_s30 }
 0x12b   : > { %v7397_v24 = vpop.permute.xlu2 %1317 }
 0x130   : > { %1874 = vperm.xlu0 %6538, %v7107_v1  }
 0x131   : > { %2158 = vperm.xlu1 %6539, %v7107_v1   ;;  %2191 = vrot.lane.b32.xlu2 %v7305_v41, %s6994_s9 }
 0x132   : > { %v7409_v29 = vpop.permute.xlu0 %1213 }
 0x133   : > { %v7405_v26 = vpop.permute.xlu1 %1201  ;;  %v7407_v28 = vpop.permute.xlu2 %1329 }
 0x138   : > { %2069 = vrot.lane.b32.xlu0 %v7225_v44, %s6992_s30 }
 0x139   : > { %2065 = vrot.lane.b32.xlu1 %v7208_v27, %s6992_s30  ;;  %1091 = vrot.lane.b32.xlu2 %v7326_v61, %s6988_s24 }
 0x13a   : > { %6541 = vset.pattern.permute.xlu1 %v6986_v36  ;;  %v7422_v35 = vpop.permute.xlu0 %1099 }
 0x13b   : > { %v7418_v30 = vpop.permute.xlu1 %1613  ;;  %v7420_v34 = vpop.permute.xlu2 %1601 }
 0x140   : > { %2307 = vrot.lane.b32.xlu0 %v7305_v41, %s6995_s10 }
 0x141   : > { %2071 = vrot.lane.b32.xlu1 %v7265_v8, %s6992_s30  ;;  %1219 = vrot.lane.b32.xlu2 %v7341_v51, %s6987_s23 }
 0x142   : > { %v7434_v36 = vpop.permute.xlu0 %1331 }
 0x143   : > { %v7430_v37 = vpop.permute.xlu1 %1783  ;;  %v7432_v39 = vpop.permute.xlu2 %1781 }
 0x148   : > { %1866 = vperm.xlu0 %6538, %v7102_v0  }
 0x149   : > { %2309 = vrot.lane.b32.xlu1 %v7341_v51, %s6995_s10  ;;  %1619 = vrot.lane.b32.xlu2 %v7341_v51, %s6989_s25 }
 0x14a   : > { %v7450_v43 = vpop.permute.xlu0 %1603 }
 0x14b   : > { %v7441_v40 = vpop.permute.xlu1 %1087  ;;  %v7443_v58 = vpop.permute.xlu2 %1203 }
 0x150   : > { %2183 = vrot.lane.b32.xlu0 %v7212_v31, %s6994_s9 }
 0x151   : > { %1870 = vperm.xlu1 %6541, %v7131_v5   ;;  %1793 = vrot.lane.b32.xlu2 %v7341_v51, %s6991_s29  ;;  %s7032_s29 = smov 95  }
 0x152   : > { %6544 = vset.pattern.permute.xlu0 %v6993_v12  ;;  %v7465_v52 = vpop.permute.xlu0 %1787 }
 0x153   : > { %v7453_v45 = vpop.permute.xlu1 %1215  ;;  %v7455_v47 = vpop.permute.xlu2 %1615  ;;  %12290 = vst [vmem:[#allocation20_spill] sm:$0xff] %v7465_v52 }
 0x158   : > { %2150 = vperm.xlu0 %6544, %v7102_v0  }
 0x159   : > { %6543 = vset.pattern.permute.xlu1 %v6996_v49  ;;  %2077 = vrot.lane.b32.xlu2 %v7341_v51, %s6992_s30 }
 0x15a   : > { %2278 = vperm.xlu1 %6543, %v7116_v3   ;;  %v7477_v56 = vpop.permute.xlu0 %1101 }
 0x15b   : > { %v7461_v50 = vpop.permute.xlu1 %1319  ;;  %v7463_v17 = vpop.permute.xlu2 %1785 }
 0x15c   : > { %12289 = vst [vmem:[#allocation19_spill] sm:$0xff] %v7463_v17 }
 0x160   : > { %2299 = vrot.lane.b32.xlu0 %v7212_v31, %s6995_s10 }
 0x161   : > { %2162 = vperm.xlu2 %6540, %v7116_v3   ;;  %6548 = vset.pattern.permute.xlu0 %v6996_v49 }
 0x162   : > { %2185 = vrot.lane.b32.xlu1 %v7225_v44, %s6994_s9  ;;  %v7487_v60 = vpop.permute.xlu0 %1321 }
 0x163   : > { %v7472_v53 = vpop.permute.xlu1 %1217  ;;  %v7474_v54 = vpop.permute.xlu2 %1089  ;;  %6545 = vset.pattern.permute.xlu1 %v6993_v12 }
 0x168   : > { %2266 = vperm.xlu0 %6548, %v7102_v0  }
 0x169   : > { %2067 = vrot.lane.b32.xlu2 %v7212_v31, %s6992_s30  ;;  %s7034_s30 = smov 94  }
 0x16a   : > { %2154 = vperm.xlu1 %6545, %v7131_v5   ;;  %6542 = vset.pattern.permute.xlu2 %v6996_v49  ;;  %v7503_v17 = vpop.permute.xlu0 %1789 }
 0x16b   : > { %v7483_v57 = vpop.permute.xlu1 %1617  ;;  %v7485_v59 = vpop.permute.xlu2 %1205  ;;  %12292 = vst [vmem:[#allocation22_spill] sm:$0xff] %v7503_v17 }
 0x170   : > { %584 = vrot.lane.b32.xlu0 %v7326_v61, %s6997_s11 }
 0x171   : > { %2305 = vrot.lane.b32.xlu2 %v7294_v33, %s6995_s10  ;;  %6552 = vset.pattern.permute.xlu0 %v11958_v4 }
 0x172   : > { %6547 = vset.pattern.permute.xlu1 %v6999_v6  ;;  %v7519_v32 = vpop.permute.xlu0 %1207 }
 0x173   : > { %2394 = vperm.xlu1 %6547, %v7116_v3   ;;  %v7495_v7 = vpop.permute.xlu1 %1791  ;;  %v7497_v12 = vpop.permute.xlu2 %1333 }
 0x174   : > { %12291 = vst [vmem:[#allocation21_spill] sm:$0xff] %v7495_v7 }
 0x178   : > { %669 = vrot.lane.b32.xlu0 %v7305_v41, %s7000_s12 }
 0x179   : > { %2311 = vrot.lane.b32.xlu2 %v7326_v61, %s6995_s10 }
 0x17b   : > { %2301 = vrot.lane.b32.xlu1 %v7225_v44, %s6995_s10  ;;  %v7507_v4 = vpop.permute.xlu1 %2075  ;;  %v7509_v52 = vpop.permute.xlu2 %1605 }
 0x17c   : > { %12293 = vst [vmem:[#allocation23_spill] sm:$0xff] %v7507_v4  ;;  %6549 = vset.pattern.permute.xlu1 %v6996_v49 }
 0x180   : > { %683 = vrot.lane.b32.xlu0 %v7341_v51, %s7000_s12 }
 0x181   : > { %2274 = vperm.xlu2 %6542, %v7107_v1  }
 0x183   : > { %2270 = vperm.xlu1 %6549, %v7131_v5   ;;  %v7515_v22 = vpop.permute.xlu1 %2189  ;;  %v7517_v9 = vpop.permute.xlu2 %2073 }
 0x184   : > { %12294 = vst [vmem:[#allocation24_spill] sm:$0xff] %v7515_v22  ;;  %v7530_v22 = vpop.permute.xlu0 %1335 }
 0x185   : > { %12295 = vst [vmem:[#allocation25_spill] sm:$0xff] %v7517_v9 }
 0x186   : > { %12297 = vst [vmem:[#allocation27_spill] sm:$0xff] %v7530_v22 }
 0x188   : > { %765 = vrot.lane.b32.xlu0 %v7294_v33, %s7001_s14 }
 0x189   : > { %2181 = vrot.lane.b32.xlu2 %v7208_v27, %s6994_s9 }
 0x18a   : > { %6546 = vset.pattern.permute.xlu2 %v6999_v6 }
 0x18b   : > { %6550 = vset.pattern.permute.xlu1 %v6999_v6  ;;  %v7525_v49 = vpop.permute.xlu1 %1103  ;;  %v7527_v4 = vpop.permute.xlu2 %2191  ;;  %v11969_v6 = vmov 16  }
 0x18c   : > { %12296 = vst [vmem:[#allocation26_spill] sm:$0xff] %v7527_v4  ;;  %2386 = vperm.xlu1 %6550, %v7131_v5   ;;  %v7542_v4 = vpop.permute.xlu0 %1607 }
 0x18d   : > { %12299 = vst [vmem:[#allocation29_spill] sm:$0xff] %v7542_v4  ;;  %v5904_v4 = vld [vmem:[%s11954_s6 + $0x13] ss:$8 sm:$0x3] }
 0x18e   : > { %v7656_v63 = vperm.slane %v5904_v4, 0 }
 0x190   : > { %646 = vperm.xlu0 %6552, %v7116_v3  }
 0x191   : > { %2187 = vrot.lane.b32.xlu2 %v7265_v8, %s6994_s9 }
 0x193   : > { %v7535_v9 = vpop.permute.xlu1 %1323  ;;  %v7537_v17 = vpop.permute.xlu2 %1091 }
 0x194   : > { %12298 = vst [vmem:[#allocation28_spill] sm:$0xff] %v7535_v9  ;;  %598 = vrot.lane.b32.xlu1 %v7294_v33, %s6997_s11 }
 0x195   : > { %6553 = vset.pattern.permute.xlu1 %v11969_v6  ;;  %v7557_v6 = vpop.permute.xlu0 %1795 }
 0x196   : > { %12301 = vst [vmem:[#allocation31_spill] sm:$0xff] %v7557_v6 }
 0x198   : > { %594 = vrot.lane.b32.xlu0 %v7208_v27, %s6997_s11 }
 0x199   : > { %2390 = vperm.xlu2 %6546, %v7107_v1  }
 0x19b   : > { %v7547_v3 = vpop.permute.xlu1 %2195  ;;  %v7549_v5 = vpop.permute.xlu2 %1219 }
 0x19c   : > { %12300 = vst [vmem:[#allocation30_spill] sm:$0xff] %v7547_v3  ;;  %671 = vrot.lane.b32.xlu1 %v7326_v61, %s7000_s12 }
 0x19d   : > { %v7573_v48 = vpop.permute.xlu0 %2079 }
 0x19e   : > { %12306 = vst [vmem:[#allocation36_spill] sm:$0xff] %v7573_v48 }
 0x1a0   : > { %667 = vrot.lane.b32.xlu0 %v7265_v8, %s7000_s12 }
 0x1a1   : > { %2297 = vrot.lane.b32.xlu2 %v7208_v27, %s6995_s10 }
 0x1a3   : > { %v7559_v7 = vpop.permute.xlu1 %2158  ;;  %v7561_v23 = vpop.permute.xlu2 %1619 }
 0x1a4   : > { %12302 = vst [vmem:[#allocation32_spill] sm:$0xff] %v7559_v7  ;;  %753 = vrot.lane.b32.xlu1 %v7305_v41, %s7001_s14 }
 0x1a5   : > { %12303 = vst [vmem:[#allocation33_spill] sm:$0xff] %v7561_v23  ;;  %v7585_v10 = vpop.permute.xlu0 %2193 }
 0x1a6   : > { %12309 = vst [vmem:[#allocation39_spill] sm:$0xff] %v7585_v10  ;;  %v1234_v10 = vsel %vm1221_vm3, %v7405_v26, %v7409_v29 }
 0x1a8   : > { %837 = vrot.lane.b32.xlu0 %v7305_v41, %s7003_s15 }
 0x1a9   : > { %2303 = vrot.lane.b32.xlu2 %v7265_v8, %s6995_s10  ;;  %s7013_s10 = smov 2  }
 0x1ab   : > { %v7569_v3 = vpop.permute.xlu1 %2065  ;;  %v7571_v46 = vpop.permute.xlu2 %1793 }
 0x1ac   : > { %12304 = vst [vmem:[#allocation34_spill] sm:$0xff] %v7569_v3  ;;  %767 = vrot.lane.b32.xlu1 %v7341_v51, %s7001_s14  ;;  %v12310_v3 = vmov 15  }
 0x1ad   : > { %12305 = vst [vmem:[#allocation35_spill] sm:$0xff] %v7571_v46 }
 0x1b0   : > { %851 = vrot.lane.b32.xlu0 %v7341_v51, %s7003_s15 }
 0x1b1   : > { %2382 = vperm.xlu2 %6546, %v7102_v0   ;;  %v5900_v0 = vld [vmem:[%s11954_s6 + $0x7] ss:$8 sm:$0x3] }
 0x1b3   : > { %v7580_v7 = vpop.permute.xlu1 %2071  ;;  %v7582_v6 = vpop.permute.xlu2 %2077 }
 0x1b4   : > { %12307 = vst [vmem:[#allocation37_spill] sm:$0xff] %v7580_v7  ;;  %726 = vperm.xlu1 %6553, %v7107_v1   ;;  %v11986_v1 = vmov 17   ;;  %v5899_v7 = vld [vmem:[%s11954_s6 + $0x6] ss:$8 sm:$0x3] }
 0x1b5   : > { %12308 = vst [vmem:[#allocation38_spill] sm:$0xff] %v7582_v6  ;;  %v7620_v6 = vperm.slane %v5899_v7, 1 }
 0x1b8   : > { %749 = vrot.lane.b32.xlu0 %v7212_v31, %s7001_s14 }
 0x1b9   : > { %582 = vrot.lane.b32.xlu2 %v7305_v41, %s6997_s11 }
 0x1ba   : > { %6551 = vset.pattern.permute.xlu2 %v12310_v3  ;;  %v7605_v3 = vperm.slane %v5900_v0, 0 }
 0x1bb   : > { %v7592_v48 = vpop.permute.xlu1 %2309  ;;  %v7594_v46 = vpop.permute.xlu2 %2162 }
 0x1bc   : > { %12311 = vst [vmem:[#allocation40_spill] sm:$0xff] %v7592_v48  ;;  %578 = vrot.lane.b32.xlu1 %v7212_v31, %s6997_s11  ;;  %v7607_v48 = vpop.permute.xlu0 %1874 }
 0x1bd   : > { %12312 = vst [vmem:[#allocation41_spill] sm:$0xff] %v7594_v46  ;;  %6555 = vset.pattern.permute.xlu1 %v11986_v1  ;;  %v7611_v46 = vperm.slane %v5900_v0, 1  ;;  %v7618_v1 = vperm.slane %v5899_v7, 0  ;;  %v1118_v0 = vsel %vm1105_vm4, %v7375_v18, %v7387_v21 }
 0x1be   : > { %12313 = vst [vmem:[#allocation42_spill] sm:$0xff] %v7607_v48  ;;  %v1222_v48 = vsel %vm1221_vm3, %v7409_v29, %v7405_v26  ;;  %v1106_v26 = vsel %vm1105_vm4, %v7387_v21, %v7375_v18  ;;  %v7642_v29 = vmul.f32 %v7605_v3, %v1234_v10  ;;  %v1350_v18 = vsel %vm1337_vm5, %v7397_v24, %v7407_v28 }
 0x1bf   : > { %v7647_v9 = vmul.f32 %v7611_v46, %v1222_v48  ;;  %v7650_v22 = vmul.f32 %v7618_v1, %v1118_v0  ;;  %v7659_v10 = vmul.f32 %v7620_v6, %v1106_v26  ;;  %v7664_v21 = vperm.slane %v5904_v4, 1 }
 0x1c0   : > { %763 = vrot.lane.b32.xlu0 %v7225_v44, %s7001_s14  ;;  %12316 = vst [vmem:[#allocation45_spill] sm:$0xff] %v7642_v29  ;;  %v1634_v48 = vsel %vm1621_vm6, %v7420_v34, %v7418_v30  ;;  %v1301_v0 = vmul.f32 %v7367_v16, %v7642_v29  ;;  %v1622_v26 = vsel %vm1621_vm6, %v7418_v30, %v7420_v34 }
 0x1c1   : > { %600 = vrot.lane.b32.xlu2 %v7341_v51, %s6997_s11  ;;  %12317 = vst [vmem:[#allocation46_spill] sm:$0xff] %v7647_v9  ;;  %v1302_v4 = vmul.f32 %v7367_v16, %v7647_v9  ;;  %v1185_v29 = vmul.f32 %v7307_v42, %v7650_v22  ;;  %v1186_v30 = vmul.f32 %v7307_v42, %v7659_v10 }
 0x1c2   : > { %12318 = vst [vmem:[#allocation47_spill] sm:$0xff] %v7650_v22  ;;  %v7699_v16 = vmul.f32 %v7664_v21, %v1622_v26 }
 0x1c3   : > { %v7634_v23 = vpop.permute.xlu1 %1870  ;;  %v7636_v7 = vpop.permute.xlu2 %2067  ;;  %12319 = vst [vmem:[#allocation48_spill] sm:$0xff] %v7659_v10  ;;  %v1309_v22 = vadd.f32 %v1301_v0, %v1185_v29  ;;  %v5905_v29 = vld [vmem:[%s11954_s6 + $0x15] ss:$8 sm:$0x3] }
 0x1c4   : > { %12314 = vst [vmem:[#allocation43_spill] sm:$0xff] %v7634_v23  ;;  %596 = vrot.lane.b32.xlu1 %v7225_v44, %s6997_s11  ;;  %v7652_v23 = vperm.slane %v5901_v11, 0  ;;  %v1702_v26 = vmul.f32 %v7377_v19, %v7699_v16 }
 0x1c5   : > { %12315 = vst [vmem:[#allocation44_spill] sm:$0xff] %v7636_v7  ;;  %v7654_v7 = vperm.slane %v5901_v11, 1  ;;  %v1338_v11 = vsel %vm1337_vm5, %v7407_v28, %v7397_v24  ;;  %v7689_v24 = vmul.f32 %v7656_v63, %v1634_v48  ;;  %v7691_v28 = vpop.permute.xlu0 %2069  ;;  %v1310_v48 = vadd.f32 %v1302_v4, %v1186_v30  ;;  %v7721_v4 = vld [vmem:[%s11955_s7 + $0x8] sm:$0xff] }
 0x1c6   : > { %v7686_v62 = vmul.f32 %v7652_v23, %v1350_v18  ;;  %12322 = vst [vmem:[#allocation51_spill] sm:$0xff] %v7691_v28  ;;  %v1765_v30 = vmul.f32 %v7363_v14, %v7208_v27 }
 0x1c7   : > { %12321 = vst [vmem:[#allocation50_spill] sm:$0xff] %v7689_v24  ;;  %v7696_v34 = vmul.f32 %v7654_v7, %v1338_v11  ;;  %v1701_v42 = vmul.f32 %v7377_v19, %v7689_v24  ;;  %v7732_v19 = vmul.f32 %v7399_v25, %v7225_v44 }
 0x1c8   : > { %933 = vrot.lane.b32.xlu0 %v7294_v33, %s7005_s26  ;;  %12320 = vst [vmem:[#allocation49_spill] sm:$0xff] %v7686_v62  ;;  %v1417_v28 = vmul.f32 %v7353_v13, %v7686_v62  ;;  %v7738_v62 = vperm.slane %v5905_v29, 0 }
 0x1c9   : > { %681 = vrot.lane.b32.xlu2 %v7294_v33, %s7000_s12  ;;  %12323 = vst [vmem:[#allocation52_spill] sm:$0xff] %v7696_v34  ;;  %v1418_v11 = vmul.f32 %v7353_v13, %v7696_v34  ;;  %v1766_v13 = vmul.f32 %v7363_v14, %v7212_v31  ;;  %v1107_v14 = vsel %vm1105_vm4, %v7422_v35, %v7441_v40 }
 0x1ca   : > { %12324 = vst [vmem:[#allocation53_spill] sm:$0xff] %v7699_v16  ;;  %v1425_v0 = vadd.f32 %v1417_v28, %v1309_v22  ;;  %v7736_v22 = vmul.f32 %v7399_v25, %v7265_v8  ;;  %v7740_v16 = vperm.slane %v5905_v29, 1  ;;  %v7752_v25 = vmul.f32 %v7385_v20, %v7294_v33 }
 0x1cb   : > { %v7701_v9 = vpop.permute.xlu2 %2305  ;;  %12325 = vst [vmem:[#allocation54_spill] sm:$0xff] %v7721_v4  ;;  %v1426_v34 = vadd.f32 %v1418_v11, %v1310_v48  ;;  %v1119_v48 = vsel %vm1105_vm4, %v7441_v40, %v7422_v35  ;;  %v7772_v40 = vmul.f32 %v7365_v15, %v7341_v51  ;;  %v7788_v24 = vmul.f32 %v7620_v6, %v1107_v14 }
 0x1cc   : > { %677 = vrot.lane.b32.xlu1 %v7208_v27, %s7000_s12  ;;  %v7705_v18 = vpop.permute.xlu1 %2278  ;;  %12326 = vst [vmem:[#allocation55_spill] sm:$0xff] %v7732_v19  ;;  %v1709_v28 = vadd.f32 %v1701_v42, %v1425_v0  ;;  %v7756_v42 = vmul.f32 %v7385_v20, %v7305_v41  ;;  %v7776_v20 = vmul.f32 %v7365_v15, %v7326_v61  ;;  %v12357_v19 = vld [vmem:[#allocation33_spill] sm:$0xff] }
 0x1cd   : > { %12327 = vst [vmem:[#allocation56_spill] sm:$0xff] %v7736_v22  ;;  %v1710_v10 = vadd.f32 %v1702_v26, %v1426_v34  ;;  %v1798_v34 = vsel %vm1797_vm7, %v7432_v39, %v7430_v37  ;;  %v1814_v26 = vsel %vm1797_vm7, %v7430_v37, %v7432_v39  ;;  %v7764_v29 = vpop.permute.xlu0 %2307  ;;  %v1223_v0 = vsel %vm1221_vm3, %v7453_v45, %v7443_v58 }
 0x1ce   : > { %12328 = vst [vmem:[#allocation57_spill] sm:$0xff] %v7740_v16  ;;  %v1235_v37 = vsel %vm1221_vm3, %v7443_v58, %v7453_v45  ;;  %v7785_v39 = vmul.f32 %v7618_v1, %v1119_v48  ;;  %v7793_v15 = vadd.f32 %v1765_v30, %v1709_v28  ;;  %v7799_v22 = vmul.f32 %v7740_v16, %v1814_v26  ;;  %v7832_v26 = vld [vmem:[%s11955_s7 + $0x10] sm:$0xff] }
 0x1cf   : > { %12329 = vst [vmem:[#allocation58_spill] sm:$0xff] %v7756_v42  ;;  %v1351_v58 = vsel %vm1337_vm5, %v7461_v50, %v7434_v36  ;;  %v7804_v45 = vadd.f32 %v1766_v13, %v1710_v10  ;;  %v7807_v14 = vmul.f32 %v7605_v3, %v1235_v37  ;;  %v7810_v48 = vmul.f32 %v7611_v46, %v1223_v0 }
 0x1d0   : > { %638 = vperm.xlu0 %6552, %v7721_v4   ;;  %12331 = vst [vmem:[#allocation60_spill] sm:$0xff] %v7776_v20  ;;  %v1635_v30 = vsel %vm1621_vm6, %v7450_v43, %v7455_v47  ;;  %v1120_v28 = vsel %vm1105_vm4, %v7474_v54, %v7477_v56  ;;  %v1352_v13 = vsel %vm1337_vm5, %v7487_v60, %v7497_v12  ;;  %v12341_v0 = vmov 17  }
 0x1d1   : > { %755 = vrot.lane.b32.xlu2 %v7326_v61, %s7001_s14  ;;  %12332 = vst [vmem:[#allocation61_spill] sm:$0xff] %v7785_v39  ;;  %v1188_v37 = vmul.f32 %v7302_v38, %v7788_v24 }
 0x1d2   : > { %12333 = vst [vmem:[#allocation62_spill] sm:$0xff] %v7788_v24 }
 0x1d3   : > { %v7748_v11 = vpop.permute.xlu2 %2311  ;;  %12334 = vst [vmem:[#allocation63_spill] sm:$0xff] %v7793_v15  ;;  %v7844_v15 = vmul.f32 %v7652_v23, %v1351_v58 }
 0x1d4   : > { %839 = vrot.lane.b32.xlu1 %v7326_v61, %s7003_s15  ;;  %v7768_v35 = vpop.permute.xlu1 %2185  ;;  %v7796_v61 = vmul.f32 %v7738_v62, %v1798_v34  ;;  %12336 = vst [vmem:[#allocation65_spill] sm:$0xff] %v7799_v22  ;;  %v1237_v34 = vsel %vm1221_vm3, %v7519_v32, %v7549_v5  ;;  %v1623_v22 = vsel %vm1621_vm6, %v7455_v47, %v7450_v43 }
 0x1d5   : > { %12330 = vst [vmem:[#allocation59_spill] sm:$0xff] %v7768_v35  ;;  %v1236_v35 = vsel %vm1221_vm3, %v7485_v59, %v7472_v53  ;;  %v1224_v43 = vsel %vm1221_vm3, %v7472_v53, %v7485_v59  ;;  %v7867_v47 = vmul.f32 %v7652_v23, %v1352_v13  ;;  %v12349_v59 = vld [vmem:[#allocation13_spill] sm:$0xff]  ;;  %v1108_v13 = vsel %vm1105_vm4, %v7477_v56, %v7474_v54 }
 0x1d6   : > { %12335 = vst [vmem:[#allocation64_spill] sm:$0xff] %v7796_v61  ;;  %v7821_v10 = vmul.f32 %v7605_v3, %v1236_v35  ;;  %v1187_v35 = vmul.f32 %v7302_v38, %v7785_v39  ;;  %v7850_v61 = vmul.f32 %v7618_v1, %v1120_v28  ;;  %v1636_v39 = vsel %vm1621_vm6, %v7509_v52, %v7483_v57  ;;  %v12358_v54 = vld [vmem:[#allocation29_spill] sm:$0xff] }
 0x1d7   : > { %12337 = vst [vmem:[#allocation66_spill] sm:$0xff] %v7804_v45  ;;  %v1339_v45 = vsel %vm1337_vm5, %v7434_v36, %v7461_v50  ;;  %v1121_v38 = vsel %vm1105_vm4, %v7537_v17, %v7525_v49  ;;  %v7861_v36 = vmul.f32 %v7656_v63, %v1635_v30  ;;  %v7870_v50 = vmul.f32 %v7605_v3, %v1237_v34 }
 0x1d8   : > { %12338 = vst [vmem:[#allocation67_spill] sm:$0xff] %v7807_v14  ;;  %847 = vrot.lane.b32.xlu0 %v7225_v44, %s7003_s15  ;;  %v1303_v28 = vmul.f32 %v7319_v55, %v7807_v14  ;;  %v1304_v30 = vmul.f32 %v7319_v55, %v7810_v48  ;;  %v7880_v20 = vmul.f32 %v7654_v7, %v1339_v45  ;;  %v7895_v55 = vpop.permute.xlu0 %1866  ;;  %v12353_v45 = vld [vmem:[#allocation4_spill] sm:$0xff] }
 0x1d9   : > { %12339 = vst [vmem:[#allocation68_spill] sm:$0xff] %v7810_v48  ;;  %642 = vperm.xlu2 %6551, %v7832_v26   ;;  %6562 = vset.pattern.permute.xlu0 %v12341_v0  ;;  %v1305_v53 = vmul.f32 %v7355_v2, %v7821_v10  ;;  %v1419_v3 = vmul.f32 %v12349_v59, %v7844_v15 }
 0x1da   : > { %12340 = vst [vmem:[#allocation69_spill] sm:$0xff] %v7821_v10  ;;  %v7890_v34 = vmul.f32 %v7656_v63, %v1636_v39  ;;  %v7893_v14 = vmul.f32 %v7618_v1, %v1121_v38  ;;  %v1189_v48 = vmul.f32 %v12353_v45, %v7850_v61  ;;  %v7900_v10 = vmul.f32 %v7611_v46, %v1224_v43  ;;  %v12360_v1 = vld [vmem:[#allocation17_spill] sm:$0xff]  ;;  %v12363_v43 = vld [vmem:[#allocation6_spill] sm:$0xff] }
 0x1db   : > { %12342 = vst [vmem:[#allocation70_spill] sm:$0xff] %v7844_v15  ;;  %v7858_v24 = vpop.permute.xlu2 %2274  ;;  %v12356_v15 = vld [vmem:[#allocation28_spill] sm:$0xff]  ;;  %v1637_v56 = vsel %vm1621_vm6, %v12358_v54, %v12357_v19  ;;  %v7909_v39 = vmul.f32 %v7664_v21, %v1623_v22  ;;  %v7913_v38 = vmul.f32 %v12360_v1, %v7861_v36  ;;  %v1307_v42 = vmul.f32 %v12363_v43, %v7870_v50 }
 0x1dc   : > { %12343 = vst [vmem:[#allocation71_spill] sm:$0xff] %v7850_v61  ;;  %810 = vperm.xlu1 %6555, %v7832_v26   ;;  %v7873_v58 = vpop.permute.xlu1 %2154  ;;  %v12362_v61 = vld [vmem:[#allocation15_spill] sm:$0xff]  ;;  %v1311_v27 = vadd.f32 %v1303_v28, %v1187_v35  ;;  %v7921_v16 = vadd.f32 %v1304_v30, %v1188_v37  ;;  %v7924_v22 = vmul.f32 %v7620_v6, %v1108_v13  ;;  %v12375_v13 = vld [vmem:[#allocation22_spill] sm:$0xff] }
 0x1dd   : > { %12344 = vst [vmem:[#allocation72_spill] sm:$0xff] %v7861_v36  ;;  %v7929_v36 = vld [vmem:[%s11954_s6 + $0x20] ss:$8 sm:$0x3]  ;;  %v7940_v28 = vmul.f32 %v7656_v63, %v1637_v56  ;;  %v7950_v30 = vmul.f32 %v12349_v59, %v7880_v20  ;;  %v12374_v63 = vld [vmem:[#allocation21_spill] sm:$0xff] }
 0x1de   : > { %12345 = vst [vmem:[#allocation73_spill] sm:$0xff] %v7867_v47  ;;  %v12369_v35 = vld [vmem:[#allocation7_spill] sm:$0xff]  ;;  %v1800_v56 = vsel %vm1797_vm7, %v12375_v13, %v12374_v63 }
 0x1df   : > { %12346 = vst [vmem:[#allocation74_spill] sm:$0xff] %v7870_v50  ;;  %v12367_v50 = vld [vmem:[#allocation11_spill] sm:$0xff]  ;;  %v1191_v37 = vmul.f32 %v12369_v35, %v7893_v14 }
 0x1e0   : > { %12347 = vst [vmem:[#allocation75_spill] sm:$0xff] %v7873_v58  ;;  %v12355_v58 = vld [vmem:[#allocation27_spill] sm:$0xff]  ;;  %1017 = vrot.lane.b32.xlu0 %v7294_v33, %s7006_s19  ;;  %v1705_v1 = vmul.f32 %v12367_v50, %v7890_v34  ;;  %v7992_v33 = vmul.f32 %v7738_v62, %v1800_v56  ;;  %v8009_v56 = vpop.permute.xlu0 %2183 }
 0x1e1   : > { %12348 = vst [vmem:[#allocation76_spill] sm:$0xff] %v7880_v20  ;;  %v1353_v44 = vsel %vm1337_vm5, %v12356_v15, %v12355_v58  ;;  %v7967_v59 = vld [vmem:[%s11954_s6 + $0x21] ss:$8 sm:$0x3] }
 0x1e2   : > { %12350 = vst [vmem:[#allocation13_spill] sm:$0xff] %v7890_v34 }
 0x1e3   : > { %12351 = vst [vmem:[#allocation77_spill] sm:$0xff] %v7893_v14  ;;  %v7962_v14 = vperm.slane %v7929_v36, 0 }
 0x1e4   : > { %12352 = vst [vmem:[#allocation78_spill] sm:$0xff] %v7895_v55  ;;  %v1421_v55 = vmul.f32 %v12362_v61, %v7867_v47  ;;  %v12366_v47 = vmov 16   ;;  %751 = vrot.lane.b32.xlu1 %v7265_v8, %s7001_s14 }
 0x1e5   : > { %12354 = vst [vmem:[#allocation4_spill] sm:$0xff] %v7900_v10  ;;  %6554 = vset.pattern.permute.xlu2 %v12366_v47  ;;  %v7979_v20 = vpop.permute.xlu1 %2394  ;;  %6558 = vset.pattern.permute.xlu1 %v12366_v47 }
 0x1e6   : > { %12359 = vst [vmem:[#allocation27_spill] sm:$0xff] %v7909_v39  ;;  %v1313_v39 = vadd.f32 %v1305_v53, %v1189_v48  ;;  %v7945_v48 = vld [vmem:[%s11955_s7 + $0x18] sm:$0xff]  ;;  %v7952_v53 = vadd.f32 %v1419_v3, %v1311_v27  ;;  %v1315_v27 = vadd.f32 %v1307_v42, %v1191_v37  ;;  %v1340_v3 = vsel %vm1337_vm5, %v7497_v12, %v7487_v60 }
 0x1e7   : > { %12361 = vst [vmem:[#allocation28_spill] sm:$0xff] %v7913_v38  ;;  %v7935_v38 = vmul.f32 %v7652_v23, %v1353_v44  ;;  %730 = vperm.xlu2 %6554, %v7945_v48   ;;  %v1306_v44 = vmul.f32 %v7355_v2, %v7900_v10  ;;  %v7956_v23 = vpop.permute.xlu2 %2181  ;;  %v1190_v2 = vmul.f32 %v12353_v45, %v7924_v22  ;;  %v12379_v45 = vld [vmem:[#allocation8_spill] sm:$0xff] }
 0x1e8   : > { %12364 = vst [vmem:[#allocation33_spill] sm:$0xff] %v7924_v22  ;;  %v1429_v34 = vadd.f32 %v1421_v55, %v1313_v39  ;;  %v12377_v55 = vld [vmem:[#allocation31_spill] sm:$0xff]  ;;  %v1624_v42 = vsel %vm1621_vm6, %v7483_v57, %v7509_v52  ;;  %v12384_v52 = vld [vmem:[#allocation26_spill] sm:$0xff]  ;;  %v12385_v57 = vld [vmem:[#allocation24_spill] sm:$0xff]  ;;  %806 = vperm.xlu0 %6562, %v7721_v4  }
 0x1e9   : > { %12365 = vst [vmem:[#allocation29_spill] sm:$0xff] %v7929_v36  ;;  %v12378_v39 = vld [vmem:[#allocation35_spill] sm:$0xff]  ;;  %v1423_v22 = vmul.f32 %v12379_v45, %v7935_v38  ;;  %v7989_v12 = vadd.f32 %v1306_v44, %v1190_v2  ;;  %v12383_v36 = vld [vmem:[#allocation25_spill] sm:$0xff] }
 0x1ea   : > { %12368 = vst [vmem:[#allocation15_spill] sm:$0xff] %v7935_v38  ;;  %v1801_v10 = vsel %vm1797_vm7, %v12378_v39, %v12377_v55  ;;  %v1713_v37 = vadd.f32 %v1705_v1, %v1429_v34  ;;  %v2200_v34 = vsel %vm2197_vm9, %v12385_v57, %v12384_v52  ;;  %v1225_v1 = vsel %vm1221_vm3, %v7549_v5, %v7519_v32  ;;  %v12390_v57 = vld [vmem:[#allocation36_spill] sm:$0xff]  ;;  %v12391_v32 = vld [vmem:[#allocation38_spill] sm:$0xff] }
 0x1eb   : > { %12370 = vst [vmem:[#allocation6_spill] sm:$0xff] %v7940_v28  ;;  %v1431_v44 = vadd.f32 %v1423_v22, %v1315_v27  ;;  %v8007_v2 = vmul.f32 %v7738_v62, %v1801_v10  ;;  %v8016_v38 = vmul.f32 %v7664_v21, %v1624_v42  ;;  %v1109_v52 = vsel %vm1105_vm4, %v7525_v49, %v7537_v17  ;;  %v12392_v10 = vld [vmem:[#allocation30_spill] sm:$0xff]  ;;  %v12393_v22 = vld [vmem:[#allocation39_spill] sm:$0xff] }
 0x1ec   : > { %12371 = vst [vmem:[#allocation11_spill] sm:$0xff] %v7945_v48  ;;  %v12380_v48 = vld [vmem:[#allocation14_spill] sm:$0xff]  ;;  %v2085_v5 = vsel %vm2081_vm8, %v12391_v32, %v12390_v57  ;;  %v2201_v27 = vsel %vm2197_vm9, %v12393_v22, %v12392_v10  ;;  %v1777_v4 = vadd.f32 %v7752_v25, %v1713_v37  ;;  %v1341_v49 = vsel %vm1337_vm5, %v12355_v58, %v12356_v15 }
 0x1ed   : > { %12372 = vst [vmem:[#allocation7_spill] sm:$0xff] %v7952_v53  ;;  %v1707_v60 = vmul.f32 %v12380_v48, %v7940_v28  ;;  %v7998_v53 = vperm.slane %v7967_v59, 0  ;;  %v8013_v28 = vmul.f32 %v7654_v7, %v1340_v3  ;;  %v12394_v3 = vld [vmem:[#allocation42_spill] sm:$0xff]  ;;  %v8042_v10 = vmul.f32 %v7611_v46, %v1225_v1  ;;  %921 = vrot.lane.b32.xlu1 %v7305_v41, %s7005_s26  ;;  %v8071_v1 = vpop.permute.xlu1 %2301 }
 0x1ee   : > { %12373 = vst [vmem:[#allocation79_spill] sm:$0xff] %v7956_v23  ;;  %v12382_v23 = vld [vmem:[#allocation23_spill] sm:$0xff]  ;;  %v8058_v15 = vmul.f32 %v7962_v14, %v2085_v5  ;;  %v1625_v58 = vsel %vm1621_vm6, %v12357_v19, %v12358_v54  ;;  %v12404_v54 = vld [vmem:[#allocation32_spill] sm:$0xff]  ;;  %vm1537_vm3 = vcmask 15360   ;;  %vm1913_vm4 = vcmask 1031168  }
 0x1ef   : > { %12376 = vst [vmem:[#allocation21_spill] sm:$0xff] %v7967_v59  ;;  %v2084_v47 = vsel %vm2081_vm8, %v12383_v36, %v12382_v23  ;;  %v1715_v59 = vadd.f32 %v1707_v60, %v1431_v44  ;;  %580 = vrot.lane.b32.xlu2 %v7265_v8, %s6997_s11  ;;  %v8036_v17 = vmul.f32 %v7998_v53, %v2200_v34  ;;  %v8047_v25 = vld [vmem:[%s11954_s6 + $0x22] ss:$8 sm:$0x3]  ;;  %v8049_v37 = vpop.permute.xlu2 %2187  ;;  %vm1997_vm5 = vcmask 932864  }
 0x1f0   : > { %12381 = vst [vmem:[#allocation22_spill] sm:$0xff] %v7992_v33  ;;  %v8033_v42 = vmul.f32 %v7962_v14, %v2084_v47  ;;  %6556 = vset.pattern.permute.xlu2 %v12341_v0  ;;  %v8053_v47 = vmul.f32 %v7620_v6, %v1109_v52  ;;  %v12399_v60 = vld [vmem:[#allocation18_spill] sm:$0xff]  ;;  %v8063_v46 = vmul.f32 %v7998_v53, %v2201_v27  ;;  %v12402_v6 = vld [vmem:[#allocation40_spill] sm:$0xff]  ;;  %v8077_v0 = vperm.slane %v8047_v25, 0 }
 0x1f1   : > { %12386 = vst [vmem:[#allocation31_spill] sm:$0xff] %v8007_v2  ;;  %v1887_v34 = vmul.f32 %v12399_v60, %v8007_v2  ;;  %v2317_v52 = vsel %vm2313_vm10, %v12402_v6, %v7748_v11  ;;  %v1779_v5 = vadd.f32 %v7772_v40, %v1715_v59  ;;  %v12403_v2 = vld [vmem:[#allocation41_spill] sm:$0xff]  ;;  %v1422_v27 = vmul.f32 %v12362_v61, %v8013_v28 }
 0x1f2   : > { %12387 = vst [vmem:[#allocation35_spill] sm:$0xff] %v8009_v56  ;;  %v1885_v56 = vmul.f32 %v12394_v3, %v7992_v33  ;;  %v2171_v33 = vmul.f32 %v12403_v2, %v8058_v15  ;;  %v1308_v19 = vmul.f32 %v12363_v43, %v8042_v10  ;;  %v2169_v41 = vmul.f32 %v12404_v54, %v8033_v42 }
 0x1f3   : > { %12388 = vst [vmem:[#allocation8_spill] sm:$0xff] %v8013_v28  ;;  %v1895_v40 = vadd.f32 %v1887_v34, %v1779_v5  ;;  %v2287_v59 = vmul.f32 %v7705_v18, %v8063_v46  ;;  %v2285_v61 = vmul.f32 %v7858_v24, %v8036_v17  ;;  %v1706_v43 = vmul.f32 %v12367_v50, %v8016_v38 }
 0x1f4   : > { %12389 = vst [vmem:[#allocation14_spill] sm:$0xff] %v8016_v38  ;;  %v1893_v44 = vadd.f32 %v1885_v56, %v1777_v4  ;;  %v2316_v4 = vsel %vm2313_vm10, %v7701_v9, %v7764_v29  ;;  %v8091_v56 = vmul.f32 %v8077_v0, %v2317_v52  ;;  %v1192_v34 = vmul.f32 %v12369_v35, %v8053_v47 }
 0x1f5   : > { %12395 = vst [vmem:[#allocation23_spill] sm:$0xff] %v8033_v42  ;;  %v8099_v42 = vmul.f32 %v7654_v7, %v1341_v49  ;;  %v8104_v5 = vmul.f32 %v7664_v21, %v1625_v58  ;;  %v2179_v52 = vadd.f32 %v2171_v33, %v1895_v40  ;;  %v1428_v35 = vadd.f32 %v7950_v30, %v7921_v16  ;;  %v12409_v21 = vld [vmem:[#allocation20_spill] sm:$0xff]  ;;  %v12410_v49 = vld [vmem:[#allocation19_spill] sm:$0xff] }
 0x1f6   : > { %12396 = vst [vmem:[#allocation25_spill] sm:$0xff] %v8036_v17  ;;  %v8110_v17 = vmul.f32 %v8077_v0, %v2316_v4  ;;  %v2403_v50 = vmul.f32 %v7979_v20, %v8091_v56  ;;  %v2177_v7 = vadd.f32 %v2169_v41, %v1893_v44  ;;  %v1799_v58 = vsel %vm1797_vm7, %v12410_v49, %v12409_v21 }
 0x1f7   : > { %12397 = vst [vmem:[#allocation36_spill] sm:$0xff] %v8042_v10  ;;  %665 = vrot.lane.b32.xlu2 %v7212_v31, %s7000_s12  ;;  %v1816_v33 = vsel %vm1797_vm7, %v12374_v63, %v12375_v13  ;;  %v1316_v4 = vadd.f32 %v1308_v19, %v1192_v34  ;;  %v8124_v40 = vpop.permute.xlu2 %2390  ;;  %935 = vrot.lane.b32.xlu1 %v7341_v51, %s7005_s26  ;;  %v12411_v13 = vld [vmem:[#allocation7_spill] sm:$0xff]  ;;  %v8140_v19 = vpop.permute.xlu1 %2270  ;;  %v12413_v34 = vld [vmem:[#allocation57_spill] sm:$0xff] }
 0x1f8   : > { %12398 = vst [vmem:[#allocation38_spill] sm:$0xff] %v8053_v47  ;;  %v2293_v41 = vadd.f32 %v2285_v61, %v2177_v7  ;;  %v2295_v16 = vadd.f32 %v2287_v59, %v2179_v52  ;;  %v1424_v30 = vmul.f32 %v12379_v45, %v8099_v42  ;;  %v1708_v44 = vmul.f32 %v12380_v48, %v8104_v5  ;;  %v12415_v7 = vld [vmem:[#allocation27_spill] sm:$0xff]  ;;  %v12416_v45 = vld [vmem:[#allocation17_spill] sm:$0xff] }
 0x1f9   : > { %12400 = vst [vmem:[#allocation39_spill] sm:$0xff] %v8058_v15  ;;  %v12059_v15 = vmov 18   ;;  %v1817_v63 = vsel %vm1797_vm7, %v12377_v55, %v12378_v39  ;;  %v1815_v48 = vsel %vm1797_vm7, %v12409_v21, %v12410_v49  ;;  %v12419_v49 = vld [vmem:[#allocation2_spill] sm:$0xff]  ;;  %v12502_v47 = vmov 23  }
 0x1fa   : > { %12401 = vst [vmem:[#allocation42_spill] sm:$0xff] %v8063_v46  ;;  %6563 = vset.pattern.permute.xlu0 %v12059_v15  ;;  %v8107_v46 = vpop.permute.xlu0 %2150  ;;  %v1430_v15 = vadd.f32 %v1422_v27, %v7989_v12  ;;  %v12412_v12 = vld [vmem:[#allocation28_spill] sm:$0xff]  ;;  %v2411_v52 = vadd.f32 %v2403_v50, %v2295_v16  ;;  %v1432_v39 = vadd.f32 %v1424_v30, %v1316_v4  ;;  %v12421_v4 = vld [vmem:[#allocation55_spill] sm:$0xff]  ;;  %vm2513_vm7 = vcmask 801792  }
 0x1fb   : > { %12405 = vst [vmem:[#allocation18_spill] sm:$0xff] %v8091_v56  ;;  %894 = vperm.xlu0 %6563, %v7832_v26   ;;  %v2401_v56 = vmul.f32 %v8124_v40, %v8110_v17  ;;  %v1711_v27 = vadd.f32 %v12412_v12, %v12411_v13  ;;  %v2100_v13 = vsel %vm2081_vm8, %v12382_v23, %v12383_v36  ;;  %v12420_v23 = vld [vmem:[#allocation58_spill] sm:$0xff]  ;;  %v12422_v16 = vld [vmem:[#allocation3_spill] sm:$0xff] }
 0x1fc   : > { %12406 = vst [vmem:[#allocation40_spill] sm:$0xff] %v8099_v42  ;;  %v1714_v61 = vadd.f32 %v1706_v43, %v1430_v15  ;;  %v1704_v42 = vmul.f32 %v12416_v45, %v12415_v7  ;;  %v8157_v15 = vmul.f32 %v12413_v34, %v1817_v63  ;;  %v8160_v43 = vmul.f32 %v7738_v62, %v1799_v58  ;;  %v12424_v58 = vld [vmem:[#allocation21_spill] sm:$0xff] }
 0x1fd   : > { %12407 = vst [vmem:[#allocation41_spill] sm:$0xff] %v8104_v5  ;;  %v2409_v59 = vadd.f32 %v2401_v56, %v2293_v41  ;;  %v12417_v5 = vld [vmem:[#allocation29_spill] sm:$0xff]  ;;  %v1716_v50 = vadd.f32 %v1708_v44, %v1432_v39  ;;  %v8168_v36 = vmul.f32 %v12413_v34, %v1815_v48  ;;  %v1775_v41 = vadd.f32 %v12421_v4, %v1711_v27  ;;  %v8197_v48 = vld [vmem:[%s11955_s7] sm:$0xff]  ;;  %v12435_v4 = vld [vmem:[#allocation64_spill] sm:$0xff] }
 0x1fe   : > { %12408 = vst [vmem:[#allocation32_spill] sm:$0xff] %v8110_v17  ;;  %v8143_v17 = vmul.f32 %v12413_v34, %v1816_v33  ;;  %v2106_v55 = vperm.slane %v12417_v5, 1  ;;  %v2101_v5 = vsel %vm2081_vm8, %v12390_v57, %v12391_v32  ;;  %v1712_v21 = vadd.f32 %v1704_v42, %v1428_v35  ;;  %v12425_v57 = vld [vmem:[#allocation24_spill] sm:$0xff]  ;;  %v12426_v32 = vld [vmem:[#allocation26_spill] sm:$0xff]  ;;  %v12431_v39 = vld [vmem:[#allocation37_spill] sm:$0xff] }
 0x1ff   : > { %12418 = vst [vmem:[#allocation19_spill] sm:$0xff] %v8157_v15  ;;  %v2935_v56 = vpack.c.bf16 %v2411_v52, %v2409_v59  ;;  %679 = vrot.lane.b32.xlu2 %v12422_v16, %s7000_s12  ;;  %v8177_v30 = vperm.slane %v12424_v58, 1  ;;  %v2216_v42 = vsel %vm2197_vm9, %v12426_v32, %v12425_v57  ;;  %v12427_v35 = vld [vmem:[#allocation30_spill] sm:$0xff]  ;;  %v8185_v63 = vpop.permute.xlu2 %2297  ;;  %v1888_v27 = vmul.f32 %v12399_v60, %v8157_v15  ;;  %v12437_v32 = vld [vmem:[#allocation65_spill] sm:$0xff]  ;;  %v8218_v15 = vpop.permute.xlu1 %2386 }
 0x200   : > { %12414 = vst [vmem:[#allocation20_spill] sm:$0xff] %v8143_v17  ;;  %v1886_v33 = vmul.f32 %v12394_v3, %v8143_v17  ;;  %v1778_v3 = vadd.f32 %v12420_v23, %v1714_v61  ;;  %v8174_v62 = vmul.f32 %v2106_v55, %v2100_v13  ;;  %v2217_v44 = vsel %vm2197_vm9, %v12427_v35, %v12393_v22  ;;  %v12429_v61 = vld [vmem:[#allocation44_spill] sm:$0xff]  ;;  %v12430_v59 = vld [vmem:[#allocation34_spill] sm:$0xff]  ;;  %v12432_v13 = vld [vmem:[#allocation51_spill] sm:$0xff] }
 0x201   : > { %3015 = vmatpush.bf16.msra.mxu2 %v2935_v56  ;;  %6394 = vmatpush.bf16.msra.mxu3 %v2935_v56  ;;  %v8189_v34 = vmul.f32 %v2106_v55, %v2101_v5  ;;  %v2082_v52 = vsel %vm2081_vm8, %v12430_v59, %v12429_v61  ;;  %v2083_v60 = vsel %vm2081_vm8, %v12432_v13, %v12431_v39  ;;  %v12434_v5 = vld [vmem:[#allocation56_spill] sm:$0xff]  ;;  %v12436_v58 = vld [vmem:[#allocation78_spill] sm:$0xff] }
 0x202   : > { %12423 = vst [vmem:[#allocation7_spill] sm:$0xff] %v8174_v62  ;;  %v1894_v12 = vadd.f32 %v1886_v33, %v1778_v3  ;;  %v2300_v45 = vpop.permute.xlu0 %2299  ;;  %718 = vperm.xlu1 %6558, %v8197_v48   ;;  %v2170_v22 = vmul.f32 %v12404_v54, %v8174_v62  ;;  %v12433_v33 = vld [vmem:[#allocation60_spill] sm:$0xff]  ;;  %v8207_v23 = vadd.f32 %v12434_v5, %v1712_v21  ;;  %v12441_v5 = vld [vmem:[#allocation43_spill] sm:$0xff] }
 0x203   : > { %929 = vrot.lane.b32.xlu0 %v12419_v49, %s7005_s26  ;;  %12428 = vst [vmem:[#allocation28_spill] sm:$0xff] %v8189_v34  ;;  %v1780_v56 = vadd.f32 %v12433_v33, %v1716_v50  ;;  %v2099_v3 = vsel %vm2081_vm8, %v12431_v39, %v12432_v13  ;;  %v1881_v57 = vmul.f32 %v12436_v58, %v12435_v4  ;;  %v12446_v4 = vld [vmem:[#allocation66_spill] sm:$0xff] }
 0x204   : > { %v1882_v35 = vmul.f32 %v12436_v58, %v12437_v32  ;;  %v2172_v54 = vmul.f32 %v12403_v2, %v8189_v34  ;;  %v8221_v50 = vmul.f32 %v8177_v30, %v2216_v42  ;;  %v8224_v21 = vmul.f32 %v8177_v30, %v2217_v44  ;;  %v12442_v2 = vld [vmem:[#allocation35_spill] sm:$0xff] }
 0x205   : > { %v2098_v39 = vsel %vm2081_vm8, %v12429_v61, %v12430_v59  ;;  %v8230_v13 = vmul.f32 %v7962_v14, %v2082_v52  ;;  %v1896_v33 = vadd.f32 %v1888_v27, %v1780_v56  ;;  %v1883_v58 = vmul.f32 %v12441_v5, %v8160_v43  ;;  %v12443_v34 = vld [vmem:[#allocation79_spill] sm:$0xff]  ;;  %v12444_v52 = vld [vmem:[#allocation54_spill] sm:$0xff] }
 0x206   : > { %12438 = vst [vmem:[#allocation57_spill] sm:$0xff] %v8221_v50  ;;  %v2198_v62 = vsel %vm2197_vm9, %v12443_v34, %v12442_v2  ;;  %v2178_v42 = vadd.f32 %v2170_v22, %v1894_v12  ;;  %v8238_v32 = vmul.f32 %v7962_v14, %v2083_v60  ;;  %v8240_v44 = vmul.f32 %v2106_v55, %v2099_v3  ;;  %v12445_v27 = vld [vmem:[#allocation63_spill] sm:$0xff]  ;;  %v12448_v12 = vld [vmem:[#allocation9_spill] sm:$0xff] }
 0x207   : > { %12439 = vst [vmem:[#allocation27_spill] sm:$0xff] %v8224_v21  ;;  %v2165_v61 = vmul.f32 %v8107_v46, %v8230_v13  ;;  %v2338_v59 = vperm.slane %v8047_v25, 1  ;;  %v1889_v56 = vadd.f32 %v1881_v57, %v12445_v27  ;;  %v1890_v17 = vadd.f32 %v1882_v35, %v12446_v4  ;;  %849 = vrot.lane.b32.xlu2 %v12448_v12, %s7003_s15  ;;  %v12450_v60 = vld [vmem:[#allocation59_spill] sm:$0xff]  ;;  %v2304_v4 = vpop.permute.xlu2 %2303 }
 0x208   : > { %12440 = vst [vmem:[#allocation17_spill] sm:$0xff] %v8230_v13  ;;  %v2180_v10 = vadd.f32 %v2172_v54, %v1896_v33  ;;  %v8248_v38 = vmul.f32 %v2106_v55, %v2098_v39  ;;  %v1884_v14 = vmul.f32 %v12441_v5, %v8168_v36  ;;  %v2332_v22 = vsel %vm2313_vm10, %v7764_v29, %v7701_v9  ;;  %v12452_v39 = vld [vmem:[#allocation75_spill] sm:$0xff] }
 0x209   : > { %v8258_v25 = vmul.f32 %v7998_v53, %v2198_v62  ;;  %v2199_v3 = vsel %vm2197_vm9, %v12450_v60, %v8049_v37  ;;  %v1891_v55 = vadd.f32 %v1883_v58, %v1775_v41  ;;  %v2214_v35 = vsel %vm2197_vm9, %v12442_v2, %v12443_v34  ;;  %v12453_v33 = vld [vmem:[#allocation11_spill] sm:$0xff] }
 0x20a   : > { %12447 = vst [vmem:[#allocation29_spill] sm:$0xff] %v8248_v38  ;;  %v2166_v57 = vmul.f32 %v8107_v46, %v8248_v38  ;;  %v2315_v54 = vsel %vm2313_vm10, %v8071_v1, %v2304_v4  ;;  %v12451_v9 = vmov 18   ;;  %v2173_v29 = vadd.f32 %v2165_v61, %v1889_v56  ;;  %v2267_v58 = vpop.permute.xlu0 %2266 }
 0x20b   : > { %890 = vperm.xlu0 %6563, %v12444_v52   ;;  %12449 = vst [vmem:[#allocation58_spill] sm:$0xff] %v8258_v25  ;;  %6560 = vset.pattern.permute.xlu1 %v12451_v9  ;;  %v2333_v62 = vsel %vm2313_vm10, %v7748_v11, %v12402_v6  ;;  %v2286_v41 = vmul.f32 %v7858_v24, %v8221_v50  ;;  %v8289_v11 = vpop.permute.xlu1 %598  ;;  %v12497_v13 = vmov 21   ;;  %vm2429_vm8 = vcmask 900096  }
 0x20c   : > { %v2167_v46 = vmul.f32 %v12452_v39, %v8238_v32  ;;  %898 = vperm.xlu1 %6560, %v12453_v33   ;;  %v8279_v5 = vmul.f32 %v2338_v59, %v2332_v22  ;;  %v2288_v34 = vmul.f32 %v7705_v18, %v8224_v21  ;;  %v8284_v2 = vmul.f32 %v7998_v53, %v2199_v3 }
 0x20d   : > { %v8287_v61 = vmul.f32 %v8077_v0, %v2315_v54  ;;  %12456 = vst [vmem:[#allocation21_spill] sm:$0xff] %v8289_v11  ;;  %v8292_v24 = vmul.f32 %v8177_v30, %v2214_v35  ;;  %v2281_v6 = vmul.f32 %v2267_v58, %v8258_v25  ;;  %v2314_v27 = vsel %vm2313_vm10, %v8185_v63, %v2300_v45 }
 0x20e   : > { %12454 = vst [vmem:[#allocation55_spill] sm:$0xff] %v8279_v5  ;;  %v8297_v56 = vmul.f32 %v2338_v59, %v2333_v62  ;;  %v2168_v18 = vmul.f32 %v12452_v39, %v8240_v44  ;;  %v2215_v53 = vsel %vm2197_vm9, %v8049_v37, %v12450_v60  ;;  %v2283_v22 = vmul.f32 %v8140_v19, %v8284_v2 }
 0x20f   : > { %12455 = vst [vmem:[#allocation3_spill] sm:$0xff] %v8287_v61  ;;  %v2175_v3 = vadd.f32 %v2167_v46, %v1891_v55  ;;  %v2330_v35 = vsel %vm2313_vm10, %v2300_v45, %v8185_v63  ;;  %v2331_v54 = vsel %vm2313_vm10, %v2304_v4, %v8071_v1  ;;  %v2294_v62 = vadd.f32 %v2286_v41, %v2178_v42 }
 0x210   : > { %12457 = vst [vmem:[#allocation24_spill] sm:$0xff] %v8292_v24  ;;  %v2402_v39 = vmul.f32 %v8124_v40, %v8279_v5  ;;  %v8315_v21 = vmul.f32 %v8077_v0, %v2314_v27  ;;  %814 = vperm.xlu2 %6556, %v12453_v33   ;;  %v12084_v37 = vmov 19   ;;  %v2399_v63 = vmul.f32 %v8218_v15, %v8287_v61  ;;  %v2383_v40 = vpop.permute.xlu2 %2382 }
 0x211   : > { %12458 = vst [vmem:[#allocation26_spill] sm:$0xff] %v8297_v56  ;;  %v2282_v1 = vmul.f32 %v2267_v58, %v8292_v24  ;;  %v2404_v45 = vmul.f32 %v7979_v20, %v8297_v56  ;;  %v8325_v42 = vmul.f32 %v8177_v30, %v2215_v53  ;;  %v2289_v60 = vadd.f32 %v2281_v6, %v2173_v29 }
 0x212   : > { %12459 = vst [vmem:[#allocation30_spill] sm:$0xff] %v8315_v21  ;;  %v8327_v0 = vmul.f32 %v2338_v59, %v2330_v35  ;;  %v8329_v4 = vmul.f32 %v2338_v59, %v2331_v54  ;;  %v2397_v55 = vmul.f32 %v2383_v40, %v8315_v21  ;;  %v2291_v41 = vadd.f32 %v2283_v22, %v2175_v3 }
 0x213   : > { %1013 = vrot.lane.b32.xlu0 %v12419_v49, %s7006_s19  ;;  %v1892_v46 = vadd.f32 %v1884_v14, %v8207_v23  ;;  %v2174_v27 = vadd.f32 %v2166_v57, %v1890_v17  ;;  %v2284_v58 = vmul.f32 %v8140_v19, %v8325_v42  ;;  %v2296_v20 = vadd.f32 %v2288_v34, %v2180_v10  ;;  %v8338_v29 = vpop.permute.xlu1 %671 }
 0x214   : > { %6570 = vset.pattern.permute.xlu0 %v12084_v37  ;;  %12460 = vst [vmem:[#allocation44_spill] sm:$0xff] %v8327_v0  ;;  %835 = vrot.lane.b32.xlu1 %v7265_v8, %s7003_s15  ;;  %v2398_v30 = vmul.f32 %v2383_v40, %v8327_v0  ;;  %v2405_v6 = vadd.f32 %v2397_v55, %v2289_v60  ;;  %v12464_v35 = vmov 15   ;;  %v12492_v0 = vmov 22  }
 0x215   : > { %12461 = vst [vmem:[#allocation34_spill] sm:$0xff] %v8329_v4  ;;  %v2407_v59 = vadd.f32 %v2399_v63, %v2291_v41  ;;  %v2410_v53 = vadd.f32 %v2402_v39, %v2294_v62  ;;  %6564 = vset.pattern.permute.xlu1 %v12084_v37  ;;  %v2176_v22 = vadd.f32 %v2168_v18, %v1892_v46  ;;  %v8349_v18 = vpop.permute.xlu0 %584  ;;  %v12080_v63 = vmov 22  }
 0x216   : > { %12462 = vst [vmem:[#allocation37_spill] sm:$0xff] %v8338_v29  ;;  %v2412_v23 = vadd.f32 %v2404_v45, %v2296_v20  ;;  %v2290_v17 = vadd.f32 %v2282_v1, %v2174_v27  ;;  %v2400_v19 = vmul.f32 %v8218_v15, %v8329_v4  ;;  %v12465_v15 = vld [vmem:[#allocation10_spill] sm:$0xff]  ;;  %v12467_v1 = vld [vmem:[#allocation12_spill] sm:$0xff]  ;;  %v12076_v41 = vmov 23  }
 0x217   : > { %v2933_v3 = vpack.c.bf16 %v2407_v59, %v2405_v6  ;;  %v2292_v14 = vadd.f32 %v2284_v58, %v2176_v22  ;;  %v12473_v58 = vmov 16   ;;  %v12082_v6 = vmov 20  }
 0x218   : > { %761 = vrot.lane.b32.xlu2 %v12419_v49, %s7001_s14  ;;  %v2936_v10 = vpack.c.bf16 %v2412_v23, %v2410_v53  ;;  %v2406_v57 = vadd.f32 %v2398_v30, %v2290_v17  ;;  %v8346_v34 = vpop.permute.xlu2 %582  ;;  %s7010_s14 = smov 14   ;;  %v12074_v22 = vmov 24   ;;  %v12094_v24 = vmov 27  }
 0x219   : > { %3016 = vmatpush.bf16.msra.mxu2 %v2933_v3  ;;  %6395 = vmatpush.bf16.msra.mxu3 %v2933_v3  ;;  %12463 = vst [vmem:[#allocation51_spill] sm:$0xff] %v8346_v34  ;;  %v2408_v54 = vadd.f32 %v2400_v19, %v2292_v14  ;;  %v12478_v3 = vmov 17   ;;  %v12072_v14 = vmov 25   ;;  %v12499_v5 = vmov 19  }
 0x21a   : > { %6557 = vset.pattern.permute.xlu2 %v12464_v35  ;;  %vm2597_vm9 = vcmask 793600   ;;  %vm2765_vm10 = vcmask 777216  }
 0x21b   : > { %974 = vperm.xlu0 %6570, %v12444_v52   ;;  %v8353_v62 = vpop.permute.xlu1 %753  ;;  %v2934_v39 = vpack.c.bf16 %v2408_v54, %v2406_v57 }
 0x21c   : > { %1005 = vrot.lane.b32.xlu1 %v12465_v15, %s7006_s19  ;;  %12466 = vst [vmem:[#allocation60_spill] sm:$0xff] %v8353_v62 }
 0x21d   : > { %3044 = vmatpush.bf16.msrb.mxu3 %v2936_v10  ;;  %v8363_v40 = vpop.permute.xlu0 %669 }
 0x21e   : > { %12468 = vst [vmem:[#allocation56_spill] sm:$0xff] %v8363_v40 }
 0x220   : > { %923 = vrot.lane.b32.xlu2 %v12467_v1, %s7005_s26  ;;  %v8359_v45 = vpop.permute.xlu2 %600 }
 0x221   : > { %3045 = vmatpush.bf16.msrb.mxu3 %v2934_v39  ;;  %v12078_v39 = vmov 21  }
 0x223   : > { %6575 = vset.pattern.permute.xlu0 %v12080_v63  ;;  %v8365_v60 = vpop.permute.xlu1 %767 }
 0x224   : > { %1262 = vperm.xlu0 %6575, %v7832_v26   ;;  %1019 = vrot.lane.b32.xlu1 %v7341_v51, %s7006_s19  ;;  %12469 = vst [vmem:[#allocation78_spill] sm:$0xff] %v8365_v60  ;;  %v12564_v60 = vmov 33  }
 0x225   : > { %v8376_v27 = vpop.permute.xlu0 %683 }
 0x226   : > { %12472 = vst [vmem:[#allocation79_spill] sm:$0xff] %v8376_v27 }
 0x228   : > { %634 = vperm.xlu2 %6557, %v8197_v48   ;;  %v8370_v55 = vpop.permute.xlu2 %681 }
 0x229   : > { %12470 = vst [vmem:[#allocation43_spill] sm:$0xff] %v8370_v55 }
 0x22b   : > { %v8374_v46 = vpop.permute.xlu1 %726 }
 0x22c   : > { %1451 = vrot.lane.b32.xlu0 %v7341_v51, %s7010_s14  ;;  %978 = vperm.xlu1 %6564, %v7832_v26   ;;  %12471 = vst [vmem:[#allocation35_spill] sm:$0xff] %v8374_v46 }
 0x22d   : > { %6579 = vset.pattern.permute.xlu0 %v12076_v41  ;;  %v8388_v59 = vpop.permute.xlu0 %765 }
 0x22e   : > { %12476 = vst [vmem:[#allocation66_spill] sm:$0xff] %v8388_v59 }
 0x230   : > { %6559 = vset.pattern.permute.xlu2 %v12473_v58  ;;  %v8381_v20 = vpop.permute.xlu2 %755 }
 0x231   : > { %722 = vperm.xlu2 %6559, %v12444_v52   ;;  %12474 = vst [vmem:[#allocation54_spill] sm:$0xff] %v8381_v20 }
 0x233   : > { %v8385_v30 = vpop.permute.xlu1 %578 }
 0x234   : > { %1378 = vperm.xlu0 %6579, %v7832_v26   ;;  %917 = vrot.lane.b32.xlu1 %v7212_v31, %s7005_s26  ;;  %12475 = vst [vmem:[#allocation63_spill] sm:$0xff] %v8385_v30 }
 0x235   : > { %6567 = vset.pattern.permute.xlu1 %v12082_v6  ;;  %v8405_v17 = vpop.permute.xlu0 %646 }
 0x236   : > { %12479 = vst [vmem:[#allocation59_spill] sm:$0xff] %v8405_v17 }
 0x238   : > { %v8394_v53 = vpop.permute.xlu2 %642 }
 0x239   : > { %833 = vrot.lane.b32.xlu2 %v7212_v31, %s7003_s15  ;;  %12477 = vst [vmem:[#allocation9_spill] sm:$0xff] %v8394_v53  ;;  %v12560_v53 = vmov 32  }
 0x23a   : > { %6561 = vset.pattern.permute.xlu2 %v12478_v3 }
 0x23b   : > { %v8400_v23 = vpop.permute.xlu1 %596 }
 0x23c   : > { %1535 = vrot.lane.b32.xlu0 %v7341_v51, %s7013_s10  ;;  %931 = vrot.lane.b32.xlu1 %v12422_v16, %s7005_s26 }
 0x23d   : > { %6583 = vset.pattern.permute.xlu0 %v12074_v22  ;;  %v8421_v35 = vpop.permute.xlu0 %594  ;;  %v12085_v22 = vmov 26  }
 0x23e   : > { %12482 = vst [vmem:[#allocation12_spill] sm:$0xff] %v8421_v35  ;;  %v8772_v35 = vld [vmem:[%s11955_s7 + $0x18] sm:$0xff] }
 0x241   : > { %845 = vrot.lane.b32.xlu2 %v12419_v49, %s7003_s15  ;;  %v8407_v19 = vpop.permute.xlu2 %730  ;;  %s7019_s15 = smov 114  }
 0x242   : > { %12480 = vst [vmem:[#allocation75_spill] sm:$0xff] %v8407_v19 }
 0x243   : > { %v8410_v10 = vpop.permute.xlu1 %677 }
 0x244   : > { %1494 = vperm.xlu0 %6583, %v7832_v26   ;;  %1062 = vperm.xlu1 %6567, %v7832_v26   ;;  %12481 = vst [vmem:[#allocation11_spill] sm:$0xff] %v8410_v10 }
 0x249   : > { %1007 = vrot.lane.b32.xlu2 %v12467_v1, %s7006_s19  ;;  %v8417_v57 = vpop.permute.xlu2 %580 }
 0x24b   : > { %v8423_v54 = vpop.permute.xlu1 %839 }
 0x24c   : > { %1447 = vrot.lane.b32.xlu0 %v12422_v16, %s7010_s14  ;;  %1001 = vrot.lane.b32.xlu1 %v7212_v31, %s7006_s19  ;;  %12483 = vst [vmem:[#allocation80_spill] sm:$0xff] %v8423_v54  ;;  %v12544_v54 = vmov 29  }
 0x24d   : > { %6587 = vset.pattern.permute.xlu0 %v12072_v14  ;;  %6571 = vset.pattern.permute.xlu1 %v12078_v39  ;;  %v8434_v14 = vpop.permute.xlu0 %667 }
 0x251   : > { %802 = vperm.xlu2 %6561, %v8197_v48   ;;  %v8428_v58 = vpop.permute.xlu2 %665 }
 0x252   : > { %12484 = vst [vmem:[#allocation81_spill] sm:$0xff] %v8428_v58 }
 0x253   : > { %v8432_v3 = vpop.permute.xlu1 %810 }
 0x254   : > { %1578 = vperm.xlu0 %6587, %v7832_v26   ;;  %1015 = vrot.lane.b32.xlu1 %v12422_v16, %s7006_s19  ;;  %12485 = vst [vmem:[#allocation82_spill] sm:$0xff] %v8432_v3 }
 0x255   : > { %v8446_v63 = vpop.permute.xlu0 %837 }
 0x256   : > { %12486 = vst [vmem:[#allocation83_spill] sm:$0xff] %v8446_v63 }
 0x259   : > { %6565 = vset.pattern.permute.xlu2 %v12084_v37  ;;  %v8441_v41 = vpop.permute.xlu2 %679  ;;  %v12488_v37 = vmov 20  }
 0x25a   : > { %982 = vperm.xlu2 %6565, %v12453_v33   ;;  %v699_v29 = vsel %vm685_vm11, %v8434_v14, %v8441_v41 }
 0x25b   : > { %v8444_v39 = vpop.permute.xlu1 %751 }
 0x25c   : > { %1531 = vrot.lane.b32.xlu0 %v12422_v16, %s7013_s10  ;;  %1146 = vperm.xlu1 %6571, %v7832_v26  }
 0x25d   : > { %6591 = vset.pattern.permute.xlu0 %v12085_v22  ;;  %v8459_v56 = vpop.permute.xlu0 %851 }
 0x25e   : > { %12490 = vst [vmem:[#allocation86_spill] sm:$0xff] %v8459_v56 }
 0x261   : > { %v8451_v6 = vpop.permute.xlu2 %849 }
 0x262   : > { %919 = vrot.lane.b32.xlu2 %v7265_v8, %s7005_s26  ;;  %12487 = vst [vmem:[#allocation84_spill] sm:$0xff] %v8451_v6  ;;  %s7020_s26 = smov 126   ;;  %v12551_v6 = vmov 30  }
 0x263   : > { %6566 = vset.pattern.permute.xlu2 %v12451_v9  ;;  %v8456_v22 = vpop.permute.xlu1 %921 }
 0x264   : > { %1662 = vperm.xlu0 %6591, %v7832_v26   ;;  %6573 = vset.pattern.permute.xlu1 %v12488_v37  ;;  %12489 = vst [vmem:[#allocation85_spill] sm:$0xff] %v8456_v22 }
 0x265   : > { %1054 = vperm.xlu1 %6573, %v8197_v48   ;;  %v8474_v25 = vpop.permute.xlu0 %749 }
 0x266   : > { %12495 = vst [vmem:[#allocation90_spill] sm:$0xff] %v8474_v25 }
 0x26a   : > { %886 = vperm.xlu2 %6566, %v8197_v48   ;;  %v8462_v26 = vpop.permute.xlu2 %814 }
 0x26b   : > { %12491 = vst [vmem:[#allocation87_spill] sm:$0xff] %v8462_v26  ;;  %v8465_v21 = vpop.permute.xlu1 %935 }
 0x26c   : > { %1654 = vperm.xlu0 %6591, %v8197_v48   ;;  %12493 = vst [vmem:[#allocation88_spill] sm:$0xff] %v8465_v21 }
 0x26d   : > { %6576 = vset.pattern.permute.xlu1 %v12492_v0  ;;  %v8491_v4 = vpop.permute.xlu0 %763 }
 0x26e   : > { %1266 = vperm.xlu1 %6576, %v12453_v33  }
 0x272   : > { %6568 = vset.pattern.permute.xlu2 %v12488_v37  ;;  %v8471_v9 = vpop.permute.xlu2 %761 }
 0x273   : > { %12494 = vst [vmem:[#allocation89_spill] sm:$0xff] %v8471_v9  ;;  %1066 = vperm.xlu2 %6568, %v12453_v33  }
 0x274   : > { %6596 = vset.pattern.permute.xlu0 %v12094_v24  ;;  %v8476_v38 = vpop.permute.xlu1 %718 }
 0x275   : > { %1730 = vperm.xlu0 %6596, %v12453_v33   ;;  %12496 = vst [vmem:[#allocation91_spill] sm:$0xff] %v8476_v38  ;;  %v8501_v38 = vpop.permute.xlu0 %933 }
 0x276   : > { %1439 = vrot.lane.b32.xlu1 %v12467_v1, %s7010_s14  ;;  %12503 = vst [vmem:[#allocation95_spill] sm:$0xff] %v8501_v38 }
 0x277   : > { %6577 = vset.pattern.permute.xlu1 %v12497_v13 }
 0x27a   : > { %v8483_v24 = vpop.permute.xlu2 %923 }
 0x27b   : > { %12498 = vst [vmem:[#allocation92_spill] sm:$0xff] %v8483_v24  ;;  %1003 = vrot.lane.b32.xlu2 %v7265_v8, %s7006_s19 }
 0x27c   : > { %6569 = vset.pattern.permute.xlu2 %v12499_v5  ;;  %v12107_v5 = vmov 28  }
 0x27d   : > { %1991 = vrot.lane.b32.xlu0 %v12465_v15, %s7019_s15  ;;  %v8516_v24 = vpop.permute.xlu0 %638 }
 0x27e   : > { %1138 = vperm.xlu1 %6577, %v8197_v48   ;;  %v8489_v50 = vpop.permute.xlu1 %898 }
 0x27f   : > { %12500 = vst [vmem:[#allocation93_spill] sm:$0xff] %v8489_v50 }
 0x282   : > { %v8494_v61 = vpop.permute.xlu2 %634 }
 0x283   : > { %12501 = vst [vmem:[#allocation94_spill] sm:$0xff] %v8494_v61  ;;  %970 = vperm.xlu2 %6569, %v8197_v48  }
 0x285   : > { %1718 = vperm.xlu0 %6596, %v8197_v48   ;;  %v8530_v25 = vpop.permute.xlu0 %847 }
 0x286   : > { %6580 = vset.pattern.permute.xlu1 %v12502_v47  ;;  %v8498_v28 = vpop.permute.xlu1 %835 }
 0x287   : > { %1382 = vperm.xlu1 %6580, %v12453_v33  }
 0x28b   : > { %6572 = vset.pattern.permute.xlu2 %v12497_v13  ;;  %v8507_v61 = vpop.permute.xlu2 %722 }
 0x28c   : > { %1150 = vperm.xlu2 %6572, %v12453_v33  }
 0x28d   : > { %1899 = vrot.lane.b32.xlu0 %v7212_v31, %s7020_s26 }
 0x28e   : > { %6603 = vset.pattern.permute.xlu0 %v12107_v5  ;;  %v8510_v50 = vpop.permute.xlu1 %1005 }
 0x28f   : > { %12504 = vst [vmem:[#allocation96_spill] sm:$0xff] %v8510_v50  ;;  %1523 = vrot.lane.b32.xlu1 %v12467_v1, %s7013_s10  ;;  %v12114_v50 = vmov 29  }
 0x290   : > { %6581 = vset.pattern.permute.xlu1 %v12492_v0 }
 0x293   : > { %v8518_v21 = vpop.permute.xlu2 %833 }
 0x294   : > { %12505 = vst [vmem:[#allocation97_spill] sm:$0xff] %v8518_v21  ;;  %6574 = vset.pattern.permute.xlu2 %v12488_v37  ;;  %v12509_v37 = vmov 24   ;;  %v12121_v21 = vmov 30  }
 0x295   : > { %1834 = vperm.xlu0 %6603, %v8197_v48   ;;  %1058 = vperm.xlu2 %6574, %v12444_v52  }
 0x296   : > { %v8521_v5 = vpop.permute.xlu1 %1019 }
 0x297   : > { %12506 = vst [vmem:[#allocation98_spill] sm:$0xff] %v8521_v5  ;;  %1254 = vperm.xlu1 %6581, %v8197_v48  }
 0x29b   : > { %v8528_v9 = vpop.permute.xlu2 %845 }
 0x29c   : > { %12507 = vst [vmem:[#allocation99_spill] sm:$0xff] %v8528_v9  ;;  %v8546_v9 = vpop.permute.xlu0 %1017 }
 0x29d   : > { %1983 = vrot.lane.b32.xlu0 %v7212_v31, %s7019_s15  ;;  %1437 = vrot.lane.b32.xlu2 %v12465_v15, %s7010_s14  ;;  %12512 = vst [vmem:[#allocation103_spill] sm:$0xff] %v8546_v9 }
 0x29e   : > { %6607 = vset.pattern.permute.xlu0 %v12114_v50  ;;  %v8532_v26 = vpop.permute.xlu1 %978  ;;  %6578 = vset.pattern.permute.xlu2 %v12497_v13 }
 0x29f   : > { %12508 = vst [vmem:[#allocation100_spill] sm:$0xff] %v8532_v26  ;;  %6584 = vset.pattern.permute.xlu1 %v12509_v37  ;;  %v12127_v26 = vmov 31  }
 0x2a0   : > { %1498 = vperm.xlu1 %6584, %v12453_v33  }
 0x2a3   : > { %v8540_v5 = vpop.permute.xlu2 %1007 }
 0x2a4   : > { %12510 = vst [vmem:[#allocation101_spill] sm:$0xff] %v8540_v5 }
 0x2a5   : > { %1950 = vperm.xlu0 %6607, %v8197_v48   ;;  %1449 = vrot.lane.b32.xlu2 %v12448_v12, %s7010_s14 }
 0x2a6   : > { %v8542_v50 = vpop.permute.xlu1 %917 }
 0x2a7   : > { %12511 = vst [vmem:[#allocation102_spill] sm:$0xff] %v8542_v50  ;;  %v8559_v50 = vpop.permute.xlu0 %806 }
 0x2a8   : > { %1435 = vrot.lane.b32.xlu1 %v7265_v8, %s7010_s14 }
 0x2a9   : > { %6585 = vset.pattern.permute.xlu1 %v12502_v47 }
 0x2ab   : > { %v8553_v13 = vpop.permute.xlu2 %802 }
 0x2ac   : > { %12513 = vst [vmem:[#allocation104_spill] sm:$0xff] %v8553_v13  ;;  %v12516_v13 = vmov 25  }
 0x2ad   : > { %6612 = vset.pattern.permute.xlu0 %v12121_v21  ;;  %1142 = vperm.xlu2 %6578, %v12444_v52  }
 0x2ae   : > { %2038 = vperm.xlu0 %6612, %v12444_v52   ;;  %v8555_v5 = vpop.permute.xlu1 %931 }
 0x2af   : > { %v8573_v22 = vpop.permute.xlu0 %894 }
 0x2b0   : > { %1370 = vperm.xlu1 %6585, %v8197_v48   ;;  %12517 = vst [vmem:[#allocation107_spill] sm:$0xff] %v8573_v22 }
 0x2b4   : > { %v8564_v21 = vpop.permute.xlu2 %982 }
 0x2b5   : > { %12514 = vst [vmem:[#allocation105_spill] sm:$0xff] %v8564_v21  ;;  %1521 = vrot.lane.b32.xlu2 %v12465_v15, %s7013_s10 }
 0x2b6   : > { %2425 = vrot.lane.b32.xlu0 %v7341_v51, %s7024_s17  ;;  %v8566_v9 = vpop.permute.xlu1 %1062  ;;  %6582 = vset.pattern.permute.xlu2 %v12492_v0  ;;  %v12134_v0 = vmov 32  }
 0x2b7   : > { %6616 = vset.pattern.permute.xlu0 %v12127_v26  ;;  %12515 = vst [vmem:[#allocation106_spill] sm:$0xff] %v8566_v9  ;;  %v8588_v21 = vpop.permute.xlu0 %929 }
 0x2b8   : > { %6588 = vset.pattern.permute.xlu1 %v12516_v13  ;;  %12519 = vst [vmem:[#allocation109_spill] sm:$0xff] %v8588_v21  ;;  %v12140_v21 = vmov 33  }
 0x2b9   : > { %1582 = vperm.xlu1 %6588, %v12453_v33  }
 0x2bc   : > { %v8576_v38 = vpop.permute.xlu2 %919 }
 0x2bd   : > { %1533 = vrot.lane.b32.xlu2 %v12448_v12, %s7013_s10 }
 0x2be   : > { %2122 = vperm.xlu0 %6616, %v12444_v52   ;;  %v8578_v26 = vpop.permute.xlu1 %1001 }
 0x2bf   : > { %12518 = vst [vmem:[#allocation108_spill] sm:$0xff] %v8578_v26 }
 0x2c1   : > { %1519 = vrot.lane.b32.xlu1 %v7265_v8, %s7013_s10 }
 0x2c2   : > { %6589 = vset.pattern.permute.xlu1 %v12509_v37 }
 0x2c4   : > { %v8590_v9 = vpop.permute.xlu2 %886 }
 0x2c5   : > { %12520 = vst [vmem:[#allocation110_spill] sm:$0xff] %v8590_v9  ;;  %1258 = vperm.xlu2 %6582, %v12444_v52   ;;  %v12523_v9 = vmov 26  }
 0x2c6   : > { %2509 = vrot.lane.b32.xlu0 %v7341_v51, %s7026_s18  ;;  %v8592_v26 = vpop.permute.xlu1 %1015 }
 0x2c7   : > { %6620 = vset.pattern.permute.xlu0 %v12134_v0  ;;  %v8603_v0 = vpop.permute.xlu0 %890 }
 0x2c9   : > { %1486 = vperm.xlu1 %6589, %v8197_v48  }
 0x2cd   : > { %1433 = vrot.lane.b32.xlu2 %v7212_v31, %s7010_s14  ;;  %v8601_v58 = vpop.permute.xlu2 %1066 }
 0x2ce   : > { %2238 = vperm.xlu0 %6620, %v12444_v52   ;;  %v8597_v22 = vpop.permute.xlu1 %1146  ;;  %12522 = vst [vmem:[#allocation112_spill] sm:$0xff] %v8601_v58  ;;  %6586 = vset.pattern.permute.xlu2 %v12502_v47  ;;  %v8623_v47 = vld [vmem:[%s11955_s7 + $0x8] sm:$0xff] }
 0x2cf   : > { %12521 = vst [vmem:[#allocation111_spill] sm:$0xff] %v8597_v22  ;;  %v8617_v22 = vpop.permute.xlu0 %1013 }
 0x2d0   : > { %12525 = vst [vmem:[#allocation114_spill] sm:$0xff] %v8617_v22 }
 0x2d1   : > { %6592 = vset.pattern.permute.xlu1 %v12523_v9 }
 0x2d2   : > { %1666 = vperm.xlu1 %6592, %v12453_v33  }
 0x2d5   : > { %1445 = vrot.lane.b32.xlu2 %v12419_v49, %s7010_s14  ;;  %v8613_v52 = vpop.permute.xlu2 %1003 }
 0x2d6   : > { %2417 = vrot.lane.b32.xlu0 %v12422_v16, %s7024_s17 }
 0x2d7   : > { %6623 = vset.pattern.permute.xlu0 %v12140_v21  ;;  %v8615_v58 = vpop.permute.xlu1 %1054  ;;  %v8633_v22 = vpop.permute.xlu0 %974 }
 0x2d8   : > { %12524 = vst [vmem:[#allocation113_spill] sm:$0xff] %v8615_v58 }
 0x2da   : > { %6594 = vset.pattern.permute.xlu1 %v12516_v13 }
 0x2db   : > { %1574 = vperm.xlu1 %6594, %v8623_v47  }
 0x2dd   : > { %1374 = vperm.xlu2 %6586, %v8623_v47   ;;  %v8629_v21 = vpop.permute.xlu2 %970 }
 0x2de   : > { %2591 = vrot.lane.b32.xlu0 %v12465_v15, %s7029_s21  ;;  %12526 = vst [vmem:[#allocation115_spill] sm:$0xff] %v8629_v21 }
 0x2e0   : > { %v8631_v58 = vpop.permute.xlu1 %1266 }
 0x2e1   : > { %12527 = vst [vmem:[#allocation116_spill] sm:$0xff] %v8631_v58  ;;  %v8650_v58 = vpop.permute.xlu0 %1262 }
 0x2e2   : > { %12530 = vst [vmem:[#allocation119_spill] sm:$0xff] %v8650_v58 }
 0x2e3   : > { %1905 = vrot.lane.b32.xlu1 %v12448_v12, %s7020_s26 }
 0x2e4   : > { %6597 = vset.pattern.permute.xlu1 %v12523_v9 }
 0x2e5   : > { %1517 = vrot.lane.b32.xlu2 %v7212_v31, %s7013_s10 }
 0x2e6   : > { %2350 = vperm.xlu0 %6623, %v8197_v48   ;;  %v8641_v10 = vpop.permute.xlu2 %1150  ;;  %6590 = vset.pattern.permute.xlu2 %v12509_v37  ;;  %v12153_v37 = vmov 35  }
 0x2e7   : > { %12528 = vst [vmem:[#allocation117_spill] sm:$0xff] %v8641_v10 }
 0x2e8   : > { %v8644_v3 = vpop.permute.xlu1 %1439 }
 0x2e9   : > { %12529 = vst [vmem:[#allocation118_spill] sm:$0xff] %v8644_v3  ;;  %v8663_v3 = vpop.permute.xlu0 %1451 }
 0x2ea   : > { %12532 = vst [vmem:[#allocation121_spill] sm:$0xff] %v8663_v3 }
 0x2eb   : > { %1909 = vrot.lane.b32.xlu1 %v7341_v51, %s7020_s26 }
 0x2ed   : > { %1529 = vrot.lane.b32.xlu2 %v12419_v49, %s7013_s10 }
 0x2ee   : > { %2499 = vrot.lane.b32.xlu0 %v7212_v31, %s7026_s18 }
 0x2ef   : > { %v8656_v21 = vpop.permute.xlu2 %1058  ;;  %6631 = vset.pattern.permute.xlu0 %v12153_v37 }
 0x2f0   : > { %v8654_v9 = vpop.permute.xlu1 %1138 }
 0x2f1   : > { %12531 = vst [vmem:[#allocation120_spill] sm:$0xff] %v8654_v9  ;;  %v12535_v9 = vmov 28   ;;  %v8677_v37 = vpop.permute.xlu0 %1378 }
 0x2f2   : > { %12537 = vst [vmem:[#allocation125_spill] sm:$0xff] %v8677_v37 }
 0x2f3   : > { %1658 = vperm.xlu1 %6597, %v8623_v47  }
 0x2f5   : > { %1490 = vperm.xlu2 %6590, %v8623_v47  }
 0x2f6   : > { %2673 = vrot.lane.b32.xlu0 %v12448_v12, %s7030_s22 }
 0x2f7   : > { %v8665_v10 = vpop.permute.xlu2 %1437 }
 0x2f8   : > { %12533 = vst [vmem:[#allocation122_spill] sm:$0xff] %v8665_v10 }
 0x2f9   : > { %v8667_v58 = vpop.permute.xlu1 %1382  ;;  %v8697_v10 = vpop.permute.xlu0 %1535 }
 0x2fa   : > { %12534 = vst [vmem:[#allocation123_spill] sm:$0xff] %v8667_v58  ;;  %v12539_v58 = vmov 27  }
 0x2fb   : > { %6599 = vset.pattern.permute.xlu1 %v12535_v9  ;;  %12541 = vst [vmem:[#allocation128_spill] sm:$0xff] %v8697_v10 }
 0x2fc   : > { %1846 = vperm.xlu1 %6599, %v12453_v33  }
 0x2fd   : > { %6593 = vset.pattern.permute.xlu2 %v12516_v13  ;;  %v8690_v13 = vld [vmem:[%s11955_s7 + $0x10] sm:$0xff] }
 0x2fe   : > { %2679 = vrot.lane.b32.xlu0 %v12467_v1, %s7030_s22  ;;  %1570 = vperm.xlu2 %6593, %v8197_v48  }
 0x2ff   : > { %v8675_v56 = vpop.permute.xlu2 %1449 }
 0x300   : > { %12536 = vst [vmem:[#allocation124_spill] sm:$0xff] %v8675_v56 }
 0x301   : > { %v8679_v3 = vpop.permute.xlu1 %1523  ;;  %v8711_v10 = vpop.permute.xlu0 %1494 }
 0x302   : > { %12538 = vst [vmem:[#allocation126_spill] sm:$0xff] %v8679_v3 }
 0x303   : > { %12545 = vst [vmem:[#allocation131_spill] sm:$0xff] %v8711_v10 }
 0x304   : > { %1993 = vrot.lane.b32.xlu1 %v7341_v51, %s7019_s15 }
 0x305   : > { %6600 = vset.pattern.permute.xlu1 %v12539_v58 }
 0x306   : > { %2587 = vrot.lane.b32.xlu0 %v7265_v8, %s7029_s21  ;;  %6595 = vset.pattern.permute.xlu2 %v12539_v58 }
 0x307   : > { %1726 = vperm.xlu2 %6595, %v8690_v13   ;;  %v8693_v56 = vpop.permute.xlu2 %1142 }
 0x309   : > { %v8695_v3 = vpop.permute.xlu1 %1254 }
 0x30a   : > { %12540 = vst [vmem:[#allocation127_spill] sm:$0xff] %v8695_v3 }
 0x30c   : > { %1722 = vperm.xlu1 %6600, %v8623_v47  }
 0x30e   : > { %2761 = vrot.lane.b32.xlu0 %v7341_v51, %s7032_s29 }
 0x30f   : > { %1907 = vrot.lane.b32.xlu2 %v12465_v15, %s7020_s26  ;;  %v8704_v58 = vpop.permute.xlu2 %1521 }
 0x310   : > { %12542 = vst [vmem:[#allocation129_spill] sm:$0xff] %v8704_v58  ;;  %6598 = vset.pattern.permute.xlu2 %v12535_v9  ;;  %v12169_v58 = vmov 36  }
 0x312   : > { %v8707_v37 = vpop.permute.xlu1 %1498 }
 0x313   : > { %12543 = vst [vmem:[#allocation130_spill] sm:$0xff] %v8707_v37  ;;  %v8725_v37 = vpop.permute.xlu0 %1447 }
 0x314   : > { %6602 = vset.pattern.permute.xlu1 %v12544_v54 }
 0x315   : > { %1962 = vperm.xlu1 %6602, %v12453_v33  }
 0x316   : > { %2554 = vperm.xlu0 %6631, %v8623_v47  }
 0x317   : > { %1911 = vrot.lane.b32.xlu2 %v12467_v1, %s7020_s26  ;;  %v8716_v3 = vpop.permute.xlu2 %1533 }
 0x318   : > { %12546 = vst [vmem:[#allocation132_spill] sm:$0xff] %v8716_v3 }
 0x31a   : > { %v8718_v19 = vpop.permute.xlu1 %1435 }
 0x31b   : > { %v8739_v3 = vpop.permute.xlu0 %1578 }
 0x31c   : > { %12549 = vst [vmem:[#allocation135_spill] sm:$0xff] %v8739_v3 }
 0x31d   : > { %1901 = vrot.lane.b32.xlu1 %v12422_v16, %s7020_s26 }
 0x31e   : > { %6632 = vset.pattern.permute.xlu0 %v12169_v58  ;;  %6604 = vset.pattern.permute.xlu1 %v12535_v9 }
 0x31f   : > { %2642 = vperm.xlu0 %6632, %v8690_v13   ;;  %1842 = vperm.xlu2 %6598, %v8690_v13   ;;  %v8728_v10 = vpop.permute.xlu2 %1258 }
 0x322   : > { %v8730_v63 = vpop.permute.xlu1 %1370 }
 0x323   : > { %12547 = vst [vmem:[#allocation133_spill] sm:$0xff] %v8730_v63 }
 0x325   : > { %1838 = vperm.xlu1 %6604, %v8623_v47  }
 0x327   : > { %2669 = vrot.lane.b32.xlu0 %v12422_v16, %s7030_s22  ;;  %1989 = vrot.lane.b32.xlu2 %v12448_v12, %s7019_s15  ;;  %v8737_v58 = vpop.permute.xlu2 %1433 }
 0x328   : > { %12548 = vst [vmem:[#allocation134_spill] sm:$0xff] %v8737_v58  ;;  %6601 = vset.pattern.permute.xlu2 %v12544_v54  ;;  %v8752_v58 = vpop.permute.xlu0 %1531 }
 0x32b   : > { %v8742_v9 = vpop.permute.xlu1 %1582 }
 0x32c   : > { %12550 = vst [vmem:[#allocation136_spill] sm:$0xff] %v8742_v9 }
 0x32d   : > { %6606 = vset.pattern.permute.xlu1 %v12551_v6 }
 0x32e   : > { %2046 = vperm.xlu1 %6606, %v12453_v33  }
 0x32f   : > { %2843 = vrot.lane.b32.xlu0 %v12465_v15, %s7034_s30  ;;  %1995 = vrot.lane.b32.xlu2 %v12467_v1, %s7019_s15  ;;  %v8750_v63 = vpop.permute.xlu2 %1445 }
 0x330   : > { %12552 = vst [vmem:[#allocation137_spill] sm:$0xff] %v8750_v63  ;;  %v8765_v46 = vpop.permute.xlu0 %1662  ;;  %v12182_v63 = vmov 1  }
 0x331   : > { %12554 = vst [vmem:[#allocation139_spill] sm:$0xff] %v8765_v46  ;;  %v12557_v46 = vmov 31  }
 0x333   : > { %v8754_v3 = vpop.permute.xlu1 %1519 }
 0x336   : > { %1985 = vrot.lane.b32.xlu1 %v12422_v16, %s7019_s15 }
 0x337   : > { %2634 = vperm.xlu0 %6632, %v8197_v48   ;;  %6608 = vset.pattern.permute.xlu1 %v12544_v54  ;;  %v8761_v9 = vpop.permute.xlu2 %1374 }
 0x338   : > { %1958 = vperm.xlu2 %6601, %v8690_v13   ;;  %v8784_v30 = vpop.permute.xlu0 %1654 }
 0x339   : > { %12558 = vst [vmem:[#allocation142_spill] sm:$0xff] %v8784_v30 }
 0x33b   : > { %v8763_v33 = vpop.permute.xlu1 %1486 }
 0x33c   : > { %12553 = vst [vmem:[#allocation138_spill] sm:$0xff] %v8763_v33 }
 0x33e   : > { %1954 = vperm.xlu1 %6608, %v8623_v47  }
 0x33f   : > { %6639 = vset.pattern.permute.xlu0 %v12182_v63  ;;  %v8777_v54 = vpop.permute.xlu2 %1517  ;;  %v12188_v63 = vmov 37  }
 0x340   : > { %3206 = vperm.xlu0 %6639, %v8772_v35   ;;  %1897 = vrot.lane.b32.xlu2 %v12419_v49, %s7020_s26  ;;  %12555 = vst [vmem:[#allocation140_spill] sm:$0xff] %v8777_v54 }
 0x341   : > { %6605 = vset.pattern.permute.xlu2 %v12551_v6 }
 0x344   : > { %v8780_v33 = vpop.permute.xlu1 %1666 }
 0x345   : > { %12556 = vst [vmem:[#allocation141_spill] sm:$0xff] %v8780_v33  ;;  %v8801_v33 = vpop.permute.xlu0 %1730 }
 0x346   : > { %6610 = vset.pattern.permute.xlu1 %v12557_v46  ;;  %12561 = vst [vmem:[#allocation144_spill] sm:$0xff] %v8801_v33 }
 0x347   : > { %2130 = vperm.xlu1 %6610, %v8772_v35   ;;  %v8790_v17 = vpop.permute.xlu2 %1529 }
 0x348   : > { %6640 = vset.pattern.permute.xlu0 %v12188_v63  ;;  %1903 = vrot.lane.b32.xlu2 %v7265_v8, %s7020_s26  ;;  %12559 = vst [vmem:[#allocation143_spill] sm:$0xff] %v8790_v17 }
 0x349   : > { %2718 = vperm.xlu0 %6640, %v8197_v48  }
 0x34d   : > { %v8792_v54 = vpop.permute.xlu1 %1574  ;;  %v8813_v20 = vpop.permute.xlu0 %1991 }
 0x34e   : > { %12565 = vst [vmem:[#allocation147_spill] sm:$0xff] %v8813_v20 }
 0x34f   : > { %6613 = vset.pattern.permute.xlu1 %v12560_v53  ;;  %v8799_v63 = vpop.permute.xlu2 %1490 }
 0x350   : > { %2242 = vperm.xlu1 %6613, %v8690_v13   ;;  %2042 = vperm.xlu2 %6605, %v8690_v13  }
 0x351   : > { %2835 = vrot.lane.b32.xlu0 %v7212_v31, %s7034_s30 }
 0x355   : > { %v8803_v30 = vpop.permute.xlu1 %1905  ;;  %v8823_v33 = vpop.permute.xlu0 %1718 }
 0x356   : > { %12562 = vst [vmem:[#allocation145_spill] sm:$0xff] %v8803_v30 }
 0x357   : > { %12568 = vst [vmem:[#allocation150_spill] sm:$0xff] %v8823_v33  ;;  %v12207_v33 = vmov 34  }
 0x358   : > { %2421 = vrot.lane.b32.xlu1 %v12448_v12, %s7024_s17  ;;  %1981 = vrot.lane.b32.xlu2 %v12419_v49, %s7019_s15  ;;  %v8809_v17 = vpop.permute.xlu2 %1570 }
 0x359   : > { %12563 = vst [vmem:[#allocation146_spill] sm:$0xff] %v8809_v17  ;;  %6617 = vset.pattern.permute.xlu1 %v12564_v60  ;;  %6609 = vset.pattern.permute.xlu2 %v12557_v46 }
 0x35d   : > { %v8815_v62 = vpop.permute.xlu1 %1909 }
 0x35e   : > { %12566 = vst [vmem:[#allocation148_spill] sm:$0xff] %v8815_v62  ;;  %v8833_v62 = vpop.permute.xlu0 %1899 }
 0x35f   : > { %12571 = vst [vmem:[#allocation153_spill] sm:$0xff] %v8833_v62 }
 0x360   : > { %2427 = vrot.lane.b32.xlu1 %v12467_v1, %s7024_s17  ;;  %1987 = vrot.lane.b32.xlu2 %v7265_v8, %s7019_s15 }
 0x361   : > { %v8821_v30 = vpop.permute.xlu2 %1726 }
 0x362   : > { %12567 = vst [vmem:[#allocation149_spill] sm:$0xff] %v8821_v30 }
 0x365   : > { %v8825_v59 = vpop.permute.xlu1 %1658 }
 0x368   : > { %2358 = vperm.xlu1 %6617, %v8690_v13   ;;  %2126 = vperm.xlu2 %6609, %v8690_v13  }
 0x369   : > { %v8829_v17 = vpop.permute.xlu2 %1907 }
 0x36a   : > { %12569 = vst [vmem:[#allocation151_spill] sm:$0xff] %v8829_v17  ;;  %v687_v17 = vsel %vm685_vm11, %v8441_v41, %v8434_v14  ;;  %v5896_v41 = vld [vmem:[%s11954_s6 + $0x3] ss:$8 sm:$0x3] }
 0x36e   : > { %v8831_v20 = vpop.permute.xlu1 %1846 }
 0x36f   : > { %12570 = vst [vmem:[#allocation152_spill] sm:$0xff] %v8831_v20  ;;  %v8846_v20 = vpop.permute.xlu0 %1834 }
 0x370   : > { %2505 = vrot.lane.b32.xlu1 %v12448_v12, %s7026_s18  ;;  %6611 = vset.pattern.permute.xlu2 %v12551_v6  ;;  %12574 = vst [vmem:[#allocation156_spill] sm:$0xff] %v8846_v20 }
 0x371   : > { %2034 = vperm.xlu2 %6611, %v8197_v48   ;;  %6621 = vset.pattern.permute.xlu1 %v12207_v33  ;;  %v8840_v30 = vpop.permute.xlu2 %1911 }
 0x372   : > { %12572 = vst [vmem:[#allocation154_spill] sm:$0xff] %v8840_v30 }
 0x376   : > { %v8842_v27 = vpop.permute.xlu1 %1993 }
 0x377   : > { %12573 = vst [vmem:[#allocation155_spill] sm:$0xff] %v8842_v27  ;;  %v8859_v27 = vpop.permute.xlu0 %1983 }
 0x378   : > { %2511 = vrot.lane.b32.xlu1 %v12467_v1, %s7026_s18  ;;  %12577 = vst [vmem:[#allocation159_spill] sm:$0xff] %v8859_v27 }
 0x379   : > { %6614 = vset.pattern.permute.xlu2 %v12560_v53  ;;  %v8850_v62 = vpop.permute.xlu2 %1842 }
 0x37a   : > { %2246 = vperm.xlu2 %6614, %v8772_v35   ;;  %12575 = vst [vmem:[#allocation157_spill] sm:$0xff] %v8850_v62 }
 0x37e   : > { %v8852_v6 = vpop.permute.xlu1 %1722 }
 0x37f   : > { %v8870_v62 = vpop.permute.xlu0 %1950 }
 0x380   : > { %2474 = vperm.xlu1 %6621, %v8690_v13   ;;  %12580 = vst [vmem:[#allocation162_spill] sm:$0xff] %v8870_v62  ;;  %v616_v62 = vsel %vm602_vm12, %v8417_v57, %v8400_v23 }
 0x381   : > { %v8857_v33 = vpop.permute.xlu2 %1989 }
 0x382   : > { %2423 = vrot.lane.b32.xlu2 %v12465_v15, %s7024_s17  ;;  %12576 = vst [vmem:[#allocation158_spill] sm:$0xff] %v8857_v33  ;;  %v5894_v33 = vld [vmem:[%s11954_s6 + $0x1] ss:$8 sm:$0x3] }
 0x383   : > { %6615 = vset.pattern.permute.xlu2 %v12557_v46  ;;  %v619_v46 = vld [vmem:[%s11954_s6] ss:$8 sm:$0x3] }
 0x384   : > { %v8904_v55 = vperm.slane %v619_v46, 1 }
 0x386   : > { %12585 = vst [vmem:[#allocation167_spill] sm:$0xff] %v8904_v55 }
 0x387   : > { %v8862_v30 = vpop.permute.xlu1 %1962  ;;  %v8920_v11 = vpop.permute.xlu0 %2038 }
 0x388   : > { %12578 = vst [vmem:[#allocation160_spill] sm:$0xff] %v8862_v30  ;;  %2413 = vrot.lane.b32.xlu1 %v12419_v49, %s7024_s17  ;;  %v8882_v30 = vperm.slane %v5894_v33, 0 }
 0x389   : > { %6624 = vset.pattern.permute.xlu1 %v12564_v60  ;;  %v8868_v20 = vpop.permute.xlu2 %1995 }
 0x38a   : > { %2118 = vperm.xlu2 %6615, %v8197_v48   ;;  %12579 = vst [vmem:[#allocation161_spill] sm:$0xff] %v8868_v20  ;;  %v604_v20 = vsel %vm602_vm12, %v8400_v23, %v8417_v57  ;;  %v5895_v23 = vld [vmem:[%s11954_s6 + $0x2] ss:$8 sm:$0x3]  ;;  %v711_v14 = vmul.f32 %v8882_v30, %v699_v29 }
 0x38b   : > { %12581 = vst [vmem:[#allocation163_spill] sm:$0xff] %v8882_v30  ;;  %v628_v40 = vmul.f32 %v8904_v55, %v604_v20  ;;  %v8916_v34 = vperm.slane %v5895_v23, 0  ;;  %v5897_v29 = vld [vmem:[%s11954_s6 + $0x4] ss:$8 sm:$0x3]  ;;  %v771_v30 = vsel %vm769_vm13, %v8491_v4, %v8444_v39 }
 0x38c   : > { %v735_v20 = vmul.f32 %v8507_v61, %v711_v14  ;;  %v867_v14 = vsel %vm853_vm14, %v8498_v28, %v8530_v25 }
 0x38f   : > { %v8875_v27 = vpop.permute.xlu1 %1901 }
 0x390   : > { %2419 = vrot.lane.b32.xlu1 %v7265_v8, %s7024_s17 }
 0x392   : > { %6618 = vset.pattern.permute.xlu2 %v12564_v60  ;;  %v8885_v48 = vpop.permute.xlu2 %1958  ;;  %v8900_v60 = vperm.slane %v5894_v33, 1 }
 0x393   : > { %12582 = vst [vmem:[#allocation164_spill] sm:$0xff] %v8885_v48  ;;  %2362 = vperm.xlu2 %6618, %v8772_v35   ;;  %v8902_v48 = vperm.slane %v619_v46, 0  ;;  %v8918_v46 = vperm.slane %v5895_v23, 1  ;;  %v8934_v23 = vperm.slane %v5896_v41, 0 }
 0x394   : > { %12583 = vst [vmem:[#allocation165_spill] sm:$0xff] %v8900_v60  ;;  %v712_v33 = vmul.f32 %v8900_v60, %v687_v17  ;;  %v8936_v60 = vperm.slane %v5896_v41, 1 }
 0x395   : > { %12584 = vst [vmem:[#allocation166_spill] sm:$0xff] %v8902_v48  ;;  %v627_v57 = vmul.f32 %v8902_v48, %v616_v62  ;;  %v783_v62 = vsel %vm769_vm13, %v8444_v39, %v8491_v4  ;;  %v652_v48 = vmul.f32 %v8516_v24, %v628_v40  ;;  %v939_v4 = vsel %vm937_vm15, %v8555_v5, %v8576_v38 }
 0x396   : > { %v736_v17 = vmul.f32 %v8507_v61, %v712_v33  ;;  %v855_v61 = vsel %vm853_vm14, %v8530_v25, %v8498_v28  ;;  %v795_v41 = vmul.f32 %v8916_v34, %v783_v62  ;;  %v796_v40 = vmul.f32 %v8918_v46, %v771_v30 }
 0x397   : > { %v8922_v49 = vpop.permute.xlu1 %1838  ;;  %v651_v55 = vmul.f32 %v8516_v24, %v627_v57  ;;  %v951_v24 = vsel %vm937_vm15, %v8576_v38, %v8555_v5  ;;  %v8963_v28 = vperm.slane %v5897_v29, 1  ;;  %v879_v62 = vmul.f32 %v8934_v23, %v867_v14  ;;  %v5898_v38 = vld [vmem:[%s11954_s6 + $0x5] ss:$8 sm:$0x3] }
 0x398   : > { %2593 = vrot.lane.b32.xlu1 %v7341_v51, %s7029_s21  ;;  %v8952_v51 = vperm.slane %v5897_v29, 0  ;;  %v744_v39 = vadd.f32 %v736_v17, %v652_v48  ;;  %v819_v57 = vmul.f32 %v8559_v50, %v795_v41  ;;  %v820_v5 = vmul.f32 %v8559_v50, %v796_v40 }
 0x399   : > { %v743_v25 = vadd.f32 %v735_v20, %v651_v55  ;;  %v964_v55 = vmul.f32 %v8963_v28, %v939_v4  ;;  %v1035_v48 = vsel %vm1021_vm1, %v8613_v52, %v8592_v26  ;;  %v8981_v17 = vperm.slane %v5898_v38, 0  ;;  %v8990_v4 = vpop.permute.xlu0 %2425 }
 0x39a   : > { %v8949_v33 = vpop.permute.xlu2 %1897  ;;  %v963_v30 = vmul.f32 %v8952_v51, %v951_v24  ;;  %v828_v20 = vadd.f32 %v820_v5, %v744_v39  ;;  %v903_v14 = vmul.f32 %v8603_v0, %v879_v62  ;;  %12588 = vst [vmem:[#allocation170_spill] sm:$0xff] %v8990_v4  ;;  %v9001_v39 = vld [vmem:[%s11955_s7] sm:$0xff] }
 0x39b   : > { %12586 = vst [vmem:[#allocation168_spill] sm:$0xff] %v8949_v33  ;;  %2507 = vrot.lane.b32.xlu2 %v12465_v15, %s7026_s18  ;;  %v880_v33 = vmul.f32 %v8936_v60, %v855_v61  ;;  %v827_v29 = vadd.f32 %v819_v57, %v743_v25  ;;  %v8983_v61 = vperm.slane %v5898_v38, 1 }
 0x39c   : > { %6619 = vset.pattern.permute.xlu2 %v12560_v53  ;;  %v1023_v53 = vsel %vm1021_vm1, %v8592_v26, %v8613_v52  ;;  %v987_v24 = vmul.f32 %v8633_v22, %v963_v30  ;;  %v988_v26 = vmul.f32 %v8633_v22, %v964_v55  ;;  %v1047_v52 = vmul.f32 %v8981_v17, %v1035_v48  ;;  %v5902_v22 = vld [vmem:[%s11954_s6 + $0x11] ss:$8 sm:$0x3] }
 0x39d   : > { %v904_v41 = vmul.f32 %v8603_v0, %v880_v33  ;;  %v1048_v40 = vmul.f32 %v8983_v61, %v1023_v53  ;;  %v911_v0 = vadd.f32 %v903_v14, %v827_v29  ;;  %v12589_v30 = vld [vmem:[#allocation61_spill] sm:$0xff]  ;;  %v12590_v53 = vld [vmem:[#allocation62_spill] sm:$0xff]  ;;  %v12591_v14 = vmov 35  }
 0x39e   : > { %v1071_v57 = vmul.f32 %v8656_v21, %v1047_v52  ;;  %v1155_v55 = vmul.f32 %v8693_v56, %v12589_v30  ;;  %v1156_v48 = vmul.f32 %v8693_v56, %v12590_v53  ;;  %v12592_v56 = vld [vmem:[#allocation67_spill] sm:$0xff]  ;;  %v12596_v30 = vld [vmem:[#allocation76_spill] sm:$0xff] }
 0x39f   : > { %v912_v33 = vadd.f32 %v904_v41, %v828_v20  ;;  %v1072_v62 = vmul.f32 %v8656_v21, %v1048_v40  ;;  %v995_v38 = vadd.f32 %v987_v24, %v911_v0  ;;  %v1455_v20 = vsel %vm1453_vm2, %v8725_v37, %v8718_v19  ;;  %v12593_v40 = vld [vmem:[#allocation68_spill] sm:$0xff] }
 0x3a0   : > { %2354 = vperm.xlu1 %6624, %v8623_v47   ;;  %v8986_v50 = vpop.permute.xlu1 %2046  ;;  %v1467_v21 = vsel %vm1453_vm2, %v8718_v19, %v8725_v37  ;;  %v9022_v24 = vperm.slane %v5902_v22, 0  ;;  %v1271_v52 = vmul.f32 %v8728_v10, %v12592_v56  ;;  %v1272_v0 = vmul.f32 %v8728_v10, %v12593_v40  ;;  %v5903_v10 = vld [vmem:[%s11954_s6 + $0x12] ss:$8 sm:$0x3] }
 0x3a1   : > { %12587 = vst [vmem:[#allocation169_spill] sm:$0xff] %v8986_v50  ;;  %v996_v5 = vadd.f32 %v988_v26, %v912_v33  ;;  %v1079_v4 = vadd.f32 %v1071_v57, %v995_v38  ;;  %v9024_v26 = vperm.slane %v5902_v22, 1  ;;  %v9035_v38 = vpop.permute.xlu0 %2122  ;;  %v12595_v22 = vld [vmem:[#allocation70_spill] sm:$0xff]  ;;  %v1388_v53 = vmul.f32 %v8761_v9, %v12596_v30  ;;  %v12631_v50 = vld [vmem:[#allocation12_spill] sm:$0xff] }
 0x3a2   : > { %v8996_v25 = vpop.permute.xlu2 %1903  ;;  %v1479_v19 = vmul.f32 %v9022_v24, %v1467_v21  ;;  %v12597_v56 = vmov 34   ;;  %v9054_v21 = vperm.slane %v5903_v10, 0  ;;  %v9056_v40 = vperm.slane %v5903_v10, 1  ;;  %v5906_v10 = vld [vmem:[%s11954_s6 + $0x16] ss:$8 sm:$0x3] }
 0x3a3   : > { %2234 = vperm.xlu2 %6619, %v9001_v39   ;;  %v1080_v29 = vadd.f32 %v1072_v62, %v996_v5  ;;  %v1163_v33 = vadd.f32 %v1155_v55, %v1079_v4  ;;  %v1480_v37 = vmul.f32 %v9024_v26, %v1455_v20  ;;  %v1387_v5 = vmul.f32 %v8761_v9, %v12595_v22 }
 0x3a4   : > { %v1539_v20 = vsel %vm1537_vm3, %v8752_v58, %v8754_v3  ;;  %v1551_v9 = vsel %vm1537_vm3, %v8754_v3, %v8752_v58 }
 0x3a5   : > { %v1164_v57 = vadd.f32 %v1156_v48, %v1080_v29  ;;  %v1279_v4 = vadd.f32 %v1271_v52, %v1163_v33  ;;  %v1503_v48 = vmul.f32 %v8799_v63, %v1479_v19  ;;  %v1504_v29 = vmul.f32 %v8799_v63, %v1480_v37  ;;  %v12599_v37 = vld [vmem:[#allocation72_spill] sm:$0xff] }
 0x3a6   : > { %v1564_v33 = vmul.f32 %v9056_v40, %v1539_v20  ;;  %v1735_v20 = vmul.f32 %v8852_v6, %v12422_v16 }
 0x3a7   : > { %v1280_v55 = vadd.f32 %v1272_v0, %v1164_v57  ;;  %v1395_v22 = vadd.f32 %v1387_v5, %v1279_v4  ;;  %v1563_v0 = vmul.f32 %v9054_v21, %v1551_v9  ;;  %v1671_v5 = vmul.f32 %v8825_v59, %v12599_v37 }
 0x3a8   : > { %6626 = vset.pattern.permute.xlu1 %v12591_v14  ;;  %v9020_v41 = vpop.permute.xlu1 %1985  ;;  %v1588_v58 = vmul.f32 %v8792_v54, %v1564_v33  ;;  %v1736_v9 = vmul.f32 %v8852_v6, %v7265_v8 }
 0x3a9   : > { %2562 = vperm.xlu1 %6626, %v8772_v35   ;;  %v1396_v30 = vadd.f32 %v1388_v53, %v1280_v55  ;;  %v1511_v63 = vadd.f32 %v1503_v48, %v1395_v22  ;;  %v1587_v3 = vmul.f32 %v8792_v54, %v1563_v0  ;;  %v1672_v53 = vmul.f32 %v8825_v59, %v12415_v7  ;;  %v9076_v4 = vpop.permute.xlu0 %2509  ;;  %v5907_v22 = vld [vmem:[%s11954_s6 + $0x17] ss:$8 sm:$0x3] }
 0x3aa   : > { %v9031_v62 = vpop.permute.xlu2 %2042  ;;  %12600 = vst [vmem:[#allocation67_spill] sm:$0xff] %v9076_v4  ;;  %v1915_v54 = vsel %vm1913_vm4, %v8875_v27, %v8996_v25  ;;  %v1931_v7 = vsel %vm1913_vm4, %v8996_v25, %v8875_v27  ;;  %v9085_v59 = vperm.slane %v5906_v10, 0  ;;  %v1851_v27 = vmul.f32 %v8922_v49, %v8160_v43  ;;  %v12637_v4 = vld [vmem:[#allocation80_spill] sm:$0xff] }
 0x3ab   : > { %12594 = vst [vmem:[#allocation61_spill] sm:$0xff] %v9031_v62  ;;  %6622 = vset.pattern.permute.xlu2 %v12597_v56  ;;  %v1512_v57 = vadd.f32 %v1504_v29, %v1396_v30  ;;  %v1595_v55 = vadd.f32 %v1587_v3, %v1511_v63  ;;  %v9087_v29 = vperm.slane %v5906_v10, 1  ;;  %v1852_v25 = vmul.f32 %v8922_v49, %v8168_v36 }
 0x3ac   : > { %2478 = vperm.xlu2 %6622, %v8772_v35   ;;  %v1943_v33 = vmul.f32 %v9085_v59, %v1915_v54  ;;  %v9104_v6 = vperm.slane %v5907_v22, 1 }
 0x3ad   : > { %v1596_v48 = vadd.f32 %v1588_v58, %v1512_v57  ;;  %v1679_v30 = vadd.f32 %v1671_v5, %v1595_v55  ;;  %v1944_v63 = vmul.f32 %v9087_v29, %v1931_v7  ;;  %v9102_v57 = vperm.slane %v5907_v22, 0 }
 0x3ae   : > { %12602 = vst [vmem:[#allocation70_spill] sm:$0xff] %v9104_v6 }
 0x3af   : > { %v1680_v0 = vadd.f32 %v1672_v53, %v1596_v48  ;;  %12601 = vst [vmem:[#allocation68_spill] sm:$0xff] %v9102_v57  ;;  %v1743_v58 = vadd.f32 %v1735_v20, %v1679_v30  ;;  %v2135_v30 = vmul.f32 %v9035_v38, %v8238_v32 }
 0x3b0   : > { %v1955_v52 = vpop.permute.xlu1 %1954 }
 0x3b1   : > { %2501 = vrot.lane.b32.xlu1 %v12422_v16, %s7026_s18  ;;  %v1744_v37 = vadd.f32 %v1736_v9, %v1680_v0  ;;  %v1967_v43 = vmul.f32 %v1955_v52, %v1943_v33  ;;  %v1968_v5 = vmul.f32 %v1955_v52, %v1944_v63  ;;  %v1859_v10 = vadd.f32 %v1851_v27, %v1743_v58  ;;  %v2239_v22 = vpop.permute.xlu0 %2238 }
 0x3b2   : > { %v9062_v19 = vpop.permute.xlu2 %1981  ;;  %6627 = vset.pattern.permute.xlu1 %v12597_v56  ;;  %v2252_v33 = vmul.f32 %v2239_v22, %v8325_v42 }
 0x3b3   : > { %12598 = vst [vmem:[#allocation62_spill] sm:$0xff] %v9062_v19  ;;  %v1860_v55 = vadd.f32 %v1852_v25, %v1744_v37  ;;  %v1975_v7 = vadd.f32 %v1967_v43, %v1859_v10  ;;  %v2251_v25 = vmul.f32 %v2239_v22, %v8284_v2  ;;  %v12614_v10 = vld [vmem:[#allocation51_spill] sm:$0xff] }
 0x3b4   : > { %2415 = vrot.lane.b32.xlu2 %v7212_v31, %s7024_s17  ;;  %v12618_v22 = vld [vmem:[#allocation79_spill] sm:$0xff] }
 0x3b5   : > { %6625 = vset.pattern.permute.xlu2 %v12591_v14  ;;  %v1976_v20 = vadd.f32 %v1968_v5, %v1860_v55  ;;  %v12610_v5 = vmov 37  }
 0x3b9   : > { %2675 = vrot.lane.b32.xlu1 %v12465_v15, %s7030_s22  ;;  %v9108_v3 = vpop.permute.xlu1 %2130 }
 0x3ba   : > { %12603 = vst [vmem:[#allocation76_spill] sm:$0xff] %v9108_v3  ;;  %v1988_v53 = vpop.permute.xlu2 %1987 }
 0x3bb   : > { %v1999_v49 = vsel %vm1997_vm5, %v9020_v41, %v1988_v53  ;;  %v2015_v36 = vsel %vm1997_vm5, %v1988_v53, %v9020_v41  ;;  %v2136_v41 = vmul.f32 %v9035_v38, %v8240_v44  ;;  %v12606_v38 = vmov 36  }
 0x3bc   : > { %v2027_v48 = vmul.f32 %v9102_v57, %v1999_v49  ;;  %v2028_v54 = vmul.f32 %v9104_v6, %v2015_v36  ;;  %2589 = vrot.lane.b32.xlu2 %v12448_v12, %s7029_s21  ;;  %v618_v53 = vsel %vm602_vm12, %v8349_v18, %v8359_v45  ;;  %v12611_v49 = vld [vmem:[#allocation2_spill] sm:$0xff]  ;;  %v12613_v36 = vld [vmem:[#allocation21_spill] sm:$0xff] }
 0x3bd   : > { %v617_v55 = vsel %vm602_vm12, %v12614_v10, %v12613_v36  ;;  %v12639_v6 = vld [vmem:[#allocation82_spill] sm:$0xff] }
 0x3be   : > { %v2051_v52 = vmul.f32 %v8920_v11, %v2027_v48  ;;  %v2052_v9 = vmul.f32 %v8920_v11, %v2028_v54  ;;  %v606_v48 = vsel %vm602_vm12, %v8359_v45, %v8349_v18  ;;  %v12615_v54 = vld [vmem:[#allocation56_spill] sm:$0xff]  ;;  %v605_v18 = vsel %vm602_vm12, %v12613_v36, %v12614_v10  ;;  %v12619_v45 = vld [vmem:[#allocation66_spill] sm:$0xff] }
 0x3c0   : > { %v2059_v0 = vadd.f32 %v2051_v52, %v1975_v7  ;;  %v2060_v27 = vadd.f32 %v2052_v9, %v1976_v20  ;;  %v12616_v7 = vld [vmem:[#allocation43_spill] sm:$0xff]  ;;  %v12617_v9 = vld [vmem:[#allocation37_spill] sm:$0xff] }
 0x3c1   : > { %2466 = vperm.xlu1 %6627, %v9001_v39   ;;  %v688_v20 = vsel %vm685_vm11, %v12616_v7, %v12615_v54  ;;  %v700_v52 = vsel %vm685_vm11, %v12615_v54, %v12616_v7  ;;  %v12623_v7 = vld [vmem:[#allocation163_spill] sm:$0xff] }
 0x3c2   : > { %v9127_v63 = vpop.permute.xlu1 %2242  ;;  %v9129_v58 = vpop.permute.xlu2 %2126  ;;  %v2143_v11 = vadd.f32 %v2135_v30, %v2059_v0  ;;  %v2144_v37 = vadd.f32 %v2136_v41, %v2060_v27  ;;  %v689_v30 = vsel %vm685_vm11, %v12618_v22, %v12617_v9  ;;  %v701_v41 = vsel %vm685_vm11, %v12617_v9, %v12618_v22  ;;  %v12620_v0 = vld [vmem:[#allocation60_spill] sm:$0xff]  ;;  %v12624_v22 = vld [vmem:[#allocation165_spill] sm:$0xff] }
 0x3c3   : > { %12604 = vst [vmem:[#allocation72_spill] sm:$0xff] %v9127_v63  ;;  %v784_v27 = vsel %vm769_vm13, %v12620_v0, %v12619_v45  ;;  %v713_v9 = vmul.f32 %v12623_v7, %v700_v52  ;;  %v715_v36 = vmul.f32 %v12623_v7, %v701_v41  ;;  %v716_v10 = vmul.f32 %v12624_v22, %v689_v30  ;;  %v12627_v52 = vld [vmem:[#allocation9_spill] sm:$0xff]  ;;  %v12629_v41 = vld [vmem:[#allocation59_spill] sm:$0xff] }
 0x3c4   : > { %12605 = vst [vmem:[#allocation171_spill] sm:$0xff] %v9129_v58  ;;  %2595 = vrot.lane.b32.xlu2 %v12467_v1, %s7029_s21  ;;  %v9133_v32 = vadd.f32 %v2251_v25, %v2143_v11  ;;  %v9135_v44 = vadd.f32 %v2252_v33, %v2144_v37  ;;  %v12621_v25 = vld [vmem:[#allocation166_spill] sm:$0xff]  ;;  %v12622_v37 = vld [vmem:[#allocation167_spill] sm:$0xff]  ;;  %v797_v3 = vmul.f32 %v8916_v34, %v784_v27 }
 0x3c5   : > { %v631_v33 = vmul.f32 %v12621_v25, %v618_v53  ;;  %v629_v11 = vmul.f32 %v12621_v25, %v617_v55  ;;  %v632_v54 = vmul.f32 %v12622_v37, %v606_v48  ;;  %v12626_v53 = vld [vmem:[#allocation78_spill] sm:$0xff]  ;;  %v12630_v27 = vld [vmem:[#allocation63_spill] sm:$0xff] }
 0x3c9   : > { %6629 = vset.pattern.permute.xlu1 %v12606_v38 }
 0x3ca   : > { %2646 = vperm.xlu1 %6629, %v8772_v35   ;;  %v9139_v2 = vpop.permute.xlu1 %2421 }
 0x3cb   : > { %12607 = vst [vmem:[#allocation172_spill] sm:$0xff] %v9139_v2  ;;  %v9141_v42 = vpop.permute.xlu2 %2034  ;;  %v12633_v2 = vld [vmem:[#allocation84_spill] sm:$0xff] }
 0x3cc   : > { %12608 = vst [vmem:[#allocation173_spill] sm:$0xff] %v9141_v42  ;;  %2558 = vperm.xlu2 %6625, %v8690_v13   ;;  %v615_v42 = vsel %vm602_vm12, %v12630_v27, %v12631_v50 }
 0x3d2   : > { %2583 = vrot.lane.b32.xlu1 %v7212_v31, %s7029_s21  ;;  %v9146_v43 = vpop.permute.xlu1 %2427 }
 0x3d3   : > { %12609 = vst [vmem:[#allocation174_spill] sm:$0xff] %v9146_v43  ;;  %6633 = vset.pattern.permute.xlu1 %v12610_v5  ;;  %v630_v43 = vmul.f32 %v12622_v37, %v605_v18  ;;  %v655_v18 = vmul.f32 %v12629_v41, %v631_v33 }
 0x3d4   : > { %2497 = vrot.lane.b32.xlu2 %v12611_v49, %s7026_s18  ;;  %v9154_v35 = vpop.permute.xlu2 %2246 }
 0x3d5   : > { %12612 = vst [vmem:[#allocation2_spill] sm:$0xff] %v9154_v35  ;;  %6628 = vset.pattern.permute.xlu2 %v12597_v56  ;;  %v772_v56 = vsel %vm769_vm13, %v12619_v45, %v12620_v0  ;;  %v714_v35 = vmul.f32 %v12624_v22, %v688_v20  ;;  %v12625_v0 = vld [vmem:[#allocation54_spill] sm:$0xff]  ;;  %v653_v20 = vmul.f32 %v12627_v52, %v629_v11  ;;  %v12632_v11 = vld [vmem:[#allocation35_spill] sm:$0xff] }
 0x3d6   : > { %v798_v45 = vmul.f32 %v8918_v46, %v772_v56  ;;  %v773_v55 = vsel %vm769_vm13, %v12626_v53, %v12625_v0  ;;  %v785_v48 = vsel %vm769_vm13, %v12625_v0, %v12626_v53  ;;  %v603_v56 = vsel %vm602_vm12, %v12631_v50, %v12630_v27 }
 0x3d7   : > { %v654_v19 = vmul.f32 %v12627_v52, %v630_v43  ;;  %v656_v0 = vmul.f32 %v12629_v41, %v632_v54  ;;  %v737_v53 = vmul.f32 %v12632_v11, %v713_v9  ;;  %v738_v63 = vmul.f32 %v12632_v11, %v714_v35  ;;  %v12636_v43 = vld [vmem:[#allocation75_spill] sm:$0xff] }
 0x3d8   : > { %v799_v62 = vmul.f32 %v8916_v34, %v785_v48  ;;  %v800_v50 = vmul.f32 %v8918_v46, %v773_v55  ;;  %v739_v52 = vmul.f32 %v12636_v43, %v715_v36  ;;  %v625_v35 = vmul.f32 %v12621_v25, %v615_v42  ;;  %v12641_v42 = vld [vmem:[#allocation81_spill] sm:$0xff] }
 0x3d9   : > { %v626_v9 = vmul.f32 %v12622_v37, %v603_v56  ;;  %v745_v41 = vadd.f32 %v737_v53, %v653_v20  ;;  %v740_v27 = vmul.f32 %v12636_v43, %v716_v10  ;;  %v746_v11 = vadd.f32 %v738_v63, %v654_v19  ;;  %v12643_v20 = vld [vmem:[#allocation85_spill] sm:$0xff]  ;;  %v12644_v53 = vld [vmem:[#allocation107_spill] sm:$0xff] }
 0x3da   : > { %2757 = vrot.lane.b32.xlu1 %v12448_v12, %s7032_s29  ;;  %v9203_v30 = vpop.permute.xlu1 %2358  ;;  %v821_v55 = vmul.f32 %v12639_v6, %v797_v3  ;;  %v822_v37 = vmul.f32 %v12639_v6, %v798_v45  ;;  %v747_v63 = vadd.f32 %v739_v52, %v655_v18  ;;  %v12642_v3 = vld [vmem:[#allocation95_spill] sm:$0xff]  ;;  %vm2849_vm12 = vcmask 769024  }
 0x3db   : > { %12628 = vst [vmem:[#allocation21_spill] sm:$0xff] %v9203_v30  ;;  %v12634_v30 = vld [vmem:[#allocation83_spill] sm:$0xff]  ;;  %v952_v56 = vsel %vm937_vm15, %v12643_v20, %v12642_v3 }
 0x3dc   : > { %v868_v33 = vsel %vm853_vm14, %v12634_v30, %v12633_v2  ;;  %2503 = vrot.lane.b32.xlu2 %v7265_v8, %s7026_s18  ;;  %v9221_v58 = vpop.permute.xlu2 %2423  ;;  %v856_v54 = vsel %vm853_vm14, %v12633_v2, %v12634_v30  ;;  %v12640_v30 = vld [vmem:[#allocation11_spill] sm:$0xff] }
 0x3dd   : > { %12635 = vst [vmem:[#allocation51_spill] sm:$0xff] %v9221_v58  ;;  %v12638_v58 = vld [vmem:[#allocation86_spill] sm:$0xff]  ;;  %v881_v36 = vmul.f32 %v8934_v23, %v868_v33  ;;  %v698_v25 = vsel %vm685_vm11, %v12641_v42, %v12640_v30  ;;  %v882_v19 = vmul.f32 %v8936_v60, %v856_v54  ;;  %v686_v10 = vsel %vm685_vm11, %v12640_v30, %v12641_v42  ;;  %v12645_v45 = vld [vmem:[#allocation87_spill] sm:$0xff] }
 0x3de   : > { %v857_v48 = vsel %vm853_vm14, %v12638_v58, %v12637_v4  ;;  %v869_v2 = vsel %vm853_vm14, %v12637_v4, %v12638_v58  ;;  %v748_v4 = vadd.f32 %v740_v27, %v656_v0  ;;  %v940_v58 = vsel %vm937_vm15, %v12642_v3, %v12643_v20 }
 0x3df   : > { %v905_v33 = vmul.f32 %v12644_v53, %v881_v36  ;;  %v906_v6 = vmul.f32 %v12644_v53, %v882_v19  ;;  %v823_v43 = vmul.f32 %v12645_v45, %v799_v62  ;;  %v883_v52 = vmul.f32 %v8934_v23, %v869_v2  ;;  %v12647_v62 = vld [vmem:[#allocation16_spill] sm:$0xff]  ;;  %v12649_v53 = vld [vmem:[#allocation90_spill] sm:$0xff] }
 0x3e0   : > { %v884_v54 = vmul.f32 %v8936_v60, %v857_v48  ;;  %v709_v36 = vmul.f32 %v12623_v7, %v698_v25  ;;  %v829_v0 = vadd.f32 %v821_v55, %v745_v41  ;;  %v710_v27 = vmul.f32 %v12624_v22, %v686_v10  ;;  %v12650_v48 = vld [vmem:[#allocation89_spill] sm:$0xff]  ;;  %v12651_v55 = vld [vmem:[#allocation88_spill] sm:$0xff] }
 0x3e1   : > { %v830_v30 = vadd.f32 %v822_v37, %v746_v11  ;;  %v965_v42 = vmul.f32 %v8952_v51, %v952_v56  ;;  %v824_v19 = vmul.f32 %v12645_v45, %v800_v50  ;;  %v966_v20 = vmul.f32 %v8963_v28, %v940_v58  ;;  %v12652_v50 = vld [vmem:[#allocation92_spill] sm:$0xff]  ;;  %v12653_v37 = vld [vmem:[#allocation93_spill] sm:$0xff]  ;;  %v12654_v58 = vld [vmem:[#allocation94_spill] sm:$0xff] }
 0x3e2   : > { %2763 = vrot.lane.b32.xlu1 %v12467_v1, %s7032_s29  ;;  %v9259_v18 = vpop.permute.xlu1 %2505  ;;  %v913_v2 = vadd.f32 %v905_v33, %v829_v0  ;;  %v770_v7 = vsel %vm769_vm13, %v12650_v48, %v12649_v53  ;;  %v782_v22 = vsel %vm769_vm13, %v12649_v53, %v12650_v48  ;;  %v831_v11 = vadd.f32 %v823_v43, %v747_v63  ;;  %v12655_v45 = vld [vmem:[#allocation96_spill] sm:$0xff]  ;;  %v12656_v0 = vld [vmem:[#allocation103_spill] sm:$0xff] }
 0x3e3   : > { %12646 = vst [vmem:[#allocation56_spill] sm:$0xff] %v9259_v18  ;;  %v914_v41 = vadd.f32 %v906_v6, %v830_v30  ;;  %v953_v25 = vsel %vm937_vm15, %v12652_v50, %v12651_v55  ;;  %v907_v10 = vmul.f32 %v12653_v37, %v883_v52  ;;  %v908_v56 = vmul.f32 %v12653_v37, %v884_v54  ;;  %v12657_v54 = vld [vmem:[#allocation91_spill] sm:$0xff]  ;;  %v12658_v37 = vld [vmem:[#allocation100_spill] sm:$0xff] }
 0x3e4   : > { %2677 = vrot.lane.b32.xlu2 %v12647_v62, %s7030_s22  ;;  %v9269_v3 = vpop.permute.xlu2 %2118  ;;  %v649_v33 = vmul.f32 %v12654_v58, %v625_v35  ;;  %v1036_v53 = vsel %vm1021_vm1, %v12655_v45, %v12656_v0  ;;  %v832_v6 = vadd.f32 %v824_v19, %v748_v4  ;;  %v793_v63 = vmul.f32 %v8916_v34, %v782_v22 }
 0x3e5   : > { %12648 = vst [vmem:[#allocation43_spill] sm:$0xff] %v9269_v3  ;;  %v1024_v3 = vsel %vm1021_vm1, %v12656_v0, %v12655_v45  ;;  %v794_v43 = vmul.f32 %v8918_v46, %v770_v7  ;;  %v941_v52 = vsel %vm937_vm15, %v12651_v55, %v12652_v50  ;;  %v733_v30 = vmul.f32 %v12657_v54, %v709_v36  ;;  %v12660_v55 = vld [vmem:[#allocation99_spill] sm:$0xff] }
 0x3e6   : > { %v734_v35 = vmul.f32 %v12657_v54, %v710_v27  ;;  %v650_v48 = vmul.f32 %v12654_v58, %v626_v9  ;;  %v989_v18 = vmul.f32 %v12658_v37, %v965_v42  ;;  %v967_v57 = vmul.f32 %v8952_v51, %v953_v25  ;;  %v12659_v9 = vld [vmem:[#allocation97_spill] sm:$0xff]  ;;  %v12663_v45 = vld [vmem:[#allocation119_spill] sm:$0xff] }
 0x3e7   : > { %v1049_v4 = vmul.f32 %v8981_v17, %v1036_v53  ;;  %v1050_v34 = vmul.f32 %v8983_v61, %v1024_v3  ;;  %v990_v46 = vmul.f32 %v12658_v37, %v966_v20  ;;  %v968_v36 = vmul.f32 %v8963_v28, %v941_v52  ;;  %v12661_v3 = vld [vmem:[#allocation106_spill] sm:$0xff]  ;;  %v12662_v58 = vld [vmem:[#allocation69_spill] sm:$0xff]  ;;  %v12669_v37 = vld [vmem:[#allocation111_spill] sm:$0xff] }
 0x3e8   : > { %v915_v7 = vadd.f32 %v907_v10, %v831_v11  ;;  %v916_v27 = vadd.f32 %v908_v56, %v832_v6  ;;  %v741_v22 = vadd.f32 %v733_v30, %v649_v33  ;;  %v854_v42 = vsel %vm853_vm14, %v12660_v55, %v12659_v9  ;;  %v12664_v10 = vld [vmem:[#allocation4_spill] sm:$0xff]  ;;  %v12666_v6 = vld [vmem:[#allocation98_spill] sm:$0xff]  ;;  %v12667_v52 = vld [vmem:[#allocation101_spill] sm:$0xff] }
 0x3e9   : > { %v866_v50 = vsel %vm853_vm14, %v12659_v9, %v12660_v55  ;;  %v1073_v25 = vmul.f32 %v12661_v3, %v1049_v4  ;;  %v1074_v20 = vmul.f32 %v12661_v3, %v1050_v34  ;;  %v1273_v11 = vmul.f32 %v12663_v45, %v12662_v58  ;;  %v12668_v30 = vld [vmem:[#allocation71_spill] sm:$0xff]  ;;  %v12670_v34 = vld [vmem:[#allocation33_spill] sm:$0xff]  ;;  %v12674_v55 = vld [vmem:[#allocation104_spill] sm:$0xff] }
 0x3ea   : > { %2726 = vperm.xlu1 %6633, %v8690_v13   ;;  %v9304_v19 = vpop.permute.xlu1 %2511  ;;  %v742_v13 = vadd.f32 %v734_v35, %v650_v48  ;;  %v1274_v56 = vmul.f32 %v12663_v45, %v12664_v10  ;;  %v997_v33 = vadd.f32 %v989_v18, %v913_v2  ;;  %v998_v53 = vadd.f32 %v990_v46, %v914_v41  ;;  %v9329_v35 = vpop.permute.xlu0 %2417  ;;  %v12672_v2 = vld [vmem:[#allocation109_spill] sm:$0xff]  ;;  %v12673_v41 = vld [vmem:[#allocation102_spill] sm:$0xff] }
 0x3eb   : > { %v1037_v54 = vsel %vm1021_vm1, %v12667_v52, %v12666_v6  ;;  %v1157_v4 = vmul.f32 %v12669_v37, %v12668_v30  ;;  %12671 = vst [vmem:[#allocation79_spill] sm:$0xff] %v9329_v35  ;;  %v877_v48 = vmul.f32 %v8934_v23, %v866_v50  ;;  %v878_v9 = vmul.f32 %v8936_v60, %v854_v42  ;;  %v12675_v30 = vld [vmem:[#allocation73_spill] sm:$0xff]  ;;  %v12677_v50 = vld [vmem:[#allocation8_spill] sm:$0xff] }
 0x3ec   : > { %2470 = vperm.xlu2 %6628, %v8623_v47   ;;  %v1158_v47 = vmul.f32 %v12669_v37, %v12670_v34  ;;  %v1025_v18 = vsel %vm1021_vm1, %v12666_v6, %v12667_v52  ;;  %v950_v46 = vsel %vm937_vm15, %v12673_v41, %v12672_v2  ;;  %v817_v3 = vmul.f32 %v12674_v55, %v793_v63  ;;  %v12676_v37 = vld [vmem:[#allocation125_spill] sm:$0xff] }
 0x3ed   : > { %v9320_v0 = vpop.permute.xlu2 %2362  ;;  %v1081_v58 = vadd.f32 %v1073_v25, %v997_v33  ;;  %v1082_v45 = vadd.f32 %v1074_v20, %v998_v53  ;;  %v12257_v10 = vmov 38   ;;  %v1389_v23 = vmul.f32 %v12676_v37, %v12675_v30 }
 0x3ee   : > { %12665 = vst [vmem:[#allocation37_spill] sm:$0xff] %v9320_v0  ;;  %6644 = vset.pattern.permute.xlu0 %v12257_v10  ;;  %v1390_v60 = vmul.f32 %v12676_v37, %v12677_v50  ;;  %v1051_v42 = vmul.f32 %v8981_v17, %v1037_v54  ;;  %v938_v6 = vsel %vm937_vm15, %v12672_v2, %v12673_v41  ;;  %v12678_v54 = vld [vmem:[#allocation105_spill] sm:$0xff]  ;;  %v12679_v2 = vld [vmem:[#allocation110_spill] sm:$0xff]  ;;  %vm2681_vm11 = vcmask 785408  }
 0x3ef   : > { %2802 = vperm.xlu0 %6644, %v9001_v39   ;;  %v1052_v63 = vmul.f32 %v8983_v61, %v1025_v18  ;;  %v818_v25 = vmul.f32 %v12674_v55, %v794_v43  ;;  %v1165_v20 = vadd.f32 %v1157_v4, %v1081_v58  ;;  %v1166_v33 = vadd.f32 %v1158_v47, %v1082_v45  ;;  %v12680_v4 = vld [vmem:[#allocation108_spill] sm:$0xff]  ;;  %v12681_v47 = vld [vmem:[#allocation114_spill] sm:$0xff] }
 0x3f0   : > { %v961_v52 = vmul.f32 %v8952_v51, %v950_v46  ;;  %v991_v34 = vmul.f32 %v12678_v54, %v967_v57  ;;  %v992_v30 = vmul.f32 %v12678_v54, %v968_v36  ;;  %v901_v41 = vmul.f32 %v12679_v2, %v877_v48  ;;  %v12682_v57 = vld [vmem:[#allocation112_spill] sm:$0xff]  ;;  %v12683_v48 = vld [vmem:[#allocation115_spill] sm:$0xff]  ;;  %v12684_v54 = vld [vmem:[#allocation77_spill] sm:$0xff] }
 0x3f1   : > { %v962_v18 = vmul.f32 %v8963_v28, %v938_v6  ;;  %v825_v43 = vadd.f32 %v817_v3, %v741_v22  ;;  %v1022_v55 = vsel %vm1021_vm1, %v12681_v47, %v12680_v4  ;;  %v902_v58 = vmul.f32 %v12679_v2, %v878_v9  ;;  %v12685_v2 = vld [vmem:[#allocation117_spill] sm:$0xff] }
 0x3f2   : > { %2665 = vrot.lane.b32.xlu1 %v12611_v49, %s7030_s22  ;;  %v9354_v53 = vpop.permute.xlu1 %2474  ;;  %v1034_v51 = vsel %vm1021_vm1, %v12680_v4, %v12681_v47  ;;  %v1075_v36 = vmul.f32 %v12682_v57, %v1051_v42  ;;  %v985_v28 = vmul.f32 %v12683_v48, %v961_v52  ;;  %v826_v46 = vadd.f32 %v818_v25, %v742_v13  ;;  %v12686_v47 = vld [vmem:[#allocation38_spill] sm:$0xff]  ;;  %v12689_v25 = vld [vmem:[#allocation139_spill] sm:$0xff] }
 0x3f3   : > { %6635 = vset.pattern.permute.xlu1 %v12606_v38  ;;  %v1076_v38 = vmul.f32 %v12682_v57, %v1052_v63  ;;  %v1281_v3 = vadd.f32 %v1273_v11, %v1165_v20  ;;  %v1282_v9 = vadd.f32 %v1274_v56, %v1166_v33  ;;  %v986_v45 = vmul.f32 %v12683_v48, %v962_v18  ;;  %v12688_v56 = vld [vmem:[#allocation13_spill] sm:$0xff] }
 0x3f4   : > { %2581 = vrot.lane.b32.xlu2 %v12611_v49, %s7029_s21  ;;  %v999_v37 = vadd.f32 %v991_v34, %v915_v7  ;;  %v1000_v50 = vadd.f32 %v992_v30, %v916_v27  ;;  %v909_v6 = vadd.f32 %v901_v41, %v825_v43  ;;  %v1159_v4 = vmul.f32 %v12685_v2, %v12684_v54  ;;  %v12691_v41 = vld [vmem:[#allocation113_spill] sm:$0xff] }
 0x3f5   : > { %v9374_v22 = vpop.permute.xlu2 %2507  ;;  %6630 = vset.pattern.permute.xlu2 %v12591_v14  ;;  %v1045_v42 = vmul.f32 %v8981_v17, %v1034_v51  ;;  %v1046_v63 = vmul.f32 %v8983_v61, %v1022_v55  ;;  %v910_v52 = vadd.f32 %v902_v58, %v826_v46  ;;  %v1160_v57 = vmul.f32 %v12685_v2, %v12686_v47  ;;  %v9384_v14 = vpop.permute.xlu0 %2591  ;;  %v12690_v17 = vld [vmem:[#allocation14_spill] sm:$0xff]  ;;  %v12696_v46 = vld [vmem:[#allocation47_spill] sm:$0xff]  ;;  %v12701_v2 = vld [vmem:[#allocation36_spill] sm:$0xff] }
 0x3f6   : > { %12687 = vst [vmem:[#allocation66_spill] sm:$0xff] %v9384_v14  ;;  %v1083_v13 = vadd.f32 %v1075_v36, %v999_v37  ;;  %v1084_v11 = vadd.f32 %v1076_v38, %v1000_v50  ;;  %v9388_v7 = vmul.f32 %v12689_v25, %v12688_v56  ;;  %v993_v27 = vadd.f32 %v985_v28, %v909_v6  ;;  %v12692_v55 = vld [vmem:[#allocation50_spill] sm:$0xff]  ;;  %v12695_v38 = vld [vmem:[#allocation121_spill] sm:$0xff]  ;;  %v12700_v6 = vld [vmem:[#allocation116_spill] sm:$0xff] }
 0x3f7   : > { %v9390_v20 = vadd.f32 %v1389_v23, %v1281_v3  ;;  %v9392_v33 = vadd.f32 %v1390_v60, %v1282_v9  ;;  %v9396_v61 = vmul.f32 %v12689_v25, %v12690_v17  ;;  %v994_v34 = vadd.f32 %v986_v45, %v910_v52  ;;  %v12693_v58 = vld [vmem:[#allocation142_spill] sm:$0xff]  ;;  %v12697_v3 = vld [vmem:[#allocation120_spill] sm:$0xff]  ;;  %v12698_v45 = vld [vmem:[#allocation53_spill] sm:$0xff] }
 0x3f8   : > { %v1069_v18 = vmul.f32 %v12691_v41, %v1045_v42  ;;  %v1070_v43 = vmul.f32 %v12691_v41, %v1046_v63  ;;  %v9406_v23 = vmul.f32 %v12693_v58, %v12692_v55  ;;  %v1167_v60 = vadd.f32 %v1159_v4, %v1083_v13  ;;  %v12694_v36 = vld [vmem:[#allocation118_spill] sm:$0xff]  ;;  %v12702_v47 = vld [vmem:[#allocation48_spill] sm:$0xff] }
 0x3f9   : > { %v1168_v51 = vadd.f32 %v1160_v57, %v1084_v11  ;;  %v1457_v48 = vsel %vm1453_vm2, %v12695_v38, %v12694_v36  ;;  %v1469_v28 = vsel %vm1453_vm2, %v12694_v36, %v12695_v38  ;;  %v1153_v9 = vmul.f32 %v12697_v3, %v12696_v46  ;;  %v12699_v50 = vld [vmem:[#allocation74_spill] sm:$0xff]  ;;  %v12704_v11 = vld [vmem:[#allocation124_spill] sm:$0xff]  ;;  %v12707_v36 = vld [vmem:[#allocation45_spill] sm:$0xff] }
 0x3fa   : > { %2671 = vrot.lane.b32.xlu1 %v7265_v8, %s7030_s22  ;;  %v9400_v30 = vpop.permute.xlu1 %2413  ;;  %v9420_v37 = vmul.f32 %v12693_v58, %v12698_v45  ;;  %v1275_v54 = vmul.f32 %v12700_v6, %v12699_v50  ;;  %v1276_v4 = vmul.f32 %v12700_v6, %v12701_v2  ;;  %v1077_v42 = vadd.f32 %v1069_v18, %v993_v27  ;;  %v12703_v13 = vld [vmem:[#allocation122_spill] sm:$0xff]  ;;  %v12705_v27 = vld [vmem:[#allocation137_spill] sm:$0xff]  ;;  %v12708_v38 = vld [vmem:[#allocation127_spill] sm:$0xff] }
 0x3fb   : > { %v1078_v52 = vadd.f32 %v1070_v43, %v994_v34  ;;  %v1154_v57 = vmul.f32 %v12697_v3, %v12702_v47  ;;  %v1456_v56 = vsel %vm1453_vm2, %v12704_v11, %v12703_v13  ;;  %v1468_v25 = vsel %vm1453_vm2, %v12703_v13, %v12704_v11  ;;  %v12706_v18 = vld [vmem:[#allocation134_spill] sm:$0xff]  ;;  %v12709_v3 = vld [vmem:[#allocation132_spill] sm:$0xff]  ;;  %v12710_v45 = vld [vmem:[#allocation129_spill] sm:$0xff] }
 0x3fc   : > { %2585 = vrot.lane.b32.xlu2 %v12422_v16, %s7029_s21  ;;  %v1483_v17 = vmul.f32 %v9022_v24, %v1469_v28  ;;  %v1484_v41 = vmul.f32 %v9024_v26, %v1457_v48  ;;  %v1283_v55 = vadd.f32 %v1275_v54, %v1167_v60  ;;  %v1466_v34 = vsel %vm1453_vm2, %v12706_v18, %v12705_v27  ;;  %v12711_v48 = vld [vmem:[#allocation143_spill] sm:$0xff]  ;;  %v12712_v54 = vld [vmem:[#allocation140_spill] sm:$0xff]  ;;  %v12715_v47 = vld [vmem:[#allocation49_spill] sm:$0xff] }
 0x3fd   : > { %v9426_v63 = vpop.permute.xlu2 %2234  ;;  %v1161_v43 = vadd.f32 %v1153_v9, %v1077_v42  ;;  %v1284_v58 = vadd.f32 %v1276_v4, %v1168_v51  ;;  %v1269_v46 = vmul.f32 %v12708_v38, %v12707_v36  ;;  %v1552_v50 = vsel %vm1537_vm3, %v12710_v45, %v12709_v3  ;;  %v12713_v2 = vld [vmem:[#allocation15_spill] sm:$0xff]  ;;  %v12716_v13 = vld [vmem:[#allocation133_spill] sm:$0xff]  ;;  %v12722_v14 = vld [vmem:[#allocation138_spill] sm:$0xff] }
 0x3fe   : > { %v1481_v6 = vmul.f32 %v9022_v24, %v1468_v25  ;;  %v1482_v28 = vmul.f32 %v9024_v26, %v1456_v56  ;;  %v1540_v60 = vsel %vm1537_vm3, %v12709_v3, %v12710_v45  ;;  %v1550_v9 = vsel %vm1537_vm3, %v12712_v54, %v12711_v48  ;;  %v12714_v4 = vld [vmem:[#allocation123_spill] sm:$0xff]  ;;  %v9459_v25 = vpop.permute.xlu0 %2350  ;;  %v12719_v3 = vld [vmem:[#allocation128_spill] sm:$0xff]  ;;  %v12720_v45 = vld [vmem:[#allocation126_spill] sm:$0xff] }
 0x3ff   : > { %v1162_v51 = vadd.f32 %v1154_v57, %v1078_v52  ;;  %v1391_v42 = vmul.f32 %v12714_v4, %v12713_v2  ;;  %v1385_v11 = vmul.f32 %v12716_v13, %v12715_v47  ;;  %v1477_v36 = vmul.f32 %v9022_v24, %v1466_v34  ;;  %12717 = vst [vmem:[#allocation60_spill] sm:$0xff] %v9459_v25  ;;  %v12721_v52 = vld [vmem:[#allocation46_spill] sm:$0xff] }
 0x400   : > { %v1553_v10 = vsel %vm1537_vm3, %v12720_v45, %v12719_v3  ;;  %v1270_v57 = vmul.f32 %v12708_v38, %v12721_v52  ;;  %v1565_v2 = vmul.f32 %v9054_v21, %v1552_v50  ;;  %v1454_v24 = vsel %vm1453_vm2, %v12705_v27, %v12706_v18  ;;  %v12724_v18 = vld [vmem:[#allocation52_spill] sm:$0xff] }
 0x401   : > { %v1277_v34 = vadd.f32 %v1269_v46, %v1161_v43  ;;  %v1566_v47 = vmul.f32 %v9056_v40, %v1540_v60  ;;  %v1501_v8 = vmul.f32 %v12722_v14, %v1477_v36  ;;  %v1561_v35 = vmul.f32 %v9054_v21, %v1550_v9  ;;  %v12725_v9 = vld [vmem:[#allocation146_spill] sm:$0xff] }
 0x402   : > { %2845 = vrot.lane.b32.xlu1 %v12647_v62, %s7034_s30  ;;  %v9463_v56 = vpop.permute.xlu1 %2419  ;;  %v1541_v50 = vsel %vm1537_vm3, %v12719_v3, %v12720_v45  ;;  %v1538_v27 = vsel %vm1537_vm3, %v12711_v48, %v12712_v54  ;;  %v1386_v43 = vmul.f32 %v12716_v13, %v12724_v18  ;;  %v1478_v60 = vmul.f32 %v9024_v26, %v1454_v24  ;;  %v12727_v45 = vld [vmem:[#allocation135_spill] sm:$0xff]  ;;  %v12728_v24 = vld [vmem:[#allocation130_spill] sm:$0xff] }
 0x403   : > { %12718 = vst [vmem:[#allocation166_spill] sm:$0xff] %v9463_v56  ;;  %v12723_v56 = vld [vmem:[#allocation131_spill] sm:$0xff]  ;;  %v1393_v46 = vadd.f32 %v1385_v11, %v1277_v34  ;;  %v1585_v36 = vmul.f32 %v12725_v9, %v1561_v35  ;;  %v1278_v3 = vadd.f32 %v1270_v57, %v1162_v51  ;;  %v1589_v25 = vmul.f32 %v12727_v45, %v1565_v2 }
 0x404   : > { %2759 = vrot.lane.b32.xlu2 %v12465_v15, %s7032_s29  ;;  %v1505_v0 = vmul.f32 %v12723_v56, %v1481_v6  ;;  %v1506_v38 = vmul.f32 %v12723_v56, %v1482_v28  ;;  %v12726_v6 = vld [vmem:[#allocation40_spill] sm:$0xff]  ;;  %v1567_v56 = vmul.f32 %v9054_v21, %v1553_v10  ;;  %v1590_v48 = vmul.f32 %v12727_v45, %v1566_v47 }
 0x405   : > { %v1392_v28 = vmul.f32 %v12714_v4, %v12726_v6  ;;  %v1502_v54 = vmul.f32 %v12722_v14, %v1478_v60  ;;  %v1509_v13 = vadd.f32 %v1501_v8, %v1393_v46  ;;  %v1562_v11 = vmul.f32 %v9056_v40, %v1538_v27  ;;  %v9509_v8 = vld [vmem:[%s11955_s7 + $0x8] sm:$0xff]  ;;  %v12731_v46 = vld [vmem:[#allocation6_spill] sm:$0xff]  ;;  %v12734_v6 = vld [vmem:[#allocation149_spill] sm:$0xff] }
 0x406   : > { %v9491_v52 = vpop.permute.xlu2 %2478  ;;  %v1513_v26 = vadd.f32 %v1505_v0, %v9390_v20  ;;  %v1568_v35 = vmul.f32 %v9056_v40, %v1541_v50  ;;  %v1507_v34 = vmul.f32 %v12728_v24, %v1483_v17  ;;  %v1508_v4 = vmul.f32 %v12728_v24, %v1484_v41  ;;  %v12729_v20 = vld [vmem:[#allocation136_spill] sm:$0xff]  ;;  %v9520_v27 = vpop.permute.xlu0 %2499  ;;  %v12736_v24 = vld [vmem:[#allocation151_spill] sm:$0xff] }
 0x407   : > { %v1514_v21 = vadd.f32 %v1506_v38, %v9392_v33  ;;  %v1394_v10 = vadd.f32 %v1386_v43, %v1278_v3  ;;  %v1586_v51 = vmul.f32 %v12725_v9, %v1562_v11  ;;  %v1593_v57 = vadd.f32 %v1585_v36, %v1509_v13  ;;  %v12730_v33 = vld [vmem:[#allocation144_spill] sm:$0xff] }
 0x408   : > { %v1399_v40 = vadd.f32 %v1391_v42, %v1283_v55  ;;  %v1400_v14 = vadd.f32 %v1392_v28, %v1284_v58  ;;  %v1591_v17 = vmul.f32 %v12729_v20, %v1567_v56  ;;  %v1592_v41 = vmul.f32 %v12729_v20, %v1568_v35  ;;  %v12732_v55 = vld [vmem:[#allocation141_spill] sm:$0xff]  ;;  %v12740_v20 = vld [vmem:[#allocation158_spill] sm:$0xff] }
 0x409   : > { %v9518_v2 = vmul.f32 %v12730_v33, %v12647_v62  ;;  %v1597_v47 = vadd.f32 %v1589_v25, %v1513_v26  ;;  %v1598_v38 = vadd.f32 %v1590_v48, %v1514_v21  ;;  %v1510_v50 = vadd.f32 %v1502_v54, %v1394_v10  ;;  %v12733_v42 = vld [vmem:[#allocation41_spill] sm:$0xff] }
 0x40a   : > { %2638 = vperm.xlu1 %6635, %v9509_v8   ;;  %v9512_v0 = vpop.permute.xlu1 %2593  ;;  %v1515_v18 = vadd.f32 %v1507_v34, %v1399_v40  ;;  %v1516_v43 = vadd.f32 %v1508_v4, %v1400_v14  ;;  %v1675_v58 = vmul.f32 %v12732_v55, %v12731_v46  ;;  %v1676_v60 = vmul.f32 %v12732_v55, %v12733_v42  ;;  %v12737_v34 = vld [vmem:[#allocation145_spill] sm:$0xff]  ;;  %v12739_v14 = vld [vmem:[#allocation147_spill] sm:$0xff] }
 0x40b   : > { %v1740_v9 = vmul.f32 %v12730_v33, %v12467_v1  ;;  %v1594_v36 = vadd.f32 %v1586_v51, %v1510_v50  ;;  %v1677_v25 = vadd.f32 %v9406_v23, %v1593_v57  ;;  %v1737_v28 = vmul.f32 %v12734_v6, %v12448_v12  ;;  %v5912_v33 = vld [vmem:[%s11954_s6 + $0x24] ss:$8 sm:$0x3]  ;;  %v12744_v42 = vld [vmem:[#allocation157_spill] sm:$0xff] }
 0x40c   : > { %2550 = vperm.xlu2 %6630, %v9001_v39   ;;  %v12735_v39 = vld [vmem:[#allocation150_spill] sm:$0xff]  ;;  %v1599_v48 = vadd.f32 %v1591_v17, %v1515_v18  ;;  %v1600_v54 = vadd.f32 %v1592_v41, %v1516_v43  ;;  %v1681_v13 = vadd.f32 %v9388_v7, %v1597_v47  ;;  %v1682_v11 = vadd.f32 %v9396_v61, %v1598_v38  ;;  %v9566_v18 = vld [vmem:[%s11955_s7 + $0x18] sm:$0xff] }
 0x40d   : > { %v1733_v3 = vmul.f32 %v12735_v39, %v12611_v49  ;;  %v1734_v45 = vmul.f32 %v12735_v39, %v7212_v31  ;;  %v1738_v23 = vmul.f32 %v12734_v6, %v12465_v15  ;;  %v1916_v4 = vsel %vm1913_vm4, %v12737_v34, %v12736_v24  ;;  %v12742_v38 = vld [vmem:[#allocation34_spill] sm:$0xff] }
 0x40e   : > { %v9532_v56 = vpop.permute.xlu2 %2415  ;;  %v1683_v26 = vadd.f32 %v1675_v58, %v1599_v48  ;;  %v1684_v35 = vadd.f32 %v1676_v60, %v1600_v54  ;;  %v1932_v21 = vsel %vm1913_vm4, %v12736_v24, %v12737_v34  ;;  %v12266_v10 = vmov 39   ;;  %v12743_v58 = vld [vmem:[#allocation22_spill] sm:$0xff]  ;;  %v9583_v39 = vpop.permute.xlu0 %2673  ;;  %v12748_v34 = vld [vmem:[#allocation164_spill] sm:$0xff] }
 0x40f   : > { %6649 = vset.pattern.permute.xlu0 %v12266_v10  ;;  %v1678_v7 = vadd.f32 %v9420_v37, %v1594_v36  ;;  %v1741_v51 = vadd.f32 %v1733_v3, %v1677_v25  ;;  %v1745_v61 = vadd.f32 %v1737_v28, %v1681_v13  ;;  %v12738_v57 = vmov 38   ;;  %v12741_v37 = vld [vmem:[#allocation3_spill] sm:$0xff]  ;;  %v12745_v36 = vld [vmem:[#allocation20_spill] sm:$0xff]  ;;  %v12747_v54 = vld [vmem:[#allocation70_spill] sm:$0xff] }
 0x410   : > { %2890 = vperm.xlu0 %6649, %v9509_v8   ;;  %v2000_v17 = vsel %vm1997_vm5, %v12740_v20, %v12739_v14  ;;  %v2016_v41 = vsel %vm1997_vm5, %v12739_v14, %v12740_v20  ;;  %v1746_v43 = vadd.f32 %v1738_v23, %v1682_v11  ;;  %v1945_v46 = vmul.f32 %v9085_v59, %v1916_v4  ;;  %v12746_v3 = vld [vmem:[#allocation68_spill] sm:$0xff]  ;;  %v12774_v10 = vld [vmem:[#allocation19_spill] sm:$0xff] }
 0x411   : > { %v1946_v55 = vmul.f32 %v9087_v29, %v1932_v21  ;;  %v1853_v60 = vmul.f32 %v12744_v42, %v12743_v58  ;;  %v1854_v25 = vmul.f32 %v12744_v42, %v12745_v36  ;;  %v2029_v48 = vmul.f32 %v12746_v3, %v2000_v17  ;;  %v12750_v14 = vld [vmem:[#allocation64_spill] sm:$0xff] }
 0x412   : > { %6637 = vset.pattern.permute.xlu1 %v12738_v57  ;;  %v2355_v40 = vpop.permute.xlu1 %2354  ;;  %v2030_v13 = vmul.f32 %v12747_v54, %v2016_v41  ;;  %v9587_v11 = vperm.slane %v5912_v33, 0  ;;  %v9589_v23 = vperm.slane %v5912_v33, 1  ;;  %v12751_v20 = vld [vmem:[#allocation156_spill] sm:$0xff]  ;;  %v12752_v41 = vld [vmem:[#allocation65_spill] sm:$0xff]  ;;  %v9610_v42 = vadd.f32 %v1740_v9, %v1684_v35 }
 0x413   : > { %v2367_v47 = vmul.f32 %v2355_v40, %v12741_v37  ;;  %v2368_v50 = vmul.f32 %v2355_v40, %v12742_v38  ;;  %2814 = vperm.xlu1 %6637, %v9566_v18   ;;  %v1970_v4 = vmul.f32 %v12748_v34, %v1946_v55  ;;  %v1849_v17 = vmul.f32 %v12751_v20, %v12750_v14  ;;  %v12757_v9 = vld [vmem:[#allocation153_spill] sm:$0xff]  ;;  %v12758_v35 = vld [vmem:[#allocation168_spill] sm:$0xff] }
 0x414   : > { %6634 = vset.pattern.permute.xlu2 %v12610_v5  ;;  %v1850_v33 = vmul.f32 %v12751_v20, %v12752_v41  ;;  %v1742_v37 = vadd.f32 %v1734_v45, %v1678_v7  ;;  %v1861_v38 = vadd.f32 %v1853_v60, %v1745_v61  ;;  %v12754_v45 = vld [vmem:[#allocation23_spill] sm:$0xff]  ;;  %v12760_v20 = vld [vmem:[#allocation148_spill] sm:$0xff] }
 0x415   : > { %v9577_v6 = vadd.f32 %v2367_v47, %v9133_v32  ;;  %v9580_v28 = vadd.f32 %v2368_v50, %v9135_v44  ;;  %2730 = vperm.xlu2 %6634, %v9566_v18   ;;  %v1969_v32 = vmul.f32 %v12748_v34, %v1945_v46  ;;  %v12749_v44 = vld [vmem:[#allocation67_spill] sm:$0xff]  ;;  %v9606_v47 = vadd.f32 %v9518_v2, %v1683_v26  ;;  %v12753_v46 = vld [vmem:[#allocation61_spill] sm:$0xff] }
 0x416   : > { %v9591_v24 = vpop.permute.xlu2 %2589  ;;  %v2517_v21 = vsel %vm2513_vm7, %v12749_v44, %v9304_v19  ;;  %v2533_v40 = vsel %vm2513_vm7, %v9304_v19, %v12749_v44  ;;  %v1862_v50 = vadd.f32 %v1854_v25, %v1746_v43  ;;  %v2053_v55 = vmul.f32 %v12753_v46, %v2029_v48  ;;  %v12755_v7 = vld [vmem:[#allocation171_spill] sm:$0xff] }
 0x417   : > { %v2054_v58 = vmul.f32 %v12753_v46, %v2030_v13  ;;  %v9612_v36 = vadd.f32 %v1849_v17, %v1741_v51  ;;  %v2547_v19 = vmul.f32 %v9587_v11, %v2517_v21  ;;  %v2548_v34 = vmul.f32 %v9589_v23, %v2533_v40  ;;  %v12756_v26 = vld [vmem:[#allocation7_spill] sm:$0xff]  ;;  %v12759_v40 = vld [vmem:[#allocation154_spill] sm:$0xff] }
 0x418   : > { %v1977_v44 = vadd.f32 %v1969_v32, %v1861_v38  ;;  %v1978_v14 = vadd.f32 %v1970_v4, %v1862_v50  ;;  %v2137_v2 = vmul.f32 %v12755_v7, %v12754_v45  ;;  %v2138_v61 = vmul.f32 %v12755_v7, %v12756_v26  ;;  %v5911_v25 = vld [vmem:[%s11954_s6 + $0x23] ss:$8 sm:$0x3]  ;;  %v12763_v45 = vld [vmem:[#allocation25_spill] sm:$0xff]  ;;  %v12764_v7 = vld [vmem:[#allocation72_spill] sm:$0xff] }
 0x419   : > { %v1914_v51 = vsel %vm1913_vm4, %v12758_v35, %v12757_v9  ;;  %v9625_v60 = vadd.f32 %v1850_v33, %v1742_v37  ;;  %v1930_v32 = vsel %vm1913_vm4, %v12757_v9, %v12758_v35  ;;  %v1917_v17 = vsel %vm1913_vm4, %v12760_v20, %v12759_v40  ;;  %v12761_v33 = vld [vmem:[#allocation51_spill] sm:$0xff]  ;;  %v12766_v35 = vld [vmem:[#allocation32_spill] sm:$0xff] }
 0x41a   : > { %v2061_v4 = vadd.f32 %v2053_v55, %v1977_v44  ;;  %v2062_v21 = vadd.f32 %v2054_v58, %v1978_v14  ;;  %v1933_v41 = vsel %vm1913_vm4, %v12759_v40, %v12760_v20  ;;  %v9655_v58 = vperm.slane %v5911_v25, 0  ;;  %v12767_v40 = vld [vmem:[#allocation21_spill] sm:$0xff]  ;;  %v12769_v20 = vld [vmem:[#allocation159_spill] sm:$0xff] }
 0x41b   : > { %2749 = vrot.lane.b32.xlu1 %v12611_v49, %s7032_s29  ;;  %v2563_v43 = vpop.permute.xlu1 %2562  ;;  %v1941_v44 = vmul.f32 %v9085_v59, %v1914_v51  ;;  %v1942_v14 = vmul.f32 %v9087_v29, %v1930_v32  ;;  %v2253_v26 = vmul.f32 %v12764_v7, %v12763_v45  ;;  %v12770_v51 = vld [vmem:[#allocation62_spill] sm:$0xff]  ;;  %v1947_v62 = vmul.f32 %v9085_v59, %v1917_v17 }
 0x41c   : > { %v9630_v48 = vmul.f32 %v2563_v43, %v2547_v19  ;;  %v9632_v13 = vmul.f32 %v2563_v43, %v2548_v34  ;;  %6641 = vset.pattern.permute.xlu1 %v12610_v5  ;;  %v12762_v5 = vld [vmem:[#allocation172_spill] sm:$0xff]  ;;  %v2145_v46 = vadd.f32 %v2137_v2, %v2061_v4  ;;  %v2146_v55 = vadd.f32 %v2138_v61, %v2062_v21  ;;  %v9659_v34 = vpop.permute.xlu0 %2679  ;;  %v12765_v43 = vld [vmem:[#allocation57_spill] sm:$0xff]  ;;  %v12768_v61 = vld [vmem:[#allocation55_spill] sm:$0xff] }
 0x41d   : > { %2667 = vrot.lane.b32.xlu2 %v7212_v31, %s7030_s22  ;;  %v2432_v37 = vsel %vm2429_vm8, %v12762_v5, %v12761_v33  ;;  %v2448_v38 = vsel %vm2429_vm8, %v12761_v33, %v12762_v5  ;;  %v9657_v19 = vperm.slane %v5911_v25, 1  ;;  %v2254_v9 = vmul.f32 %v12764_v7, %v12765_v43  ;;  %v12771_v5 = vld [vmem:[#allocation56_spill] sm:$0xff] }
 0x41e   : > { %v9652_v50 = vpop.permute.xlu2 %2595  ;;  %6636 = vset.pattern.permute.xlu2 %v12738_v57  ;;  %v2369_v2 = vmul.f32 %v12767_v40, %v12766_v35  ;;  %v2370_v4 = vmul.f32 %v12767_v40, %v12768_v61  ;;  %v2461_v25 = vmul.f32 %v9655_v58, %v2432_v37  ;;  %v1998_v32 = vsel %vm1997_vm5, %v12770_v51, %v12769_v20  ;;  %v12772_v61 = vld [vmem:[#allocation31_spill] sm:$0xff] }
 0x41f   : > { %v2462_v21 = vmul.f32 %v9657_v19, %v2448_v38  ;;  %v2014_v33 = vsel %vm1997_vm5, %v12769_v20, %v12770_v51  ;;  %v2516_v45 = vsel %vm2513_vm7, %v12771_v5, %v9374_v22  ;;  %v2532_v7 = vsel %vm2513_vm7, %v9374_v22, %v12771_v5  ;;  %v12773_v20 = vld [vmem:[#allocation152_spill] sm:$0xff] }
 0x420   : > { %v2261_v43 = vadd.f32 %v2253_v26, %v2145_v46  ;;  %v2262_v37 = vadd.f32 %v2254_v9, %v2146_v55  ;;  %v2485_v38 = vmul.f32 %v9354_v53, %v2461_v25  ;;  %v1855_v51 = vmul.f32 %v12773_v20, %v12772_v61  ;;  %v12775_v9 = vld [vmem:[#allocation162_spill] sm:$0xff] }
 0x421   : > { %v2486_v35 = vmul.f32 %v9354_v53, %v2462_v21  ;;  %v1856_v15 = vmul.f32 %v12773_v20, %v12774_v10  ;;  %v1948_v22 = vmul.f32 %v9087_v29, %v1933_v41  ;;  %v2545_v26 = vmul.f32 %v9587_v11, %v2516_v45  ;;  %v12777_v45 = vld [vmem:[#allocation155_spill] sm:$0xff] }
 0x422   : > { %v2377_v46 = vadd.f32 %v2369_v2, %v2261_v43  ;;  %v2378_v55 = vadd.f32 %v2370_v4, %v2262_v37  ;;  %v2546_v53 = vmul.f32 %v9589_v23, %v2532_v7  ;;  %v1965_v25 = vmul.f32 %v12775_v9, %v1941_v44  ;;  %v12776_v4 = vld [vmem:[#allocation161_spill] sm:$0xff] }
 0x423   : > { %2753 = vrot.lane.b32.xlu1 %v12422_v16, %s7032_s29  ;;  %v9689_v40 = vpop.permute.xlu1 %2501  ;;  %v1966_v21 = vmul.f32 %v12775_v9, %v1942_v14  ;;  %v2025_v5 = vmul.f32 %v12746_v3, %v1998_v32  ;;  %v2026_v10 = vmul.f32 %v12747_v54, %v2014_v33  ;;  %v2001_v7 = vsel %vm1997_vm5, %v12777_v45, %v12776_v4  ;;  %v12778_v44 = vld [vmem:[#allocation173_spill] sm:$0xff]  ;;  %v12779_v32 = vld [vmem:[#allocation160_spill] sm:$0xff] }
 0x424   : > { %v2493_v17 = vadd.f32 %v2485_v38, %v2377_v46  ;;  %v2494_v29 = vadd.f32 %v2486_v35, %v2378_v55  ;;  %v2017_v43 = vsel %vm1997_vm5, %v12776_v4, %v12777_v45  ;;  %v1971_v61 = vmul.f32 %v12779_v32, %v1947_v62  ;;  %v9719_v20 = vpop.permute.xlu0 %2587  ;;  %v12785_v4 = vld [vmem:[#allocation169_spill] sm:$0xff] }
 0x425   : > { %2841 = vrot.lane.b32.xlu2 %v12448_v12, %s7034_s30  ;;  %v2049_v37 = vmul.f32 %v12778_v44, %v2025_v5  ;;  %v2050_v14 = vmul.f32 %v12778_v44, %v2026_v10  ;;  %v1972_v33 = vmul.f32 %v12779_v32, %v1948_v22  ;;  %v1973_v46 = vadd.f32 %v1965_v25, %v9612_v36  ;;  %v12782_v5 = vld [vmem:[#allocation29_spill] sm:$0xff]  ;;  %v12783_v25 = vld [vmem:[#allocation58_spill] sm:$0xff] }
 0x426   : > { %v2559_v59 = vpop.permute.xlu2 %2558  ;;  %v1974_v55 = vadd.f32 %v1966_v21, %v9625_v60  ;;  %v1863_v62 = vadd.f32 %v1855_v51, %v9606_v47  ;;  %v1864_v22 = vadd.f32 %v1856_v15, %v9610_v42  ;;  %v2249_v21 = vmul.f32 %v9426_v63, %v12783_v25 }
 0x427   : > { %v2569_v41 = vmul.f32 %v2559_v59, %v2545_v26  ;;  %v2570_v2 = vmul.f32 %v2559_v59, %v2546_v53  ;;  %v12780_v26 = vld [vmem:[#allocation17_spill] sm:$0xff]  ;;  %v12781_v53 = vld [vmem:[#allocation43_spill] sm:$0xff]  ;;  %v2031_v59 = vmul.f32 %v12746_v3, %v2001_v7  ;;  %v2057_v36 = vadd.f32 %v2049_v37, %v1973_v46  ;;  %v12788_v37 = vld [vmem:[#allocation28_spill] sm:$0xff] }
 0x428   : > { %v2133_v9 = vmul.f32 %v12781_v53, %v12780_v26  ;;  %v2134_v10 = vmul.f32 %v12781_v53, %v12782_v5  ;;  %v2058_v60 = vadd.f32 %v2050_v14, %v1974_v55  ;;  %v1979_v3 = vadd.f32 %v1971_v61, %v1863_v62  ;;  %v12786_v7 = vld [vmem:[#allocation39_spill] sm:$0xff]  ;;  %v12789_v61 = vld [vmem:[#allocation30_spill] sm:$0xff] }
 0x429   : > { %v9715_v38 = vadd.f32 %v2569_v41, %v2493_v17  ;;  %v9717_v35 = vadd.f32 %v2570_v2, %v2494_v29  ;;  %v2032_v17 = vmul.f32 %v12747_v54, %v2017_v43  ;;  %v12784_v41 = vld [vmem:[#allocation24_spill] sm:$0xff]  ;;  %v2055_v47 = vmul.f32 %v12785_v4, %v2031_v59  ;;  %v12791_v55 = vld [vmem:[#allocation174_spill] sm:$0xff] }
 0x42a   : > { %v2250_v2 = vmul.f32 %v9426_v63, %v12784_v41  ;;  %v1980_v54 = vadd.f32 %v1972_v33, %v1864_v22  ;;  %v2141_v42 = vadd.f32 %v2133_v9, %v2057_v36  ;;  %v2142_v51 = vadd.f32 %v2134_v10, %v2058_v60  ;;  %v12787_v43 = vld [vmem:[#allocation76_spill] sm:$0xff]  ;;  %v12792_v26 = vld [vmem:[#allocation170_spill] sm:$0xff] }
 0x42b   : > { %2722 = vperm.xlu1 %6641, %v9509_v8   ;;  %v9732_v29 = vpop.permute.xlu1 %2675  ;;  %v2056_v15 = vmul.f32 %v12785_v4, %v2032_v17  ;;  %v2139_v44 = vmul.f32 %v12787_v43, %v12786_v7  ;;  %v2140_v14 = vmul.f32 %v12787_v43, %v12788_v37  ;;  %v2430_v63 = vsel %vm2429_vm8, %v9400_v30, %v9532_v56  ;;  %v12790_v33 = vld [vmem:[#allocation60_spill] sm:$0xff]  ;;  %v12794_v17 = vld [vmem:[#allocation42_spill] sm:$0xff] }
 0x42c   : > { %v2446_v32 = vsel %vm2429_vm8, %v9532_v56, %v9400_v30  ;;  %v2365_v46 = vmul.f32 %v12790_v33, %v12789_v61  ;;  %v2433_v53 = vsel %vm2429_vm8, %v12792_v26, %v12791_v55  ;;  %v2257_v9 = vadd.f32 %v2249_v21, %v2141_v42  ;;  %v12793_v10 = vld [vmem:[#allocation44_spill] sm:$0xff]  ;;  %v12795_v36 = vld [vmem:[#allocation2_spill] sm:$0xff]  ;;  %v12796_v56 = vld [vmem:[#allocation27_spill] sm:$0xff]  ;;  %v9774_v7 = vpop.permute.xlu0 %2761 }
 0x42d   : > { %2847 = vrot.lane.b32.xlu2 %v12467_v1, %s7034_s30  ;;  %v2258_v5 = vadd.f32 %v2250_v2, %v2142_v51  ;;  %v2366_v62 = vmul.f32 %v12790_v33, %v12793_v10  ;;  %v2063_v22 = vadd.f32 %v2055_v47, %v1979_v3  ;;  %v2064_v59 = vadd.f32 %v2056_v15, %v1980_v54  ;;  %v12797_v47 = vld [vmem:[#allocation18_spill] sm:$0xff]  ;;  %v12798_v15 = vld [vmem:[#allocation37_spill] sm:$0xff] }
 0x42e   : > { %v9742_v45 = vpop.permute.xlu2 %2497  ;;  %v2255_v60 = vmul.f32 %v12795_v36, %v12794_v17  ;;  %v2449_v30 = vsel %vm2429_vm8, %v12791_v55, %v12792_v26  ;;  %v2256_v25 = vmul.f32 %v12795_v36, %v12796_v56  ;;  %v2457_v41 = vmul.f32 %v9655_v58, %v2430_v63  ;;  %v9783_v55 = vld [vmem:[%s11955_s7 + $0x10] sm:$0xff] }
 0x42f   : > { %v2458_v21 = vmul.f32 %v9657_v19, %v2446_v32  ;;  %v2147_v2 = vadd.f32 %v2139_v44, %v2063_v22  ;;  %v2148_v4 = vadd.f32 %v2140_v14, %v2064_v59  ;;  %v2463_v42 = vmul.f32 %v9655_v58, %v2433_v53  ;;  %v12800_v14 = vld [vmem:[#allocation26_spill] sm:$0xff] }
 0x430   : > { %v2371_v3 = vmul.f32 %v12798_v15, %v12797_v47  ;;  %v12799_v54 = vmov 39   ;;  %v2373_v43 = vadd.f32 %v2365_v46, %v2257_v9  ;;  %v2374_v37 = vadd.f32 %v2366_v62, %v2258_v5 }
 0x431   : > { %v2464_v63 = vmul.f32 %v9657_v19, %v2449_v30  ;;  %v2263_v44 = vadd.f32 %v2255_v60, %v2147_v2  ;;  %v2372_v32 = vmul.f32 %v12798_v15, %v12800_v14  ;;  %v2264_v26 = vadd.f32 %v2256_v25, %v2148_v4 }
 0x432   : > { %v2487_v46 = vmul.f32 %v9491_v52, %v2463_v42  ;;  %v2601_v17 = vsel %vm2597_vm9, %v9512_v0, %v9652_v50  ;;  %v2617_v36 = vsel %vm2597_vm9, %v9652_v50, %v9512_v0  ;;  %v12801_v42 = vmov 1  }
 0x433   : > { %6643 = vset.pattern.permute.xlu1 %v12799_v54  ;;  %v2467_v51 = vpop.permute.xlu1 %2466  ;;  %v2488_v10 = vmul.f32 %v9491_v52, %v2464_v63  ;;  %v2379_v59 = vadd.f32 %v2371_v3, %v2263_v44  ;;  %v2380_v60 = vadd.f32 %v2372_v32, %v2264_v26 }
 0x434   : > { %v2481_v61 = vmul.f32 %v2467_v51, %v2457_v41  ;;  %v2482_v33 = vmul.f32 %v2467_v51, %v2458_v21  ;;  %2898 = vperm.xlu1 %6643, %v9566_v18   ;;  %v5913_v18 = vld [vmem:[%s11954_s6 + $0x25] ss:$8 sm:$0x3]  ;;  %v2555_v47 = vpop.permute.xlu0 %2554 }
 0x435   : > { %2810 = vperm.xlu2 %6636, %v9783_v55   ;;  %v9805_v30 = vperm.slane %v5913_v18, 0  ;;  %v9807_v52 = vperm.slane %v5913_v18, 1  ;;  %v2495_v56 = vadd.f32 %v2487_v46, %v2379_v59  ;;  %v2496_v25 = vadd.f32 %v2488_v10, %v2380_v60  ;;  %v12802_v51 = vld [vmem:[#allocation166_spill] sm:$0xff]  ;;  %v12804_v59 = vld [vmem:[#allocation5_spill] sm:$0xff] }
 0x436   : > { %v9790_v53 = vadd.f32 %v2481_v61, %v2373_v43  ;;  %v9792_v9 = vadd.f32 %v2482_v33, %v2374_v37  ;;  %v2504_v5 = vpop.permute.xlu2 %2503  ;;  %v12803_v43 = vld [vmem:[#allocation79_spill] sm:$0xff] }
 0x437   : > { %v2515_v62 = vsel %vm2513_vm7, %v9689_v40, %v2504_v5  ;;  %v2531_v22 = vsel %vm2513_vm7, %v2504_v5, %v9689_v40  ;;  %v2631_v41 = vmul.f32 %v9805_v30, %v2601_v17  ;;  %v2632_v40 = vmul.f32 %v9807_v52, %v2617_v36 }
 0x438   : > { %v2579_v21 = vadd.f32 %v9630_v48, %v2495_v56  ;;  %v2580_v4 = vadd.f32 %v9632_v13, %v2496_v25  ;;  %v2431_v37 = vsel %vm2429_vm8, %v12803_v43, %v12802_v51  ;;  %v2447_v13 = vsel %vm2429_vm8, %v12802_v51, %v12803_v43 }
 0x439   : > { %v2459_v61 = vmul.f32 %v9655_v58, %v2431_v37  ;;  %v2460_v33 = vmul.f32 %v9657_v19, %v2447_v13  ;;  %v2543_v63 = vmul.f32 %v9587_v11, %v2515_v62  ;;  %v2544_v44 = vmul.f32 %v9589_v23, %v2531_v22 }
 0x43b   : > { %v2567_v18 = vmul.f32 %v2555_v47, %v2543_v63  ;;  %v2568_v5 = vmul.f32 %v2555_v47, %v2544_v44  ;;  %v2684_v47 = vsel %vm2681_vm11, %v9583_v39, %v9732_v29 }
 0x43c   : > { %2837 = vrot.lane.b32.xlu1 %v12422_v16, %s7034_s30  ;;  %v2647_v2 = vpop.permute.xlu1 %2646  ;;  %v2643_v46 = vpop.permute.xlu0 %2642 }
 0x43d   : > { %v2655_v0 = vmul.f32 %v2647_v2, %v2631_v41  ;;  %v2656_v50 = vmul.f32 %v2647_v2, %v2632_v40  ;;  %6638 = vset.pattern.permute.xlu2 %v12801_v42  ;;  %6645 = vset.pattern.permute.xlu1 %v12738_v57 }
 0x43e   : > { %3202 = vperm.xlu2 %6638, %v9783_v55   ;;  %v9818_v15 = vpop.permute.xlu2 %2677 }
 0x43f   : > { %v9820_v3 = vadd.f32 %v2655_v0, %v2579_v21  ;;  %v9822_v48 = vadd.f32 %v2656_v50, %v2580_v4 }
 0x444   : > { %2806 = vperm.xlu1 %6645, %v9509_v8   ;;  %v2584_v57 = vpop.permute.xlu1 %2583 }
 0x446   : > { %2751 = vrot.lane.b32.xlu2 %v7212_v31, %s7032_s29  ;;  %v2471_v14 = vpop.permute.xlu2 %2470 }
 0x447   : > { %v2483_v32 = vmul.f32 %v2471_v14, %v2459_v61  ;;  %v2484_v26 = vmul.f32 %v2471_v14, %v2460_v33  ;;  %6642 = vset.pattern.permute.xlu2 %v12799_v54 }
 0x449   : > { %v2491_v10 = vadd.f32 %v2483_v32, %v9577_v6  ;;  %v2492_v58 = vadd.f32 %v2484_v26, %v9580_v28  ;;  %v9850_v6 = vpop.permute.xlu0 %2669  ;;  %v12805_v28 = vld [vmem:[#allocation66_spill] sm:$0xff] }
 0x44a   : > { %v2600_v56 = vsel %vm2597_vm9, %v9591_v24, %v12805_v28  ;;  %v2616_v25 = vsel %vm2597_vm9, %v12805_v28, %v9591_v24 }
 0x44b   : > { %v9840_v19 = vadd.f32 %v2567_v18, %v2491_v10  ;;  %v9842_v62 = vadd.f32 %v2568_v5, %v2492_v58  ;;  %v2629_v24 = vmul.f32 %v9805_v30, %v2600_v56  ;;  %v2630_v4 = vmul.f32 %v9807_v52, %v2616_v25 }
 0x44c   : > { %6647 = vset.pattern.permute.xlu1 %v12801_v42  ;;  %v2758_v22 = vpop.permute.xlu1 %2757 }
 0x44d   : > { %3198 = vperm.xlu1 %6647, %v9509_v8   ;;  %v5914_v8 = vld [vmem:[%s11954_s6 + $0x26] ss:$8 sm:$0x3]  ;;  %v2653_v51 = vmul.f32 %v2643_v46, %v2629_v24 }
 0x44e   : > { %2755 = vrot.lane.b32.xlu2 %v12804_v59, %s7032_s29  ;;  %v2582_v17 = vpop.permute.xlu2 %2581  ;;  %v9874_v0 = vperm.slane %v5914_v8, 0  ;;  %v9876_v50 = vperm.slane %v5914_v8, 1 }
 0x44f   : > { %v2598_v36 = vsel %vm2597_vm9, %v2582_v17, %v2584_v57  ;;  %v2614_v60 = vsel %vm2597_vm9, %v2584_v57, %v2582_v17  ;;  %v2661_v61 = vadd.f32 %v2653_v51, %v9715_v38  ;;  %v9906_v38 = vld [vmem:[%s11950_s2 + $0x38] sm:$0xff]  ;;  %v6318_v51 = vld [vmem:[%s11950_s2 + $0x20] sm:$0xff] }
 0x450   : > { %v2713_v43 = vmul.f32 %v9874_v0, %v2684_v47  ;;  %5936 = vmatmul.msk.bf16.vlgmr.msra.gmra.mxu3 %vm769_vm13, %v9906_v38  ;;  %v2625_v10 = vmul.f32 %v9805_v30, %v2598_v36  ;;  %v2626_v58 = vmul.f32 %v9807_v52, %v2614_v60  ;;  %5933 = vmatmul.msk.bf16.vlgmr.msra.gmra.mxu2 %vm769_vm13, %v6318_v51 }
 0x451   : > { %v9886_v13 = vpop.permute.xlu0 %2843 }
 0x454   : > { %v2764_v41 = vpop.permute.xlu1 %2763 }
 0x455   : > { %v9863_v40 = vsel %vm2765_vm10, %v9774_v7, %v2764_v41  ;;  %v9867_v21 = vsel %vm2765_vm10, %v2764_v41, %v9774_v7  ;;  %v2700_v7 = vsel %vm2681_vm11, %v9732_v29, %v9583_v39 }
 0x456   : > { %2894 = vperm.xlu2 %6642, %v9783_v55   ;;  %v9870_v2 = vpop.permute.xlu2 %2585  ;;  %v2654_v55 = vmul.f32 %v2643_v46, %v2630_v4  ;;  %v2714_v37 = vmul.f32 %v9876_v50, %v2700_v7  ;;  %v2530_v46 = vsel %vm2513_vm7, %v9520_v27, %v9742_v45 }
 0x458   : > { %v2662_v33 = vadd.f32 %v2654_v55, %v9717_v35  ;;  %v2514_v35 = vsel %vm2513_vm7, %v9742_v45, %v9520_v27 }
 0x459   : > { %v2541_v5 = vmul.f32 %v9587_v11, %v2514_v35  ;;  %v2685_v11 = vsel %vm2681_vm11, %v9818_v15, %v9659_v34 }
 0x45a   : > { %v2715_v24 = vmul.f32 %v9874_v0, %v2685_v11 }
 0x45c   : > { %v2727_v57 = vpop.permute.xlu1 %2726 }
 0x45d   : > { %v2737_v63 = vmul.f32 %v2727_v57, %v2713_v43  ;;  %v2738_v44 = vmul.f32 %v2727_v57, %v2714_v37  ;;  %v2924_v37 = vld [vmem:[%s11955_s7 + $0x38] sm:$0xff] }
 0x45e   : > { %2833 = vrot.lane.b32.xlu2 %v12611_v49, %s7034_s30  ;;  %v2760_v14 = vpop.permute.xlu2 %2759 }
 0x45f   : > { %v9892_v39 = vadd.f32 %v2737_v63, %v2661_v61  ;;  %v9894_v29 = vadd.f32 %v2738_v44, %v2662_v33  ;;  %v9897_v32 = vsel %vm2765_vm10, %v2758_v22, %v2760_v14  ;;  %v9900_v26 = vsel %vm2765_vm10, %v2760_v14, %v2758_v22  ;;  %6646 = vset.pattern.permute.xlu2 %v12801_v42  ;;  %v2635_v22 = vpop.permute.xlu0 %2634  ;;  %v2922_v44 = vld [vmem:[%s11955_s7 + $0x28] sm:$0xff] }
 0x460   : > { %v2542_v42 = vmul.f32 %v9589_v23, %v2530_v46  ;;  %v2649_v27 = vmul.f32 %v2635_v22, %v2625_v10  ;;  %v2650_v45 = vmul.f32 %v2635_v22, %v2626_v58  ;;  %v2701_v23 = vsel %vm2681_vm11, %v9659_v34, %v9818_v15  ;;  %5937 = vmatmul.msk.bf16.vlgmr.msrb.gmra.mxu3 %vm769_vm13, %v6318_v51 }
 0x461   : > { %v2716_v4 = vmul.f32 %v9876_v50, %v2701_v23 }
 0x464   : > { %v2666_v18 = vpop.permute.xlu1 %2665 }
 0x466   : > { %2839 = vrot.lane.b32.xlu2 %v12804_v59, %s7034_s30  ;;  %v2551_v17 = vpop.permute.xlu2 %2550 }
 0x467   : > { %v2565_v28 = vmul.f32 %v2551_v17, %v2541_v5  ;;  %v2566_v56 = vmul.f32 %v2551_v17, %v2542_v42  ;;  %v9937_v7 = vpop.permute.xlu0 %3206 }
 0x469   : > { %v2573_v25 = vadd.f32 %v2565_v28, %v9790_v53  ;;  %v2574_v8 = vadd.f32 %v2566_v56, %v9792_v9  ;;  %v6955_v53 = vld [vmem:[%s11955_s7] sm:$0xff]  ;;  %v7040_v9 = vmov 2  }
 0x46a   : > { %6650 = vset.pattern.permute.xlu1 %v7040_v9  ;;  %6652 = vset.pattern.permute.xlu0 %v7040_v9 }
 0x46b   : > { %v2657_v36 = vadd.f32 %v2649_v27, %v2573_v25  ;;  %v2658_v60 = vadd.f32 %v2650_v45, %v2574_v8  ;;  %2974 = vperm.xlu1 %6650, %v2924_v37   ;;  %v6319_v45 = vld [vmem:[%s11950_s2 + $0x28] sm:$0xff]  ;;  %v2919_v25 = vld [vmem:[%s11955_s7 + $0x10] sm:$0xff] }
 0x46c   : > { %v9930_v41 = vpop.permute.xlu1 %2671  ;;  %5934 = vmatmul.msk.bf16.gmra.mxu2 %vm769_vm13, %v6319_v45 }
 0x46e   : > { %3194 = vperm.xlu2 %6646, %v6955_v53  }
 0x46f   : > { %v2731_v47 = vpop.permute.xlu2 %2730  ;;  %v2719_v35 = vpop.permute.xlu0 %2718 }
 0x470   : > { %v2739_v34 = vmul.f32 %v2731_v47, %v2715_v24  ;;  %v2740_v15 = vmul.f32 %v2731_v47, %v2716_v4  ;;  %5938 = vmatmul.msk.bf16.gmra.mxu3 %vm769_vm13, %v6319_v45  ;;  %v2917_v4 = vld [vmem:[%s11955_s7] sm:$0xff]  ;;  %v2923_v47 = vld [vmem:[%s11955_s7 + $0x30] sm:$0xff] }
 0x472   : > { %v2747_v55 = vadd.f32 %v2739_v34, %v9820_v3  ;;  %v2748_v43 = vadd.f32 %v2740_v15, %v9822_v48  ;;  %v2599_v3 = vsel %vm2597_vm9, %v9870_v2, %v9719_v20  ;;  %v2615_v48 = vsel %vm2597_vm9, %v9719_v20, %v9870_v2  ;;  %v5915_v2 = vld [vmem:[%s11954_s6 + $0x27] ss:$8 sm:$0x3] }
 0x473   : > { %v2627_v46 = vmul.f32 %v9805_v30, %v2599_v3  ;;  %v2628_v5 = vmul.f32 %v9807_v52, %v2615_v48  ;;  %2964 = vperm.xlu1 %6650, %v2922_v44   ;;  %v9978_v52 = vperm.slane %v5915_v2, 0  ;;  %v9980_v27 = vperm.slane %v5915_v2, 1  ;;  %v2920_v44 = vld [vmem:[%s11955_s7 + $0x18] sm:$0xff] }
 0x474   : > { %v9949_v57 = vpop.permute.xlu1 %2845  ;;  %v2683_v48 = vsel %vm2681_vm11, %v9850_v6, %v9930_v41  ;;  %2954 = vperm.xlu0 %6652, %v2920_v44  }
 0x476   : > { %6648 = vset.pattern.permute.xlu2 %v12799_v54 }
 0x477   : > { %2886 = vperm.xlu2 %6648, %v6955_v53   ;;  %v2668_v61 = vpop.permute.xlu2 %2667 }
 0x478   : > { %v2682_v33 = vsel %vm2681_vm11, %v2666_v18, %v2668_v61  ;;  %v2698_v63 = vsel %vm2681_vm11, %v2668_v61, %v2666_v18  ;;  %v3216_v61 = vmul.f32 %v9937_v7, %v12467_v1  ;;  %v2921_v1 = vld [vmem:[%s11955_s7 + $0x20] sm:$0xff] }
 0x479   : > { %v2709_v54 = vmul.f32 %v9874_v0, %v2682_v33  ;;  %v2710_v14 = vmul.f32 %v9876_v50, %v2698_v63  ;;  %v12807_v33 = vld [vmem:[#allocation10_spill] sm:$0xff] }
 0x47b   : > { %v2733_v42 = vmul.f32 %v2719_v35, %v2709_v54  ;;  %v2734_v10 = vmul.f32 %v2719_v35, %v2710_v14  ;;  %2949 = vperm.xlu1 %6650, %v2919_v25   ;;  %v2711_v14 = vmul.f32 %v9874_v0, %v2683_v48 }
 0x47c   : > { %v2639_v20 = vpop.permute.xlu1 %2638 }
 0x47d   : > { %v2651_v18 = vmul.f32 %v2639_v20, %v2627_v46  ;;  %v2652_v58 = vmul.f32 %v2639_v20, %v2628_v5  ;;  %v9970_v22 = vadd.f32 %v2733_v42, %v2657_v36  ;;  %v9972_v17 = vadd.f32 %v2734_v10, %v2658_v60  ;;  %v2918_v10 = vld [vmem:[%s11955_s7 + $0x8] sm:$0xff] }
 0x47f   : > { %v2659_v28 = vadd.f32 %v2651_v18, %v9840_v19  ;;  %v2660_v30 = vadd.f32 %v2652_v58, %v9842_v62  ;;  %v9976_v56 = vpop.permute.xlu2 %2841  ;;  %6651 = vset.pattern.permute.xlu2 %v7040_v9  ;;  %v2799_v19 = vmul.f32 %v9978_v52, %v9863_v40  ;;  %v2800_v62 = vmul.f32 %v9980_v27, %v9867_v21  ;;  %v6320_v9 = vld [vmem:[%s11950_s2 + $0x30] sm:$0xff] }
 0x480   : > { %v2797_v40 = vmul.f32 %v9978_v52, %v9897_v32  ;;  %v2798_v21 = vmul.f32 %v9980_v27, %v9900_v26  ;;  %2969 = vperm.xlu2 %6651, %v2923_v47   ;;  %5939 = vmatmul.msk.bf16.gmra.mxu3 %vm769_vm13, %v6320_v9  ;;  %v12806_v26 = vld [vmem:[#allocation16_spill] sm:$0xff] }
 0x481   : > { %5935 = vmatmul.msk.bf16.gmra.mxu2 %vm769_vm13, %v6320_v9  ;;  %v3215_v37 = vmul.f32 %v9937_v7, %v12806_v26 }
 0x483   : > { %2939 = vperm.xlu1 %6650, %v2917_v4  }
 0x485   : > { %v2815_v8 = vpop.permute.xlu1 %2814 }
 0x486   : > { %v2823_v11 = vmul.f32 %v2815_v8, %v2799_v19  ;;  %v2824_v23 = vmul.f32 %v2815_v8, %v2800_v62 }
 0x487   : > { %v2848_v36 = vpop.permute.xlu2 %2847 }
 0x488   : > { %v9994_v60 = vadd.f32 %v2823_v11, %v2747_v55  ;;  %v9996_v24 = vadd.f32 %v2824_v23, %v2748_v43  ;;  %2959 = vperm.xlu2 %6651, %v2921_v1   ;;  %v2853_v2 = vsel %vm2849_vm12, %v9949_v57, %v2848_v36  ;;  %v2869_v18 = vsel %vm2849_vm12, %v2848_v36, %v9949_v57 }
 0x48d   : > { %v10001_v53 = vpop.permute.xlu1 %2749 }
 0x48f   : > { %v2811_v34 = vpop.permute.xlu2 %2810 }
 0x490   : > { %v2821_v15 = vmul.f32 %v2811_v34, %v2797_v40  ;;  %v2822_v51 = vmul.f32 %v2811_v34, %v2798_v21  ;;  %5940 = vmatmul.msk.bf16.gmra.mxu3 %vm769_vm13, %v9906_v38  ;;  %2944 = vperm.xlu2 %6651, %v2918_v10   ;;  %v2852_v38 = vsel %vm2849_vm12, %v9976_v56, %v9886_v13 }
 0x492   : > { %v2829_v55 = vadd.f32 %v2821_v15, %v9892_v39  ;;  %v2830_v43 = vadd.f32 %v2822_v51, %v9894_v29  ;;  %v2699_v39 = vsel %vm2681_vm11, %v9930_v41, %v9850_v6  ;;  %v2836_v51 = vpop.permute.xlu0 %2835 }
 0x493   : > { %v2712_v6 = vmul.f32 %v9876_v50, %v2699_v39  ;;  %v5916_v50 = vld [vmem:[%s11954_s6 + $0x30] ss:$8 sm:$0x3] }
 0x494   : > { %v2873_v58 = vperm.slane %v5916_v50, 0 }
 0x495   : > { %v10017_v32 = vpop.permute.xlu1 %2753 }
 0x496   : > { %v2883_v45 = vmul.f32 %v2873_v58, %v2853_v2  ;;  %v2881_v19 = vmul.f32 %v2873_v58, %v2852_v38 }
 0x498   : > { %v3203_v3 = vpop.permute.xlu2 %3202 }
 0x499   : > { %v3213_v29 = vmul.f32 %v3203_v3, %v12448_v12  ;;  %v3214_v63 = vmul.f32 %v3203_v3, %v12807_v33 }
 0x49b   : > { %v3220_v7 = vpack.c.bf16 %v3216_v61, %v3214_v63  ;;  %v3219_v54 = vpack.c.bf16 %v3215_v37, %v3213_v29 }
 0x49d   : > { %v2723_v41 = vpop.permute.xlu1 %2722  ;;  %3259 = vmatpush.bf16.msrb.mxu2 %v3219_v54  ;;  %3288 = vmatpush.bf16.msra.mxu3 %v3220_v7 }
 0x49e   : > { %v2735_v12 = vmul.f32 %v2723_v41, %v2711_v14  ;;  %v2736_v35 = vmul.f32 %v2723_v41, %v2712_v6 }
 0x4a0   : > { %v10039_v46 = vadd.f32 %v2735_v12, %v2659_v28  ;;  %v10041_v5 = vadd.f32 %v2736_v35, %v2660_v30  ;;  %v2752_v42 = vpop.permute.xlu2 %2751  ;;  %v2874_v28 = vperm.slane %v5916_v50, 1  ;;  %v2868_v30 = vsel %vm2849_vm12, %v9886_v13, %v9976_v56 }
 0x4a1   : > { %v2766_v37 = vsel %vm2765_vm10, %v10001_v53, %v2752_v42  ;;  %v2782_v61 = vsel %vm2765_vm10, %v2752_v42, %v10001_v53 }
 0x4a2   : > { %v2884_v25 = vmul.f32 %v2874_v28, %v2869_v18  ;;  %v2882_v62 = vmul.f32 %v2874_v28, %v2868_v30 }
 0x4a6   : > { %v2899_v0 = vpop.permute.xlu1 %2898 }
 0x4a7   : > { %v2907_v8 = vmul.f32 %v2899_v0, %v2883_v45  ;;  %v2908_v11 = vmul.f32 %v2899_v0, %v2884_v25 }
 0x4a8   : > { %v2756_v20 = vpop.permute.xlu2 %2755 }
 0x4a9   : > { %v2915_v21 = vadd.f32 %v2907_v8, %v9994_v60  ;;  %v2916_v47 = vadd.f32 %v2908_v11, %v9996_v24  ;;  %v2793_v60 = vmul.f32 %v9978_v52, %v2766_v37  ;;  %v2794_v24 = vmul.f32 %v9980_v27, %v2782_v61 }
 0x4aa   : > { %v2783_v48 = vsel %vm2765_vm10, %v2756_v20, %v10017_v32 }
 0x4ab   : > { %v2796_v6 = vmul.f32 %v9980_v27, %v2783_v48 }
 0x4ae   : > { %v2838_v4 = vpop.permute.xlu1 %2837 }
 0x4b0   : > { %v2895_v23 = vpop.permute.xlu2 %2894 }
 0x4b1   : > { %v2905_v40 = vmul.f32 %v2895_v23, %v2881_v19  ;;  %v2906_v57 = vmul.f32 %v2895_v23, %v2882_v62  ;;  %v6322_v23 = vld [vmem:[%s11950_s2 + $0x40] sm:$0xff] }
 0x4b3   : > { %v2913_v36 = vadd.f32 %v2905_v40, %v2829_v55  ;;  %v2914_v9 = vadd.f32 %v2906_v57, %v2830_v43  ;;  %v2803_v55 = vpop.permute.xlu0 %2802  ;;  %v2767_v43 = vsel %vm2765_vm10, %v10017_v32, %v2756_v20  ;;  %v6329_v40 = vld [vmem:[%s11950_s2 + $0x18] sm:$0xff] }
 0x4b4   : > { %v2795_v7 = vmul.f32 %v9978_v52, %v2767_v43  ;;  %v2817_v12 = vmul.f32 %v2803_v55, %v2793_v60  ;;  %v2818_v35 = vmul.f32 %v2803_v55, %v2794_v24 }
 0x4b5   : > { %v3077_v34 = vpack.c.bf16 %v2915_v21, %v2913_v36  ;;  %v3078_v15 = vpack.c.bf16 %v2916_v47, %v2914_v9  ;;  %v6325_v36 = vld [vmem:[%s11950_s2 + $0x58] sm:$0xff] }
 0x4b6   : > { %v2807_v56 = vpop.permute.xlu1 %2806  ;;  %v2825_v20 = vadd.f32 %v2817_v12, %v9970_v22  ;;  %v2826_v2 = vadd.f32 %v2818_v35, %v9972_v17  ;;  %v6327_v22 = vld [vmem:[%s11950_s2 + $0x8] sm:$0xff] }
 0x4b7   : > { %3117 = vmatpush.bf16.msrb.mxu0 %v3077_v34  ;;  %3146 = vmatpush.bf16.msrb.mxu1 %v3078_v15  ;;  %v2820_v52 = vmul.f32 %v2807_v56, %v2796_v6  ;;  %v6323_v17 = vld [vmem:[%s11950_s2 + $0x48] sm:$0xff] }
 0x4b8   : > { %v2834_v13 = vpop.permute.xlu2 %2833 }
 0x4b9   : > { %v2850_v32 = vsel %vm2849_vm12, %v2834_v13, %v2836_v51  ;;  %v2828_v30 = vadd.f32 %v2820_v52, %v10041_v5 }
 0x4ba   : > { %v2877_v10 = vmul.f32 %v2873_v58, %v2850_v32 }
 0x4bb   : > { %v2891_v42 = vpop.permute.xlu0 %2890 }
 0x4bf   : > { %v3199_v3 = vpop.permute.xlu1 %3198 }
 0x4c0   : > { %v2840_v26 = vpop.permute.xlu2 %2839  ;;  %v3211_v39 = vmul.f32 %v3199_v3, %v12422_v16  ;;  %v3212_v29 = vmul.f32 %v3199_v3, %v12804_v59  ;;  %v6326_v59 = vld [vmem:[%s11950_s2] sm:$0xff] }
 0x4c1   : > { %v2851_v63 = vsel %vm2849_vm12, %v2838_v4, %v2840_v26  ;;  %v2867_v53 = vsel %vm2849_vm12, %v2840_v26, %v2838_v4  ;;  %v6324_v4 = vld [vmem:[%s11950_s2 + $0x50] sm:$0xff] }
 0x4c2   : > { %v2879_v16 = vmul.f32 %v2873_v58, %v2851_v63  ;;  %v2880_v41 = vmul.f32 %v2874_v28, %v2867_v53 }
 0x4c4   : > { %v2903_v27 = vmul.f32 %v2891_v42, %v2879_v16  ;;  %v2904_v50 = vmul.f32 %v2891_v42, %v2880_v41 }
 0x4c6   : > { %v2912_v62 = vadd.f32 %v2904_v50, %v2828_v30 }
 0x4c8   : > { %v3195_v33 = vpop.permute.xlu2 %3194 }
 0x4c9   : > { %v3209_v44 = vmul.f32 %v3195_v33, %v12611_v49  ;;  %v3210_v1 = vmul.f32 %v3195_v33, %v7212_v31  ;;  %v2866_v49 = vsel %vm2849_vm12, %v2836_v51, %v2834_v13  ;;  %v2819_v31 = vmul.f32 %v2807_v56, %v2795_v7 }
 0x4ca   : > { %v2878_v0 = vmul.f32 %v2874_v28, %v2866_v49 }
 0x4cb   : > { %v3218_v54 = vpack.c.bf16 %v3212_v29, %v3210_v1  ;;  %v3217_v14 = vpack.c.bf16 %v3211_v39, %v3209_v44  ;;  %v2827_v38 = vadd.f32 %v2819_v31, %v10039_v46  ;;  %v6328_v46 = vld [vmem:[%s11950_s2 + $0x10] sm:$0xff] }
 0x4cd   : > { %3260 = vmatpush.bf16.msrb.mxu2 %v3217_v14  ;;  %3289 = vmatpush.bf16.msra.mxu3 %v3218_v54  ;;  %v2911_v58 = vadd.f32 %v2903_v27, %v2827_v38 }
 0x4d0   : > { %5981 = vmatmul.msk.bf16.vlgmr.msrb.gmra.mxu2 %vm769_vm13, %v6326_v59  ;;  %5985 = vmatmul.msk.bf16.vlgmr.msra.gmra.mxu3 %vm769_vm13, %v6326_v59 }
 0x4d1   : > { %v2887_v18 = vpop.permute.xlu2 %2886 }
 0x4d2   : > { %v2901_v45 = vmul.f32 %v2887_v18, %v2877_v10  ;;  %v2902_v25 = vmul.f32 %v2887_v18, %v2878_v0 }
 0x4d3   : > { %v10112_v5 = vpop.f32.mrf.mxu3  ;;  %v3018_v47 = vpop.f32.mrf.mxu2 }
 0x4d4   : > { %v2909_v19 = vadd.f32 %v2901_v45, %v2825_v20  ;;  %v2910_v28 = vadd.f32 %v2902_v25, %v2826_v2 }
 0x4d6   : > { %v3075_v8 = vpack.c.bf16 %v2911_v58, %v2909_v19  ;;  %v3076_v11 = vpack.c.bf16 %v2912_v62, %v2910_v28 }
 0x4d8   : > { %3118 = vmatpush.bf16.msrb.mxu0 %v3075_v8  ;;  %3147 = vmatpush.bf16.msrb.mxu1 %v3076_v11 }
 0x4da   : > { %v10147_v24 = vpop.permute.xlu2 %2969 }
 0x4db   : > { %5957 = vmatmul.msk.bf16.vlgmr.msrb.gmra.mxu0 %vm769_vm13, %v6322_v23  ;;  %5961 = vmatmul.msk.bf16.vlgmr.msrb.gmra.mxu1 %vm769_vm13, %v6322_v23  ;;  %v10122_v57 = vpop.f32.mrf.mxu3  ;;  %v3020_v15 = vpop.f32.mrf.mxu2 }
 0x4dd   : > { %v10135_v26 = vpop.permute.xlu1 %2974 }
 0x4e0   : > { %5982 = vmatmul.msk.bf16.gmra.mxu2 %vm769_vm13, %v6327_v22  ;;  %5986 = vmatmul.msk.bf16.gmra.mxu3 %vm769_vm13, %v6327_v22 }
 0x4e2   : > { %v2960_v29 = vpop.permute.xlu2 %2959 }
 0x4e3   : > { %v3047_v21 = vpop.f32.mrf.mxu3 }
 0x4e5   : > { %v10141_v55 = vpop.permute.xlu1 %2964 }
 0x4ea   : > { %v2945_v41 = vpop.permute.xlu2 %2944 }
 0x4eb   : > { %5958 = vmatmul.msk.bf16.gmra.mxu0 %vm769_vm13, %v6323_v17  ;;  %5962 = vmatmul.msk.bf16.gmra.mxu1 %vm769_vm13, %v6323_v17  ;;  %v3049_v9 = vpop.f32.mrf.mxu3  ;;  %v3021_v49 = vadd.f32 %v3020_v15, %v2945_v41  ;;  %v2955_v17 = vpop.permute.xlu0 %2954 }
 0x4ec   : > { %v3050_v35 = vadd.f32 %v3049_v9, %v2945_v41  ;;  %v10178_v9 = vadd.f32 %v10122_v57, %v10135_v26 }
 0x4ed   : > { %v2950_v43 = vpop.permute.xlu1 %2949 }
 0x4ef   : > { %v3023_v56 = vpop.f32.mrf.mxu2 }
 0x4f0   : > { %5983 = vmatmul.msk.bf16.gmra.mxu2 %vm769_vm13, %v6328_v46  ;;  %5987 = vmatmul.msk.bf16.gmra.mxu3 %vm769_vm13, %v6328_v46  ;;  %v3024_v19 = vadd.f32 %v3023_v56, %v2950_v43 }
 0x4f3   : > { %v3052_v34 = vpop.f32.mrf.mxu3 }
 0x4f4   : > { %v3053_v62 = vadd.f32 %v3052_v34, %v2950_v43 }
 0x4f5   : > { %v2940_v33 = vpop.permute.xlu1 %2939 }
 0x4f6   : > { %v3048_v53 = vadd.f32 %v3047_v21, %v2940_v33  ;;  %v3019_v44 = vadd.f32 %v3018_v47, %v2940_v33  ;;  %v10174_v21 = vadd.f32 %v10112_v5, %v10147_v24 }
 0x4f7   : > { %v10137_v37 = vpop.f32.mrf.mxu2 }
 0x4f8   : > { %v3026_v33 = vadd.f32 %v10137_v37, %v2955_v17 }
 0x4fb   : > { %5959 = vmatmul.msk.bf16.gmra.mxu0 %vm769_vm13, %v6324_v4  ;;  %5963 = vmatmul.msk.bf16.gmra.mxu1 %vm769_vm13, %v6324_v4  ;;  %v10131_v13 = vpop.f32.mrf.mxu3 }
 0x4fc   : > { %v3055_v56 = vadd.f32 %v10131_v13, %v2955_v17 }
 0x500   : > { %5984 = vmatmul.msk.bf16.gmra.mxu2 %vm769_vm13, %v6329_v40  ;;  %5988 = vmatmul.msk.bf16.gmra.mxu3 %vm769_vm13, %v6329_v40 }
 0x503   : > { %v10133_v51 = vpop.f32.mrf.mxu3 }
 0x504   : > { %v10143_v3 = vpop.f32.mrf.mxu2  ;;  %v10185_v43 = vadd.f32 %v10133_v51, %v2960_v29 }
 0x505   : > { %v10189_v5 = vadd.f32 %v10143_v3, %v2960_v29 }
 0x50b   : > { %5960 = vmatmul.msk.bf16.gmra.mxu0 %vm769_vm13, %v6325_v36  ;;  %5964 = vmatmul.msk.bf16.gmra.mxu1 %vm769_vm13, %v6325_v36  ;;  %v10139_v61 = vpop.f32.mrf.mxu3 }
 0x50c   : > { %v10149_v48 = vpop.f32.mrf.mxu2 }
 0x513   : > { %v10145_v60 = vpop.f32.mrf.mxu3 }
 0x51b   : > { %v10151_v39 = vpop.f32.mrf.mxu3 }
 0x553   : > { %v3262_v63 = vpop.f32.mrf.mxu2  ;;  %v3291_v1 = vpop.f32.mrf.mxu3 }
 0x558   : > { %v3120_v7 = vpop.f32.mrf.mxu0  ;;  %v3149_v54 = vpop.f32.mrf.mxu1 }
 0x559   : > { %v3169_v14 = vadd.f32 %v3120_v7, %v3019_v44  ;;  %v3170_v6 = vadd.f32 %v3149_v54, %v3048_v53 }
 0x55b   : > { %v10153_v32 = vadd.f32 %v3262_v63, %v3169_v14  ;;  %v10155_v16 = vadd.f32 %v3291_v1, %v3170_v6  ;;  %v3264_v42 = vpop.f32.mrf.mxu2  ;;  %v3293_v10 = vpop.f32.mrf.mxu3 }
 0x55d   : > { %v5989_v59 = vmul.f32 -1.442695, %v10153_v32  ;;  %v5990_v12 = vmul.f32 -1.442695, %v10155_v16 }
 0x55f   : > { %6692 = vpow2.f32 %v5989_v59 }
 0x560   : > { %6694 = vpow2.f32 %v5990_v12  ;;  %v3122_v31 = vpop.f32.mrf.mxu0  ;;  %v3151_v52 = vpop.f32.mrf.mxu1 }
 0x561   : > { %v3171_v0 = vadd.f32 %v3122_v31, %v3021_v49  ;;  %v3172_v27 = vadd.f32 %v3151_v52, %v3050_v35 }
 0x563   : > { %v10159_v50 = vadd.f32 %v3264_v42, %v3171_v0  ;;  %v10161_v20 = vadd.f32 %v3293_v10, %v3172_v27  ;;  %v3267_v8 = vpop.f32.mrf.mxu2  ;;  %v3296_v23 = vpop.f32.mrf.mxu3 }
 0x565   : > { %v6693_v2 = vpop.eup %6692  ;;  %v5991_v18 = vmul.f32 -1.442695, %v10159_v50  ;;  %v5992_v45 = vmul.f32 -1.442695, %v10161_v20 }
 0x566   : > { %v6695_v38 = vpop.eup %6694  ;;  %v3375_v30 = vadd.f32 1.0, %v6693_v2 }
 0x567   : > { %v10165_v25 = vadd.f32 1.0, %v6695_v38  ;;  %6696 = vpow2.f32 %v5991_v18 }
 0x568   : > { %6698 = vrcp.f32 %v3375_v30  ;;  %v3125_v58 = vpop.f32.mrf.mxu0  ;;  %v3154_v28 = vpop.f32.mrf.mxu1  ;;  %v3400_v44 = vand.u32 2147483647, %v3375_v30  ;;  %v3402_v14 = vand.u32 2147483648, %v3375_v30  ;;  %vm3396_vm14 = vweird.f32 %v3375_v30 }
 0x569   : > { %6700 = vrcp.f32 %v10165_v25  ;;  %v3173_v11 = vadd.f32 %v3125_v58, %v3024_v19  ;;  %v3174_v22 = vadd.f32 %v3154_v28, %v3053_v62  ;;  %v3417_v3 = vand.u32 2147483648, %v10165_v25 }
 0x56a   : > { %6702 = vpow2.f32 %v5992_v45  ;;  %v3415_v12 = vand.u32 2147483647, %v10165_v25  ;;  %vm3411_vm1 = vweird.f32 %v10165_v25  ;;  %vm3401_vm4 = vcmp.eq.f32.partialorder %v3400_v44, 8.507059e+37 }
 0x56b   : > { %v10168_v46 = vadd.f32 %v3267_v8, %v3173_v11  ;;  %v10170_v40 = vadd.f32 %v3296_v23, %v3174_v22  ;;  %v3269_v35 = vpop.f32.mrf.mxu2  ;;  %v3298_v42 = vpop.f32.mrf.mxu3  ;;  %v3403_v10 = vor.u32 1.1754944e-38, %v3402_v14  ;;  %v3418_v18 = vor.u32 1.1754944e-38, %v3417_v3 }
 0x56c   : > { %vm3416_vm7 = vcmp.eq.f32.partialorder %v3415_v12, 8.507059e+37 }
 0x56d   : > { %v6697_v4 = vpop.eup %6696  ;;  %v5993_v34 = vmul.f32 -1.442695, %v10168_v46  ;;  %v5994_v51 = vmul.f32 -1.442695, %v10170_v40 }
 0x56e   : > { %v6699_v36 = vpop.eup %6698  ;;  %v10180_v47 = vadd.f32 1.0, %v6697_v4 }
 0x56f   : > { %v6701_v15 = vpop.eup %6700  ;;  %v3392_v63 = vmul.f32 %v6699_v36, %v3375_v30  ;;  %vm3397_vm13 = vweird.f32 %v6699_v36 }
 0x570   : > { %v6703_v53 = vpop.eup %6702  ;;  %v3407_v57 = vmul.f32 %v6701_v15, %v10165_v25  ;;  %6704 = vrcp.f32 %v10180_v47  ;;  %v3127_v1 = vpop.f32.mrf.mxu0  ;;  %vm3412_vm15 = vweird.f32 %v6701_v15  ;;  %vm3398_vm2 = vmor %vm3396_vm14, %vm3397_vm13  ;;  %v3430_v58 = vand.u32 2147483647, %v10180_v47 }
 0x571   : > { %v3156_v7 = vpop.f32.mrf.mxu1  ;;  %v3393_v54 = vsub.f32 1.0, %v3392_v63  ;;  %v10193_v13 = vadd.f32 1.0, %v6703_v53  ;;  %6706 = vpow2.f32 %v5993_v34  ;;  %v3175_v37 = vadd.f32 %v3127_v1, %v3026_v33  ;;  %vm3413_vm5 = vmor %vm3411_vm1, %vm3412_vm15 }
 0x572   : > { %v3408_v6 = vsub.f32 1.0, %v3407_v57  ;;  %v3176_v41 = vadd.f32 %v3156_v7, %v3055_v56  ;;  %v3432_v11 = vand.u32 2147483648, %v10180_v47  ;;  %v10220_v33 = vadd.f32 %v10139_v61, %v10141_v55  ;;  %v6956_v7 = vld [vmem:[%s7126_s16] sm:$0xff]  ;;  %v6957_v61 = vld [vmem:[%s7126_s16 + $0x8] sm:$0xff] }
 0x573   : > { %v3394_v59 = vmul.f32 %v6699_v36, %v3393_v54  ;;  %6708 = vrcp.f32 %v10193_v13  ;;  %v10200_v31 = vadd.f32 %v3269_v35, %v3175_v37  ;;  %vm3426_vm9 = vweird.f32 %v10180_v47 }
 0x574   : > { %v3409_v29 = vmul.f32 %v6701_v15, %v3408_v6  ;;  %6710 = vpow2.f32 %v5994_v51  ;;  %v10202_v27 = vadd.f32 %v3298_v42, %v3176_v41  ;;  %v3447_v63 = vand.u32 2147483648, %v10193_v13  ;;  %v3272_v42 = vpop.f32.mrf.mxu2 }
 0x575   : > { %v3395_v49 = vadd.f32 %v6699_v36, %v3394_v59  ;;  %v5995_v30 = vmul.f32 -1.442695, %v10200_v31  ;;  %v3445_v57 = vand.u32 2147483647, %v10193_v13  ;;  %vm3431_vm12 = vcmp.eq.f32.partialorder %v3430_v58, 8.507059e+37 }
 0x576   : > { %v6705_v52 = vpop.eup %6704  ;;  %v3410_v0 = vadd.f32 %v6701_v15, %v3409_v29  ;;  %v5996_v4 = vmul.f32 -1.442695, %v10202_v27  ;;  %vm3441_vm13 = vweird.f32 %v10193_v13  ;;  %v3448_v59 = vor.u32 1.1754944e-38, %v3447_v63 }
 0x577   : > { %v3399_v2 = vsel %vm3398_vm2, %v6699_v36, %v3395_v49  ;;  %v3422_v38 = vmul.f32 %v6705_v52, %v10180_v47  ;;  %v6707_v45 = vpop.eup %6706  ;;  %6712 = vpow2.f32 %v5995_v30  ;;  %vm3427_vm8 = vweird.f32 %v6705_v52 }
 0x578   : > { %v3404_v25 = vsel %vm3401_vm4, %v3403_v10, %v3399_v2  ;;  %v3414_v19 = vsel %vm3413_vm5, %v6701_v15, %v3410_v0  ;;  %v10209_v23 = vadd.f32 1.0, %v6707_v45  ;;  %v10216_v56 = vpop.f32.mrf.mxu0  ;;  %vm3428_vm10 = vmor %vm3426_vm9, %vm3427_vm8  ;;  %vm3446_vm15 = vcmp.eq.f32.partialorder %v3445_v57, 8.507059e+37  ;;  %v3301_v0 = vpop.f32.mrf.mxu3 }
 0x579   : > { %v6709_v28 = vpop.eup %6708  ;;  %v3419_v62 = vsel %vm3416_vm7, %v3418_v18, %v3414_v19  ;;  %v3423_v8 = vsub.f32 1.0, %v3422_v38  ;;  %v3631_v22 = vmul.f32 %v3404_v25, %v10153_v32  ;;  %v10224_v53 = vpop.f32.mrf.mxu1  ;;  %v6958_v18 = vld [vmem:[%s7126_s16 + $0x10] sm:$0xff]  ;;  %v3177_v57 = vadd.f32 %v10216_v56, %v10189_v5 }
 0x57a   : > { %v3437_v17 = vmul.f32 %v6709_v28, %v10193_v13  ;;  %v6711_v36 = vpop.eup %6710  ;;  %v3632_v34 = vmul.f32 %v3419_v62, %v10155_v16  ;;  %6714 = vrcp.f32 %v10209_v23  ;;  %v3433_v16 = vor.u32 1.1754944e-38, %v3432_v11 }
 0x57b   : > { %v3424_v15 = vmul.f32 %v6705_v52, %v3423_v8  ;;  %v10227_v1 = vadd.f32 1.0, %v6711_v36  ;;  %v10230_v54 = vadd.f32 %v6956_v7, %v3631_v22  ;;  %vm3442_vm11 = vweird.f32 %v6709_v28  ;;  %v6959_v36 = vld [vmem:[%s7126_s16 + $0x18] sm:$0xff] }
 0x57c   : > { %v3438_v32 = vsub.f32 1.0, %v3437_v17  ;;  %6716 = vpow2.f32 %v5996_v4  ;;  %v10233_v47 = vadd.f32 %v6957_v61, %v3632_v34  ;;  %v3460_v3 = vand.u32 2147483647, %v10209_v23  ;;  %vm3443_vm14 = vmor %vm3441_vm13, %vm3442_vm11 }
 0x57d   : > { %v3425_v44 = vadd.f32 %v6705_v52, %v3424_v15  ;;  %v6713_v6 = vpop.eup %6712  ;;  %v3462_v35 = vand.u32 2147483648, %v10209_v23  ;;  %6718 = vrcp.f32 %v10227_v1  ;;  %v6005_v13 = vmul.f32 -1.442695, %v10230_v54 }
 0x57e   : > { %v3439_v14 = vmul.f32 %v6709_v28, %v3438_v32  ;;  %v10240_v49 = vadd.f32 1.0, %v6713_v6  ;;  %v6006_v2 = vmul.f32 -1.442695, %v10233_v47  ;;  %v3475_v19 = vand.u32 2147483647, %v10227_v1 }
 0x57f   : > { %v3429_v51 = vsel %vm3428_vm10, %v6705_v52, %v3425_v44  ;;  %v3477_v58 = vand.u32 2147483648, %v10227_v1  ;;  %vm3456_vm1 = vweird.f32 %v10209_v23  ;;  %vm10255_vm2 = vcmp.eq.f32.partialorder %v3460_v3, 8.507059e+37 }
 0x580   : > { %v3434_v37 = vsel %vm3431_vm12, %v3433_v16, %v3429_v51  ;;  %v3440_v41 = vadd.f32 %v6709_v28, %v3439_v14  ;;  %v6715_v29 = vpop.eup %6714  ;;  %6720 = vrcp.f32 %v10240_v49  ;;  %v3463_v8 = vor.u32 1.1754944e-38, %v3462_v35  ;;  %v3132_v11 = vpop.f32.mrf.mxu0 }
 0x581   : > { %v3633_v12 = vmul.f32 %v3434_v37, %v10159_v50  ;;  %v3452_v10 = vmul.f32 %v6715_v29, %v10209_v23  ;;  %6722 = vpow2.f32 %v6005_v13  ;;  %vm3457_vm4 = vweird.f32 %v6715_v29  ;;  %v3161_v17 = vpop.f32.mrf.mxu1 }
 0x582   : > { %v3444_v52 = vsel %vm3443_vm14, %v6709_v28, %v3440_v41  ;;  %v6717_v30 = vpop.eup %6716  ;;  %v3031_v28 = vadd.f32 %v10149_v48, %v10141_v55  ;;  %6724 = vpow2.f32 %v6006_v2  ;;  %vm3471_vm5 = vweird.f32 %v10227_v1  ;;  %vm3458_vm8 = vmor %vm3456_vm1, %vm3457_vm4  ;;  %v3274_v41 = vpop.f32.mrf.mxu2 }
 0x583   : > { %v10246_v38 = vadd.f32 %v6958_v18, %v3633_v12  ;;  %v3449_v50 = vsel %vm3446_vm15, %v3448_v59, %v3444_v52  ;;  %v3453_v25 = vsub.f32 1.0, %v3452_v10  ;;  %v6719_v4 = vpop.eup %6718  ;;  %v10264_v55 = vadd.f32 1.0, %v6717_v30  ;;  %v3303_v59 = vpop.f32.mrf.mxu3  ;;  %v6960_v52 = vld [vmem:[%s7126_s16 + $0x20] sm:$0xff] }
 0x584   : > { %v3634_v45 = vmul.f32 %v3449_v50, %v10161_v20  ;;  %v3467_v15 = vmul.f32 %v6719_v4, %v10227_v1  ;;  %vm10267_vm7 = vcmp.eq.f32.partialorder %v3475_v19, 8.507059e+37  ;;  %v3478_v63 = vor.u32 1.1754944e-38, %v3477_v58 }
 0x585   : > { %v6007_v20 = vmul.f32 -1.442695, %v10246_v38  ;;  %v3454_v22 = vmul.f32 %v6715_v29, %v3453_v25  ;;  %vm3486_vm9 = vweird.f32 %v10240_v49  ;;  %v3490_v16 = vand.u32 2147483647, %v10240_v49 }
 0x586   : > { %v10261_v34 = vadd.f32 %v6959_v36, %v3634_v45  ;;  %v6721_v44 = vpop.eup %6720  ;;  %v3178_v7 = vadd.f32 %v10224_v53, %v10185_v43  ;;  %v3468_v61 = vsub.f32 1.0, %v3467_v15  ;;  %v3492_v37 = vand.u32 2147483648, %v10240_v49  ;;  %v6961_v15 = vld [vmem:[%s7126_s16 + $0x28] sm:$0xff] }
 0x587   : > { %v3455_v48 = vadd.f32 %v6715_v29, %v3454_v22  ;;  %6726 = vpow2.f32 %v6007_v20  ;;  %v3482_v51 = vmul.f32 %v6721_v44, %v10240_v49  ;;  %v6723_v5 = vpop.eup %6722  ;;  %vm3472_vm10 = vweird.f32 %v6719_v4 }
 0x588   : > { %v6008_v6 = vmul.f32 -1.442695, %v10261_v34  ;;  %6728 = vrcp.f32 %v10264_v55  ;;  %v3469_v43 = vmul.f32 %v6719_v4, %v3468_v61  ;;  %v6725_v3 = vpop.eup %6724  ;;  %v10288_v12 = vadd.f32 %v3301_v0, %v3178_v7  ;;  %vm3473_vm12 = vmor %vm3471_vm5, %vm3472_vm10 }
 0x589   : > { %v3459_v14 = vsel %vm3458_vm8, %v6715_v29, %v3455_v48  ;;  %v3483_v53 = vsub.f32 1.0, %v3482_v51  ;;  %v10286_v29 = vadd.f32 %v3272_v42, %v3177_v57  ;;  %v3179_v35 = vadd.f32 %v3132_v11, %v3031_v28  ;;  %v3164_v1 = vpop.f32.mrf.mxu1 }
 0x58a   : > { %v3464_v23 = vsel %vm10255_vm2, %v3463_v8, %v3459_v14  ;;  %v3180_v13 = vadd.f32 %v3161_v17, %v10220_v33  ;;  %v3470_v2 = vadd.f32 %v6719_v4, %v3469_v43  ;;  %vm3487_vm11 = vweird.f32 %v6721_v44  ;;  %v3135_v33 = vpop.f32.mrf.mxu0  ;;  %v6962_v43 = vld [vmem:[%s7126_s16 + $0x30] sm:$0xff] }
 0x58b   : > { %v3635_v56 = vmul.f32 %v3464_v23, %v10168_v46  ;;  %v3484_v18 = vmul.f32 %v6721_v44, %v3483_v53  ;;  %vm10296_vm13 = vcmp.eq.f32.partialorder %v3490_v16, 8.507059e+37  ;;  %v5997_v42 = vmul.f32 -1.442695, %v10286_v29  ;;  %vm3488_vm14 = vmor %vm3486_vm9, %vm3487_vm11  ;;  %v3277_v16 = vpop.f32.mrf.mxu2  ;;  %v3306_v51 = vpop.f32.mrf.mxu3 }
 0x58c   : > { %v10301_v0 = vadd.f32 %v3274_v41, %v3179_v35  ;;  %v10303_v50 = vadd.f32 %v3303_v59, %v3180_v13  ;;  %v3474_v25 = vsel %vm3473_vm12, %v6719_v4, %v3470_v2  ;;  %v5998_v58 = vmul.f32 -1.442695, %v10288_v12 }
 0x58d   : > { %v10292_v10 = vadd.f32 %v6960_v52, %v3635_v56  ;;  %v6727_v30 = vpop.eup %6726  ;;  %v3485_v19 = vadd.f32 %v6721_v44, %v3484_v18  ;;  %v3479_v62 = vsel %vm10267_vm7, %v3478_v63, %v3474_v25  ;;  %v3493_v8 = vor.u32 1.1754944e-38, %v3492_v37 }
 0x58e   : > { %v6729_v28 = vpop.eup %6728  ;;  %6730 = vpow2.f32 %v5997_v42  ;;  %v5999_v11 = vmul.f32 -1.442695, %v10301_v0  ;;  %v3636_v20 = vmul.f32 %v3479_v62, %v10170_v40  ;;  %v10315_v4 = vadd.f32 1.0, %v6723_v5 }
 0x58f   : > { %v6009_v45 = vmul.f32 -1.442695, %v10292_v10  ;;  %6732 = vpow2.f32 %v6008_v6  ;;  %v3489_v22 = vsel %vm3488_vm14, %v6721_v44, %v3485_v19  ;;  %v3497_v17 = vmul.f32 %v6729_v28, %v10264_v55 }
 0x590   : > { %v3494_v36 = vsel %vm10296_vm13, %v3493_v8, %v3489_v22  ;;  %v6000_v48 = vmul.f32 -1.442695, %v10303_v50  ;;  %v10320_v49 = vadd.f32 1.0, %v6725_v3  ;;  %v10323_v32 = vadd.f32 %v6961_v15, %v3636_v20 }
 0x591   : > { %6734 = vpow2.f32 %v6009_v45  ;;  %v3498_v63 = vsub.f32 1.0, %v3497_v17  ;;  %v3637_v40 = vmul.f32 %v3494_v36, %v10200_v31  ;;  %v3507_v44 = vand.u32 2147483648, %v10264_v55  ;;  %v3166_v13 = vpop.f32.mrf.mxu1 }
 0x592   : > { %6736 = vpow2.f32 %v5998_v58  ;;  %v3181_v57 = vadd.f32 %v3135_v33, %v10174_v21  ;;  %v6010_v7 = vmul.f32 -1.442695, %v10323_v32  ;;  %vm3502_vm15 = vweird.f32 %v6729_v28 }
 0x593   : > { %6738 = vpow2.f32 %v5999_v11  ;;  %v3499_v14 = vmul.f32 %v6729_v28, %v3498_v63  ;;  %v3505_v61 = vand.u32 2147483647, %v10264_v55  ;;  %v3063_v23 = vadd.f32 %v10145_v60, %v10147_v24  ;;  %v3279_v8 = vpop.f32.mrf.mxu2  ;;  %v3308_v17 = vpop.f32.mrf.mxu3 }
 0x594   : > { %v6731_v6 = vpop.eup %6730  ;;  %v10332_v37 = vadd.f32 1.0, %v6727_v30  ;;  %vm3501_vm1 = vweird.f32 %v10264_v55  ;;  %6740 = vpow2.f32 %v6000_v48  ;;  %v10338_v5 = vadd.f32 %v3277_v16, %v3181_v57  ;;  %v3137_v55 = vpop.f32.mrf.mxu0 }
 0x595   : > { %v6733_v31 = vpop.eup %6732  ;;  %6742 = vrcp.f32 %v10315_v4  ;;  %v3500_v21 = vadd.f32 %v6729_v28, %v3499_v14  ;;  %v10336_v41 = vadd.f32 1.0, %v6731_v6  ;;  %v10342_v53 = vadd.f32 %v6962_v43, %v3637_v40  ;;  %vm3503_vm2 = vmor %vm3501_vm1, %vm3502_vm15  ;;  %v6963_v40 = vld [vmem:[%s7126_s16 + $0x38] sm:$0xff] }
 0x596   : > { %6744 = vrcp.f32 %v10320_v49  ;;  %v3508_v60 = vor.u32 1.1754944e-38, %v3507_v44  ;;  %v3182_v24 = vadd.f32 %v3164_v1, %v3063_v23  ;;  %v3065_v3 = vadd.f32 %v10151_v39, %v10135_v26 }
 0x597   : > { %v6735_v56 = vpop.eup %6734  ;;  %6746 = vpow2.f32 %v6010_v7  ;;  %v3504_v35 = vsel %vm3503_vm2, %v6729_v28, %v3500_v21  ;;  %vm3506_vm4 = vcmp.eq.f32.partialorder %v3505_v61, 8.507059e+37  ;;  %v10348_v2 = vadd.f32 1.0, %v6733_v31 }
 0x598   : > { %v6737_v59 = vpop.eup %6736  ;;  %6748 = vrcp.f32 %v10332_v37  ;;  %v3509_v18 = vsel %vm3506_vm4, %v3508_v60, %v3504_v35  ;;  %v6001_v33 = vmul.f32 -1.442695, %v10338_v5  ;;  %v3183_v26 = vadd.f32 %v3137_v55, %v10178_v9 }
 0x599   : > { %v6739_v52 = vpop.eup %6738  ;;  %v10350_v46 = vadd.f32 1.0, %v6737_v59  ;;  %6750 = vrcp.f32 %v10336_v41  ;;  %v6011_v30 = vmul.f32 -1.442695, %v10342_v53  ;;  %v10359_v45 = vadd.f32 %v3306_v51, %v3182_v24 }
 0x59a   : > { %v10353_v42 = vadd.f32 1.0, %v6739_v52  ;;  %v6741_v39 = vpop.eup %6740  ;;  %v3184_v25 = vadd.f32 %v3166_v13, %v3065_v3  ;;  %v10363_v58 = vadd.f32 1.0, %v6735_v56  ;;  %v3638_v1 = vmul.f32 %v3509_v18, %v10202_v27 }
 0x59b   : > { %6752 = vrcp.f32 %v10350_v46  ;;  %v10361_v19 = vpop.eup %6742  ;;  %v3522_v28 = vand.u32 2147483648, %v10336_v41  ;;  %v3520_v9 = vand.u32 2147483647, %v10336_v41  ;;  %v3535_v20 = vand.u32 2147483647, %v10350_v46 }
 0x59c   : > { %6754 = vrcp.f32 %v10353_v42  ;;  %v10368_v62 = vpop.eup %6744  ;;  %v10373_v22 = vadd.f32 1.0, %v6741_v39  ;;  %v10375_v27 = vadd.f32 %v3279_v8, %v3183_v26  ;;  %vm3516_vm5 = vweird.f32 %v10336_v41 }
 0x59d   : > { %6756 = vrcp.f32 %v10348_v2  ;;  %v6747_v11 = vpop.eup %6746  ;;  %v6002_v48 = vmul.f32 -1.442695, %v10359_v45  ;;  %v10381_v15 = vadd.f32 %v3308_v17, %v3184_v25  ;;  %v10385_v44 = vadd.f32 %v6963_v40, %v3638_v1 }
 0x59e   : > { %6758 = vpow2.f32 %v6001_v33  ;;  %v10377_v36 = vpop.eup %6748  ;;  %v3523_v16 = vor.u32 1.1754944e-38, %v3522_v28  ;;  %v3537_v57 = vand.u32 2147483648, %v10350_v46  ;;  %v10388_v14 = vadd.f32 1.0, %v6747_v11 }
 0x59f   : > { %6760 = vpow2.f32 %v6011_v30  ;;  %v6751_v63 = vpop.eup %6750  ;;  %vm10391_vm7 = vcmp.eq.f32.partialorder %v3520_v9, 8.507059e+37  ;;  %vm3531_vm8 = vweird.f32 %v10350_v46  ;;  %vm3546_vm9 = vweird.f32 %v10353_v42 }
 0x5a0   : > { %6762 = vrcp.f32 %v10363_v58  ;;  %v3512_v61 = vmul.f32 %v6751_v63, %v10336_v41  ;;  %vm10398_vm10 = vcmp.eq.f32.partialorder %v3535_v20, 8.507059e+37  ;;  %v6003_v21 = vmul.f32 -1.442695, %v10375_v27 }
 0x5a1   : > { %v6753_v7 = vpop.eup %6752  ;;  %6764 = vrcp.f32 %v10373_v22  ;;  %v3550_v24 = vand.u32 2147483647, %v10353_v42  ;;  %v3552_v55 = vand.u32 2147483648, %v10353_v42  ;;  %v10410_v3 = vmul.f32 -1.442695, %v10385_v44 }
 0x5a2   : > { %v6755_v6 = vpop.eup %6754  ;;  %v3527_v23 = vmul.f32 %v6753_v7, %v10350_v46  ;;  %v3513_v43 = vsub.f32 1.0, %v3512_v61  ;;  %v3538_v13 = vor.u32 1.1754944e-38, %v3537_v57  ;;  %6766 = vpow2.f32 %v6002_v48 }
 0x5a3   : > { %v10404_v56 = vpop.eup %6756  ;;  %v3542_v60 = vmul.f32 %v6755_v6, %v10353_v42  ;;  %vm3517_vm11 = vweird.f32 %v6751_v63  ;;  %vm3532_vm12 = vweird.f32 %v6753_v7  ;;  %6768 = vpow2.f32 %v6003_v21 }
 0x5a4   : > { %v6759_v59 = vpop.eup %6758  ;;  %v3528_v35 = vsub.f32 1.0, %v3527_v23  ;;  %v3514_v18 = vmul.f32 %v6751_v63, %v3513_v43  ;;  %v6004_v25 = vmul.f32 -1.442695, %v10381_v15  ;;  %vm3547_vm13 = vweird.f32 %v6755_v6  ;;  %vm3518_vm14 = vmor %vm3516_vm5, %vm3517_vm11 }
 0x5a5   : > { %v10412_v52 = vpop.eup %6760  ;;  %v3543_v33 = vsub.f32 1.0, %v3542_v60  ;;  %v10414_v26 = vadd.f32 1.0, %v6759_v59  ;;  %vm10423_vm15 = vcmp.eq.f32.partialorder %v3550_v24, 8.507059e+37  ;;  %v3553_v20 = vor.u32 1.1754944e-38, %v3552_v55  ;;  %vm3533_vm1 = vmor %vm3531_vm8, %vm3532_vm12  ;;  %v6964_v55 = vld [vmem:[%s7126_s16 + $0x40] sm:$0xff] }
 0x5a6   : > { %v10416_v39 = vpop.eup %6762  ;;  %v3529_v30 = vmul.f32 %v6753_v7, %v3528_v35  ;;  %v3515_v1 = vadd.f32 %v6751_v63, %v3514_v18  ;;  %v3565_v57 = vand.u32 2147483647, %v10373_v22  ;;  %vm3548_vm2 = vmor %vm3546_vm9, %vm3547_vm13  ;;  %vm3561_vm4 = vweird.f32 %v10373_v22  ;;  %v6965_v35 = vld [vmem:[%s7126_s16 + $0x48] sm:$0xff] }
 0x5a7   : > { %v3544_v28 = vmul.f32 %v6755_v6, %v3543_v33  ;;  %6770 = vrcp.f32 %v10414_v26  ;;  %v6765_v9 = vpop.eup %6764 }
 0x5a8   : > { %6772 = vrcp.f32 %v10388_v14  ;;  %v3530_v8 = vadd.f32 %v6753_v7, %v3529_v30  ;;  %v3519_v17 = vsel %vm3518_vm14, %v6751_v63, %v3515_v1  ;;  %v3557_v40 = vmul.f32 %v6765_v9, %v10373_v22  ;;  %v6767_v61 = vpop.eup %6766  ;;  %v6966_v30 = vld [vmem:[%s7126_s16 + $0x50] sm:$0xff] }
 0x5a9   : > { %v3545_v48 = vadd.f32 %v6755_v6, %v3544_v28  ;;  %v3524_v41 = vsel %vm10391_vm7, %v3523_v16, %v3519_v17  ;;  %v3567_v63 = vand.u32 2147483648, %v10373_v22  ;;  %6774 = vpow2.f32 %v6004_v25  ;;  %v6769_v24 = vpop.eup %6768 }
 0x5aa   : > { %v3534_v23 = vsel %vm3533_vm1, %v6753_v7, %v3530_v8  ;;  %v3639_v46 = vmul.f32 %v3524_v41, %v10286_v29  ;;  %v3558_v60 = vsub.f32 1.0, %v3557_v40  ;;  %v10444_v42 = vadd.f32 1.0, %v6767_v61 }
 0x5ab   : > { %v3539_v21 = vsel %vm10398_vm10, %v3538_v13, %v3534_v23  ;;  %v3549_v43 = vsel %vm3548_vm2, %v6755_v6, %v3545_v48  ;;  %vm3562_vm5 = vweird.f32 %v6765_v9  ;;  %vm10455_vm7 = vcmp.eq.f32.partialorder %v3565_v57, 8.507059e+37 }
 0x5ac   : > { %v3640_v51 = vmul.f32 %v3539_v21, %v10288_v12  ;;  %v3554_v16 = vsel %vm10423_vm15, %v3553_v20, %v3549_v43  ;;  %v10447_v29 = vadd.f32 %v6964_v55, %v3639_v46  ;;  %v3559_v59 = vmul.f32 %v6765_v9, %v3558_v60  ;;  %vm3563_vm8 = vmor %vm3561_vm4, %vm3562_vm5  ;;  %v6967_v21 = vld [vmem:[%s7126_s16 + $0x58] sm:$0xff] }
 0x5ad   : > { %v6771_v7 = vpop.eup %6770  ;;  %v3641_v31 = vmul.f32 %v3554_v16, %v10301_v0  ;;  %6776 = vrcp.f32 %v10444_v42  ;;  %v3568_v1 = vor.u32 1.1754944e-38, %v3567_v63  ;;  %v3580_v20 = vand.u32 2147483647, %v10414_v26 }
 0x5ae   : > { %v10450_v6 = vpop.eup %6772  ;;  %v10453_v12 = vadd.f32 %v6965_v35, %v3640_v51  ;;  %v3572_v18 = vmul.f32 %v6771_v7, %v10414_v26  ;;  %v6013_v33 = vmul.f32 -1.442695, %v10447_v29  ;;  %v3560_v0 = vadd.f32 %v6765_v9, %v3559_v59 }
 0x5af   : > { %v10463_v25 = vadd.f32 %v6966_v30, %v3641_v31  ;;  %v6775_v28 = vpop.eup %6774  ;;  %v10469_v17 = vadd.f32 1.0, %v6769_v24  ;;  %v3582_v57 = vand.u32 2147483648, %v10414_v26  ;;  %vm3577_vm9 = vweird.f32 %v6771_v7 }
 0x5b0   : > { %v6014_v8 = vmul.f32 -1.442695, %v10453_v12  ;;  %v3573_v11 = vsub.f32 1.0, %v3572_v18  ;;  %6778 = vpow2.f32 %v6013_v33  ;;  %v3564_v40 = vsel %vm3563_vm8, %v6765_v9, %v3560_v0  ;;  %v6968_v0 = vld [vmem:[%s7126_s16 + $0x60] sm:$0xff] }
 0x5b1   : > { %v6015_v48 = vmul.f32 -1.442695, %v10463_v25  ;;  %v3569_v61 = vsel %vm10455_vm7, %v3568_v1, %v3564_v40  ;;  %v10476_v22 = vadd.f32 1.0, %v10412_v52  ;;  %vm3576_vm10 = vweird.f32 %v10414_v26 }
 0x5b2   : > { %6780 = vpow2.f32 %v6014_v8  ;;  %v3574_v41 = vmul.f32 %v6771_v7, %v3573_v11  ;;  %v3642_v23 = vmul.f32 %v3569_v61, %v10303_v50  ;;  %v10481_v9 = vadd.f32 1.0, %v6775_v28  ;;  %vm3578_vm11 = vmor %vm3576_vm10, %vm3577_vm9 }
 0x5b3   : > { %6782 = vpow2.f32 %v6015_v48  ;;  %v6777_v63 = vpop.eup %6776  ;;  %v3583_v60 = vor.u32 1.1754944e-38, %v3582_v57  ;;  %vm3581_vm12 = vcmp.eq.f32.partialorder %v3580_v20, 8.507059e+37  ;;  %v3595_v59 = vand.u32 2147483647, %v10444_v42 }
 0x5b4   : > { %v3575_v46 = vadd.f32 %v6771_v7, %v3574_v41  ;;  %6784 = vrcp.f32 %v10469_v17  ;;  %v10485_v43 = vadd.f32 %v6967_v21, %v3642_v23  ;;  %v3587_v52 = vmul.f32 %v6777_v63, %v10444_v42 }
 0x5b5   : > { %6786 = vpow2.f32 %v10410_v3  ;;  %vm3592_vm13 = vweird.f32 %v6777_v63  ;;  %vm3591_vm14 = vweird.f32 %v10444_v42  ;;  %vm3606_vm15 = vweird.f32 %v10469_v17 }
 0x5b6   : > { %v3579_v24 = vsel %vm3578_vm11, %v6771_v7, %v3575_v46  ;;  %6788 = vrcp.f32 %v10481_v9  ;;  %v6779_v50 = vpop.eup %6778  ;;  %v6016_v26 = vmul.f32 -1.442695, %v10485_v43  ;;  %v3588_v16 = vsub.f32 1.0, %v3587_v52  ;;  %vm3593_vm1 = vmor %vm3591_vm14, %vm3592_vm13 }
 0x5b7   : > { %6790 = vrcp.f32 %v10476_v22  ;;  %v3584_v51 = vsel %vm3581_vm12, %v3583_v60, %v3579_v24  ;;  %v10491_v55 = vadd.f32 1.0, %v6779_v50  ;;  %v3597_v7 = vand.u32 2147483648, %v10444_v42 }
 0x5b8   : > { %v6781_v3 = vpop.eup %6780  ;;  %v3643_v31 = vmul.f32 %v3584_v51, %v10338_v5  ;;  %6792 = vpow2.f32 %v6016_v26  ;;  %v3589_v18 = vmul.f32 %v6777_v63, %v3588_v16  ;;  %vm3596_vm2 = vcmp.eq.f32.partialorder %v3595_v59, 8.507059e+37 }
 0x5b9   : > { %v6783_v35 = vpop.eup %6782  ;;  %v10496_v13 = vadd.f32 1.0, %v6781_v3  ;;  %6794 = vrcp.f32 %v10491_v55  ;;  %v3598_v48 = vor.u32 1.1754944e-38, %v3597_v7  ;;  %v3610_v40 = vand.u32 2147483647, %v10469_v17 }
 0x5ba   : > { %v6785_v33 = vpop.eup %6784  ;;  %v10499_v30 = vadd.f32 1.0, %v6783_v35  ;;  %v10502_v1 = vadd.f32 %v6968_v0, %v3643_v31  ;;  %v3590_v28 = vadd.f32 %v6777_v63, %v3589_v18  ;;  %v3612_v46 = vand.u32 2147483648, %v10469_v17  ;;  %v6969_v31 = vld [vmem:[%s7126_s16 + $0x68] sm:$0xff] }
 0x5bb   : > { %v10505_v5 = vpop.eup %6786  ;;  %6796 = vrcp.f32 %v10496_v13  ;;  %v3602_v8 = vmul.f32 %v6785_v33, %v10469_v17  ;;  %v3625_v21 = vand.u32 2147483647, %v10481_v9  ;;  %vm3607_vm4 = vweird.f32 %v6785_v33 }
 0x5bc   : > { %v6789_v11 = vpop.eup %6788  ;;  %v6017_v20 = vmul.f32 -1.442695, %v10502_v1  ;;  %6798 = vrcp.f32 %v10499_v30  ;;  %v3594_v42 = vsel %vm3593_vm1, %v6777_v63, %v3590_v28  ;;  %vm10523_vm5 = vcmp.eq.f32.partialorder %v3610_v40, 8.507059e+37  ;;  %vm3608_vm8 = vmor %vm3606_vm15, %vm3607_vm4 }
 0x5bd   : > { %v10512_v57 = vpop.eup %6790  ;;  %v3603_v61 = vsub.f32 1.0, %v3602_v8  ;;  %v3617_v41 = vmul.f32 %v6789_v11, %v10481_v9  ;;  %v3599_v23 = vsel %vm3596_vm2, %v3598_v48, %v3594_v42  ;;  %vm3622_vm7 = vweird.f32 %v6789_v11 }
 0x5be   : > { %6800 = vpow2.f32 %v6017_v20  ;;  %v6793_v60 = vpop.eup %6792  ;;  %v3644_v52 = vmul.f32 %v3599_v23, %v10359_v45  ;;  %v3627_v16 = vand.u32 2147483648, %v10481_v9  ;;  %v3613_v18 = vor.u32 1.1754944e-38, %v3612_v46 }
 0x5bf   : > { %v3604_v24 = vmul.f32 %v6785_v33, %v3603_v61  ;;  %v3618_v50 = vsub.f32 1.0, %v3617_v41  ;;  %v10519_v26 = vpop.eup %6794  ;;  %v10521_v51 = vadd.f32 1.0, %v6793_v60  ;;  %vm3621_vm9 = vweird.f32 %v10481_v9 }
 0x5c0   : > { %v10531_v59 = vadd.f32 %v6969_v31, %v3644_v52  ;;  %v3848_v35 = vmul.f32 %v10519_v26, %v10491_v55  ;;  %vm10538_vm10 = vcmp.eq.f32.partialorder %v3625_v21, 8.507059e+37  ;;  %vm3623_vm11 = vmor %vm3621_vm9, %vm3622_vm7  ;;  %v3628_v61 = vor.u32 1.1754944e-38, %v3627_v16 }
 0x5c1   : > { %v10528_v3 = vpop.eup %6796  ;;  %v3605_v45 = vadd.f32 %v6785_v33, %v3604_v24  ;;  %v3619_v7 = vmul.f32 %v6789_v11, %v3618_v50  ;;  %6802 = vrcp.f32 %v10521_v51  ;;  %v6970_v50 = vld [vmem:[%s7126_s16 + $0x70] sm:$0xff]  ;;  %vm3852_vm12 = vweird.f32 %v10491_v55 }
 0x5c2   : > { %v3863_v28 = vmul.f32 %v10528_v3, %v10496_v13  ;;  %v10544_v8 = vpop.eup %6798  ;;  %v6018_v20 = vmul.f32 -1.442695, %v10531_v59  ;;  %v3849_v42 = vsub.f32 1.0, %v3848_v35  ;;  %v10572_v31 = vmul.f32 %v10416_v39, %v10363_v58 }
 0x5c3   : > { %v3609_v48 = vsel %vm3608_vm8, %v6785_v33, %v3605_v45  ;;  %v3620_v40 = vadd.f32 %v6789_v11, %v3619_v7  ;;  %v3878_v24 = vmul.f32 %v10544_v8, %v10499_v30  ;;  %v6971_v7 = vld [vmem:[%s7126_s16 + $0x78] sm:$0xff]  ;;  %vm3853_vm13 = vweird.f32 %v10519_v26 }
 0x5c4   : > { %v6801_v17 = vpop.eup %6800  ;;  %v3614_v9 = vsel %vm10523_vm5, %v3613_v18, %v3609_v48  ;;  %v3864_v41 = vsub.f32 1.0, %v3863_v28  ;;  %6804 = vpow2.f32 %v6018_v20  ;;  %v3850_v60 = vmul.f32 %v10519_v26, %v3849_v42  ;;  %vm10593_vm15 = vmor %vm3852_vm12, %vm3853_vm13 }
 0x5c5   : > { %v10551_v23 = vadd.f32 1.0, %v6801_v17  ;;  %v3645_v46 = vmul.f32 %v3614_v9, %v10375_v27  ;;  %v3624_v33 = vsel %vm3623_vm11, %v6789_v11, %v3620_v40  ;;  %v10566_v27 = vadd.f32 1.0, %v10505_v5 }
 0x5c6   : > { %v3629_v21 = vsel %vm10538_vm10, %v3628_v61, %v3624_v33  ;;  %v3865_v52 = vmul.f32 %v10528_v3, %v3864_v41  ;;  %v3856_v11 = vand.u32 2147483647, %v10491_v55  ;;  %v3879_v18 = vsub.f32 1.0, %v3878_v24 }
 0x5c7   : > { %6806 = vrcp.f32 %v10551_v23  ;;  %v10562_v63 = vadd.f32 %v6970_v50, %v3645_v46  ;;  %v3646_v16 = vmul.f32 %v3629_v21, %v10381_v15  ;;  %v10579_v15 = vpop.eup %6802  ;;  %v3851_v5 = vadd.f32 %v10519_v26, %v3850_v60 }
 0x5c8   : > { %v3858_v0 = vand.u32 2147483648, %v10491_v55  ;;  %v3866_v28 = vadd.f32 %v10528_v3, %v3865_v52  ;;  %vm3868_vm14 = vweird.f32 %v10528_v3  ;;  %v3871_v40 = vand.u32 2147483647, %v10496_v13 }
 0x5c9   : > { %v6019_v45 = vmul.f32 -1.442695, %v10562_v63  ;;  %v10576_v35 = vadd.f32 %v6971_v7, %v3646_v16  ;;  %v3873_v42 = vand.u32 2147483648, %v10496_v13  ;;  %vm3867_vm1 = vweird.f32 %v10496_v13 }
 0x5ca   : > { %v6805_v20 = vpop.eup %6804  ;;  %v3789_v61 = vsub.f32 1.0, %v10572_v31  ;;  %v3916_v46 = vand.u32 2147483647, %v10551_v23  ;;  %vm10602_vm2 = vcmp.eq.f32.partialorder %v3856_v11, 8.507059e+37  ;;  %vm10608_vm4 = vmor %vm3867_vm1, %vm3868_vm14  ;;  %v3880_v21 = vmul.f32 %v10544_v8, %v3879_v18 }
 0x5cb   : > { %6808 = vpow2.f32 %v6019_v45  ;;  %v6020_v48 = vmul.f32 -1.442695, %v10576_v35  ;;  %v10589_v17 = vadd.f32 1.0, %v6805_v20  ;;  %v3855_v60 = vsel %vm10593_vm15, %v10519_v26, %v3851_v5 }
 0x5cc   : > { %6810 = vrcp.f32 %v10566_v27  ;;  %v3870_v52 = vsel %vm10608_vm4, %v10528_v3, %v3866_v28  ;;  %v3918_v24 = vand.u32 2147483648, %v10551_v23  ;;  %v3859_v50 = vor.u32 1.1754944e-38, %v3858_v0 }
 0x5cd   : > { %v10599_v41 = vpop.eup %6806  ;;  %6812 = vpow2.f32 %v6020_v48  ;;  %vm3872_vm5 = vcmp.eq.f32.partialorder %v3871_v40, 8.507059e+37  ;;  %v3874_v16 = vor.u32 1.1754944e-38, %v3873_v42  ;;  %vm3912_vm7 = vweird.f32 %v10551_v23 }
 0x5ce   : > { %6814 = vrcp.f32 %v10589_v17  ;;  %v3908_v13 = vmul.f32 %v10599_v41, %v10551_v23  ;;  %vm3882_vm8 = vweird.f32 %v10499_v30  ;;  %v3893_v45 = vmul.f32 %v10579_v15, %v10521_v51 }
 0x5cf   : > { %vm10627_vm9 = vcmp.eq.f32.partialorder %v3916_v46, 8.507059e+37  ;;  %v3860_v3 = vsel %vm10602_vm2, %v3859_v50, %v3855_v60  ;;  %v3875_v18 = vsel %vm3872_vm5, %v3874_v16, %v3870_v52  ;;  %v3881_v5 = vadd.f32 %v10544_v8, %v3880_v21 }
 0x5d0   : > { %v3909_v11 = vsub.f32 1.0, %v3908_v13  ;;  %vm3883_vm10 = vweird.f32 %v10544_v8  ;;  %v3886_v48 = vand.u32 2147483647, %v10499_v30  ;;  %v3888_v40 = vand.u32 2147483648, %v10499_v30 }
 0x5d1   : > { %v6809_v7 = vpop.eup %6808  ;;  %vm3913_vm11 = vweird.f32 %v10599_v41  ;;  %v3919_v9 = vor.u32 1.1754944e-38, %v3918_v24  ;;  %v3931_v46 = vand.u32 2147483647, %v10589_v17  ;;  %v3933_v33 = vand.u32 2147483648, %v10589_v17  ;;  %vm10653_vm12 = vmor %vm3882_vm8, %vm3883_vm10 }
 0x5d2   : > { %v10635_v0 = vpop.eup %6810  ;;  %v10637_v28 = vadd.f32 1.0, %v6809_v7  ;;  %v3910_v20 = vmul.f32 %v10599_v41, %v3909_v11  ;;  %v3894_v52 = vsub.f32 1.0, %v3893_v45  ;;  %v10659_v50 = vmul.f32 %v3860_v3, %v10447_v29  ;;  %vm10672_vm13 = vmor %vm3912_vm7, %vm3913_vm11 }
 0x5d3   : > { %v6813_v42 = vpop.eup %6812  ;;  %v10662_v16 = vmul.f32 %v3875_v18, %v10453_v12  ;;  %v3885_v11 = vsel %vm10653_vm12, %v10544_v8, %v3881_v5  ;;  %vm3927_vm14 = vweird.f32 %v10589_v17  ;;  %vm3887_vm15 = vcmp.eq.f32.partialorder %v3886_v48, 8.507059e+37 }
 0x5d4   : > { %v6815_v55 = vpop.eup %6814  ;;  %6816 = vrcp.f32 %v10637_v28  ;;  %v10646_v21 = vadd.f32 1.0, %v6813_v42  ;;  %v3911_v13 = vadd.f32 %v10599_v41, %v3910_v20  ;;  %v3889_v29 = vor.u32 1.1754944e-38, %v3888_v40 }
 0x5d5   : > { %v3923_v24 = vmul.f32 %v6815_v55, %v10589_v17  ;;  %vm10680_vm1 = vcmp.eq.f32.partialorder %v3931_v46, 8.507059e+37  ;;  %v3934_v7 = vor.u32 1.1754944e-38, %v3933_v33  ;;  %v3946_v23 = vand.u32 2147483647, %v10637_v28 }
 0x5d6   : > { %6818 = vrcp.f32 %v10646_v21  ;;  %v3915_v12 = vsel %vm10672_vm13, %v10599_v41, %v3911_v13  ;;  %v3948_v3 = vand.u32 2147483648, %v10637_v28  ;;  %v3890_v18 = vsel %vm3887_vm15, %v3889_v29, %v3885_v11 }
 0x5d7   : > { %v3924_v45 = vsub.f32 1.0, %v3923_v24  ;;  %v3895_v5 = vmul.f32 %v10579_v15, %v3894_v52  ;;  %vm3928_vm2 = vweird.f32 %v6815_v55  ;;  %vm3897_vm4 = vweird.f32 %v10521_v51 }
 0x5d8   : > { %vm3898_vm5 = vweird.f32 %v10579_v15  ;;  %v3920_v48 = vsel %vm10627_vm9, %v3919_v9, %v3915_v12  ;;  %v3961_v40 = vand.u32 2147483647, %v10646_v21  ;;  %v3901_v42 = vand.u32 2147483647, %v10521_v51  ;;  %vm3929_vm7 = vmor %vm3927_vm14, %vm3928_vm2 }
 0x5d9   : > { %v3925_v20 = vmul.f32 %v6815_v55, %v3924_v45  ;;  %v3903_v46 = vand.u32 2147483648, %v10521_v51  ;;  %v3896_v60 = vadd.f32 %v10579_v15, %v3895_v5  ;;  %v10697_v52 = vmul.f32 %v3890_v18, %v10463_v25  ;;  %vm10721_vm13 = vmor %vm3897_vm4, %vm3898_vm5 }
 0x5da   : > { %v6817_v41 = vpop.eup %6816  ;;  %vm3942_vm8 = vweird.f32 %v10637_v28  ;;  %vm10702_vm9 = vcmp.eq.f32.partialorder %v3946_v23, 8.507059e+37  ;;  %v3949_v9 = vor.u32 1.1754944e-38, %v3948_v3  ;;  %vm3957_vm10 = vweird.f32 %v10646_v21 }
 0x5db   : > { %v3926_v33 = vadd.f32 %v6815_v55, %v3925_v20  ;;  %v3938_v13 = vmul.f32 %v6817_v41, %v10637_v28  ;;  %v10708_v30 = vmul.f32 %v3920_v48, %v10502_v1  ;;  %vm3943_vm11 = vweird.f32 %v6817_v41 }
 0x5dc   : > { %v6819_v24 = vpop.eup %6818  ;;  %vm10713_vm12 = vcmp.eq.f32.partialorder %v3961_v40, 8.507059e+37  ;;  %v3790_v1 = vmul.f32 %v10416_v39, %v3789_v61  ;;  %v3900_v23 = vsel %vm10721_vm13, %v10579_v15, %v3896_v60  ;;  %v3963_v3 = vand.u32 2147483648, %v10646_v21 }
 0x5dd   : > { %v3930_v11 = vsel %vm3929_vm7, %v6815_v55, %v3926_v33  ;;  %v3939_v29 = vsub.f32 1.0, %v3938_v13  ;;  %v3953_v25 = vmul.f32 %v6819_v24, %v10646_v21  ;;  %vm3902_vm14 = vcmp.eq.f32.partialorder %v3901_v42, 8.507059e+37 }
 0x5de   : > { %v3935_v17 = vsel %vm10680_vm1, %v3934_v7, %v3930_v11  ;;  %v3904_v51 = vor.u32 1.1754944e-38, %v3903_v46  ;;  %v3803_v18 = vmul.f32 %v10450_v6, %v10388_v14  ;;  %vm3958_vm15 = vweird.f32 %v6819_v24  ;;  %vm3944_vm1 = vmor %vm3942_vm8, %vm3943_vm11 }
 0x5df   : > { %v10729_v45 = vmul.f32 %v3935_v17, %v10531_v59  ;;  %v3940_v8 = vmul.f32 %v6817_v41, %v3939_v29  ;;  %v3954_v7 = vsub.f32 1.0, %v3953_v25  ;;  %v3791_v15 = vadd.f32 %v10416_v39, %v3790_v1  ;;  %vm3959_vm4 = vmor %vm3957_vm10, %vm3958_vm15 }
 0x5e0   : > { %v3905_v59 = vsel %vm3902_vm14, %v3904_v51, %v3900_v23  ;;  %vm3793_vm2 = vweird.f32 %v10416_v39  ;;  %v3804_v20 = vsub.f32 1.0, %v3803_v18  ;;  %v3796_v42 = vand.u32 2147483647, %v10363_v58 }
 0x5e1   : > { %v4001_v31 = vadd.f32 %v10729_v45, %v10708_v30  ;;  %v3941_v61 = vadd.f32 %v6817_v41, %v3940_v8  ;;  %v3955_v5 = vmul.f32 %v6819_v24, %v3954_v7  ;;  %v3798_v46 = vand.u32 2147483648, %v10363_v58 }
 0x5e2   : > { %v3964_v28 = vor.u32 1.1754944e-38, %v3963_v3  ;;  %vm3792_vm5 = vweird.f32 %v10363_v58  ;;  %v3758_v13 = vmul.f32 %v10377_v36, %v10332_v37  ;;  %v10757_v11 = vmul.f32 %v3905_v59, %v10485_v43 }
 0x5e3   : > { %4002 = vadd.xlane.f32.xlu0 %v4001_v31  ;;  %v3945_v48 = vsel %vm3944_vm1, %v6817_v41, %v3941_v61  ;;  %v3956_v40 = vadd.f32 %v6819_v24, %v3955_v5  ;;  %v3805_v29 = vmul.f32 %v10450_v6, %v3804_v20  ;;  %v3995_v21 = vadd.f32 %v10662_v16, %v10659_v50  ;;  %vm10768_vm7 = vmor %vm3792_vm5, %vm3793_vm2 }
 0x5e4   : > { %v3950_v33 = vsel %vm10702_vm9, %v3949_v9, %v3945_v48  ;;  %v4034_v58 = vmax.f32 %v10659_v50, %v10662_v16  ;;  %v3795_v9 = vsel %vm10768_vm7, %v10416_v39, %v3791_v15  ;;  %vm10778_vm8 = vcmp.eq.f32.partialorder %v3796_v42, 8.507059e+37 }
 0x5e5   : > { %v3960_v60 = vsel %vm3959_vm4, %v6819_v24, %v3956_v40  ;;  %v10754_v41 = vmul.f32 %v3950_v33, %v10562_v63  ;;  %v3759_v63 = vsub.f32 1.0, %v3758_v13  ;;  %v3799_v17 = vor.u32 1.1754944e-38, %v3798_v46 }
 0x5e6   : > { %v3965_v26 = vsel %vm10713_vm12, %v3964_v28, %v3960_v60  ;;  %vm3807_vm9 = vweird.f32 %v10388_v14  ;;  %vm3808_vm10 = vweird.f32 %v10450_v6  ;;  %v3773_v55 = vmul.f32 %v10404_v56, %v10348_v2 }
 0x5e7   : > { %v10773_v43 = vmul.f32 %v3965_v26, %v10576_v35  ;;  %v3760_v12 = vmul.f32 %v10377_v36, %v3759_v63  ;;  %v4037_v1 = vmax.f32 %v10697_v52, %v10757_v11  ;;  %v3806_v8 = vadd.f32 %v10450_v6, %v3805_v29  ;;  %vm10807_vm12 = vmor %vm3807_vm9, %vm3808_vm10 }
 0x5e8   : > { %v3998_v7 = vadd.f32 %v10757_v11, %v10697_v52  ;;  %vm3763_vm11 = vweird.f32 %v10377_v36  ;;  %v3774_v3 = vsub.f32 1.0, %v3773_v55  ;;  %v3811_v51 = vand.u32 2147483647, %v10388_v14 }
 0x5e9   : > { %v4043_v35 = vmax.f32 %v10754_v41, %v10773_v43  ;;  %v4004_v39 = vadd.f32 %v10773_v43, %v10754_v41  ;;  %v3761_v23 = vadd.f32 %v10377_v36, %v3760_v12  ;;  %v3813_v18 = vand.u32 2147483648, %v10388_v14 }
 0x5ea   : > { %v3768_v31 = vand.u32 2147483648, %v10332_v37  ;;  %v3818_v61 = vmul.f32 %v10512_v57, %v10476_v22  ;;  %vm3762_vm13 = vweird.f32 %v10332_v37  ;;  %v3766_v59 = vand.u32 2147483647, %v10332_v37 }
 0x5eb   : > { %4044 = vmax.xlane.f32.xlu1 %v4043_v35  ;;  %4005 = vadd.xlane.f32.xlu2 %v4004_v39  ;;  %v3775_v15 = vmul.f32 %v10404_v56, %v3774_v3  ;;  %vm3778_vm14 = vweird.f32 %v10404_v56  ;;  %v3800_v20 = vsel %vm10778_vm8, %v3799_v17, %v3795_v9  ;;  %v3810_v48 = vsel %vm10807_vm12, %v10450_v6, %v3806_v8  ;;  %vm10822_vm15 = vmor %vm3762_vm13, %vm3763_vm11 }
 0x5ec   : > { %3996 = vadd.xlane.f32.xlu0 %v3995_v21  ;;  %v3783_v40 = vand.u32 2147483648, %v10348_v2  ;;  %v3819_v37 = vsub.f32 1.0, %v3818_v61  ;;  %v3765_v42 = vsel %vm10822_vm15, %v10377_v36, %v3761_v23  ;;  %vm3777_vm1 = vweird.f32 %v10348_v2 }
 0x5ed   : > { %v3776_v46 = vadd.f32 %v10404_v56, %v3775_v15  ;;  %v3781_v33 = vand.u32 2147483647, %v10348_v2  ;;  %v3814_v6 = vor.u32 1.1754944e-38, %v3813_v18  ;;  %v3769_v28 = vor.u32 1.1754944e-38, %v3768_v31  ;;  %vm10833_vm2 = vmor %vm3777_vm1, %vm3778_vm14 }
 0x5ee   : > { %v3820_v60 = vmul.f32 %v10512_v57, %v3819_v37  ;;  %v3833_v29 = vmul.f32 %v10635_v0, %v10566_v27  ;;  %vm3812_vm4 = vcmp.eq.f32.partialorder %v3811_v51, 8.507059e+37  ;;  %v10841_v36 = vmul.f32 %v3800_v20, %v10292_v10 }
 0x5ef   : > { %vm3767_vm5 = vcmp.eq.f32.partialorder %v3766_v59, 8.507059e+37  ;;  %v3780_v2 = vsel %vm10833_vm2, %v10404_v56, %v3776_v46  ;;  %v3815_v26 = vsel %vm3812_vm4, %v3814_v6, %v3810_v48  ;;  %v3784_v24 = vor.u32 1.1754944e-38, %v3783_v40 }
 0x5f0   : > { %v3770_v21 = vsel %vm3767_vm5, %v3769_v28, %v3765_v42  ;;  %v3834_v63 = vsub.f32 1.0, %v3833_v29  ;;  %vm3782_vm7 = vcmp.eq.f32.partialorder %v3781_v33, 8.507059e+37  ;;  %v3821_v9 = vadd.f32 %v10512_v57, %v3820_v60 }
 0x5f1   : > { %vm3823_vm8 = vweird.f32 %v10512_v57  ;;  %v3828_v25 = vand.u32 2147483648, %v10476_v22  ;;  %v3785_v10 = vsel %vm3782_vm7, %v3784_v24, %v3780_v2  ;;  %vm3838_vm9 = vweird.f32 %v10635_v0 }
 0x5f2   : > { %v3835_v17 = vmul.f32 %v10635_v0, %v3834_v63  ;;  %v3728_v56 = vmul.f32 %v10361_v19, %v10315_v4  ;;  %v10857_v12 = vmul.f32 %v3815_v26, %v10323_v32  ;;  %vm3822_vm10 = vweird.f32 %v10476_v22 }
 0x5f3   : > { %4038 = vmax.xlane.f32.xlu1 %v4037_v1  ;;  %3999 = vadd.xlane.f32.xlu2 %v3998_v7  ;;  %v3826_v55 = vand.u32 2147483647, %v10476_v22  ;;  %v3843_v35 = vand.u32 2147483648, %v10566_v27  ;;  %vm10862_vm11 = vmor %vm3822_vm10, %vm3823_vm8  ;;  %vm3837_vm12 = vweird.f32 %v10566_v27  ;;  %v3841_v8 = vand.u32 2147483647, %v10566_v27 }
 0x5f4   : > { %4035 = vmax.xlane.f32.xlu0 %v4034_v58  ;;  %v3836_v1 = vadd.f32 %v10635_v0, %v3835_v17  ;;  %v3729_v58 = vsub.f32 1.0, %v3728_v56  ;;  %v10870_v32 = vmul.f32 %v3770_v21, %v10246_v38  ;;  %v10873_v7 = vmul.f32 %v3785_v10, %v10261_v34  ;;  %vm3839_vm13 = vmor %vm3837_vm12, %vm3838_vm9 }
 0x5f5   : > { %v3825_v22 = vsel %vm10862_vm11, %v10512_v57, %v3821_v9  ;;  %v3743_v23 = vmul.f32 %v10368_v62, %v10320_v49  ;;  %v3829_v3 = vor.u32 1.1754944e-38, %v3828_v25  ;;  %vm3827_vm14 = vcmp.eq.f32.partialorder %v3826_v55, 8.507059e+37 }
 0x5f6   : > { %v3840_v27 = vsel %vm3839_vm13, %v10635_v0, %v3836_v1  ;;  %v3730_v51 = vmul.f32 %v10361_v19, %v3729_v58  ;;  %v3844_v38 = vor.u32 1.1754944e-38, %v3843_v35  ;;  %v4040_v34 = vmax.f32 %v10708_v30, %v10729_v45 }
 0x5f7   : > { %v3744_v18 = vsub.f32 1.0, %v3743_v23  ;;  %v3989_v57 = vadd.f32 %v10857_v12, %v10841_v36  ;;  %v3830_v31 = vsel %vm3827_vm14, %v3829_v3, %v3825_v22  ;;  %vm3842_vm15 = vcmp.eq.f32.partialorder %v3841_v8, 8.507059e+37 }
 0x5f8   : > { %v3986_v61 = vadd.f32 %v10873_v7, %v10870_v32  ;;  %v3845_v5 = vsel %vm3842_vm15, %v3844_v38, %v3840_v27  ;;  %vm3733_vm1 = vweird.f32 %v10361_v19  ;;  %v3731_v59 = vadd.f32 %v10361_v19, %v3730_v51 }
 0x5f9   : > { %v3745_v0 = vmul.f32 %v10368_v62, %v3744_v18  ;;  %vm3732_vm2 = vweird.f32 %v10315_v4  ;;  %vm3748_vm4 = vweird.f32 %v10368_v62  ;;  %v10896_v15 = vmul.f32 %v3830_v31, %v10342_v53 }
 0x5fa   : > { %v3738_v20 = vand.u32 2147483648, %v10315_v4  ;;  %v3753_v14 = vand.u32 2147483648, %v10320_v49  ;;  %v10902_v40 = vmul.f32 %v3845_v5, %v10385_v44  ;;  %vm3734_vm5 = vmor %vm3732_vm2, %vm3733_vm1  ;;  %v3736_v37 = vand.u32 2147483647, %v10315_v4 }
 0x5fb   : > { %4041 = vmax.xlane.f32.xlu2 %v4040_v34  ;;  %3990 = vadd.xlane.f32.xlu1 %v3989_v57  ;;  %v3746_v48 = vadd.f32 %v10368_v62, %v3745_v0  ;;  %vm3747_vm7 = vweird.f32 %v10320_v49  ;;  %v3751_v42 = vand.u32 2147483647, %v10320_v49  ;;  %v3735_v53 = vsel %vm3734_vm5, %v10361_v19, %v3731_v59 }
 0x5fc   : > { %3987 = vadd.xlane.f32.xlu0 %v3986_v61  ;;  %vm3749_vm8 = vmor %vm3747_vm7, %vm3748_vm4  ;;  %v3739_v33 = vor.u32 1.1754944e-38, %v3738_v20  ;;  %v3754_v6 = vor.u32 1.1754944e-38, %v3753_v14  ;;  %v3992_v28 = vadd.f32 %v10902_v40, %v10896_v15  ;;  %v4028_v44 = vmax.f32 %v10841_v36, %v10857_v12 }
 0x5fd   : > { %v3750_v46 = vsel %vm3749_vm8, %v10368_v62, %v3746_v48  ;;  %vm3737_vm9 = vcmp.eq.f32.partialorder %v3736_v37, 8.507059e+37  ;;  %vm3752_vm10 = vcmp.eq.f32.partialorder %v3751_v42, 8.507059e+37  ;;  %v4025_v4 = vmax.f32 %v10870_v32, %v10873_v7 }
 0x5fe   : > { %v3740_v13 = vsel %vm3737_vm9, %v3739_v33, %v3735_v53  ;;  %v3755_v49 = vsel %vm3752_vm10, %v3754_v6, %v3750_v46  ;;  %v4031_v60 = vmax.f32 %v10896_v15, %v10902_v40  ;;  %v7041_v26 = vmov 256.0   ;;  %v4054_v33 = vld [vmem:[%s11951_s3] sm:$0xff] }
 0x5ff   : > { %v10916_v19 = vmul.f32 %v3740_v13, %v10230_v54  ;;  %v10919_v62 = vmul.f32 %v3755_v49, %v10233_v47  ;;  %6820 = vrcp.f32 %v7041_v26  ;;  %vm4087_vm12 = vcmask 64512   ;;  %v4080_v13 = vld [vmem:[%s11952_s4 + $0x8] sm:$0xff]  ;;  %v4081_v49 = vld [vmem:[%s11952_s4 + $0x10] sm:$0xff] }
 0x600   : > { %v4085_v26 = vld [vmem:[%s11952_s4 + $0x30] sm:$0xff] }
 0x601   : > { %v4022_v29 = vmax.f32 %v10916_v19, %v10919_v62  ;;  %v3983_v2 = vadd.f32 %v10919_v62, %v10916_v19 }
 0x603   : > { %3993 = vadd.xlane.f32.xlu2 %v3992_v28  ;;  %4029 = vmax.xlane.f32.xlu1 %v4028_v44 }
 0x604   : > { %4026 = vmax.xlane.f32.xlu0 %v4025_v4  ;;  %v4079_v4 = vld [vmem:[%s11952_s4] sm:$0xff] }
 0x605   : > { %v6821_v21 = vpop.eup %6820 }
 0x606   : > { %v4008_v54 = vmul.f32 256.0, %v6821_v21  ;;  %vm4012_vm11 = vweird.f32 %v6821_v21 }
 0x608   : > { %v4009_v24 = vsub.f32 1.0, %v4008_v54 }
 0x60a   : > { %v4010_v63 = vmul.f32 %v6821_v21, %v4009_v24 }
 0x60b   : > { %4032 = vmax.xlane.f32.xlu2 %v4031_v60  ;;  %4023 = vmax.xlane.f32.xlu1 %v4022_v29  ;;  %v4082_v60 = vld [vmem:[%s11952_s4 + $0x18] sm:$0xff]  ;;  %v4083_v29 = vld [vmem:[%s11952_s4 + $0x20] sm:$0xff] }
 0x60c   : > { %v4011_v9 = vadd.f32 %v6821_v21, %v4010_v63 }
 0x60e   : > { %v4013_v25 = vsel %vm4012_vm11, %v6821_v21, %v4011_v9  ;;  %v4086_v21 = vld [vmem:[%s11952_s4 + $0x38] sm:$0xff] }
 0x613   : > { %3984 = vadd.xlane.f32.xlu2 %v3983_v2  ;;  %v4084_v2 = vld [vmem:[%s11952_s4 + $0x28] sm:$0xff] }
 0x656   : > { %v4003_v47 = vpop.xlane.xlu0 %4002 }
 0x657   : > { %v4020_v58 = vmul.f32 %v4013_v25, %v4003_v47 }
 0x65e   : > { %v4006_v10 = vpop.xlane.xlu2 %4005  ;;  %v4045_v56 = vpop.xlane.xlu1 %4044 }
 0x65f   : > { %v4021_v17 = vmul.f32 %v4013_v25, %v4006_v10  ;;  %v3997_v35 = vpop.xlane.xlu0 %3996 }
 0x660   : > { %v4018_v27 = vmul.f32 %v4013_v25, %v3997_v35 }
 0x661   : > { %v4053_v55 = vsel %vm1621_vm6, %v4021_v17, %v4045_v56 }
 0x662   : > { %4066 = vmatpush.msra.mxu0 %v4053_v55 }
 0x666   : > { %v4000_v39 = vpop.xlane.xlu2 %3999  ;;  %v4039_v1 = vpop.xlane.xlu1 %4038 }
 0x667   : > { %v4036_v8 = vpop.xlane.xlu0 %4035  ;;  %v4019_v22 = vmul.f32 %v4013_v25, %v4000_v39 }
 0x668   : > { %v4050_v38 = vsel %vm1621_vm6, %v4018_v27, %v4036_v8 }
 0x669   : > { %v4051_v51 = vsel %vm1621_vm6, %v4019_v22, %v4039_v1 }
 0x66e   : > { %v4042_v23 = vpop.xlane.xlu2 %4041  ;;  %v3991_v18 = vpop.xlane.xlu1 %3990 }
 0x66f   : > { %v4052_v3 = vsel %vm1621_vm6, %v4020_v58, %v4042_v23  ;;  %v3988_v34 = vpop.xlane.xlu0 %3987  ;;  %v4016_v0 = vmul.f32 %v4013_v25, %v3991_v18 }
 0x670   : > { %4067 = vmatpush.msra.mxu0 %v4052_v3  ;;  %v4015_v48 = vmul.f32 %v4013_v25, %v3988_v34 }
 0x672   : > { %4068 = vmatpush.msra.mxu0 %v4051_v51 }
 0x674   : > { %4069 = vmatpush.msra.mxu0 %v4050_v38 }
 0x676   : > { %v3994_v57 = vpop.xlane.xlu2 %3993  ;;  %v4030_v61 = vpop.xlane.xlu1 %4029 }
 0x677   : > { %v4017_v31 = vmul.f32 %v4013_v25, %v3994_v57  ;;  %v4027_v20 = vpop.xlane.xlu0 %4026  ;;  %v4048_v14 = vsel %vm1621_vm6, %v4016_v0, %v4030_v61 }
 0x678   : > { %v4047_v37 = vsel %vm1621_vm6, %v4015_v48, %v4027_v20 }
 0x67e   : > { %v4033_v5 = vpop.xlane.xlu2 %4032  ;;  %v4024_v46 = vpop.xlane.xlu1 %4023 }
 0x67f   : > { %v4049_v59 = vsel %vm1621_vm6, %v4017_v31, %v4033_v5 }
 0x680   : > { %4070 = vmatpush.msra.mxu0 %v4049_v59 }
 0x682   : > { %4071 = vmatpush.msra.mxu0 %v4048_v14 }
 0x684   : > { %4072 = vmatpush.msra.mxu0 %v4047_v37 }
 0x686   : > { %v3985_v42 = vpop.xlane.xlu2 %3984 }
 0x687   : > { %v4014_v53 = vmul.f32 %v4013_v25, %v3985_v42 }
 0x689   : > { %v4046_v6 = vsel %vm1621_vm6, %v4014_v53, %v4024_v46 }
 0x68a   : > { %4073 = vmatpush.msra.mxu0 %v4046_v6 }
 0x68b   : > { %6021 = vmatmul.msk.f32.vlgmr.msra.gmra.mxu0 %vm369_vm0, %v4054_v33 }
 0x708   : > { %v4075_v28 = vpop.f32.mrf.mxu0 }
 0x709   : > { %v4078_v44 = vmax.f32 %v4075_v28, 0.0 }
 0x70b   : > { %4127 = vmatpush.msra.mxu1 %v4078_v44 }
 0x70c   : > { %6022 = vmatmul.msk.f32.vlgmr.msra.gmra.mxu1 %vm4087_vm12, %v4079_v4 }
 0x714   : > { %6023 = vmatmul.msk.f32.gmra.mxu1 %vm4087_vm12, %v4080_v13 }
 0x71c   : > { %6024 = vmatmul.msk.f32.gmra.mxu1 %vm4087_vm12, %v4081_v49 }
 0x724   : > { %6025 = vmatmul.msk.f32.gmra.mxu1 %vm4087_vm12, %v4082_v60 }
 0x72c   : > { %6026 = vmatmul.msk.f32.gmra.mxu1 %vm4087_vm12, %v4083_v29 }
 0x734   : > { %6027 = vmatmul.msk.f32.gmra.mxu1 %vm4087_vm12, %v4084_v2 }
 0x73c   : > { %6028 = vmatmul.msk.f32.gmra.mxu1 %vm4087_vm12, %v4085_v26 }
 0x744   : > { %6029 = vmatmul.msk.f32.gmra.mxu1 %vm4087_vm12, %v4086_v21 }
 0x789   : > { %v4129_v54 = vpop.f32.mrf.mxu1 }
 0x78a   : > { %v4153_v24 = vsel %vm1537_vm3, %v4129_v54, 0.0 }
 0x78b   : > { %4154 = vadd.xlane.f32.xlu2 %v4153_v24 }
 0x791   : > { %v4132_v63 = vpop.f32.mrf.mxu1 }
 0x792   : > { %v4156_v47 = vsel %vm1537_vm3, %v4132_v63, 0.0 }
 0x793   : > { %4157 = vadd.xlane.f32.xlu0 %v4156_v47 }
 0x799   : > { %v4135_v9 = vpop.f32.mrf.mxu1 }
 0x79a   : > { %v4159_v25 = vsel %vm1537_vm3, %v4135_v9, 0.0 }
 0x79b   : > { %4160 = vadd.xlane.f32.xlu1 %v4159_v25 }
 0x7a1   : > { %v4138_v10 = vpop.f32.mrf.mxu1 }
 0x7a2   : > { %v4162_v17 = vsel %vm1537_vm3, %v4138_v10, 0.0 }
 0x7a3   : > { %4163 = vadd.xlane.f32.xlu2 %v4162_v17 }
 0x7a9   : > { %v4141_v56 = vpop.f32.mrf.mxu1 }
 0x7aa   : > { %v4165_v55 = vsel %vm1537_vm3, %v4141_v56, 0.0 }
 0x7ab   : > { %4166 = vadd.xlane.f32.xlu0 %v4165_v55 }
 0x7b1   : > { %v4144_v35 = vpop.f32.mrf.mxu1 }
 0x7b2   : > { %v4168_v39 = vsel %vm1537_vm3, %v4144_v35, 0.0 }
 0x7b3   : > { %4169 = vadd.xlane.f32.xlu1 %v4168_v39 }
 0x7b9   : > { %v4147_v1 = vpop.f32.mrf.mxu1 }
 0x7ba   : > { %v4171_v8 = vsel %vm1537_vm3, %v4147_v1, 0.0 }
 0x7bb   : > { %4172 = vadd.xlane.f32.xlu2 %v4171_v8 }
 0x7c1   : > { %v4150_v58 = vpop.f32.mrf.mxu1 }
 0x7c2   : > { %v4174_v22 = vsel %vm1537_vm3, %v4150_v58, 0.0 }
 0x7c3   : > { %4175 = vadd.xlane.f32.xlu0 %v4174_v22 }
 0x7fe   : > { %v10979_v23 = vpop.xlane.xlu2 %4154 }
 0x7ff   : > { %v6030_v3 = vmul.f32 -1.442695, %v10979_v23 }
 0x801   : > { %6822 = vpow2.f32 %v6030_v3 }
 0x806   : > { %v10982_v27 = vpop.xlane.xlu0 %4157 }
 0x807   : > { %v6031_v51 = vmul.f32 -1.442695, %v10982_v27  ;;  %v6823_v38 = vpop.eup %6822 }
 0x808   : > { %v4201_v34 = vadd.f32 1.0, %v6823_v38 }
 0x809   : > { %6824 = vpow2.f32 %v6031_v51 }
 0x80a   : > { %v4220_v24 = vand.u32 2147483648, %v4201_v34  ;;  %vm4214_vm6 = vweird.f32 %v4201_v34  ;;  %v4218_v9 = vand.u32 2147483647, %v4201_v34 }
 0x80c   : > { %v4221_v56 = vor.u32 1.1754944e-38, %v4220_v24  ;;  %vm4219_vm14 = vcmp.eq.f32.partialorder %v4218_v9, 8.507059e+37 }
 0x80e   : > { %v10985_v18 = vpop.xlane.xlu1 %4160 }
 0x80f   : > { %v6032_v57 = vmul.f32 -1.442695, %v10985_v18  ;;  %v6825_v31 = vpop.eup %6824 }
 0x810   : > { %v10988_v61 = vadd.f32 1.0, %v6825_v31 }
 0x811   : > { %6826 = vpow2.f32 %v6032_v57 }
 0x812   : > { %6828 = vrcp.f32 %v4201_v34  ;;  %v4235_v25 = vand.u32 2147483648, %v10988_v61  ;;  %vm4229_vm15 = vweird.f32 %v10988_v61  ;;  %v4233_v58 = vand.u32 2147483647, %v10988_v61 }
 0x813   : > { %6830 = vrcp.f32 %v10988_v61 }
 0x814   : > { %v4236_v22 = vor.u32 1.1754944e-38, %v4235_v25  ;;  %vm4234_vm5 = vcmp.eq.f32.partialorder %v4233_v58, 8.507059e+37 }
 0x816   : > { %v10990_v5 = vpop.xlane.xlu2 %4163 }
 0x817   : > { %v6827_v0 = vpop.eup %6826  ;;  %v6033_v59 = vmul.f32 -1.442695, %v10990_v5 }
 0x818   : > { %v10994_v20 = vadd.f32 1.0, %v6827_v0  ;;  %v6829_v48 = vpop.eup %6828 }
 0x819   : > { %6832 = vpow2.f32 %v6033_v59  ;;  %v4210_v14 = vmul.f32 %v6829_v48, %v4201_v34  ;;  %v10997_v37 = vpop.eup %6830  ;;  %vm4215_vm0 = vweird.f32 %v6829_v48 }
 0x81a   : > { %6834 = vrcp.f32 %v10994_v20  ;;  %v4225_v44 = vmul.f32 %v10997_v37, %v10988_v61  ;;  %vm4216_vm3 = vmor %vm4214_vm6, %vm4215_vm0  ;;  %vm4230_vm13 = vweird.f32 %v10997_v37  ;;  %v4250_v61 = vand.u32 2147483648, %v10994_v20 }
 0x81b   : > { %v4211_v33 = vsub.f32 1.0, %v4210_v14  ;;  %vm11032_vm1 = vmor %vm4229_vm15, %vm4230_vm13  ;;  %v6345_v14 = vld [vmem:[%s11953_s5 + $0x74] sm:$0xf0]  ;;  %vm4244_vm4 = vweird.f32 %v10994_v20 }
 0x81c   : > { %v4226_v49 = vsub.f32 1.0, %v4225_v44  ;;  %v6088_v44 = vld [vmem:[%s11953_s5 + $0x60] sm:$0xf] }
 0x81d   : > { %v4212_v4 = vmul.f32 %v6829_v48, %v4211_v33 }
 0x81e   : > { %v10999_v42 = vpop.xlane.xlu0 %4166  ;;  %v4227_v63 = vmul.f32 %v10997_v37, %v4226_v49  ;;  %v4251_v49 = vor.u32 1.1754944e-38, %v4250_v61 }
 0x81f   : > { %v6833_v53 = vpop.eup %6832  ;;  %v6034_v46 = vmul.f32 -1.442695, %v10999_v42  ;;  %v4213_v26 = vadd.f32 %v6829_v48, %v4212_v4 }
 0x820   : > { %v11002_v6 = vadd.f32 1.0, %v6833_v53  ;;  %v11004_v28 = vpop.eup %6834  ;;  %v4228_v55 = vadd.f32 %v10997_v37, %v4227_v63 }
 0x821   : > { %6836 = vpow2.f32 %v6034_v46  ;;  %v4240_v13 = vmul.f32 %v11004_v28, %v10994_v20  ;;  %v4217_v10 = vsel %vm4216_vm3, %v6829_v48, %v4213_v26  ;;  %vm4245_vm2 = vweird.f32 %v11004_v28  ;;  %v6096_v48 = vld [vmem:[%s11953_s5 + $0x70] sm:$0xf] }
 0x822   : > { %6838 = vrcp.f32 %v11002_v6  ;;  %v4222_v8 = vsel %vm4219_vm14, %v4221_v56, %v4217_v10  ;;  %v4232_v31 = vsel %vm11032_vm1, %v10997_v37, %v4228_v55  ;;  %v4248_v37 = vand.u32 2147483647, %v10994_v20  ;;  %vm11057_vm7 = vmor %vm4244_vm4, %vm4245_vm2 }
 0x823   : > { %v4241_v21 = vsub.f32 1.0, %v4240_v13  ;;  %v4329_v53 = vmul.f32 %v4222_v8, %v10979_v23  ;;  %v6343_v23 = vld [vmem:[%s11953_s5 + $0x64] sm:$0xf0]  ;;  %v4237_v4 = vsel %vm4234_vm5, %v4236_v22, %v4232_v31  ;;  %v6097_v13 = vor.u32 %v6345_v14, %v6096_v48  ;;  %v6080_v48 = vld [vmem:[%s11953_s5 + $0x50] sm:$0xf] }
 0x824   : > { %vm4249_vm8 = vcmp.eq.f32.partialorder %v4248_v37, 8.507059e+37  ;;  %v4330_v9 = vmul.f32 %v4237_v4, %v10982_v27  ;;  %vm4259_vm11 = vweird.f32 %v11002_v6  ;;  %v6341_v14 = vld [vmem:[%s11953_s5 + $0x54] sm:$0xf0] }
 0x825   : > { %v4242_v17 = vmul.f32 %v11004_v28, %v4241_v21  ;;  %4808 = vmatpush.bf16.msra.mxu2 %v6097_v13  ;;  %v6089_v21 = vor.u32 %v6343_v23, %v6088_v44  ;;  %v11078_v63 = vmul.f32 %v4329_v53, %v10919_v62  ;;  %v6160_v44 = vld [vmem:[%s11953_s5 + $0xf0] sm:$0xf]  ;;  %v6361_v13 = vld [vmem:[%s11953_s5 + $0xf4] sm:$0xf0] }
 0x826   : > { %v11011_v60 = vpop.xlane.xlu1 %4169  ;;  %v11098_v22 = vmul.f32 %v4330_v9, %v10870_v32  ;;  %v11101_v51 = vmul.f32 %v4330_v9, %v10873_v7  ;;  %v6377_v9 = vld [vmem:[%s11953_s5 + $0x174] sm:$0xf0] }
 0x827   : > { %v6837_v29 = vpop.eup %6836  ;;  %v6035_v2 = vmul.f32 -1.442695, %v11011_v60  ;;  %v4243_v38 = vadd.f32 %v11004_v28, %v4242_v17  ;;  %v4265_v17 = vand.u32 2147483648, %v11002_v6 }
 0x828   : > { %v11014_v54 = vadd.f32 1.0, %v6837_v29  ;;  %v11017_v47 = vpop.eup %6838 }
 0x829   : > { %6840 = vpow2.f32 %v6035_v2  ;;  %v4255_v35 = vmul.f32 %v11017_v47, %v11002_v6  ;;  %v4247_v20 = vsel %vm11057_vm7, %v11004_v28, %v4243_v38  ;;  %v11072_v2 = vmul.f32 %v4329_v53, %v10916_v19  ;;  %4809 = vmatpush.bf16.msra.mxu2 %v6089_v21  ;;  %v6224_v21 = vld [vmem:[%s11953_s5 + $0x170] sm:$0xf] }
 0x82a   : > { %6842 = vrcp.f32 %v11014_v54  ;;  %v4252_v28 = vsel %vm4249_vm8, %v4251_v49, %v4247_v20  ;;  %vm4260_vm9 = vweird.f32 %v11017_v47  ;;  %v4263_v19 = vand.u32 2147483647, %v11002_v6 }
 0x82b   : > { %v4256_v0 = vsub.f32 1.0, %v4255_v35  ;;  %v4278_v56 = vand.u32 2147483647, %v11014_v54  ;;  %v4280_v62 = vand.u32 2147483648, %v11014_v54  ;;  %vm11106_vm12 = vmor %vm4259_vm11, %vm4260_vm9  ;;  %v4266_v31 = vor.u32 1.1754944e-38, %v4265_v17 }
 0x82c   : > { %vm11110_vm0 = vcmp.eq.f32.partialorder %v4263_v19, 8.507059e+37  ;;  %vm4274_vm6 = vweird.f32 %v11014_v54  ;;  %v4353_v37 = vadd.f32 %v11098_v22, %v11072_v2  ;;  %v6064_v17 = vld [vmem:[%s11953_s5 + $0x30] sm:$0xf] }
 0x82d   : > { %v4257_v29 = vmul.f32 %v11017_v47, %v4256_v0  ;;  %vm11123_vm13 = vcmp.eq.f32.partialorder %v4278_v56, 8.507059e+37  ;;  %v4281_v61 = vor.u32 1.1754944e-38, %v4280_v62  ;;  %v6152_v56 = vld [vmem:[%s11953_s5 + $0xe0] sm:$0xf] }
 0x82e   : > { %v11026_v39 = vpop.xlane.xlu2 %4172 }
 0x82f   : > { %v6841_v1 = vpop.eup %6840  ;;  %v6036_v57 = vmul.f32 -1.442695, %v11026_v39  ;;  %v4258_v35 = vadd.f32 %v11017_v47, %v4257_v29 }
 0x830   : > { %v11030_v3 = vpop.eup %6842  ;;  %v11038_v34 = vadd.f32 1.0, %v6841_v1  ;;  %v4331_v1 = vmul.f32 %v4252_v28, %v10985_v18 }
 0x831   : > { %v4270_v59 = vmul.f32 %v11030_v3, %v11014_v54  ;;  %vm4275_vm10 = vweird.f32 %v11030_v3  ;;  %v4262_v32 = vsel %vm11106_vm12, %v11017_v47, %v4258_v35 }
 0x832   : > { %6844 = vrcp.f32 %v11038_v34  ;;  %vm11119_vm3 = vmor %vm4274_vm6, %vm4275_vm10  ;;  %v4293_v47 = vand.u32 2147483647, %v11038_v34  ;;  %v11146_v46 = vmul.f32 %v4331_v1, %v10857_v12  ;;  %v4267_v23 = vsel %vm11110_vm0, %v4266_v31, %v4262_v32 }
 0x833   : > { %v4271_v33 = vsub.f32 1.0, %v4270_v59  ;;  %6846 = vpow2.f32 %v6036_v57  ;;  %v11129_v59 = vmul.f32 %v4331_v1, %v10841_v36  ;;  %v4366_v36 = vadd.f32 %v11101_v51, %v11078_v63  ;;  %v6337_v1 = vld [vmem:[%s11953_s5 + $0x34] sm:$0xf0] }
 0x834   : > { %v4295_v4 = vand.u32 2147483648, %v11038_v34  ;;  %v6081_v12 = vor.u32 %v6341_v14, %v6080_v48  ;;  %v4332_v62 = vmul.f32 %v4267_v23, %v10990_v5  ;;  %vm4289_vm15 = vweird.f32 %v11038_v34 }
 0x835   : > { %v4272_v26 = vmul.f32 %v11030_v3, %v4271_v33  ;;  %v6339_v33 = vld [vmem:[%s11953_s5 + $0x44] sm:$0xf0]  ;;  %v11191_v35 = vadd.f32 %v4366_v36, %v11146_v46  ;;  %v4388_v5 = vmax.f32 %v11072_v2, %v11129_v59  ;;  %v6225_v31 = vor.u32 %v6377_v9, %v6224_v21  ;;  %v6226_v21 = vld [vmem:[%s11953_s5 + $0x178] sm:$0xf0]  ;;  %v6184_v9 = vld [vmem:[%s11953_s5 + $0x120] sm:$0xf] }
 0x836   : > { %v11075_v24 = vpop.xlane.xlu0 %4175  ;;  %4810 = vmatpush.bf16.msra.mxu2 %v6081_v12  ;;  %vm11226_vm2 = vcmp.eq.f32.partialorder %v4293_v47, 8.507059e+37  ;;  %v4296_v48 = vor.u32 1.1754944e-38, %v4295_v4  ;;  %v6335_v47 = vld [vmem:[%s11953_s5 + $0x24] sm:$0xf0]  ;;  %v11250_v23 = vmul.f32 %v4332_v62, %v10902_v40  ;;  %v6376_v40 = vld [vmem:[%s11953_s5 + $0x174] sm:$0xf] }
 0x837   : > { %v6037_v25 = vmul.f32 -1.442695, %v11075_v24  ;;  %v4273_v8 = vadd.f32 %v11030_v3, %v4272_v26  ;;  %v6161_v26 = vor.u32 %v6361_v13, %v6160_v44  ;;  %4834 = vmatpush.bf16.msrb.mxu0 %v6225_v31  ;;  %v6373_v44 = vld [vmem:[%s11953_s5 + $0x154] sm:$0xf0]  ;;  %v6136_v13 = vld [vmem:[%s11953_s5 + $0xc0] sm:$0xf] }
 0x838   : > { %v11082_v10 = vpop.eup %6844  ;;  %v6371_v31 = vld [vmem:[%s11953_s5 + $0x144] sm:$0xf0] }
 0x839   : > { %v6847_v55 = vpop.eup %6846  ;;  %v4285_v27 = vmul.f32 %v11082_v10, %v11038_v34  ;;  %6848 = vpow2.f32 %v6037_v25  ;;  %v4277_v54 = vsel %vm11119_vm3, %v11030_v3, %v4273_v8  ;;  %v6072_v3 = vld [vmem:[%s11953_s5 + $0x40] sm:$0xf]  ;;  %vm4290_vm14 = vweird.f32 %v11082_v10  ;;  %4821 = vmatpush.bf16.msrb.mxu3 %v6161_v26 }
 0x83a   : > { %v11095_v58 = vadd.f32 1.0, %v6847_v55  ;;  %v4282_v49 = vsel %vm11123_vm13, %v4281_v61, %v4277_v54  ;;  %v11178_v25 = vadd.f32 %v4353_v37, %v11129_v59  ;;  %v6073_v19 = vor.u32 %v6339_v33, %v6072_v3  ;;  %v6359_v55 = vld [vmem:[%s11953_s5 + $0xe4] sm:$0xf0]  ;;  %v6216_v8 = vld [vmem:[%s11953_s5 + $0x160] sm:$0xf]  ;;  %vm11211_vm1 = vmor %vm4289_vm15, %vm4290_vm14 }
 0x83b   : > { %v4286_v38 = vsub.f32 1.0, %v4285_v27  ;;  %v4333_v34 = vmul.f32 %v4282_v49, %v10999_v42  ;;  %v6153_v61 = vor.u32 %v6359_v55, %v6152_v56  ;;  %v6144_v42 = vld [vmem:[%s11953_s5 + $0xd0] sm:$0xf]  ;;  %v11234_v37 = vmul.f32 %v4332_v62, %v10896_v15  ;;  %v6355_v49 = vld [vmem:[%s11953_s5 + $0xc4] sm:$0xf0] }
 0x83c   : > { %6850 = vrcp.f32 %v11095_v58  ;;  %v4308_v57 = vand.u32 2147483647, %v11095_v58  ;;  %v4310_v6 = vand.u32 2147483648, %v11095_v58  ;;  %4811 = vmatpush.bf16.msra.mxu2 %v6073_v19  ;;  %v6208_v33 = vld [vmem:[%s11953_s5 + $0x150] sm:$0xf]  ;;  %vm4304_vm5 = vweird.f32 %v11095_v58 }
 0x83d   : > { %v4287_v0 = vmul.f32 %v11082_v10, %v4286_v38  ;;  %v6375_v38 = vld [vmem:[%s11953_s5 + $0x164] sm:$0xf0]  ;;  %4822 = vmatpush.bf16.msrb.mxu3 %v6153_v61  ;;  %v11253_v4 = vmul.f32 %v4333_v34, %v10659_v50  ;;  %v6209_v56 = vor.u32 %v6373_v44, %v6208_v33  ;;  %v6048_v55 = vld [vmem:[%s11953_s5 + $0x10] sm:$0xf]  ;;  %v6333_v62 = vld [vmem:[%s11953_s5 + $0x14] sm:$0xf0]  ;;  %v6137_v18 = vor.u32 %v6355_v49, %v6136_v13 }
 0x83e   : > { %v6217_v14 = vor.u32 %v6375_v38, %v6216_v8  ;;  %vm11268_vm7 = vcmp.eq.f32.partialorder %v4308_v57, 8.507059e+37  ;;  %v4311_v26 = vor.u32 1.1754944e-38, %v4310_v6  ;;  %v6200_v57 = vld [vmem:[%s11953_s5 + $0x140] sm:$0xf]  ;;  %v6128_v6 = vld [vmem:[%s11953_s5 + $0xb0] sm:$0xf] }
 0x83f   : > { %v6849_v53 = vpop.eup %6848  ;;  %v4288_v29 = vadd.f32 %v11082_v10, %v4287_v0  ;;  %v6357_v0 = vld [vmem:[%s11953_s5 + $0xd4] sm:$0xf0]  ;;  %v6218_v54 = vld [vmem:[%s11953_s5 + $0x168] sm:$0xf0]  ;;  %v6372_v13 = vld [vmem:[%s11953_s5 + $0x154] sm:$0xf] }
 0x840   : > { %v11160_v20 = vadd.f32 1.0, %v6849_v53  ;;  %v6056_v53 = vld [vmem:[%s11953_s5 + $0x20] sm:$0xf]  ;;  %v6145_v3 = vor.u32 %v6357_v0, %v6144_v42  ;;  %4835 = vmatpush.bf16.msrb.mxu0 %v6217_v14  ;;  %v6353_v61 = vld [vmem:[%s11953_s5 + $0xb4] sm:$0xf0] }
 0x841   : > { %v4292_v32 = vsel %vm11211_vm1, %v11082_v10, %v4288_v29  ;;  %v6065_v10 = vor.u32 %v6337_v1, %v6064_v17  ;;  %v6057_v17 = vor.u32 %v6335_v47, %v6056_v53  ;;  %v6040_v0 = vld [vmem:[%s11953_s5] sm:$0xf]  ;;  %v6192_v14 = vld [vmem:[%s11953_s5 + $0x130] sm:$0xf]  ;;  %v6369_v53 = vld [vmem:[%s11953_s5 + $0x134] sm:$0xf0]  ;;  %v6129_v44 = vor.u32 %v6353_v61, %v6128_v6 }
 0x842   : > { %v11175_v28 = vpop.eup %6850  ;;  %6852 = vrcp.f32 %v11160_v20  ;;  %v4297_v12 = vsel %vm11226_vm2, %v4296_v48, %v4292_v32  ;;  %v4323_v19 = vand.u32 2147483647, %v11160_v20  ;;  %4823 = vmatpush.bf16.msrb.mxu3 %v6145_v3  ;;  %v4355_v32 = vadd.f32 %v11178_v25, %v11234_v37  ;;  %v6374_v25 = vld [vmem:[%s11953_s5 + $0x164] sm:$0xf]  ;;  %v6210_v49 = vld [vmem:[%s11953_s5 + $0x158] sm:$0xf0] }
 0x843   : > { %v4300_v27 = vmul.f32 %v11175_v28, %v11095_v58  ;;  %vm4305_vm4 = vweird.f32 %v11175_v28  ;;  %4812 = vmatpush.bf16.msra.mxu2 %v6065_v10  ;;  %v4334_v1 = vmul.f32 %v4297_v12, %v11011_v60  ;;  %v4368_v60 = vadd.f32 %v11191_v35, %v11250_v23  ;;  %v6288_v12 = vld [vmem:[%s11953_s5 + $0x1f0] sm:$0xf]  ;;  %v6120_v29 = vld [vmem:[%s11953_s5 + $0xa0] sm:$0xf] }
 0x844   : > { %vm11279_vm8 = vmor %vm4304_vm5, %vm4305_vm4  ;;  %v4325_v42 = vand.u32 2147483648, %v11160_v20  ;;  %4836 = vmatpush.bf16.msrb.mxu0 %v6209_v56  ;;  %v6049_v48 = vor.u32 %v6333_v62, %v6048_v55  ;;  %v6201_v10 = vor.u32 %v6371_v31, %v6200_v57  ;;  %v4356_v47 = vadd.f32 %v4355_v32, %v11253_v4  ;;  %v6202_v62 = vld [vmem:[%s11953_s5 + $0x148] sm:$0xf0]  ;;  %v6391_v57 = vld [vmem:[%s11953_s5 + $0x1e4] sm:$0xf0] }
 0x845   : > { %v4301_v7 = vsub.f32 1.0, %v4300_v27  ;;  %v6229_v27 = vor.u32 %v6376_v40, %v6226_v21  ;;  %v11341_v3 = vmul.f32 %v4334_v1, %v10697_v52  ;;  %v11355_v52 = vmul.f32 %v4334_v1, %v10757_v11  ;;  %v6112_v31 = vld [vmem:[%s11953_s5 + $0x90] sm:$0xf]  ;;  %v6349_v32 = vld [vmem:[%s11953_s5 + $0x94] sm:$0xf0] }
 0x846   : > { %4824 = vmatpush.bf16.msrb.mxu3 %v6137_v18  ;;  %vm4319_vm10 = vweird.f32 %v11160_v20  ;;  %vm4324_vm12 = vcmp.eq.f32.partialorder %v4323_v19, 8.507059e+37  ;;  %v4326_v11 = vor.u32 1.1754944e-38, %v4325_v42  ;;  %v6193_v55 = vor.u32 %v6369_v53, %v6192_v14  ;;  %v6370_v19 = vld [vmem:[%s11953_s5 + $0x144] sm:$0xf] }
 0x847   : > { %v4302_v36 = vmul.f32 %v11175_v28, %v4301_v7  ;;  %v11305_v7 = vmul.f32 %v4333_v34, %v10662_v16  ;;  %4886 = vmatpush.bf16.msrb.mxu1 %v6229_v27  ;;  %v4389_v16 = vmax.f32 %v11098_v22, %v11234_v37  ;;  %4813 = vmatpush.bf16.msra.mxu2 %v6057_v17 }
 0x848   : > { %v11247_v15 = vpop.eup %6852  ;;  %4837 = vmatpush.bf16.msrb.mxu0 %v6201_v10  ;;  %v6389_v10 = vld [vmem:[%s11953_s5 + $0x1d4] sm:$0xf0] }
 0x849   : > { %v4303_v50 = vadd.f32 %v11175_v28, %v4302_v36  ;;  %v4315_v58 = vmul.f32 %v11247_v15, %v11160_v20  ;;  %vm4320_vm9 = vweird.f32 %v11247_v15  ;;  %v6221_v36 = vor.u32 %v6374_v25, %v6218_v54  ;;  %v6176_v25 = vld [vmem:[%s11953_s5 + $0x110] sm:$0xf] }
 0x84a   : > { %v4369_v40 = vadd.f32 %v4368_v60, %v11305_v7  ;;  %vm4321_vm11 = vmor %vm4319_vm10, %vm4320_vm9  ;;  %4825 = vmatpush.bf16.msrb.mxu3 %v6129_v44  ;;  %v6205_v60 = vor.u32 %v6370_v19, %v6202_v62  ;;  %v6113_v54 = vor.u32 %v6349_v32, %v6112_v31  ;;  %v6098_v44 = vld [vmem:[%s11953_s5 + $0x78] sm:$0xf0]  ;;  %v6387_v19 = vld [vmem:[%s11953_s5 + $0x1c4] sm:$0xf0] }
 0x84b   : > { %v4307_v8 = vsel %vm11279_vm8, %v11175_v28, %v4303_v50  ;;  %v4316_v38 = vsub.f32 1.0, %v4315_v58  ;;  %v6393_v50 = vld [vmem:[%s11953_s5 + $0x1f4] sm:$0xf0]  ;;  %4887 = vmatpush.bf16.msrb.mxu1 %v6221_v36  ;;  %v6213_v58 = vor.u32 %v6372_v13, %v6210_v49  ;;  %4814 = vmatpush.bf16.msra.mxu2 %v6049_v48  ;;  %v6272_v48 = vld [vmem:[%s11953_s5 + $0x1d0] sm:$0xf]  ;;  %v4401_v13 = vmax.f32 %v11078_v63, %v11146_v46 }
 0x84c   : > { %v4312_v28 = vsel %vm11268_vm7, %v4311_v26, %v4307_v8  ;;  %v6351_v26 = vld [vmem:[%s11953_s5 + $0xa4] sm:$0xf0]  ;;  %v6280_v8 = vld [vmem:[%s11953_s5 + $0x1e0] sm:$0xf]  ;;  %4838 = vmatpush.bf16.msrb.mxu0 %v6193_v55  ;;  %v4402_v49 = vmax.f32 %v11101_v51, %v11250_v23  ;;  %v6273_v55 = vor.u32 %v6389_v10, %v6272_v48  ;;  %v6364_v31 = vld [vmem:[%s11953_s5 + $0x114] sm:$0xf] }
 0x84d   : > { %v4335_v35 = vmul.f32 %v4312_v28, %v11026_v39  ;;  %v4317_v34 = vmul.f32 %v11247_v15, %v4316_v38  ;;  %v6331_v39 = vld [vmem:[%s11953_s5 + $0x4] sm:$0xf0]  ;;  %v6121_v1 = vor.u32 %v6351_v26, %v6120_v29  ;;  %v4370_v38 = vadd.f32 %v4369_v40, %v11355_v52  ;;  %v6168_v40 = vld [vmem:[%s11953_s5 + $0x100] sm:$0xf]  ;;  %v6186_v29 = vld [vmem:[%s11953_s5 + $0x128] sm:$0xf0] }
 0x84e   : > { %v6041_v20 = vor.u32 %v6331_v39, %v6040_v0  ;;  %v4390_v28 = vmax.f32 %v4388_v5, %v11253_v4  ;;  %v6365_v5 = vld [vmem:[%s11953_s5 + $0x114] sm:$0xf0]  ;;  %v6194_v0 = vld [vmem:[%s11953_s5 + $0x138] sm:$0xf0]  ;;  %v6104_v39 = vld [vmem:[%s11953_s5 + $0x80] sm:$0xf] }
 0x84f   : > { %v4318_v33 = vadd.f32 %v11247_v15, %v4317_v34  ;;  %v11368_v21 = vmul.f32 %v4335_v35, %v10708_v30  ;;  %v11376_v17 = vmul.f32 %v4335_v35, %v10729_v45  ;;  %v6367_v30 = vld [vmem:[%s11953_s5 + $0x124] sm:$0xf0]  ;;  %v4357_v45 = vadd.f32 %v4356_v47, %v11341_v3  ;;  %4888 = vmatpush.bf16.msrb.mxu1 %v6213_v58  ;;  %v6178_v32 = vld [vmem:[%s11953_s5 + $0x118] sm:$0xf0]  ;;  %v6340_v48 = vld [vmem:[%s11953_s5 + $0x54] sm:$0xf] }
 0x850   : > { %v6185_v61 = vor.u32 %v6367_v30, %v6184_v9  ;;  %4815 = vmatpush.bf16.msra.mxu2 %v6041_v20  ;;  %4826 = vmatpush.bf16.msrb.mxu3 %v6121_v1  ;;  %v6347_v47 = vld [vmem:[%s11953_s5 + $0x84] sm:$0xf0]  ;;  %v6177_v20 = vor.u32 %v6365_v5, %v6176_v25  ;;  %v6385_v25 = vld [vmem:[%s11953_s5 + $0x1b4] sm:$0xf0]  ;;  %v6082_v10 = vld [vmem:[%s11953_s5 + $0x58] sm:$0xf0] }
 0x851   : > { %v4322_v56 = vsel %vm4321_vm11, %v11247_v15, %v4318_v33  ;;  %v6289_v15 = vor.u32 %v6393_v50, %v6288_v12  ;;  %v4358_v6 = vadd.f32 %v4357_v45, %v11368_v21  ;;  %v4371_v35 = vadd.f32 %v4370_v38, %v11376_v17  ;;  %v6344_v33 = vld [vmem:[%s11953_s5 + $0x74] sm:$0xf]  ;;  %v6366_v50 = vld [vmem:[%s11953_s5 + $0x124] sm:$0xf]  ;;  %v6363_v9 = vld [vmem:[%s11953_s5 + $0x104] sm:$0xf0] }
 0x852   : > { %v4327_v27 = vsel %vm4324_vm12, %v4326_v11, %v4322_v56  ;;  %4839 = vmatpush.bf16.msrb.mxu0 %v6185_v61  ;;  %v6264_v56 = vld [vmem:[%s11953_s5 + $0x1c0] sm:$0xf]  ;;  %v6105_v30 = vor.u32 %v6347_v47, %v6104_v39  ;;  %v6101_v62 = vor.u32 %v6344_v33, %v6098_v44  ;;  %v6360_v45 = vld [vmem:[%s11953_s5 + $0xf4] sm:$0xf]  ;;  %v6342_v38 = vld [vmem:[%s11953_s5 + $0x64] sm:$0xf]  ;;  %v6181_v39 = vor.u32 %v6364_v31, %v6178_v32 }
 0x853   : > { %v4336_v18 = vmul.f32 %v4327_v27, %v11075_v24  ;;  %v4391_v24 = vmax.f32 %v4389_v16, %v11341_v3  ;;  %v6368_v16 = vld [vmem:[%s11953_s5 + $0x134] sm:$0xf]  ;;  %4889 = vmatpush.bf16.msrb.mxu1 %v6205_v60  ;;  %v6162_v27 = vld [vmem:[%s11953_s5 + $0xf8] sm:$0xf0]  ;;  %v4403_v60 = vmax.f32 %v4401_v13, %v11305_v7  ;;  %v6256_v61 = vld [vmem:[%s11953_s5 + $0x1b0] sm:$0xf] }
 0x854   : > { %4847 = vmatpush.bf16.msrb.mxu2 %v6289_v15  ;;  %v6197_v12 = vor.u32 %v6368_v16, %v6194_v0  ;;  %4827 = vmatpush.bf16.msrb.mxu3 %v6113_v54  ;;  %v6358_v16 = vld [vmem:[%s11953_s5 + $0xe4] sm:$0xf]  ;;  %v6154_v0 = vld [vmem:[%s11953_s5 + $0xe8] sm:$0xf0]  ;;  %v7043_v13 = vmov 5  }
 0x855   : > { %v11414_v34 = vmul.f32 %v4336_v18, %v10754_v41  ;;  %v11417_v42 = vmul.f32 %v4336_v18, %v10773_v43  ;;  %v4392_v41 = vmax.f32 %v4390_v28, %v11368_v21  ;;  %v6281_v43 = vor.u32 %v6391_v57, %v6280_v8  ;;  %v6090_v18 = vld [vmem:[%s11953_s5 + $0x68] sm:$0xf0]  ;;  %6653 = vset.pattern.permute.xlu1 %v7043_v13  ;;  %v6354_v31 = vld [vmem:[%s11953_s5 + $0xc4] sm:$0xf] }
 0x856   : > { %v6189_v57 = vor.u32 %v6366_v50, %v6186_v29  ;;  %v4404_v28 = vmax.f32 %v4402_v49, %v11355_v52  ;;  %4840 = vmatpush.bf16.msrb.mxu0 %v6177_v20  ;;  %v6093_v5 = vor.u32 %v6342_v38, %v6090_v18  ;;  %v4405_v33 = vmax.f32 %v4403_v60, %v11376_v17  ;;  %v6138_v32 = vld [vmem:[%s11953_s5 + $0xc8] sm:$0xf0] }
 0x857   : > { %v4359_v14 = vadd.f32 %v4358_v6, %v11414_v34  ;;  %v4372_v53 = vadd.f32 %v4371_v35, %v11417_v42  ;;  %v4393_v36 = vmax.f32 %v4391_v24, %v11414_v34  ;;  %4890 = vmatpush.bf16.msrb.mxu1 %v6197_v12  ;;  %v6169_v24 = vor.u32 %v6363_v9, %v6168_v40  ;;  %v6248_v40 = vld [vmem:[%s11953_s5 + $0x1a0] sm:$0xf] }
 0x858   : > { %4848 = vmatpush.bf16.msrb.mxu2 %v6281_v43  ;;  %v6265_v6 = vor.u32 %v6387_v19, %v6264_v56  ;;  %4828 = vmatpush.bf16.msrb.mxu3 %v6105_v30  ;;  %v6165_v35 = vor.u32 %v6360_v45, %v6162_v27  ;;  %v4406_v44 = vmax.f32 %v4404_v28, %v11417_v42  ;;  %v6074_v30 = vld [vmem:[%s11953_s5 + $0x48] sm:$0xf0] }
 0x859   : > { %v4360_v26 = vrot.slane %v4359_v14, 4  ;;  %v4373_v58 = vrot.slane %v4372_v53, 4  ;;  %v4394_v11 = vmax.f32 %v4392_v41, %v4393_v36  ;;  %v6170_v36 = vld [vmem:[%s11953_s5 + $0x108] sm:$0xf0]  ;;  %v6257_v12 = vor.u32 %v6385_v25, %v6256_v61  ;;  %v6336_v61 = vld [vmem:[%s11953_s5 + $0x34] sm:$0xf] }
 0x85a   : > { %4841 = vmatpush.bf16.msrb.mxu0 %v6169_v24  ;;  %v6157_v49 = vor.u32 %v6358_v16, %v6154_v0  ;;  %v6085_v50 = vor.u32 %v6340_v48, %v6082_v10  ;;  %v4407_v45 = vmax.f32 %v4405_v33, %v4406_v44  ;;  %v6066_v25 = vld [vmem:[%s11953_s5 + $0x38] sm:$0xf0]  ;;  %v6141_v0 = vor.u32 %v6354_v31, %v6138_v32  ;;  %v6379_v10 = vld [vmem:[%s11953_s5 + $0x184] sm:$0xf0]  ;;  %v6334_v44 = vld [vmem:[%s11953_s5 + $0x24] sm:$0xf] }
 0x85b   : > { %v4361_v15 = vadd.f32 %v4360_v26, %v4359_v14  ;;  %v4374_v1 = vadd.f32 %v4373_v58, %v4372_v53  ;;  %v4395_v8 = vrot.slane %v4394_v11, 4  ;;  %4891 = vmatpush.bf16.msrb.mxu1 %v6189_v57  ;;  %v7042_v14 = vmov 64.0   ;;  %v6362_v53 = vld [vmem:[%s11953_s5 + $0x104] sm:$0xf]  ;;  %v6383_v26 = vld [vmem:[%s11953_s5 + $0x1a4] sm:$0xf0] }
 0x85c   : > { %4849 = vmatpush.bf16.msrb.mxu2 %v6273_v55  ;;  %4860 = vmatpush.bf16.msra.mxu3 %v6101_v62  ;;  %6854 = vrcp.f32 %v7042_v14  ;;  %v6356_v58 = vld [vmem:[%s11953_s5 + $0xd4] sm:$0xf]  ;;  %v6173_v20 = vor.u32 %v6362_v53, %v6170_v36  ;;  %v6338_v55 = vld [vmem:[%s11953_s5 + $0x44] sm:$0xf]  ;;  %v6249_v27 = vor.u32 %v6383_v26, %v6248_v40  ;;  %v6130_v53 = vld [vmem:[%s11953_s5 + $0xb8] sm:$0xf0] }
 0x85d   : > { %v4396_v41 = vmax.f32 %v4394_v11, %v4395_v8  ;;  %v4362_v43 = vrot.slane %v4361_v15, 2  ;;  %v4375_v54 = vrot.slane %v4374_v1, 2  ;;  %v6146_v11 = vld [vmem:[%s11953_s5 + $0xd8] sm:$0xf0]  ;;  %v6077_v57 = vor.u32 %v6338_v55, %v6074_v30  ;;  %v6352_v14 = vld [vmem:[%s11953_s5 + $0xb4] sm:$0xf] }
 0x85e   : > { %4873 = vmatpush.bf16.msra.mxu0 %v6165_v35  ;;  %v6149_v8 = vor.u32 %v6356_v58, %v6146_v11  ;;  %v4408_v35 = vrot.slane %v4407_v45, 4  ;;  %v6290_v33 = vld [vmem:[%s11953_s5 + $0x1f8] sm:$0xf0]  ;;  %v6350_v58 = vld [vmem:[%s11953_s5 + $0xa4] sm:$0xf] }
 0x85f   : > { %v4397_v47 = vrot.slane %v4396_v41, 2  ;;  %4892 = vmatpush.bf16.msrb.mxu1 %v6181_v39  ;;  %v4363_v9 = vadd.f32 %v4362_v43, %v4361_v15  ;;  %v4376_v56 = vadd.f32 %v4375_v54, %v4374_v1  ;;  %v6240_v15 = vld [vmem:[%s11953_s5 + $0x190] sm:$0xf]  ;;  %v6381_v1 = vld [vmem:[%s11953_s5 + $0x194] sm:$0xf0]  ;;  %v6069_v39 = vor.u32 %v6336_v61, %v6066_v25 }
 0x860   : > { %4850 = vmatpush.bf16.msrb.mxu2 %v6265_v6  ;;  %4861 = vmatpush.bf16.msra.mxu3 %v6093_v5  ;;  %v4418_v5 = vld [vmem:[%s11955_s7] sm:$0x1]  ;;  %v6241_v16 = vor.u32 %v6381_v1, %v6240_v15  ;;  %v4409_v13 = vmax.f32 %v4407_v45, %v4408_v35  ;;  %v6122_v11 = vld [vmem:[%s11953_s5 + $0xa8] sm:$0xf0]  ;;  %v6050_v45 = vld [vmem:[%s11953_s5 + $0x18] sm:$0xf0] }
 0x861   : > { %v4398_v29 = vmax.f32 %v4396_v41, %v4397_v47  ;;  %v4364_v60 = vrot.slane %v4363_v9, 1  ;;  %v4377_v28 = vrot.slane %v4376_v56, 1  ;;  %v6232_v43 = vld [vmem:[%s11953_s5 + $0x180] sm:$0xf]  ;;  %v6392_v47 = vld [vmem:[%s11953_s5 + $0x1f4] sm:$0xf]  ;;  %4485 = vperm.xlu1 %6653, %v4418_v5  }
 0x862   : > { %v6855_v62 = vpop.eup %6854  ;;  %4874 = vmatpush.bf16.msra.mxu0 %v6157_v49  ;;  %v6233_v40 = vor.u32 %v6379_v10, %v6232_v43  ;;  %v6282_v55 = vld [vmem:[%s11953_s5 + $0x1e8] sm:$0xf0]  ;;  %v6348_v15 = vld [vmem:[%s11953_s5 + $0x94] sm:$0xf]  ;;  %v6114_v1 = vld [vmem:[%s11953_s5 + $0x98] sm:$0xf0] }
 0x863   : > { %v4399_v19 = vrot.slane %v4398_v29, 1  ;;  %v4380_v38 = vmul.f32 64.0, %v6855_v62  ;;  %4893 = vmatpush.bf16.msrb.mxu1 %v6173_v20  ;;  %v4365_v54 = vadd.f32 %v4364_v60, %v4363_v9  ;;  %vm4384_vm0 = vweird.f32 %v6855_v62  ;;  %v6274_v31 = vld [vmem:[%s11953_s5 + $0x1d8] sm:$0xf0]  ;;  %v6330_v32 = vld [vmem:[%s11953_s5 + $0x4] sm:$0xf] }
 0x864   : > { %4851 = vmatpush.bf16.msrb.mxu2 %v6257_v12  ;;  %4862 = vmatpush.bf16.msra.mxu3 %v6085_v50  ;;  %v4378_v48 = vadd.f32 %v4377_v28, %v4376_v56  ;;  %v6058_v12 = vld [vmem:[%s11953_s5 + $0x28] sm:$0xf0]  ;;  %v6133_v50 = vor.u32 %v6352_v14, %v6130_v53  ;;  %v6293_v20 = vor.u32 %v6392_v47, %v6290_v33  ;;  %v6390_v56 = vld [vmem:[%s11953_s5 + $0x1e4] sm:$0xf]  ;;  %v6258_v10 = vld [vmem:[%s11953_s5 + $0x1b8] sm:$0xf0] }
 0x865   : > { %v4400_v18 = vmax.f32 %v4398_v29, %v4399_v19  ;;  %v4381_v24 = vsub.f32 1.0, %v4380_v38  ;;  %v6061_v9 = vor.u32 %v6334_v44, %v6058_v12  ;;  %v6285_v38 = vor.u32 %v6390_v56, %v6282_v55  ;;  %v6042_v60 = vld [vmem:[%s11953_s5 + $0x8] sm:$0xf0]  ;;  %v6386_v5 = vld [vmem:[%s11953_s5 + $0x1c4] sm:$0xf] }
 0x866   : > { %4875 = vmatpush.bf16.msra.mxu0 %v6149_v8  ;;  %v6125_v8 = vor.u32 %v6350_v58, %v6122_v11  ;;  %v6106_v61 = vld [vmem:[%s11953_s5 + $0x88] sm:$0xf0]  ;;  %v6045_v35 = vor.u32 %v6330_v32, %v6042_v60  ;;  %v6382_v53 = vld [vmem:[%s11953_s5 + $0x1a4] sm:$0xf]  ;;  %v6380_v33 = vld [vmem:[%s11953_s5 + $0x194] sm:$0xf] }
 0x867   : > { %v4416_v6 = vpack.c.bf16 %v4400_v18, %v4400_v18  ;;  %v4382_v41 = vmul.f32 %v6855_v62, %v4381_v24  ;;  %v6117_v24 = vor.u32 %v6348_v15, %v6114_v1  ;;  %v6242_v44 = vld [vmem:[%s11953_s5 + $0x198] sm:$0xf0] }
 0x868   : > { %4852 = vmatpush.bf16.msrb.mxu2 %v6249_v27  ;;  %4863 = vmatpush.bf16.msra.mxu3 %v6077_v57  ;;  %v4410_v27 = vrot.slane %v4409_v13, 2  ;;  %v6388_v57 = vld [vmem:[%s11953_s5 + $0x1d4] sm:$0xf]  ;;  %v6245_v12 = vor.u32 %v6380_v33, %v6242_v44 }
 0x869   : > { %4842 = vmatmul.bf16.vlgmr.msrb.gmra.mxu0 %v4416_v6  ;;  %v4383_v36 = vadd.f32 %v6855_v62, %v4382_v41  ;;  %4894 = vmatmul.bf16.vlgmr.msrb.gmra.mxu1 %v4416_v6  ;;  %v6346_v6 = vld [vmem:[%s11953_s5 + $0x84] sm:$0xf]  ;;  %v6277_v25 = vor.u32 %v6388_v57, %v6274_v31 }
 0x86a   : > { %4876 = vmatpush.bf16.msra.mxu0 %v6141_v0  ;;  %v4411_v28 = vmax.f32 %v4409_v13, %v4410_v27  ;;  %v6109_v41 = vor.u32 %v6346_v6, %v6106_v61  ;;  %v6378_v13 = vld [vmem:[%s11953_s5 + $0x184] sm:$0xf] }
 0x86b   : > { %v4385_v49 = vsel %vm4384_vm0, %v6855_v62, %v4383_v36  ;;  %v6332_v62 = vld [vmem:[%s11953_s5 + $0x14] sm:$0xf]  ;;  %v6250_v36 = vld [vmem:[%s11953_s5 + $0x1a8] sm:$0xf0] }
 0x86c   : > { %4853 = vmatpush.bf16.msrb.mxu2 %v6241_v16  ;;  %v4386_v29 = vmul.f32 %v4385_v49, %v4365_v54  ;;  %v4387_v26 = vmul.f32 %v4385_v49, %v4378_v48  ;;  %4864 = vmatpush.bf16.msra.mxu3 %v6069_v39  ;;  %v6053_v18 = vor.u32 %v6332_v62, %v6050_v45  ;;  %v6266_v16 = vld [vmem:[%s11953_s5 + $0x1c8] sm:$0xf0]  ;;  %v4412_v0 = vrot.slane %v4411_v28, 1  ;;  %v6384_v48 = vld [vmem:[%s11953_s5 + $0x1b4] sm:$0xf] }
 0x86d   : > { %v6269_v43 = vor.u32 %v6386_v5, %v6266_v16  ;;  %v6261_v39 = vor.u32 %v6384_v48, %v6258_v10  ;;  %v6253_v47 = vor.u32 %v6382_v53, %v6250_v36  ;;  %v6234_v49 = vld [vmem:[%s11953_s5 + $0x188] sm:$0xf0] }
 0x86e   : > { %v4414_v30 = vpack.c.bf16 %v4386_v29, %v4386_v29  ;;  %v4415_v19 = vpack.c.bf16 %v4387_v26, %v4387_v26  ;;  %4877 = vmatpush.bf16.msra.mxu0 %v6133_v50  ;;  %v4413_v54 = vmax.f32 %v4411_v28, %v4412_v0 }
 0x870   : > { %4854 = vmatpush.bf16.msrb.mxu2 %v6233_v40  ;;  %4829 = vmatmul.bf16.vlgmr.msrb.gmra.mxu3 %v4415_v19  ;;  %v4417_v14 = vpack.c.bf16 %v4413_v54, %v4413_v54  ;;  %v6237_v40 = vor.u32 %v6378_v13, %v6234_v49 }
 0x871   : > { %4816 = vmatmul.bf16.vlgmr.msra.gmra.mxu2 %v4414_v30  ;;  %4865 = vmatpush.bf16.msra.mxu3 %v6061_v9 }
 0x872   : > { %4878 = vmatpush.bf16.msra.mxu0 %v6125_v8 }
 0x874   : > { %4899 = vmatpush.bf16.msra.mxu2 %v6293_v20 }
 0x875   : > { %4866 = vmatpush.bf16.msra.mxu3 %v6053_v18 }
 0x876   : > { %4879 = vmatpush.bf16.msra.mxu0 %v6117_v24 }
 0x878   : > { %4900 = vmatpush.bf16.msra.mxu2 %v6285_v38 }
 0x879   : > { %4867 = vmatpush.bf16.msra.mxu3 %v6045_v35 }
 0x87a   : > { %4880 = vmatpush.bf16.msra.mxu0 %v6109_v41 }
 0x87c   : > { %4901 = vmatpush.bf16.msra.mxu2 %v6277_v25 }
 0x87d   : > { %4881 = vmatmul.bf16.vlgmr.msra.gmra.mxu0 %v4415_v19 }
 0x880   : > { %4902 = vmatpush.bf16.msra.mxu2 %v6269_v43  ;;  %4868 = vmatmul.bf16.vlgmr.msra.gmra.mxu3 %v4414_v30 }
 0x881   : > { %4855 = vmatmul.bf16.vlgmr.msrb.gmra.mxu2 %v4417_v14 }
 0x884   : > { %4903 = vmatpush.bf16.msra.mxu2 %v6261_v39 }
 0x888   : > { %4904 = vmatpush.bf16.msra.mxu2 %v6253_v47 }
 0x88c   : > { %4905 = vmatpush.bf16.msra.mxu2 %v6245_v12 }
 0x890   : > { %4906 = vmatpush.bf16.msra.mxu2 %v6237_v40 }
 0x893   : > { %4907 = vmatmul.bf16.vlgmr.msra.gmra.mxu2 %v4417_v14 }
 0x8d3   : > { %v4486_v9 = vpop.permute.xlu1 %4485 }
 0x8e6   : > { %v4843_v50 = vpop.f32.mrf.mxu0  ;;  %v4895_v29 = vpop.f32.mrf.mxu1 }
 0x8ee   : > { %v4845_v26 = vpop.f32.mrf.mxu0  ;;  %v4897_v58 = vpop.f32.mrf.mxu1 }
 0x8f3   : > { %v4830_v20 = vpop.f32.mrf.mxu3 }
 0x8f4   : > { %v4817_v11 = vpop.f32.mrf.mxu2 }
 0x8f5   : > { %v4818_v56 = vadd.f32 %v4817_v11, %v4486_v9 }
 0x8f7   : > { %v4831_v62 = vadd.f32 %v4830_v20, %v4818_v56 }
 0x8f9   : > { %v4844_v45 = vadd.f32 %v4843_v50, %v4831_v62 }
 0x8fa   : > { %v4882_v19 = vpop.f32.mrf.mxu0 }
 0x8fb   : > { %v4832_v30 = vpop.f32.mrf.mxu3 }
 0x8fc   : > { %v4819_v55 = vpop.f32.mrf.mxu2 }
 0x902   : > { %v4884_v1 = vpop.f32.mrf.mxu0 }
 0x903   : > { %v4869_v15 = vpop.f32.mrf.mxu3 }
 0x904   : > { %v4856_v27 = vpop.f32.mrf.mxu2  ;;  %v4870_v18 = vadd.f32 %v4869_v15, %v4486_v9 }
 0x905   : > { %v4857_v8 = vadd.f32 %v4856_v27, %v4844_v45 }
 0x906   : > { %v4883_v60 = vadd.f32 %v4882_v19, %v4870_v18 }
 0x907   : > { %v6294_v38 = vmul.f32 -1.442695, %v4857_v8 }
 0x908   : > { %v4896_v24 = vadd.f32 %v4895_v29, %v4883_v60 }
 0x909   : > { %6856 = vpow2.f32 %v6294_v38 }
 0x90b   : > { %v4871_v31 = vpop.f32.mrf.mxu3 }
 0x90c   : > { %v4858_v57 = vpop.f32.mrf.mxu2 }
 0x90f   : > { %v6857_v32 = vpop.eup %6856 }
 0x910   : > { %v4918_v28 = vadd.f32 1.0, %v6857_v32 }
 0x912   : > { %6858 = vrcp.f32 %v4918_v28  ;;  %v4931_v10 = vand.u32 2147483648, %v4918_v28  ;;  %vm4925_vm3 = vweird.f32 %v4918_v28  ;;  %v4929_v39 = vand.u32 2147483647, %v4918_v28 }
 0x914   : > { %v4932_v36 = vor.u32 1.1754944e-38, %v4931_v10  ;;  %vm4930_vm14 = vcmp.eq.f32.partialorder %v4929_v39, 8.507059e+37 }
 0x916   : > { %v4908_v6 = vpop.f32.mrf.mxu2 }
 0x917   : > { %v4909_v61 = vadd.f32 %v4908_v6, %v4896_v24 }
 0x918   : > { %v6859_v35 = vpop.eup %6858 }
 0x919   : > { %v6295_v25 = vmul.f32 -1.442695, %v4909_v61  ;;  %v4921_v5 = vmul.f32 %v6859_v35, %v4918_v28  ;;  %vm4926_vm6 = vweird.f32 %v6859_v35 }
 0x91a   : > { %vm4927_vm13 = vmor %vm4925_vm3, %vm4926_vm6 }
 0x91b   : > { %6860 = vpow2.f32 %v6295_v25  ;;  %v4922_v16 = vsub.f32 1.0, %v4921_v5 }
 0x91d   : > { %v4923_v43 = vmul.f32 %v6859_v35, %v4922_v16 }
 0x91e   : > { %v4910_v0 = vpop.f32.mrf.mxu2 }
 0x91f   : > { %v4924_v48 = vadd.f32 %v6859_v35, %v4923_v43 }
 0x921   : > { %v6861_v41 = vpop.eup %6860  ;;  %v4928_v14 = vsel %vm4927_vm13, %v6859_v35, %v4924_v48 }
 0x922   : > { %v4919_v54 = vadd.f32 1.0, %v6861_v41  ;;  %v4933_v33 = vsel %vm4930_vm14, %v4932_v36, %v4928_v14 }
 0x923   : > { %v4950_v13 = vmul.f32 %v4933_v33, %v4857_v8 }
 0x924   : > { %6862 = vrcp.f32 %v4919_v54  ;;  %v4946_v12 = vand.u32 2147483648, %v4919_v54  ;;  %v4944_v40 = vand.u32 2147483647, %v4919_v54  ;;  %vm4940_vm1 = vweird.f32 %v4919_v54 }
 0x925   : > { %v4952_v26 = vperm.slane %v4950_v13, 0 }
 0x926   : > { %v4947_v29 = vor.u32 1.1754944e-38, %v4946_v12  ;;  %vm4945_vm4 = vcmp.eq.f32.partialorder %v4944_v40, 8.507059e+37 }
 0x927   : > { %v11655_v56 = vmul.f32 %v4952_v26, %v11072_v2  ;;  %v11658_v55 = vmul.f32 %v4952_v26, %v11234_v37  ;;  %v11706_v24 = vmul.f32 %v4952_v26, %v11253_v4  ;;  %v11718_v5 = vmul.f32 %v4952_v26, %v11341_v3 }
 0x928   : > { %v11730_v43 = vmul.f32 %v4952_v26, %v11368_v21  ;;  %v11742_v39 = vmul.f32 %v4952_v26, %v11414_v34 }
 0x929   : > { %v4980_v27 = vmul.f32 %v11655_v56, %v11655_v56  ;;  %v5295_v60 = vmul.f32 %v11658_v55, %v11658_v55  ;;  %v5400_v25 = vmul.f32 %v11706_v24, %v11706_v24  ;;  %v5505_v0 = vmul.f32 %v11718_v5, %v11718_v5 }
 0x92a   : > { %v6863_v53 = vpop.eup %6862  ;;  %v5610_v48 = vmul.f32 %v11730_v43, %v11730_v43 }
 0x92b   : > { %v4936_v47 = vmul.f32 %v6863_v53, %v4919_v54  ;;  %vm4941_vm15 = vweird.f32 %v6863_v53 }
 0x92c   : > { %vm4942_vm2 = vmor %vm4940_vm1, %vm4941_vm15 }
 0x92d   : > { %v4937_v44 = vsub.f32 1.0, %v4936_v47 }
 0x92f   : > { %v4938_v49 = vmul.f32 %v6863_v53, %v4937_v44 }
 0x931   : > { %v4939_v50 = vadd.f32 %v6863_v53, %v4938_v49 }
 0x933   : > { %v4943_v58 = vsel %vm4942_vm2, %v6863_v53, %v4939_v50  ;;  %v5715_v53 = vmul.f32 %v11742_v39, %v11742_v39 }
 0x934   : > { %v4948_v11 = vsel %vm4945_vm4, %v4947_v29, %v4943_v58 }
 0x935   : > { %v4951_v20 = vmul.f32 %v4948_v11, %v4909_v61 }
 0x937   : > { %v4953_v9 = vperm.slane %v4951_v20, 0 }
 0x939   : > { %v11661_v30 = vmul.f32 %v4953_v9, %v11250_v23  ;;  %v11664_v19 = vmul.f32 %v4953_v9, %v11078_v63  ;;  %v11675_v23 = vmul.f32 %v4953_v9, %v11101_v51  ;;  %v11678_v63 = vmul.f32 %v4952_v26, %v11098_v22 }
 0x93a   : > { %v11687_v18 = vmul.f32 %v4953_v9, %v11146_v46  ;;  %v11690_v51 = vmul.f32 %v4952_v26, %v11129_v59  ;;  %v11703_v59 = vmul.f32 %v4953_v9, %v11305_v7  ;;  %v11715_v35 = vmul.f32 %v4953_v9, %v11355_v52 }
 0x93b   : > { %v5285_v62 = vadd.f32 %v11661_v30, %v11658_v55  ;;  %v4970_v45 = vadd.f32 %v11664_v19, %v11655_v56  ;;  %v4981_v2 = vmul.f32 %v11664_v19, %v11664_v19  ;;  %v5086_v8 = vmul.f32 %v11675_v23, %v11675_v23 }
 0x93c   : > { %v5075_v15 = vadd.f32 %v11675_v23, %v11678_v63  ;;  %v5085_v1 = vmul.f32 %v11678_v63, %v11678_v63  ;;  %v5191_v22 = vmul.f32 %v11687_v18, %v11687_v18  ;;  %v5180_v57 = vadd.f32 %v11687_v18, %v11690_v51 }
 0x93d   : > { %5286 = vadd.xlane.f32.xlu1 %v5285_v62  ;;  %4971 = vadd.xlane.f32.xlu2 %v4970_v45  ;;  %v4982_v37 = vadd.f32 %v4981_v2, %v4980_v27  ;;  %v5190_v31 = vmul.f32 %v11690_v51, %v11690_v51  ;;  %v5296_v46 = vmul.f32 %v11661_v30, %v11661_v30 }
 0x93e   : > { %v5087_v38 = vadd.f32 %v5086_v8, %v5085_v1  ;;  %v5390_v6 = vadd.f32 %v11703_v59, %v11706_v24  ;;  %v5401_v61 = vmul.f32 %v11703_v59, %v11703_v59  ;;  %v5495_v4 = vadd.f32 %v11715_v35, %v11718_v5 }
 0x93f   : > { %4983 = vadd.xlane.f32.xlu0 %v4982_v37  ;;  %v5192_v32 = vadd.f32 %v5191_v22, %v5190_v31  ;;  %v5297_v28 = vadd.f32 %v5296_v46, %v5295_v60  ;;  %v5506_v16 = vmul.f32 %v11715_v35, %v11715_v35  ;;  %v11727_v41 = vmul.f32 %v4953_v9, %v11376_v17 }
 0x940   : > { %v5402_v7 = vadd.f32 %v5401_v61, %v5400_v25  ;;  %v11739_v10 = vmul.f32 %v4953_v9, %v11417_v42 }
 0x941   : > { %v5507_v52 = vadd.f32 %v5506_v16, %v5505_v0  ;;  %v5600_v3 = vadd.f32 %v11727_v41, %v11730_v43  ;;  %v5611_v54 = vmul.f32 %v11727_v41, %v11727_v41  ;;  %v11759_v16 = vld [vmem:[%s11955_s7] sm:$0xff] }
 0x942   : > { %v5705_v21 = vadd.f32 %v11739_v10, %v11742_v39  ;;  %v5716_v14 = vmul.f32 %v11739_v10, %v11739_v10 }
 0x943   : > { %v5612_v17 = vadd.f32 %v5611_v54, %v5610_v48 }
 0x944   : > { %v5717_v36 = vadd.f32 %v5716_v14, %v5715_v53 }
 0x945   : > { %5076 = vadd.xlane.f32.xlu2 %v5075_v15 }
 0x947   : > { %5088 = vadd.xlane.f32.xlu0 %v5087_v38 }
 0x94d   : > { %5181 = vadd.xlane.f32.xlu2 %v5180_v57 }
 0x94f   : > { %5193 = vadd.xlane.f32.xlu0 %v5192_v32 }
 0x955   : > { %5298 = vadd.xlane.f32.xlu2 %v5297_v28 }
 0x957   : > { %5391 = vadd.xlane.f32.xlu0 %v5390_v6 }
 0x95d   : > { %5403 = vadd.xlane.f32.xlu2 %v5402_v7 }
 0x95f   : > { %5496 = vadd.xlane.f32.xlu0 %v5495_v4  ;;  %v7044_v4 = vmov 3  }
 0x960   : > { %6654 = vset.pattern.permute.xlu1 %v7044_v4  ;;  %6655 = vset.pattern.permute.xlu0 %v7044_v4 }
 0x965   : > { %5508 = vadd.xlane.f32.xlu2 %v5507_v52 }
 0x967   : > { %5601 = vadd.xlane.f32.xlu0 %v5600_v3 }
 0x96d   : > { %5613 = vadd.xlane.f32.xlu2 %v5612_v17 }
 0x96f   : > { %5706 = vadd.xlane.f32.xlu0 %v5705_v21 }
 0x975   : > { %5718 = vadd.xlane.f32.xlu2 %v5717_v36 }
 0x9b0   : > { %v4972_v47 = vpop.xlane.xlu2 %4971 }
 0x9b1   : > { %v4973_v42 = vrot.slane %v4972_v47, 4 }
 0x9b2   : > { %v4984_v33 = vpop.xlane.xlu0 %4983 }
 0x9b3   : > { %v4974_v44 = vadd.f32 %v4973_v42, %v4972_v47  ;;  %v4985_v12 = vrot.slane %v4984_v33, 4 }
 0x9b5   : > { %v4975_v34 = vrot.slane %v4974_v44, 2  ;;  %v4986_v13 = vadd.f32 %v4985_v12, %v4984_v33 }
 0x9b7   : > { %v4987_v49 = vrot.slane %v4986_v13, 2  ;;  %v4976_v40 = vadd.f32 %v4975_v34, %v4974_v44 }
 0x9b8   : > { %v5077_v20 = vpop.xlane.xlu2 %5076 }
 0x9b9   : > { %v4977_v50 = vrot.slane %v4976_v40, 1  ;;  %v4988_v29 = vadd.f32 %v4987_v49, %v4986_v13  ;;  %v5078_v62 = vrot.slane %v5077_v20, 4 }
 0x9ba   : > { %v5089_v9 = vpop.xlane.xlu0 %5088 }
 0x9bb   : > { %v4978_v26 = vadd.f32 %v4977_v50, %v4976_v40  ;;  %v4989_v58 = vrot.slane %v4988_v29, 1  ;;  %v5090_v45 = vrot.slane %v5089_v9, 4  ;;  %v5079_v2 = vadd.f32 %v5078_v62, %v5077_v20  ;;  %v11771_v62 = vld [vmem:[%s11955_s7 + $0x8] sm:$0xff] }
 0x9bd   : > { %6396 = vpush %v4978_v26  ;;  %v4990_v11 = vadd.f32 %v4989_v58, %v4988_v29  ;;  %v5091_v37 = vadd.f32 %v5090_v45, %v5089_v9  ;;  %v5080_v8 = vrot.slane %v5079_v2, 2 }
 0x9bf   : > { %6398 = vpush %v4990_v11  ;;  %v5092_v1 = vrot.slane %v5091_v37, 2  ;;  %v5081_v57 = vadd.f32 %v5080_v8, %v5079_v2 }
 0x9c0   : > { %v5182_v48 = vpop.xlane.xlu2 %5181 }
 0x9c1   : > { %v5093_v31 = vadd.f32 %v5092_v1, %v5091_v37  ;;  %v5082_v60 = vrot.slane %v5081_v57, 1  ;;  %v5183_v21 = vrot.slane %v5182_v48, 4  ;;  %v5287_v37 = vpop.xlane.xlu1 %5286 }
 0x9c2   : > { %v5194_v17 = vpop.xlane.xlu0 %5193 }
 0x9c3   : > { %v5094_v28 = vrot.slane %v5093_v31, 1  ;;  %v5083_v25 = vadd.f32 %v5082_v60, %v5081_v57  ;;  %v5195_v14 = vrot.slane %v5194_v17, 4  ;;  %v5184_v36 = vadd.f32 %v5183_v21, %v5182_v48 }
 0x9c5   : > { %v5095_v7 = vadd.f32 %v5094_v28, %v5093_v31  ;;  %v5196_v47 = vadd.f32 %v5195_v14, %v5194_v17  ;;  %v5185_v42 = vrot.slane %v5184_v36, 2 }
 0x9c7   : > { %v5197_v44 = vrot.slane %v5196_v47, 2  ;;  %v5186_v13 = vadd.f32 %v5185_v42, %v5184_v36 }
 0x9c8   : > { %v5299_v8 = vpop.xlane.xlu2 %5298 }
 0x9c9   : > { %v5198_v49 = vadd.f32 %v5197_v44, %v5196_v47  ;;  %v5187_v29 = vrot.slane %v5186_v13, 1  ;;  %v5300_v1 = vrot.slane %v5299_v8, 4 }
 0x9ca   : > { %v11776_v2 = vpop.xlane.xlu0 %5391 }
 0x9cb   : > { %v5199_v26 = vrot.slane %v5198_v49, 1  ;;  %v5188_v20 = vadd.f32 %v5187_v29, %v5186_v13 }
 0x9cd   : > { %v5200_v9 = vadd.f32 %v5199_v26, %v5198_v49 }
 0x9d2   : > { %v11782_v60 = vpop.xlane.xlu0 %5496 }
 0x9ee   : > { %s6397_s29 = spop %6396 }
 0x9ef   : > { %s11750_s9 = smul.f32 0.00048828125, %s6397_s29 }
 0x9f0   : > { %s6399_s30 = spop %6398 }
 0x9f1   : > { %s4994_s18 = smul.f32 %s11750_s9, %s11750_s9  ;;  %v5012_v3 = vstv %s11750_s9 }
 0x9f2   : > { %s4993_s21 = smul.f32 0.00048828125, %s6399_s30 }
 0x9f4   : > { %s4995_s11 = ssub.f32 %s4993_s21, %s4994_s18 }
 0x9f6   : > { %s4996_s12 = sadd.f32 1e-05, %s4995_s11 }
 0x9f8   : > { %v4997_v27 = vstv %s4996_s12 }
 0x9f9   : > { %6864 = vrsqrt.f32 %v4997_v27  ;;  %vm5004_vm7 = vweird.f32 %v4997_v27 }
 0x9ff   : > { %v6865_v15 = vpop.eup %6864 }
 0xa00   : > { %v4999_v38 = vmul.f32 %v6865_v15, %v4997_v27  ;;  %vm5005_vm5 = vweird.f32 %v6865_v15 }
 0xa01   : > { %vm5006_vm8 = vmor %vm5004_vm7, %vm5005_vm5 }
 0xa02   : > { %v5000_v22 = vmul.f32 %v6865_v15, %v4999_v38 }
 0xa04   : > { %v5001_v32 = vmul.f32 0.5, %v5000_v22 }
 0xa06   : > { %v5002_v46 = vsub.f32 1.5, %v5001_v32  ;;  %v7045_v32 = vmov 4  }
 0xa07   : > { %6656 = vset.pattern.permute.xlu2 %v7045_v32 }
 0xa08   : > { %v5003_v6 = vmul.f32 %v6865_v15, %v5002_v46  ;;  %v5301_v46 = vadd.f32 %v5300_v1, %v5299_v8 }
 0xa0a   : > { %v5007_v61 = vsel %vm5006_vm8, %v6865_v15, %v5003_v6  ;;  %v5288_v15 = vrot.slane %v5287_v37, 4 }
 0xa0b   : > { %6400 = vpush %v5007_v61  ;;  %v5302_v61 = vrot.slane %v5301_v46, 2 }
 0xa0c   : > { %6402 = vpush %v5083_v25  ;;  %v5289_v31 = vadd.f32 %v5288_v15, %v5287_v37 }
 0xa0d   : > { %6404 = vpush %v5095_v7 }
 0xa0e   : > { %v5290_v28 = vrot.slane %v5289_v31, 2 }
 0xa3c   : > { %s6401_s15 = spop %6400 }
 0xa3d   : > { %v5010_v0 = vstv %s6401_s15  ;;  %s6403_s26 = spop %6402 }
 0xa3e   : > { %v5011_v52 = vmul.f32 %v5010_v0, %v11759_v16  ;;  %s11762_s22 = smul.f32 0.00048828125, %s6403_s26  ;;  %s6405_s16 = spop %6404  ;;  %v5291_v0 = vadd.f32 %v5290_v28, %v5289_v31 }
 0xa3f   : > { %s5098_s19 = smul.f32 0.00048828125, %s6405_s16 }
 0xa40   : > { %v5013_v54 = vmul.f32 %v5012_v3, %v5011_v52  ;;  %s5099_s20 = smul.f32 %s11762_s22, %s11762_s22  ;;  %5021 = vperm.xlu1 %6654, %v5011_v52   ;;  %v5117_v38 = vstv %s11762_s22  ;;  %v5303_v52 = vadd.f32 %v5302_v61, %v5301_v46  ;;  %v5292_v17 = vrot.slane %v5291_v0, 1 }
 0xa42   : > { %s5100_s23 = ssub.f32 %s5098_s19, %s5099_s20  ;;  %5015 = vrot.lane.b32.xlu0 %v5013_v54, %s6989_s25  ;;  %v11784_v54 = vpop.xlane.xlu0 %5601  ;;  %v5304_v21 = vrot.slane %v5303_v52, 1  ;;  %v5293_v36 = vadd.f32 %v5292_v17, %v5291_v0 }
 0xa44   : > { %s5101_s24 = sadd.f32 1e-05, %s5100_s23  ;;  %v5305_v47 = vadd.f32 %v5304_v21, %v5303_v52 }
 0xa46   : > { %v5102_v53 = vstv %s5101_s24 }
 0xa47   : > { %6866 = vrsqrt.f32 %v5102_v53  ;;  %vm5109_vm10 = vweird.f32 %v5102_v53 }
 0xa4a   : > { %v11786_v42 = vpop.xlane.xlu0 %5706 }
 0xa4d   : > { %v6867_v33 = vpop.eup %6866 }
 0xa4e   : > { %v5104_v12 = vmul.f32 %v6867_v33, %v5102_v53  ;;  %vm5110_vm9 = vweird.f32 %v6867_v33 }
 0xa4f   : > { %vm5111_vm11 = vmor %vm5109_vm10, %vm5110_vm9 }
 0xa50   : > { %v5105_v34 = vmul.f32 %v6867_v33, %v5104_v12  ;;  %v11792_v12 = vld [vmem:[%s11955_s7 + $0x10] sm:$0xff] }
 0xa52   : > { %v5106_v40 = vmul.f32 0.5, %v5105_v34 }
 0xa54   : > { %v5107_v50 = vsub.f32 1.5, %v5106_v40 }
 0xa56   : > { %v5108_v58 = vmul.f32 %v6867_v33, %v5107_v50  ;;  %v5393_v50 = vrot.slane %v11776_v2, 4 }
 0xa58   : > { %v5112_v11 = vsel %vm5111_vm11, %v6867_v33, %v5108_v58  ;;  %v5394_v58 = vadd.f32 %v5393_v50, %v11776_v2 }
 0xa59   : > { %6406 = vpush %v5112_v11 }
 0xa5a   : > { %6408 = vpush %v5188_v20  ;;  %v5395_v20 = vrot.slane %v5394_v58, 2 }
 0xa5b   : > { %6410 = vpush %v5200_v9 }
 0xa5c   : > { %v5396_v8 = vadd.f32 %v5395_v20, %v5394_v58 }
 0xa8a   : > { %s6407_s9 = spop %6406 }
 0xa8b   : > { %v5115_v45 = vstv %s6407_s9  ;;  %s6409_s30 = spop %6408 }
 0xa8c   : > { %v5116_v27 = vmul.f32 %v5115_v45, %v11771_v62  ;;  %s11774_s18 = smul.f32 0.00048828125, %s6409_s30  ;;  %s6411_s21 = spop %6410 }
 0xa8d   : > { %s5203_s11 = smul.f32 0.00048828125, %s6411_s21 }
 0xa8e   : > { %s5204_s12 = smul.f32 %s11774_s18, %s11774_s18  ;;  %5126 = vperm.xlu0 %6655, %v5116_v27   ;;  %v5118_v22 = vmul.f32 %v5117_v38, %v5116_v27  ;;  %v5222_v49 = vstv %s11774_s18 }
 0xa90   : > { %s5205_s14 = ssub.f32 %s5203_s11, %s5204_s12 }
 0xa92   : > { %s5206_s10 = sadd.f32 1e-05, %s5205_s14 }
 0xa94   : > { %v5207_v57 = vstv %s5206_s10 }
 0xa95   : > { %6868 = vrsqrt.f32 %v5207_v57  ;;  %vm5214_vm0 = vweird.f32 %v5207_v57 }
 0xa96   : > { %5120 = vrot.lane.b32.xlu0 %v5118_v22, %s6989_s25  ;;  %v5397_v22 = vrot.slane %v5396_v8, 1 }
 0xa97   : > { %6659 = vset.pattern.permute.xlu0 %v7045_v32 }
 0xa98   : > { %v5398_v28 = vadd.f32 %v5397_v22, %v5396_v8 }
 0xa9b   : > { %v6869_v6 = vpop.eup %6868 }
 0xa9c   : > { %v5209_v25 = vmul.f32 %v6869_v6, %v5207_v57  ;;  %vm5215_vm12 = vweird.f32 %v6869_v6 }
 0xa9d   : > { %vm5216_vm6 = vmor %vm5214_vm0, %vm5215_vm12 }
 0xa9e   : > { %v5210_v7 = vmul.f32 %v6869_v6, %v5209_v25 }
 0xaa0   : > { %v5211_v3 = vmul.f32 0.5, %v5210_v7 }
 0xaa2   : > { %v5212_v48 = vsub.f32 1.5, %v5211_v3 }
 0xaa4   : > { %v5213_v14 = vmul.f32 %v6869_v6, %v5212_v48 }
 0xaa6   : > { %v5217_v53 = vsel %vm5216_vm6, %v6869_v6, %v5213_v14 }
 0xaa7   : > { %6412 = vpush %v5217_v53 }
 0xaa8   : > { %6414 = vpush %v5293_v36 }
 0xaa9   : > { %6416 = vpush %v5305_v47 }
 0xab2   : > { %v5022_v52 = vpop.permute.xlu1 %5021 }
 0xab3   : > { %v5024_v3 = vmul.f32 %v5022_v52, %v11655_v56  ;;  %v5025_v48 = vmul.f32 %v5022_v52, %v11664_v19  ;;  %v11818_v56 = vld [vmem:[%s11955_s7 + $0x18] sm:$0xff] }
 0xab4   : > { %v5016_v33 = vpop.permute.xlu0 %5015 }
 0xab5   : > { %v5018_v44 = vsub.f32 %v11759_v16, %v5016_v33  ;;  %v5404_v16 = vpop.xlane.xlu2 %5403 }
 0xab6   : > { %v5405_v29 = vrot.slane %v5404_v16, 4 }
 0xab7   : > { %5028 = vperm.xlu2 %6656, %v5018_v44  }
 0xab8   : > { %v5406_v11 = vadd.f32 %v5405_v29, %v5404_v16 }
 0xaba   : > { %v5407_v45 = vrot.slane %v5406_v11, 2 }
 0xabc   : > { %v5408_v15 = vadd.f32 %v5407_v45, %v5406_v11 }
 0xabd   : > { %v11803_v2 = vpop.xlane.xlu2 %5508 }
 0xabe   : > { %v5409_v57 = vrot.slane %v5408_v15, 1 }
 0xac5   : > { %v11805_v6 = vpop.xlane.xlu2 %5613 }
 0xacd   : > { %v11809_v7 = vpop.xlane.xlu2 %5718 }
 0xad8   : > { %s6413_s22 = spop %6412 }
 0xad9   : > { %v5220_v34 = vstv %s6413_s22  ;;  %s6415_s16 = spop %6414 }
 0xada   : > { %v5221_v13 = vmul.f32 %v5220_v34, %v11792_v12  ;;  %s11795_s19 = smul.f32 0.00048828125, %s6415_s16  ;;  %s6417_s20 = spop %6416 }
 0xadb   : > { %s5308_s23 = smul.f32 0.00048828125, %s6417_s20 }
 0xadc   : > { %v5223_v40 = vmul.f32 %v5222_v49, %v5221_v13  ;;  %s5309_s24 = smul.f32 %s11795_s19, %s11795_s19  ;;  %5231 = vperm.xlu1 %6654, %v5221_v13   ;;  %v5327_v50 = vstv %s11795_s19  ;;  %s11833_s19 = scalar_lea.vmem %s11956_s8, %s6314_s13 }
 0xade   : > { %s5310_s17 = ssub.f32 %s5308_s23, %s5309_s24  ;;  %5225 = vrot.lane.b32.xlu2 %v5223_v40, %s6989_s25 }
 0xae0   : > { %s5311_s29 = sadd.f32 1e-05, %s5310_s17 }
 0xae2   : > { %v5312_v26 = vstv %s5311_s29 }
 0xae3   : > { %6870 = vrsqrt.f32 %v5312_v26  ;;  %vm5319_vm13 = vweird.f32 %v5312_v26 }
 0xae4   : > { %6657 = vset.pattern.permute.xlu1 %v7045_v32  ;;  %v5410_v32 = vadd.f32 %v5409_v57, %v5408_v15  ;;  %v5510_v57 = vrot.slane %v11803_v2, 4 }
 0xae9   : > { %v6871_v9 = vpop.eup %6870 }
 0xaea   : > { %v5314_v27 = vmul.f32 %v6871_v9, %v5312_v26  ;;  %vm5320_vm3 = vweird.f32 %v6871_v9 }
 0xaeb   : > { %vm5321_vm14 = vmor %vm5319_vm13, %vm5320_vm3 }
 0xaec   : > { %v5315_v37 = vmul.f32 %v6871_v9, %v5314_v27 }
 0xaee   : > { %v5316_v1 = vmul.f32 0.5, %v5315_v37 }
 0xaf0   : > { %v5317_v38 = vsub.f32 1.5, %v5316_v1  ;;  %v5498_v1 = vrot.slane %v11782_v60, 4 }
 0xaf2   : > { %v5318_v31 = vmul.f32 %v6871_v9, %v5317_v38  ;;  %v5499_v52 = vadd.f32 %v5498_v1, %v11782_v60 }
 0xaf4   : > { %v5322_v46 = vsel %vm5321_vm14, %v6871_v9, %v5318_v31 }
 0xaf5   : > { %6418 = vpush %v5322_v46 }
 0xaf6   : > { %6420 = vpush %v5398_v28 }
 0xaf7   : > { %6422 = vpush %v5410_v32 }
 0xb00   : > { %v11807_v61 = vpop.permute.xlu0 %5126 }
 0xb08   : > { %v5121_v25 = vpop.permute.xlu0 %5120 }
 0xb09   : > { %v5123_v0 = vsub.f32 %v11771_v62, %v5121_v25 }
 0xb0b   : > { %5133 = vperm.xlu1 %6657, %v5123_v0  }
 0xb11   : > { %v5029_v17 = vpop.permute.xlu2 %5028 }
 0xb12   : > { %v5031_v21 = vadd.f32 %v5029_v17, %v5024_v3  ;;  %v5032_v14 = vadd.f32 %v5029_v17, %v5025_v48  ;;  %v5511_v3 = vadd.f32 %v5510_v57, %v11803_v2  ;;  %v5500_v48 = vrot.slane %v5499_v52, 2 }
 0xb13   : > { %6658 = vset.pattern.permute.xlu1 %v7044_v4 }
 0xb14   : > { %v6296_v53 = vmul.f32 -1.442695, %v5031_v21  ;;  %v6297_v36 = vmul.f32 -1.442695, %v5032_v14 }
 0xb16   : > { %6872 = vpow2.f32 %v6296_v53  ;;  %v5512_v53 = vrot.slane %v5511_v3, 2 }
 0xb17   : > { %6874 = vpow2.f32 %v6297_v36 }
 0xb1c   : > { %v6873_v47 = vpop.eup %6872 }
 0xb1d   : > { %v6875_v33 = vpop.eup %6874  ;;  %v5039_v44 = vadd.f32 1.0, %v6873_v47 }
 0xb1e   : > { %v5040_v62 = vadd.f32 1.0, %v6875_v33 }
 0xb1f   : > { %6876 = vrcp.f32 %v5039_v44  ;;  %v5050_v29 = vand.u32 2147483647, %v5039_v44  ;;  %v5052_v26 = vand.u32 2147483648, %v5039_v44  ;;  %vm5046_vm2 = vweird.f32 %v5039_v44 }
 0xb20   : > { %6878 = vrcp.f32 %v5040_v62  ;;  %v5067_v20 = vand.u32 2147483648, %v5040_v62  ;;  %v5065_v27 = vand.u32 2147483647, %v5040_v62  ;;  %vm5061_vm5 = vweird.f32 %v5040_v62 }
 0xb21   : > { %v5053_v8 = vor.u32 1.1754944e-38, %v5052_v26  ;;  %vm5051_vm7 = vcmp.eq.f32.partialorder %v5050_v29, 8.507059e+37 }
 0xb22   : > { %v5068_v22 = vor.u32 1.1754944e-38, %v5067_v20  ;;  %vm5066_vm9 = vcmp.eq.f32.partialorder %v5065_v27, 8.507059e+37  ;;  %v5603_v20 = vrot.slane %v11784_v54, 4 }
 0xb25   : > { %v6877_v34 = vpop.eup %6876 }
 0xb26   : > { %v6879_v19 = vpop.eup %6878  ;;  %v5042_v13 = vmul.f32 %v6877_v34, %v5039_v44  ;;  %s6419_s18 = spop %6418  ;;  %vm5047_vm15 = vweird.f32 %v6877_v34 }
 0xb27   : > { %v5057_v4 = vmul.f32 %v6879_v19, %v5040_v62  ;;  %v5325_v49 = vstv %s6419_s18  ;;  %s6421_s21 = spop %6420  ;;  %vm5062_vm1 = vweird.f32 %v6879_v19  ;;  %vm5048_vm4 = vmor %vm5046_vm2, %vm5047_vm15  ;;  %v5501_v62 = vadd.f32 %v5500_v48, %v5499_v52 }
 0xb28   : > { %v5043_v40 = vsub.f32 1.0, %v5042_v13  ;;  %v5326_v16 = vmul.f32 %v5325_v49, %v11818_v56  ;;  %s11821_s11 = smul.f32 0.00048828125, %s6421_s21  ;;  %s6423_s12 = spop %6422  ;;  %vm5063_vm8 = vmor %vm5061_vm5, %vm5062_vm1 }
 0xb29   : > { %v5058_v58 = vsub.f32 1.0, %v5057_v4  ;;  %s5413_s14 = smul.f32 0.00048828125, %s6423_s12 }
 0xb2a   : > { %v5044_v11 = vmul.f32 %v6877_v34, %v5043_v40  ;;  %v5328_v9 = vmul.f32 %v5327_v50, %v5326_v16  ;;  %s5414_s10 = smul.f32 %s11821_s11, %s11821_s11  ;;  %5336 = vperm.xlu1 %6658, %v5326_v16   ;;  %v5432_v29 = vstv %s11821_s11 }
 0xb2b   : > { %v5059_v45 = vmul.f32 %v6879_v19, %v5058_v58  ;;  %v5129_v58 = vmul.f32 %v11807_v61, %v11678_v63  ;;  %v5604_v63 = vadd.f32 %v5603_v20, %v11784_v54 }
 0xb2c   : > { %v5045_v37 = vadd.f32 %v6877_v34, %v5044_v11  ;;  %s5415_s15 = ssub.f32 %s5413_s14, %s5414_s10  ;;  %5330 = vrot.lane.b32.xlu0 %v5328_v9, %s6989_s25  ;;  %v5130_v11 = vmul.f32 %v11807_v61, %v11675_v23 }
 0xb2d   : > { %v5060_v15 = vadd.f32 %v6879_v19, %v5059_v45  ;;  %v5615_v45 = vrot.slane %v11805_v6, 4 }
 0xb2e   : > { %v5049_v38 = vsel %vm5048_vm4, %v6877_v34, %v5045_v37  ;;  %s5416_s26 = sadd.f32 1e-05, %s5415_s15 }
 0xb2f   : > { %v5054_v31 = vsel %vm5051_vm7, %v5053_v8, %v5049_v38  ;;  %v5064_v46 = vsel %vm5063_vm8, %v6879_v19, %v5060_v15  ;;  %v5502_v19 = vrot.slane %v5501_v62, 1  ;;  %v5616_v23 = vadd.f32 %v5615_v45, %v11805_v6 }
 0xb30   : > { %v5069_v28 = vsel %vm5066_vm9, %v5068_v22, %v5064_v46  ;;  %v5071_v32 = vmul.f32 %v5054_v31, %v5031_v21  ;;  %v5417_v25 = vstv %s5416_s26  ;;  %v5513_v21 = vadd.f32 %v5512_v53, %v5511_v3 }
 0xb31   : > { %v5072_v0 = vmul.f32 %v5069_v28, %v5032_v14  ;;  %6880 = vrsqrt.f32 %v5417_v25  ;;  %vm5424_vm11 = vweird.f32 %v5417_v25  ;;  %v5503_v4 = vadd.f32 %v5502_v19, %v5501_v62 }
 0xb32   : > { %5073 = vst [vmem:[%s11833_s19] sm:$0xff] %v5071_v32  ;;  %v5514_v60 = vrot.slane %v5513_v21, 1  ;;  %v5605_v38 = vrot.slane %v5604_v63, 2  ;;  %v5617_v22 = vrot.slane %v5616_v23, 2 }
 0xb33   : > { %5074 = vst [vmem:[%s11833_s19 + $0x8] sm:$0xff] %v5072_v0 }
 0xb34   : > { %v5515_v49 = vadd.f32 %v5514_v60, %v5513_v21  ;;  %v5618_v3 = vadd.f32 %v5617_v22, %v5616_v23 }
 0xb36   : > { %v5619_v6 = vrot.slane %v5618_v3, 1 }
 0xb37   : > { %v6881_v17 = vpop.eup %6880 }
 0xb38   : > { %v5419_v36 = vmul.f32 %v6881_v17, %v5417_v25  ;;  %v5226_v47 = vpop.permute.xlu2 %5225  ;;  %vm5425_vm10 = vweird.f32 %v6881_v17  ;;  %v5606_v25 = vadd.f32 %v5605_v38, %v5604_v63  ;;  %v5620_v62 = vadd.f32 %v5619_v6, %v5618_v3 }
 0xb39   : > { %v5228_v33 = vsub.f32 %v11792_v12, %v5226_v47  ;;  %vm5426_vm12 = vmor %vm5424_vm11, %vm5425_vm10  ;;  %v11844_v12 = vld [vmem:[%s11955_s7 + $0x20] sm:$0xff] }
 0xb3a   : > { %v5420_v44 = vmul.f32 %v6881_v17, %v5419_v36  ;;  %v5607_v54 = vrot.slane %v5606_v25, 1 }
 0xb3b   : > { %5238 = vperm.xlu2 %6656, %v5228_v33  }
 0xb3c   : > { %v5421_v34 = vmul.f32 0.5, %v5420_v44  ;;  %v5608_v47 = vadd.f32 %v5607_v54, %v5606_v25 }
 0xb3e   : > { %v5422_v14 = vsub.f32 1.5, %v5421_v34 }
 0xb40   : > { %v5423_v13 = vmul.f32 %v6881_v17, %v5422_v14 }
 0xb42   : > { %v5427_v2 = vsel %vm5426_vm12, %v6881_v17, %v5423_v13 }
 0xb43   : > { %6424 = vpush %v5427_v2 }
 0xb44   : > { %6426 = vpush %v5503_v4 }
 0xb45   : > { %6428 = vpush %v5515_v49 }
 0xb4e   : > { %v5232_v40 = vpop.permute.xlu1 %5231 }
 0xb4f   : > { %v5234_v34 = vmul.f32 %v5232_v40, %v11690_v51  ;;  %v5235_v14 = vmul.f32 %v5232_v40, %v11687_v18 }
 0xb74   : > { %s6425_s20 = spop %6424 }
 0xb75   : > { %v5430_v16 = vstv %s6425_s20  ;;  %s6427_s23 = spop %6426 }
 0xb76   : > { %v5431_v50 = vmul.f32 %v5430_v16, %v11844_v12  ;;  %s11847_s24 = smul.f32 0.00048828125, %s6427_s23  ;;  %s6429_s17 = spop %6428 }
 0xb77   : > { %s5518_s29 = smul.f32 0.00048828125, %s6429_s17 }
 0xb78   : > { %v5433_v26 = vmul.f32 %v5432_v29, %v5431_v50  ;;  %s5519_s9 = smul.f32 %s11847_s24, %s11847_s24  ;;  %5441 = vperm.xlu1 %6658, %v5431_v50  }
 0xb7a   : > { %s5520_s30 = ssub.f32 %s5518_s29, %s5519_s9  ;;  %5435 = vrot.lane.b32.xlu0 %v5433_v26, %s6989_s25 }
 0xb7c   : > { %s5521_s18 = sadd.f32 1e-05, %s5520_s30 }
 0xb7d   : > { %v5134_v9 = vpop.permute.xlu1 %5133 }
 0xb7e   : > { %v5522_v27 = vstv %s5521_s18  ;;  %v11859_v37 = vadd.f32 %v5134_v9, %v5129_v58  ;;  %v11861_v8 = vadd.f32 %v5134_v9, %v5130_v11 }
 0xb7f   : > { %6882 = vrsqrt.f32 %v5522_v27  ;;  %vm5529_vm6 = vweird.f32 %v5522_v27 }
 0xb80   : > { %v6298_v15 = vmul.f32 -1.442695, %v11859_v37  ;;  %v6299_v1 = vmul.f32 -1.442695, %v11861_v8 }
 0xb82   : > { %6884 = vpow2.f32 %v6298_v15 }
 0xb83   : > { %6886 = vpow2.f32 %v6299_v1 }
 0xb85   : > { %v6883_v61 = vpop.eup %6882 }
 0xb86   : > { %v5524_v57 = vmul.f32 %v6883_v61, %v5522_v27  ;;  %vm5530_vm0 = vweird.f32 %v6883_v61 }
 0xb87   : > { %vm5531_vm3 = vmor %vm5529_vm6, %vm5530_vm0 }
 0xb88   : > { %v6885_v31 = vpop.eup %6884  ;;  %v5525_v46 = vmul.f32 %v6883_v61, %v5524_v57 }
 0xb89   : > { %v6887_v28 = vpop.eup %6886  ;;  %v5144_v32 = vadd.f32 1.0, %v6885_v31 }
 0xb8a   : > { %v5145_v0 = vadd.f32 1.0, %v6887_v28  ;;  %v5526_v52 = vmul.f32 0.5, %v5525_v46 }
 0xb8b   : > { %6888 = vrcp.f32 %v5144_v32  ;;  %v5155_v60 = vand.u32 2147483647, %v5144_v32  ;;  %v5157_v13 = vand.u32 2147483648, %v5144_v32  ;;  %vm5151_vm15 = vweird.f32 %v5144_v32 }
 0xb8c   : > { %6890 = vrcp.f32 %v5145_v0  ;;  %v5527_v48 = vsub.f32 1.5, %v5526_v52  ;;  %v5172_v4 = vand.u32 2147483648, %v5145_v0  ;;  %v5170_v58 = vand.u32 2147483647, %v5145_v0 }
 0xb8d   : > { %v5158_v40 = vor.u32 1.1754944e-38, %v5157_v13  ;;  %vm5166_vm2 = vweird.f32 %v5145_v0  ;;  %vm5156_vm4 = vcmp.eq.f32.partialorder %v5155_v60, 8.507059e+37 }
 0xb8e   : > { %v5528_v17 = vmul.f32 %v6883_v61, %v5527_v48  ;;  %v5173_v45 = vor.u32 1.1754944e-38, %v5172_v4  ;;  %vm5171_vm7 = vcmp.eq.f32.partialorder %v5170_v58, 8.507059e+37 }
 0xb90   : > { %v5532_v36 = vsel %vm5531_vm3, %v6883_v61, %v5528_v17 }
 0xb91   : > { %v6889_v53 = vpop.eup %6888  ;;  %6430 = vpush %v5532_v36 }
 0xb92   : > { %v6891_v33 = vpop.eup %6890  ;;  %v5147_v44 = vmul.f32 %v6889_v53, %v5144_v32  ;;  %6432 = vpush %v5608_v47  ;;  %vm5152_vm13 = vweird.f32 %v6889_v53 }
 0xb93   : > { %v5162_v21 = vmul.f32 %v6891_v33, %v5145_v0  ;;  %6434 = vpush %v5620_v62  ;;  %vm5167_vm14 = vweird.f32 %v6891_v33  ;;  %vm5153_vm1 = vmor %vm5151_vm15, %vm5152_vm13 }
 0xb94   : > { %v5148_v19 = vsub.f32 1.0, %v5147_v44  ;;  %vm5168_vm5 = vmor %vm5166_vm2, %vm5167_vm14 }
 0xb95   : > { %v5163_v2 = vsub.f32 1.0, %v5162_v21  ;;  %v5239_v49 = vpop.permute.xlu2 %5238 }
 0xb96   : > { %v5149_v16 = vmul.f32 %v6889_v53, %v5148_v19  ;;  %v11869_v50 = vadd.f32 %v5239_v49, %v5234_v34  ;;  %v11871_v29 = vadd.f32 %v5239_v49, %v5235_v14  ;;  %v11887_v19 = vld [vmem:[%s11955_s7 + $0x28] sm:$0xff]  ;;  %v5708_v49 = vrot.slane %v11786_v42, 4 }
 0xb97   : > { %v5164_v26 = vmul.f32 %v6891_v33, %v5163_v2  ;;  %v5537_v2 = vstv %s11847_s24 }
 0xb98   : > { %v5150_v11 = vadd.f32 %v6889_v53, %v5149_v16  ;;  %v6300_v18 = vmul.f32 -1.442695, %v11869_v50  ;;  %v6301_v51 = vmul.f32 -1.442695, %v11871_v29  ;;  %v5720_v16 = vrot.slane %v11809_v7, 4 }
 0xb99   : > { %v5165_v20 = vadd.f32 %v6891_v33, %v5164_v26 }
 0xb9a   : > { %v5154_v9 = vsel %vm5153_vm1, %v6889_v53, %v5150_v11  ;;  %6892 = vpow2.f32 %v6300_v18  ;;  %v5721_v26 = vadd.f32 %v5720_v16, %v11809_v7 }
 0xb9b   : > { %v5159_v27 = vsel %vm5156_vm4, %v5158_v40, %v5154_v9  ;;  %v5169_v15 = vsel %vm5168_vm5, %v6891_v33, %v5165_v20  ;;  %6894 = vpow2.f32 %v6301_v51 }
 0xb9c   : > { %v5174_v1 = vsel %vm5171_vm7, %v5173_v45, %v5169_v15  ;;  %v5176_v63 = vmul.f32 %v5159_v27, %v11859_v37  ;;  %v5722_v18 = vrot.slane %v5721_v26, 2 }
 0xb9d   : > { %v5177_v23 = vmul.f32 %v5174_v1, %v11861_v8 }
 0xb9e   : > { %5178 = vst [vmem:[%s11833_s19 + $0x10] sm:$0xff] %v5176_v63  ;;  %v5331_v61 = vpop.permute.xlu0 %5330  ;;  %v5723_v9 = vadd.f32 %v5722_v18, %v5721_v26 }
 0xb9f   : > { %5179 = vst [vmem:[%s11833_s19 + $0x18] sm:$0xff] %v5177_v23  ;;  %v5333_v38 = vsub.f32 %v11818_v56, %v5331_v61 }
 0xba0   : > { %v6893_v22 = vpop.eup %6892  ;;  %v5724_v1 = vrot.slane %v5723_v9, 1 }
 0xba1   : > { %v6895_v57 = vpop.eup %6894  ;;  %v5249_v31 = vadd.f32 1.0, %v6893_v22  ;;  %5343 = vperm.xlu2 %6656, %v5333_v38   ;;  %v5337_v22 = vpop.permute.xlu1 %5336 }
 0xba2   : > { %v5250_v46 = vadd.f32 1.0, %v6895_v57  ;;  %v5339_v57 = vmul.f32 %v5337_v22, %v11658_v55  ;;  %v11906_v55 = vld [vmem:[%s11955_s7 + $0x30] sm:$0xff] }
 0xba3   : > { %6896 = vrcp.f32 %v5249_v31  ;;  %v5262_v37 = vand.u32 2147483648, %v5249_v31  ;;  %v5260_v48 = vand.u32 2147483647, %v5249_v31  ;;  %vm5256_vm10 = vweird.f32 %v5249_v31 }
 0xba4   : > { %6898 = vrcp.f32 %v5250_v46  ;;  %v5277_v54 = vand.u32 2147483648, %v5250_v46  ;;  %v5275_v56 = vand.u32 2147483647, %v5250_v46  ;;  %vm5271_vm12 = vweird.f32 %v5250_v46 }
 0xba5   : > { %v5263_v53 = vor.u32 1.1754944e-38, %v5262_v37  ;;  %vm5261_vm0 = vcmp.eq.f32.partialorder %v5260_v48, 8.507059e+37 }
 0xba6   : > { %v5278_v33 = vor.u32 1.1754944e-38, %v5277_v54  ;;  %vm5276_vm3 = vcmp.eq.f32.partialorder %v5275_v56, 8.507059e+37 }
 0xba9   : > { %v6897_v28 = vpop.eup %6896 }
 0xbaa   : > { %v6899_v32 = vpop.eup %6898  ;;  %v5252_v25 = vmul.f32 %v6897_v28, %v5249_v31  ;;  %vm5257_vm8 = vweird.f32 %v6897_v28  ;;  %v5340_v31 = vmul.f32 %v5337_v22, %v11661_v30 }
 0xbab   : > { %v5267_v0 = vmul.f32 %v6899_v32, %v5250_v46  ;;  %vm5272_vm9 = vweird.f32 %v6899_v32  ;;  %vm5258_vm11 = vmor %vm5256_vm10, %vm5257_vm8 }
 0xbac   : > { %v5253_v52 = vsub.f32 1.0, %v5252_v25  ;;  %vm5273_vm6 = vmor %vm5271_vm12, %vm5272_vm9 }
 0xbad   : > { %v5268_v3 = vsub.f32 1.0, %v5267_v0 }
 0xbae   : > { %v5254_v8 = vmul.f32 %v6897_v28, %v5253_v52 }
 0xbaf   : > { %v5269_v6 = vmul.f32 %v6899_v32, %v5268_v3 }
 0xbb0   : > { %v5255_v17 = vadd.f32 %v6897_v28, %v5254_v8 }
 0xbb1   : > { %v5270_v36 = vadd.f32 %v6899_v32, %v5269_v6 }
 0xbb2   : > { %v5259_v47 = vsel %vm5258_vm11, %v6897_v28, %v5255_v17 }
 0xbb3   : > { %v5264_v44 = vsel %vm5261_vm0, %v5263_v53, %v5259_v47  ;;  %v5274_v62 = vsel %vm5273_vm6, %v6899_v32, %v5270_v36 }
 0xbb4   : > { %v5279_v21 = vsel %vm5276_vm3, %v5278_v33, %v5274_v62  ;;  %v5281_v34 = vmul.f32 %v5264_v44, %v11869_v50 }
 0xbb5   : > { %v5282_v14 = vmul.f32 %v5279_v21, %v11871_v29  ;;  %v5709_v29 = vadd.f32 %v5708_v49, %v11786_v42  ;;  %v5725_v42 = vadd.f32 %v5724_v1, %v5723_v9 }
 0xbb6   : > { %5283 = vst [vmem:[%s11833_s19 + $0x20] sm:$0xff] %v5281_v34 }
 0xbb7   : > { %5284 = vst [vmem:[%s11833_s19 + $0x28] sm:$0xff] %v5282_v14  ;;  %v5710_v58 = vrot.slane %v5709_v29, 2 }
 0xbb9   : > { %v5711_v20 = vadd.f32 %v5710_v58, %v5709_v29 }
 0xbbb   : > { %v5712_v15 = vrot.slane %v5711_v20, 1 }
 0xbbd   : > { %v5713_v61 = vadd.f32 %v5712_v15, %v5711_v20 }
 0xbc2   : > { %s6431_s12 = spop %6430 }
 0xbc3   : > { %v5535_v60 = vstv %s6431_s12  ;;  %s6433_s14 = spop %6432 }
 0xbc4   : > { %v5536_v13 = vmul.f32 %v5535_v60, %v11887_v19  ;;  %s11890_s10 = smul.f32 0.00048828125, %s6433_s14  ;;  %s6435_s15 = spop %6434 }
 0xbc5   : > { %s5623_s26 = smul.f32 0.00048828125, %s6435_s15 }
 0xbc6   : > { %v5538_v4 = vmul.f32 %v5537_v2, %v5536_v13  ;;  %s5624_s22 = smul.f32 %s11890_s10, %s11890_s10  ;;  %5546 = vperm.xlu1 %6658, %v5536_v13   ;;  %v5642_v17 = vstv %s11890_s10 }
 0xbc8   : > { %s5625_s16 = ssub.f32 %s5623_s26, %s5624_s22  ;;  %5540 = vrot.lane.b32.xlu0 %v5538_v4, %s6989_s25 }
 0xbca   : > { %s5626_s28 = sadd.f32 1e-05, %s5625_s16 }
 0xbcc   : > { %v5627_v50 = vstv %s5626_s28 }
 0xbcd   : > { %6900 = vrsqrt.f32 %v5627_v50  ;;  %vm5634_vm14 = vweird.f32 %v5627_v50 }
 0xbd3   : > { %v6901_v11 = vpop.eup %6900 }
 0xbd4   : > { %v5629_v51 = vmul.f32 %v6901_v11, %v5627_v50  ;;  %vm5635_vm13 = vweird.f32 %v6901_v11 }
 0xbd5   : > { %vm5636_vm15 = vmor %vm5634_vm14, %vm5635_vm13 }
 0xbd6   : > { %v5630_v40 = vmul.f32 %v6901_v11, %v5629_v51 }
 0xbd8   : > { %v5631_v45 = vmul.f32 0.5, %v5630_v40 }
 0xbda   : > { %v5632_v27 = vsub.f32 1.5, %v5631_v45 }
 0xbdc   : > { %v5633_v63 = vmul.f32 %v6901_v11, %v5632_v27 }
 0xbde   : > { %v5637_v23 = vsel %vm5636_vm15, %v6901_v11, %v5633_v63 }
 0xbdf   : > { %6436 = vpush %v5637_v23 }
 0xbe0   : > { %6438 = vpush %v5713_v61 }
 0xbe1   : > { %6440 = vpush %v5725_v42 }
 0xbea   : > { %v5442_v63 = vpop.permute.xlu1 %5441 }
 0xbeb   : > { %v5444_v23 = vmul.f32 %v5442_v63, %v11706_v24  ;;  %v5445_v61 = vmul.f32 %v5442_v63, %v11703_v59  ;;  %v11924_v59 = vld [vmem:[%s11955_s7 + $0x38] sm:$0xff] }
 0xbec   : > { %v5436_v7 = vpop.permute.xlu0 %5435 }
 0xbed   : > { %v5438_v38 = vsub.f32 %v11844_v12, %v5436_v7 }
 0xbef   : > { %5448 = vperm.xlu2 %6656, %v5438_v38  }
 0xbfb   : > { %v5344_v46 = vpop.permute.xlu2 %5343 }
 0xbfc   : > { %v5346_v28 = vadd.f32 %v5344_v46, %v5339_v57  ;;  %v5347_v32 = vadd.f32 %v5344_v46, %v5340_v31 }
 0xbfe   : > { %v6302_v25 = vmul.f32 -1.442695, %v5346_v28  ;;  %v6303_v0 = vmul.f32 -1.442695, %v5347_v32 }
 0xc00   : > { %6902 = vpow2.f32 %v6302_v25 }
 0xc01   : > { %6904 = vpow2.f32 %v6303_v0 }
 0xc06   : > { %v6903_v52 = vpop.eup %6902 }
 0xc07   : > { %v6905_v37 = vpop.eup %6904  ;;  %v5354_v3 = vadd.f32 1.0, %v6903_v52 }
 0xc08   : > { %v5355_v8 = vadd.f32 1.0, %v6905_v37 }
 0xc09   : > { %6906 = vrcp.f32 %v5354_v3  ;;  %v5367_v53 = vand.u32 2147483648, %v5354_v3  ;;  %v5365_v44 = vand.u32 2147483647, %v5354_v3  ;;  %vm5361_vm4 = vweird.f32 %v5354_v3 }
 0xc0a   : > { %6908 = vrcp.f32 %v5355_v8  ;;  %v5382_v62 = vand.u32 2147483648, %v5355_v8  ;;  %v5380_v34 = vand.u32 2147483647, %v5355_v8  ;;  %vm5376_vm7 = vweird.f32 %v5355_v8 }
 0xc0b   : > { %v5368_v13 = vor.u32 1.1754944e-38, %v5367_v53  ;;  %vm5366_vm8 = vcmp.eq.f32.partialorder %v5365_v44, 8.507059e+37 }
 0xc0c   : > { %v5383_v49 = vor.u32 1.1754944e-38, %v5382_v62  ;;  %vm5381_vm10 = vcmp.eq.f32.partialorder %v5380_v34, 8.507059e+37 }
 0xc0f   : > { %v6907_v12 = vpop.eup %6906 }
 0xc10   : > { %v6909_v48 = vpop.eup %6908  ;;  %v5357_v54 = vmul.f32 %v6907_v12, %v5354_v3  ;;  %s6437_s23 = spop %6436  ;;  %vm5362_vm1 = vweird.f32 %v6907_v12 }
 0xc11   : > { %v5372_v30 = vmul.f32 %v6909_v48, %v5355_v8  ;;  %v5640_v56 = vstv %s6437_s23  ;;  %s6439_s24 = spop %6438  ;;  %vm5377_vm2 = vweird.f32 %v6909_v48  ;;  %vm5363_vm5 = vmor %vm5361_vm4, %vm5362_vm1 }
 0xc12   : > { %v5358_v6 = vsub.f32 1.0, %v5357_v54  ;;  %v5641_v47 = vmul.f32 %v5640_v56, %v11906_v55  ;;  %s11910_s17 = smul.f32 0.00048828125, %s6439_s24  ;;  %s6441_s29 = spop %6440  ;;  %vm5378_vm9 = vmor %vm5376_vm7, %vm5377_vm2 }
 0xc13   : > { %v5373_v36 = vsub.f32 1.0, %v5372_v30  ;;  %s5728_s9 = smul.f32 0.00048828125, %s6441_s29 }
 0xc14   : > { %v5359_v33 = vmul.f32 %v6907_v12, %v5358_v6  ;;  %v5643_v14 = vmul.f32 %v5642_v17, %v5641_v47  ;;  %s5729_s30 = smul.f32 %s11910_s17, %s11910_s17  ;;  %5651 = vperm.xlu1 %6658, %v5641_v47   ;;  %v5747_v3 = vstv %s11910_s17 }
 0xc15   : > { %v5374_v21 = vmul.f32 %v6909_v48, %v5373_v36 }
 0xc16   : > { %v5360_v60 = vadd.f32 %v6907_v12, %v5359_v33  ;;  %s5730_s18 = ssub.f32 %s5728_s9, %s5729_s30  ;;  %5645 = vrot.lane.b32.xlu0 %v5643_v14, %s6989_s25 }
 0xc17   : > { %v5375_v2 = vadd.f32 %v6909_v48, %v5374_v21 }
 0xc18   : > { %v5364_v4 = vsel %vm5363_vm5, %v6907_v12, %v5360_v60  ;;  %s5731_s21 = sadd.f32 1e-05, %s5730_s18 }
 0xc19   : > { %v5369_v16 = vsel %vm5366_vm8, %v5368_v13, %v5364_v4  ;;  %v5379_v50 = vsel %vm5378_vm9, %v6909_v48, %v5375_v2 }
 0xc1a   : > { %v5384_v29 = vsel %vm5381_vm10, %v5383_v49, %v5379_v50  ;;  %v5386_v26 = vmul.f32 %v5369_v16, %v5346_v28  ;;  %v5732_v11 = vstv %s5731_s21 }
 0xc1b   : > { %v5387_v58 = vmul.f32 %v5384_v29, %v5347_v32  ;;  %6910 = vrsqrt.f32 %v5732_v11  ;;  %vm5739_vm12 = vweird.f32 %v5732_v11 }
 0xc1c   : > { %5388 = vst [vmem:[%s11833_s19 + $0x30] sm:$0xff] %v5386_v26 }
 0xc1d   : > { %5389 = vst [vmem:[%s11833_s19 + $0x38] sm:$0xff] %v5387_v58 }
 0xc21   : > { %v6911_v18 = vpop.eup %6910 }
 0xc22   : > { %v5734_v51 = vmul.f32 %v6911_v18, %v5732_v11  ;;  %vm5740_vm11 = vweird.f32 %v6911_v18 }
 0xc23   : > { %vm5741_vm0 = vmor %vm5739_vm12, %vm5740_vm11 }
 0xc24   : > { %v5735_v40 = vmul.f32 %v6911_v18, %v5734_v51 }
 0xc26   : > { %v5736_v20 = vmul.f32 0.5, %v5735_v40 }
 0xc28   : > { %v5737_v9 = vsub.f32 1.5, %v5736_v20 }
 0xc2a   : > { %v5738_v45 = vmul.f32 %v6911_v18, %v5737_v9 }
 0xc2c   : > { %v5742_v27 = vsel %vm5741_vm0, %v6911_v18, %v5738_v45 }
 0xc2d   : > { %6442 = vpush %v5742_v27 }
 0xc38   : > { %v5547_v49 = vpop.permute.xlu1 %5546 }
 0xc39   : > { %v5549_v16 = vmul.f32 %v5547_v49, %v11718_v5  ;;  %v5550_v50 = vmul.f32 %v5547_v49, %v11715_v35 }
 0xc3a   : > { %v5541_v15 = vpop.permute.xlu0 %5540 }
 0xc3b   : > { %v5543_v1 = vsub.f32 %v11887_v19, %v5541_v15 }
 0xc3d   : > { %5553 = vperm.xlu2 %6656, %v5543_v1  }
 0xc49   : > { %v5449_v42 = vpop.permute.xlu2 %5448 }
 0xc4a   : > { %v5451_v7 = vadd.f32 %v5449_v42, %v5444_v23  ;;  %v5452_v38 = vadd.f32 %v5449_v42, %v5445_v61 }
 0xc4c   : > { %v6304_v22 = vmul.f32 -1.442695, %v5451_v7  ;;  %v6305_v57 = vmul.f32 -1.442695, %v5452_v38 }
 0xc4e   : > { %6912 = vpow2.f32 %v6304_v22 }
 0xc4f   : > { %6914 = vpow2.f32 %v6305_v57 }
 0xc54   : > { %v6913_v31 = vpop.eup %6912 }
 0xc55   : > { %v6915_v46 = vpop.eup %6914  ;;  %v5459_v28 = vadd.f32 1.0, %v6913_v31 }
 0xc56   : > { %v5460_v32 = vadd.f32 1.0, %v6915_v46 }
 0xc57   : > { %6916 = vrcp.f32 %v5459_v28  ;;  %v5472_v8 = vand.u32 2147483648, %v5459_v28  ;;  %v5470_v30 = vand.u32 2147483647, %v5459_v28  ;;  %vm5466_vm13 = vweird.f32 %v5459_v28 }
 0xc58   : > { %6918 = vrcp.f32 %v5460_v32  ;;  %v5487_v6 = vand.u32 2147483648, %v5460_v32  ;;  %v5485_v17 = vand.u32 2147483647, %v5460_v32  ;;  %vm5481_vm15 = vweird.f32 %v5460_v32 }
 0xc59   : > { %v5473_v47 = vor.u32 1.1754944e-38, %v5472_v8  ;;  %vm5471_vm1 = vcmp.eq.f32.partialorder %v5470_v30, 8.507059e+37 }
 0xc5a   : > { %v5488_v62 = vor.u32 1.1754944e-38, %v5487_v6  ;;  %vm5486_vm4 = vcmp.eq.f32.partialorder %v5485_v17, 8.507059e+37 }
 0xc5d   : > { %v6917_v19 = vpop.eup %6916 }
 0xc5e   : > { %v6919_v25 = vpop.eup %6918  ;;  %v5462_v0 = vmul.f32 %v6917_v19, %v5459_v28  ;;  %s6443_s14 = spop %6442  ;;  %vm5467_vm6 = vweird.f32 %v6917_v19 }
 0xc5f   : > { %v5477_v24 = vmul.f32 %v6919_v25, %v5460_v32  ;;  %v5745_v37 = vstv %s6443_s14  ;;  %vm5482_vm3 = vweird.f32 %v6919_v25  ;;  %vm5468_vm14 = vmor %vm5466_vm13, %vm5467_vm6 }
 0xc60   : > { %v5463_v52 = vsub.f32 1.0, %v5462_v0  ;;  %v5746_v48 = vmul.f32 %v5745_v37, %v11924_v59  ;;  %vm5483_vm2 = vmor %vm5481_vm15, %vm5482_vm3 }
 0xc61   : > { %v5478_v12 = vsub.f32 1.0, %v5477_v24 }
 0xc62   : > { %v5464_v54 = vmul.f32 %v6917_v19, %v5463_v52  ;;  %v5748_v53 = vmul.f32 %v5747_v3, %v5746_v48  ;;  %5756 = vperm.xlu1 %6658, %v5746_v48  }
 0xc63   : > { %v5479_v56 = vmul.f32 %v6919_v25, %v5478_v12 }
 0xc64   : > { %v5465_v36 = vadd.f32 %v6917_v19, %v5464_v54  ;;  %5750 = vrot.lane.b32.xlu0 %v5748_v53, %s6989_s25 }
 0xc65   : > { %v5480_v33 = vadd.f32 %v6919_v25, %v5479_v56 }
 0xc66   : > { %v5469_v44 = vsel %vm5468_vm14, %v6917_v19, %v5465_v36 }
 0xc67   : > { %v5474_v21 = vsel %vm5471_vm1, %v5473_v47, %v5469_v44  ;;  %v5484_v34 = vsel %vm5483_vm2, %v6919_v25, %v5480_v33 }
 0xc68   : > { %v5489_v14 = vsel %vm5486_vm4, %v5488_v62, %v5484_v34  ;;  %v5491_v60 = vmul.f32 %v5474_v21, %v5451_v7 }
 0xc69   : > { %v5492_v13 = vmul.f32 %v5489_v14, %v5452_v38 }
 0xc6a   : > { %5493 = vst [vmem:[%s11833_s19 + $0x40] sm:$0xff] %v5491_v60 }
 0xc6b   : > { %5494 = vst [vmem:[%s11833_s19 + $0x48] sm:$0xff] %v5492_v13 }
 0xc86   : > { %v5652_v37 = vpop.permute.xlu1 %5651 }
 0xc87   : > { %v5654_v3 = vmul.f32 %v5652_v37, %v11730_v43  ;;  %v5655_v8 = vmul.f32 %v5652_v37, %v11727_v41 }
 0xc88   : > { %v5646_v2 = vpop.permute.xlu0 %5645 }
 0xc89   : > { %v5648_v4 = vsub.f32 %v11906_v55, %v5646_v2 }
 0xc8b   : > { %5658 = vperm.xlu2 %6656, %v5648_v4  }
 0xc97   : > { %v5554_v29 = vpop.permute.xlu2 %5553 }
 0xc98   : > { %v5556_v26 = vadd.f32 %v5554_v29, %v5549_v16  ;;  %v5557_v58 = vadd.f32 %v5554_v29, %v5550_v50 }
 0xc9a   : > { %v6306_v11 = vmul.f32 -1.442695, %v5556_v26  ;;  %v6307_v18 = vmul.f32 -1.442695, %v5557_v58 }
 0xc9c   : > { %6920 = vpow2.f32 %v6306_v11 }
 0xc9d   : > { %6922 = vpow2.f32 %v6307_v18 }
 0xca2   : > { %v6921_v51 = vpop.eup %6920 }
 0xca3   : > { %v6923_v40 = vpop.eup %6922  ;;  %v5564_v20 = vadd.f32 1.0, %v6921_v51 }
 0xca4   : > { %v5565_v9 = vadd.f32 1.0, %v6923_v40 }
 0xca5   : > { %6924 = vrcp.f32 %v5564_v20  ;;  %v5577_v1 = vand.u32 2147483648, %v5564_v20  ;;  %v5575_v23 = vand.u32 2147483647, %v5564_v20  ;;  %vm5571_vm8 = vweird.f32 %v5564_v20 }
 0xca6   : > { %6926 = vrcp.f32 %v5565_v9  ;;  %v5592_v61 = vand.u32 2147483648, %v5565_v9  ;;  %v5590_v7 = vand.u32 2147483647, %v5565_v9  ;;  %vm5586_vm10 = vweird.f32 %v5565_v9 }
 0xca7   : > { %v5578_v22 = vor.u32 1.1754944e-38, %v5577_v1  ;;  %vm5576_vm11 = vcmp.eq.f32.partialorder %v5575_v23, 8.507059e+37 }
 0xca8   : > { %v5593_v46 = vor.u32 1.1754944e-38, %v5592_v61  ;;  %vm5591_vm0 = vcmp.eq.f32.partialorder %v5590_v7, 8.507059e+37 }
 0xcab   : > { %v6925_v55 = vpop.eup %6924 }
 0xcac   : > { %v6927_v45 = vpop.eup %6926  ;;  %v5567_v27 = vmul.f32 %v6925_v55, %v5564_v20  ;;  %vm5572_vm5 = vweird.f32 %v6925_v55 }
 0xcad   : > { %v5582_v15 = vmul.f32 %v6927_v45, %v5565_v9  ;;  %vm5587_vm7 = vweird.f32 %v6927_v45  ;;  %vm5573_vm9 = vmor %vm5571_vm8, %vm5572_vm5 }
 0xcae   : > { %v5568_v5 = vsub.f32 1.0, %v5567_v27  ;;  %vm5588_vm12 = vmor %vm5586_vm10, %vm5587_vm7 }
 0xcaf   : > { %v5583_v35 = vsub.f32 1.0, %v5582_v15 }
 0xcb0   : > { %v5569_v63 = vmul.f32 %v6925_v55, %v5568_v5 }
 0xcb1   : > { %v5584_v42 = vmul.f32 %v6927_v45, %v5583_v35 }
 0xcb2   : > { %v5570_v38 = vadd.f32 %v6925_v55, %v5569_v63 }
 0xcb3   : > { %v5585_v57 = vadd.f32 %v6927_v45, %v5584_v42 }
 0xcb4   : > { %v5574_v31 = vsel %vm5573_vm9, %v6925_v55, %v5570_v38 }
 0xcb5   : > { %v5579_v28 = vsel %vm5576_vm11, %v5578_v22, %v5574_v31  ;;  %v5589_v32 = vsel %vm5588_vm12, %v6927_v45, %v5585_v57 }
 0xcb6   : > { %v5594_v19 = vsel %vm5591_vm0, %v5593_v46, %v5589_v32  ;;  %v5596_v25 = vmul.f32 %v5579_v28, %v5556_v26 }
 0xcb7   : > { %v5597_v0 = vmul.f32 %v5594_v19, %v5557_v58 }
 0xcb8   : > { %5598 = vst [vmem:[%s11833_s19 + $0x50] sm:$0xff] %v5596_v25 }
 0xcb9   : > { %5599 = vst [vmem:[%s11833_s19 + $0x58] sm:$0xff] %v5597_v0 }
 0xcd4   : > { %v5757_v51 = vpop.permute.xlu1 %5756 }
 0xcd5   : > { %v5759_v40 = vmul.f32 %v5757_v51, %v11742_v39  ;;  %v5760_v20 = vmul.f32 %v5757_v51, %v11739_v10 }
 0xcd6   : > { %v5751_v24 = vpop.permute.xlu0 %5750 }
 0xcd7   : > { %v5753_v52 = vsub.f32 %v11924_v59, %v5751_v24 }
 0xcd9   : > { %5763 = vperm.xlu2 %6656, %v5753_v52  }
 0xce5   : > { %v5659_v12 = vpop.permute.xlu2 %5658 }
 0xce6   : > { %v5661_v48 = vadd.f32 %v5659_v12, %v5654_v3  ;;  %v5662_v54 = vadd.f32 %v5659_v12, %v5655_v8 }
 0xce8   : > { %v6308_v30 = vmul.f32 -1.442695, %v5661_v48  ;;  %v6309_v6 = vmul.f32 -1.442695, %v5662_v54 }
 0xcea   : > { %6928 = vpow2.f32 %v6308_v30 }
 0xceb   : > { %6930 = vpow2.f32 %v6309_v6 }
 0xcf0   : > { %v6929_v56 = vpop.eup %6928 }
 0xcf1   : > { %v6931_v17 = vpop.eup %6930  ;;  %v5669_v53 = vadd.f32 1.0, %v6929_v56 }
 0xcf2   : > { %v5670_v36 = vadd.f32 1.0, %v6931_v17 }
 0xcf3   : > { %6932 = vrcp.f32 %v5669_v53  ;;  %v5682_v62 = vand.u32 2147483648, %v5669_v53  ;;  %v5680_v34 = vand.u32 2147483647, %v5669_v53  ;;  %vm5676_vm13 = vweird.f32 %v5669_v53 }
 0xcf4   : > { %6934 = vrcp.f32 %v5670_v36  ;;  %v5697_v14 = vand.u32 2147483648, %v5670_v36  ;;  %v5695_v13 = vand.u32 2147483647, %v5670_v36  ;;  %vm5691_vm15 = vweird.f32 %v5670_v36 }
 0xcf5   : > { %v5683_v4 = vor.u32 1.1754944e-38, %v5682_v62  ;;  %vm5681_vm1 = vcmp.eq.f32.partialorder %v5680_v34, 8.507059e+37 }
 0xcf6   : > { %v5698_v50 = vor.u32 1.1754944e-38, %v5697_v14  ;;  %vm5696_vm4 = vcmp.eq.f32.partialorder %v5695_v13, 8.507059e+37 }
 0xcf9   : > { %v6933_v59 = vpop.eup %6932 }
 0xcfa   : > { %v6935_v47 = vpop.eup %6934  ;;  %v5672_v33 = vmul.f32 %v6933_v59, %v5669_v53  ;;  %vm5677_vm6 = vweird.f32 %v6933_v59 }
 0xcfb   : > { %v5687_v44 = vmul.f32 %v6935_v47, %v5670_v36  ;;  %vm5692_vm3 = vweird.f32 %v6935_v47  ;;  %vm5678_vm14 = vmor %vm5676_vm13, %vm5677_vm6 }
 0xcfc   : > { %v5673_v43 = vsub.f32 1.0, %v5672_v33  ;;  %vm5693_vm2 = vmor %vm5691_vm15, %vm5692_vm3 }
 0xcfd   : > { %v5688_v41 = vsub.f32 1.0, %v5687_v44 }
 0xcfe   : > { %v5674_v21 = vmul.f32 %v6933_v59, %v5673_v43 }
 0xcff   : > { %v5689_v60 = vmul.f32 %v6935_v47, %v5688_v41 }
 0xd00   : > { %v5675_v2 = vadd.f32 %v6933_v59, %v5674_v21 }
 0xd01   : > { %v5690_v49 = vadd.f32 %v6935_v47, %v5689_v60 }
 0xd02   : > { %v5679_v16 = vsel %vm5678_vm14, %v6933_v59, %v5675_v2 }
 0xd03   : > { %v5684_v29 = vsel %vm5681_vm1, %v5683_v4, %v5679_v16  ;;  %v5694_v26 = vsel %vm5693_vm2, %v6935_v47, %v5690_v49 }
 0xd04   : > { %v5699_v58 = vsel %vm5696_vm4, %v5698_v50, %v5694_v26  ;;  %v5701_v11 = vmul.f32 %v5684_v29, %v5661_v48 }
 0xd05   : > { %v5702_v18 = vmul.f32 %v5699_v58, %v5662_v54 }
 0xd06   : > { %5703 = vst [vmem:[%s11833_s19 + $0x60] sm:$0xff] %v5701_v11 }
 0xd07   : > { %5704 = vst [vmem:[%s11833_s19 + $0x68] sm:$0xff] %v5702_v18 }
 0xd33   : > { %v5764_v9 = vpop.permute.xlu2 %5763 }
 0xd34   : > { %v5766_v55 = vadd.f32 %v5764_v9, %v5759_v40  ;;  %v5767_v45 = vadd.f32 %v5764_v9, %v5760_v20 }
 0xd36   : > { %v6310_v27 = vmul.f32 -1.442695, %v5766_v55  ;;  %v6311_v15 = vmul.f32 -1.442695, %v5767_v45 }
 0xd38   : > { %6936 = vpow2.f32 %v6310_v27 }
 0xd39   : > { %6938 = vpow2.f32 %v6311_v15 }
 0xd3e   : > { %v6937_v5 = vpop.eup %6936 }
 0xd3f   : > { %v6939_v1 = vpop.eup %6938  ;;  %v5774_v35 = vadd.f32 1.0, %v6937_v5 }
 0xd40   : > { %v5775_v63 = vadd.f32 1.0, %v6939_v1 }
 0xd41   : > { %6940 = vrcp.f32 %v5774_v35  ;;  %v5787_v38 = vand.u32 2147483648, %v5774_v35  ;;  %v5785_v57 = vand.u32 2147483647, %v5774_v35  ;;  %vm5781_vm8 = vweird.f32 %v5774_v35 }
 0xd42   : > { %6942 = vrcp.f32 %v5775_v63  ;;  %v5802_v31 = vand.u32 2147483648, %v5775_v63  ;;  %v5800_v28 = vand.u32 2147483647, %v5775_v63  ;;  %vm5796_vm10 = vweird.f32 %v5775_v63 }
 0xd43   : > { %v5788_v19 = vor.u32 1.1754944e-38, %v5787_v38  ;;  %vm5786_vm11 = vcmp.eq.f32.partialorder %v5785_v57, 8.507059e+37 }
 0xd44   : > { %v5803_v24 = vor.u32 1.1754944e-38, %v5802_v31  ;;  %vm5801_vm0 = vcmp.eq.f32.partialorder %v5800_v28, 8.507059e+37 }
 0xd47   : > { %v6941_v23 = vpop.eup %6940 }
 0xd48   : > { %v6943_v61 = vpop.eup %6942  ;;  %v5777_v42 = vmul.f32 %v6941_v23, %v5774_v35  ;;  %vm5782_vm5 = vweird.f32 %v6941_v23 }
 0xd49   : > { %v5792_v7 = vmul.f32 %v6943_v61, %v5775_v63  ;;  %vm5797_vm7 = vweird.f32 %v6943_v61  ;;  %vm5783_vm9 = vmor %vm5781_vm8, %vm5782_vm5 }
 0xd4a   : > { %v5778_v39 = vsub.f32 1.0, %v5777_v42  ;;  %vm5798_vm12 = vmor %vm5796_vm10, %vm5797_vm7 }
 0xd4b   : > { %v5793_v10 = vsub.f32 1.0, %v5792_v7 }
 0xd4c   : > { %v5779_v22 = vmul.f32 %v6941_v23, %v5778_v39 }
 0xd4d   : > { %v5794_v46 = vmul.f32 %v6943_v61, %v5793_v10 }
 0xd4e   : > { %v5780_v32 = vadd.f32 %v6941_v23, %v5779_v22 }
 0xd4f   : > { %v5795_v25 = vadd.f32 %v6943_v61, %v5794_v46 }
 0xd50   : > { %v5784_v0 = vsel %vm5783_vm9, %v6941_v23, %v5780_v32 }
 0xd51   : > { %v5789_v52 = vsel %vm5786_vm11, %v5788_v19, %v5784_v0  ;;  %v5799_v37 = vsel %vm5798_vm12, %v6943_v61, %v5795_v25 }
 0xd52   : > { %v5804_v3 = vsel %vm5801_vm0, %v5803_v24, %v5799_v37  ;;  %v5806_v8 = vmul.f32 %v5789_v52, %v5766_v55 }
 0xd53   : > { %v5807_v12 = vmul.f32 %v5804_v3, %v5767_v45 }
 0xd54   : > { %5808 = vst [vmem:[%s11833_s19 + $0x70] sm:$0xff] %v5806_v8 }
 0xd55   : > { %5809 = vst [vmem:[%s11833_s19 + $0x78] sm:$0xff] %v5807_v12 }
 0xd56 PF: > { %s18_s27 = sadd.s32 1, %s6978_s27  }
 0xd57   : > { %p15_p4 = scmp.ge.s32.totalorder %s18_s27, 4  }
 0xd59   :  { %17 = sbr.rel (!%p15_p4) target bundleno = 1 (0x1), region = 105 }

</bundles_post_ra>
